<compile_context>
chip_gen: v6e
topology: v6e:2x2x1
jax: 0.10.0
libtpu: 0.0.40
codegen_flags: <defaults>
</compile_context>

<pallas_src>
import jax
import jax.numpy as jnp
from jax.experimental import pallas as pl
from jax.experimental.pallas import tpu as pltpu

# ----------------------------- model config (small, Virchow-style) ----------
BATCH = 4
BBLK = 2                     # images per grid step (BATCH % BBLK == 0)
IN_CH = 3
IMG = 16
PATCH = 4
EMBED = 32
HEADS = 4
HEAD_DIM = EMBED // HEADS
DEPTH = 2
MLP_PACKED = 64              # SwiGLUPacked fc1 output (= 2 * gated hidden)
MLP_HALF = MLP_PACKED // 2
NUM_PATCHES = (IMG // PATCH) ** 2
SEQ = NUM_PATCHES + 1        # 17 tokens (cls + patches)
S_PAD = 24                   # 8-aligned padded sequence length per image
PATCH_DIM = IN_CH * PATCH * PATCH
LS_INIT = 1e-5               # LayerScale init (Virchow uses init_values=1e-5)
LN_EPS = 1e-6

PARAM_ORDER = (
    "tokadd", "patch_w",
    "ln1_g", "ln1_b",
    "q_w", "q_b", "k_w", "k_b", "v_w", "v_b",
    "proj_w", "proj_b", "ls1",
    "ln2_g", "ln2_b",
    "fc1a_w", "fc1a_b", "fc1b_w", "fc1b_b",
    "fc2_w", "fc2_b", "ls2",
    "norm_g", "norm_b",
)


# ----------------------------- fused forward kernel --------------------------
def virchow_kernel(patches_ref, tokadd_ref, patch_w_ref,
                   ln1_g_ref, ln1_b_ref,
                   q_w_ref, q_b_ref, k_w_ref, k_b_ref, v_w_ref, v_b_ref,
                   proj_w_ref, proj_b_ref, ls1_ref,
                   ln2_g_ref, ln2_b_ref,
                   fc1a_w_ref, fc1a_b_ref, fc1b_w_ref, fc1b_b_ref,
                   fc2_w_ref, fc2_b_ref, ls2_ref,
                   norm_g_ref, norm_b_ref, out_ref):
    """One grid step == BBLK images. Everything stays in VMEM / vregs."""
    f32 = jnp.float32
    bf16 = jnp.bfloat16

    def ln(x, g, b):
        # LayerNorm statistics in f32 (per row; padded rows are harmless).
        mu = jnp.mean(x, axis=-1, keepdims=True)
        var = jnp.mean(jnp.square(x - mu), axis=-1, keepdims=True)
        return (x - mu) * jax.lax.rsqrt(var + LN_EPS) * g + b

    def mm(x, w_bf16, b_f32=None):
        # bf16 operands on the MXU, f32 accumulation, f32 bias epilogue.
        y = jnp.dot(x.astype(bf16), w_bf16, preferred_element_type=f32)
        return y if b_f32 is None else y + b_f32

    # masks, computed once per grid step (hoisted out of the layer loop)
    key_bias = jnp.where(
        jax.lax.broadcasted_iota(jnp.int32, (1, S_PAD), 1) < SEQ,
        0.0, -1e30).astype(f32)                               # [1, S_PAD]
    row_mask = jnp.where(
        jax.lax.broadcasted_iota(jnp.int32, (S_PAD, 1), 0) < SEQ,
        1.0, 0.0).astype(f32)                                 # [S_PAD, 1]

    # ---- patch embed: one matmul produces the full aligned token slab -------
    # rows per image: [cls-slot, 16 patch rows, 7 zero-pad rows]; cls+pos and
    # patch_bias+pos were pre-folded into tokadd at parameter-prep time.
    tok = mm(patches_ref[...], patch_w_ref[...]) + tokadd_ref[...]   # [R, D] f32

    # ---- transformer blocks (statically unrolled over DEPTH) ----------------
    for l in range(DEPTH):
        # ---------------- attention branch ----------------
        xn = ln(tok, ln1_g_ref[l], ln1_b_ref[l])
        xb = xn.astype(bf16)
        attn_chunks = [jnp.zeros((S_PAD, EMBED), f32) for _ in range(BBLK)]
        for h in range(HEADS):
            # per-head q/k/v on the stacked rows; q-scale folded into q_w/q_b.
            q = jnp.dot(xb, q_w_ref[l, h], preferred_element_type=f32) + q_b_ref[l, h]
            k = jnp.dot(xb, k_w_ref[l, h], preferred_element_type=f32) + k_b_ref[l, h]
            v = jnp.dot(xb, v_w_ref[l, h], preferred_element_type=f32) + v_b_ref[l, h]
            for i in range(BBLK):
                r0 = i * S_PAD
                qi = q[r0:r0 + S_PAD].astype(bf16)
                ki = k[r0:r0 + S_PAD].astype(bf16)
                vi = v[r0:r0 + S_PAD].astype(bf16)
                # contract head dims directly (no k.T relayout)
                s = jax.lax.dot_general(
                    qi, ki, (((1,), (1,)), ((), ())),
                    preferred_element_type=f32)               # [S_PAD, S_PAD]
                s = s + key_bias                              # mask padded keys
                m = jnp.max(s, axis=-1, keepdims=True)
                p = jnp.exp(s - m)
                inv = pl.reciprocal(jnp.sum(p, axis=-1, keepdims=True),
                                    approx=True)
                o = jnp.dot(p.astype(bf16), vi,
                            preferred_element_type=f32) * inv  # [S_PAD, Dh]
                # per-head output projection accumulated (no head concat)
                attn_chunks[i] = attn_chunks[i] + jnp.dot(
                    o.astype(bf16), proj_w_ref[l, h],
                    preferred_element_type=f32)
        attn = jnp.concatenate(attn_chunks, axis=0) + proj_b_ref[l]   # [R, D]
        tok = tok + attn * ls1_ref[l]                          # LayerScale + residual

        # ---------------- SwiGLUPacked MLP branch ----------------
        xn = ln(tok, ln2_g_ref[l], ln2_b_ref[l])
        x1 = mm(xn, fc1a_w_ref[l], fc1a_b_ref[l])              # [R, MLP_HALF]
        x2 = mm(xn, fc1b_w_ref[l], fc1b_b_ref[l])              # [R, MLP_HALF]
        gated = x1 * jax.nn.sigmoid(x1) * x2                   # SiLU(x1) * x2
        tok = tok + mm(gated, fc2_w_ref[l], fc2_b_ref[l]) * ls2_ref[l]

    # ---- final LayerNorm + pooling (cls token ++ mean of patch tokens) ------
    xn = ln(tok, norm_g_ref[...], norm_b_ref[...])             # [R, D]
    for i in range(BBLK):
        r0 = i * S_PAD
        xi = xn[r0:r0 + S_PAD]                                 # aligned slab
        cls_row = xi[0:1, :]
        total = jnp.sum(xi * row_mask, axis=0, keepdims=True)  # masked row sum
        mean_row = (total - cls_row) * (1.0 / NUM_PATCHES)
        out_ref[i] = jnp.concatenate([cls_row, mean_row], axis=0)  # [2, D]


# ----------------------------- wrapper ---------------------------------------
def _const_spec(shape):
    """Full-array block, constant index -> DMA'd once for the whole grid."""
    n = len(shape)
    return pl.BlockSpec(shape, lambda i, _n=n: (0,) * _n)


def virchow_forward(params, x):
    # x: [B, C, H, W] (NCHW, like the PyTorch module)
    b = x.shape[0]
    assert b % BBLK == 0
    gh, gw = IMG // PATCH, IMG // PATCH
    # im2col for the patch-embed conv (kernel = stride = PATCH); (C, Ph, Pw)
    # flattening order must match the permuted Conv2d checkpoint weight.
    # TODO(synk): checkpoint loading / timm preprocessing transforms are
    # host-side; the im2col relayout is layout plumbing done with XLA here.
    patches = x.reshape(b, IN_CH, gh, PATCH, gw, PATCH)
    patches = patches.transpose(0, 2, 4, 1, 3, 5).reshape(b, NUM_PATCHES, PATCH_DIM)
    # Pad each image to an 8-aligned S_PAD-row slab: row 0 (cls slot) and rows
    # SEQ..S_PAD-1 are zeros, so the in-kernel matmul yields zeros there and
    # tokadd supplies cls+pos / patch_bias+pos.
    patches_pad = jnp.zeros((b, S_PAD, PATCH_DIM), x.dtype)
    patches_pad = patches_pad.at[:, 1:SEQ, :].set(patches)
    patches_flat = patches_pad.reshape(b * S_PAD, PATCH_DIM)

    args = [params[k] for k in PARAM_ORDER]
    in_specs = [pl.BlockSpec((BBLK * S_PAD, PATCH_DIM), lambda i: (i, 0))]
    in_specs += [_const_spec(a.shape) for a in args]

    out = pl.pallas_call(
        virchow_kernel,
        out_shape=jax.ShapeDtypeStruct((b, 2, EMBED), jnp.float32),
        grid=(b // BBLK,),
        in_specs=in_specs,
        out_specs=pl.BlockSpec((BBLK, 2, EMBED), lambda i: (i, 0, 0)),
        compiler_params=pltpu.CompilerParams(
            dimension_semantics=("parallel",)),
    )(patches_flat, *args)
    return out.reshape(b, 2 * EMBED)


# ----------------------------- parameter init --------------------------------
def init_params(key):
    keys = jax.random.split(key, 9)

    def nrm(k, shape, scale=0.02):
        return scale * jax.random.normal(k, shape, jnp.float32)

    scale = HEAD_DIM ** -0.5

    # ---- raw "checkpoint-like" tensors -------------------------------------
    patch_w = nrm(keys[0], (PATCH_DIM, EMBED))           # conv -> im2col matmul
    patch_b = jnp.zeros((EMBED,), jnp.float32)
    cls = nrm(keys[1], (1, EMBED))
    pos = nrm(keys[2], (SEQ, EMBED))
    qkv_w = nrm(keys[3], (DEPTH, EMBED, 3 * EMBED))      # x @ W layout
    qkv_b = 0.01 * jax.random.normal(keys[4], (DEPTH, 3 * EMBED), jnp.float32)
    proj_w = nrm(keys[5], (DEPTH, EMBED, EMBED))
    proj_b = jnp.zeros((DEPTH, EMBED), jnp.float32)
    fc1_w = nrm(keys[6], (DEPTH, EMBED, MLP_PACKED))
    fc1_b = 0.01 * jax.random.normal(keys[7], (DEPTH, MLP_PACKED), jnp.float32)
    fc2_w = nrm(keys[8], (DEPTH, MLP_HALF, EMBED))
    fc2_b = jnp.zeros((DEPTH, EMBED), jnp.float32)

    # ---- kernel-ready layouts (one-time parameter transform) ----------------
    def per_head_w(w):   # [DEPTH, EMBED, EMBED] -> [DEPTH, HEADS, EMBED, HEAD_DIM]
        return w.reshape(DEPTH, EMBED, HEADS, HEAD_DIM).transpose(0, 2, 1, 3)

    def per_head_b(b_):  # [DEPTH, EMBED] -> [DEPTH, HEADS, 1, HEAD_DIM]
        return b_.reshape(DEPTH, HEADS, 1, HEAD_DIM)

    q_w = per_head_w(qkv_w[:, :, :EMBED]) * scale        # q-scale folded in
    k_w = per_head_w(qkv_w[:, :, EMBED:2 * EMBED])
    v_w = per_head_w(qkv_w[:, :, 2 * EMBED:])
    q_b = per_head_b(qkv_b[:, :EMBED]) * scale
    k_b = per_head_b(qkv_b[:, EMBED:2 * EMBED])
    v_b = per_head_b(qkv_b[:, 2 * EMBED:])
    # output projection, per head: [DEPTH, HEADS, HEAD_DIM, EMBED]
    proj_w_h = proj_w.reshape(DEPTH, HEADS, HEAD_DIM, EMBED)

    # tokadd: per-image additive slab (cls+pos, patch_bias+pos, zero padding),
    # tiled BBLK times so the kernel adds it to the stacked token slab.
    tokadd_img = jnp.zeros((S_PAD, EMBED), jnp.float32)
    tokadd_img = tokadd_img.at[0].set(cls[0] + pos[0])
    tokadd_img = tokadd_img.at[1:SEQ].set(patch_b[None, :] + pos[1:SEQ])
    tokadd = jnp.tile(tokadd_img, (BBLK, 1))              # [BBLK*S_PAD, EMBED]

    params = {
        # matmul weights in bf16 (MXU operands); everything else f32.
        "tokadd": tokadd,
        "patch_w": patch_w.astype(jnp.bfloat16),
        "ln1_g": jnp.ones((DEPTH, 1, EMBED), jnp.float32),
        "ln1_b": jnp.zeros((DEPTH, 1, EMBED), jnp.float32),
        "q_w": q_w.astype(jnp.bfloat16), "q_b": q_b,
        "k_w": k_w.astype(jnp.bfloat16), "k_b": k_b,
        "v_w": v_w.astype(jnp.bfloat16), "v_b": v_b,
        "proj_w": proj_w_h.astype(jnp.bfloat16),
        "proj_b": proj_b.reshape(DEPTH, 1, EMBED),
        "ls1": LS_INIT * jnp.ones((DEPTH, 1, EMBED), jnp.float32),
        "ln2_g": jnp.ones((DEPTH, 1, EMBED), jnp.float32),
        "ln2_b": jnp.zeros((DEPTH, 1, EMBED), jnp.float32),
        "fc1a_w": fc1_w[:, :, :MLP_HALF].astype(jnp.bfloat16),
        "fc1a_b": fc1_b[:, :MLP_HALF].reshape(DEPTH, 1, MLP_HALF),
        "fc1b_w": fc1_w[:, :, MLP_HALF:].astype(jnp.bfloat16),
        "fc1b_b": fc1_b[:, MLP_HALF:].reshape(DEPTH, 1, MLP_HALF),
        "fc2_w": fc2_w.astype(jnp.bfloat16),
        "fc2_b": fc2_b.reshape(DEPTH, 1, EMBED),
        "ls2": LS_INIT * jnp.ones((DEPTH, 1, EMBED), jnp.float32),
        "norm_g": jnp.ones((1, EMBED), jnp.float32),
        "norm_b": jnp.zeros((1, EMBED), jnp.float32),
    }
    return params


if __name__ == "__main__":
    key = jax.random.PRNGKey(0)
    pkey, xkey = jax.random.split(key)
    params = init_params(pkey)
    x = jax.random.normal(xkey, (BATCH, IN_CH, IMG, IMG), jnp.float32)

    emb = jax.jit(virchow_forward)(params, x)
    emb = jax.block_until_ready(emb)

    assert emb.shape == (BATCH, 2 * EMBED), emb.shape
    assert bool(jnp.all(jnp.isfinite(emb)))
    print("KERNEL_OK")
</pallas_src>

<mosaic_0001>
module attributes {stable_mosaic.version = 11 : i64} {
  func.func @virchow_kernel(%arg0: i32, %arg1: memref<48x48xf32, #tpu.memory_space<vmem>>, %arg2: memref<48x32xf32, #tpu.memory_space<vmem>>, %arg3: memref<48x32xbf16, #tpu.memory_space<vmem>>, %arg4: memref<2x1x32xf32, #tpu.memory_space<vmem>>, %arg5: memref<2x1x32xf32, #tpu.memory_space<vmem>>, %arg6: memref<2x4x32x8xbf16, #tpu.memory_space<vmem>>, %arg7: memref<2x4x1x8xf32, #tpu.memory_space<vmem>>, %arg8: memref<2x4x32x8xbf16, #tpu.memory_space<vmem>>, %arg9: memref<2x4x1x8xf32, #tpu.memory_space<vmem>>, %arg10: memref<2x4x32x8xbf16, #tpu.memory_space<vmem>>, %arg11: memref<2x4x1x8xf32, #tpu.memory_space<vmem>>, %arg12: memref<2x4x8x32xbf16, #tpu.memory_space<vmem>>, %arg13: memref<2x1x32xf32, #tpu.memory_space<vmem>>, %arg14: memref<2x1x32xf32, #tpu.memory_space<vmem>>, %arg15: memref<2x1x32xf32, #tpu.memory_space<vmem>>, %arg16: memref<2x1x32xf32, #tpu.memory_space<vmem>>, %arg17: memref<2x32x32xbf16, #tpu.memory_space<vmem>>, %arg18: memref<2x1x32xf32, #tpu.memory_space<vmem>>, %arg19: memref<2x32x32xbf16, #tpu.memory_space<vmem>>, %arg20: memref<2x1x32xf32, #tpu.memory_space<vmem>>, %arg21: memref<2x32x32xbf16, #tpu.memory_space<vmem>>, %arg22: memref<2x1x32xf32, #tpu.memory_space<vmem>>, %arg23: memref<2x1x32xf32, #tpu.memory_space<vmem>>, %arg24: memref<1x32xf32, #tpu.memory_space<vmem>>, %arg25: memref<1x32xf32, #tpu.memory_space<vmem>>, %arg26: memref<2x2x32xf32, #tpu.memory_space<vmem>>) attributes {dimension_semantics = [#tpu.dimension_semantics<parallel>], iteration_bounds = array<i64: 2>, scalar_prefetch = 0 : i64, scratch_operands = 0 : i64, tpu.core_type = #tpu.core_type<tc>, window_params = [{transform_indices = @transform_0, window_bounds = array<i64: 48, 48>}, {pipeline_mode = #tpu.pipeline_mode<synchronous>, transform_indices = @transform_1, window_bounds = array<i64: 48, 32>}, {pipeline_mode = #tpu.pipeline_mode<synchronous>, transform_indices = @transform_2, window_bounds = array<i64: 48, 32>}, {pipeline_mode = #tpu.pipeline_mode<synchronous>, transform_indices = @transform_3, window_bounds = array<i64: 2, 1, 32>}, {pipeline_mode = #tpu.pipeline_mode<synchronous>, transform_indices = @transform_4, window_bounds = array<i64: 2, 1, 32>}, {pipeline_mode = #tpu.pipeline_mode<synchronous>, transform_indices = @transform_5, window_bounds = array<i64: 2, 4, 32, 8>}, {pipeline_mode = #tpu.pipeline_mode<synchronous>, transform_indices = @transform_6, window_bounds = array<i64: 2, 4, 1, 8>}, {pipeline_mode = #tpu.pipeline_mode<synchronous>, transform_indices = @transform_7, window_bounds = array<i64: 2, 4, 32, 8>}, {pipeline_mode = #tpu.pipeline_mode<synchronous>, transform_indices = @transform_8, window_bounds = array<i64: 2, 4, 1, 8>}, {pipeline_mode = #tpu.pipeline_mode<synchronous>, transform_indices = @transform_9, window_bounds = array<i64: 2, 4, 32, 8>}, {pipeline_mode = #tpu.pipeline_mode<synchronous>, transform_indices = @transform_10, window_bounds = array<i64: 2, 4, 1, 8>}, {pipeline_mode = #tpu.pipeline_mode<synchronous>, transform_indices = @transform_11, window_bounds = array<i64: 2, 4, 8, 32>}, {pipeline_mode = #tpu.pipeline_mode<synchronous>, transform_indices = @transform_12, window_bounds = array<i64: 2, 1, 32>}, {pipeline_mode = #tpu.pipeline_mode<synchronous>, transform_indices = @transform_13, window_bounds = array<i64: 2, 1, 32>}, {pipeline_mode = #tpu.pipeline_mode<synchronous>, transform_indices = @transform_14, window_bounds = array<i64: 2, 1, 32>}, {pipeline_mode = #tpu.pipeline_mode<synchronous>, transform_indices = @transform_15, window_bounds = array<i64: 2, 1, 32>}, {pipeline_mode = #tpu.pipeline_mode<synchronous>, transform_indices = @transform_16, window_bounds = array<i64: 2, 32, 32>}, {pipeline_mode = #tpu.pipeline_mode<synchronous>, transform_indices = @transform_17, window_bounds = array<i64: 2, 1, 32>}, {pipeline_mode = #tpu.pipeline_mode<synchronous>, transform_indices = @transform_18, window_bounds = array<i64: 2, 32, 32>}, {pipeline_mode = #tpu.pipeline_mode<synchronous>, transform_indices = @transform_19, window_bounds = array<i64: 2, 1, 32>}, {pipeline_mode = #tpu.pipeline_mode<synchronous>, transform_indices = @transform_20, window_bounds = array<i64: 2, 32, 32>}, {pipeline_mode = #tpu.pipeline_mode<synchronous>, transform_indices = @transform_21, window_bounds = array<i64: 2, 1, 32>}, {pipeline_mode = #tpu.pipeline_mode<synchronous>, transform_indices = @transform_22, window_bounds = array<i64: 2, 1, 32>}, {pipeline_mode = #tpu.pipeline_mode<synchronous>, transform_indices = @transform_23, window_bounds = array<i64: 1, 32>}, {pipeline_mode = #tpu.pipeline_mode<synchronous>, transform_indices = @transform_24, window_bounds = array<i64: 1, 32>}, {transform_indices = @transform_25, window_bounds = array<i64: 2, 2, 32>}]} {
    %0 = tpu.iota {dimensions = array<i32: 1>} : vector<1x24xi32>
    %c17_i32 = arith.constant 17 : i32
    %1 = vector.broadcast %c17_i32 : i32 to vector<1x24xi32>
    %2 = arith.cmpi slt, %0, %1 : vector<1x24xi32>
    %cst = arith.constant 0.000000e+00 : f32
    %cst_0 = arith.constant -1.000000e+30 : f32
    %3 = vector.broadcast %cst : f32 to vector<1x24xf32>
    %4 = vector.broadcast %cst_0 : f32 to vector<1x24xf32>
    %5 = arith.select %2, %3, %4 : vector<1x24xi1>, vector<1x24xf32>
    %6 = tpu.iota {dimensions = array<i32: 0>} : vector<24x1xi32>
    %c17_i32_1 = arith.constant 17 : i32
    %7 = vector.broadcast %c17_i32_1 : i32 to vector<24x1xi32>
    %8 = arith.cmpi slt, %6, %7 : vector<24x1xi32>
    %cst_2 = arith.constant 1.000000e+00 : f32
    %cst_3 = arith.constant 0.000000e+00 : f32
    %9 = vector.broadcast %cst_2 : f32 to vector<24x1xf32>
    %10 = vector.broadcast %cst_3 : f32 to vector<24x1xf32>
    %11 = arith.select %8, %9, %10 : vector<24x1xi1>, vector<24x1xf32>
    %c0 = arith.constant 0 : index
    %c0_4 = arith.constant 0 : index
    %12 = vector.load %arg1[%c0, %c0_4] : memref<48x48xf32, #tpu.memory_space<vmem>>, vector<48x48xf32>
    %c0_5 = arith.constant 0 : index
    %c0_6 = arith.constant 0 : index
    %13 = vector.load %arg3[%c0_5, %c0_6] : memref<48x32xbf16, #tpu.memory_space<vmem>>, vector<48x32xbf16>
    %14 = arith.truncf %12 : vector<48x48xf32> to vector<48x48xbf16>
    %cst_7 = arith.constant dense<0.000000e+00> : vector<48x32xf32>
    %15 = tpu.matmul %14, %13, %cst_7 {dimension_numbers = #tpu.dot_dimension_numbers<[1], [0], [0], [1], [0, 0, 1, 1], [], []>} : vector<48x48xbf16>, vector<48x32xbf16>, vector<48x32xf32> -> vector<48x32xf32>
    %c0_8 = arith.constant 0 : index
    %c0_9 = arith.constant 0 : index
    %16 = vector.load %arg2[%c0_8, %c0_9] : memref<48x32xf32, #tpu.memory_space<vmem>>, vector<48x32xf32>
    %17 = arith.addf %15, %16 : vector<48x32xf32>
    %c0_10 = arith.constant 0 : index
    %c0_11 = arith.constant 0 : index
    %c0_12 = arith.constant 0 : index
    %18 = vector.load %arg4[%c0_10, %c0_11, %c0_12] : memref<2x1x32xf32, #tpu.memory_space<vmem>>, vector<1x1x32xf32>
    %19 = vector.shape_cast %18 : vector<1x1x32xf32> to vector<1x32xf32>
    %c0_13 = arith.constant 0 : index
    %c0_14 = arith.constant 0 : index
    %c0_15 = arith.constant 0 : index
    %20 = vector.load %arg5[%c0_13, %c0_14, %c0_15] : memref<2x1x32xf32, #tpu.memory_space<vmem>>, vector<1x1x32xf32>
    %21 = vector.shape_cast %20 : vector<1x1x32xf32> to vector<1x32xf32>
    %cst_16 = arith.constant dense<0.000000e+00> : vector<48xf32>
    %22 = vector.multi_reduction <add>, %17, %cst_16 [1] : vector<48x32xf32> to vector<48xf32>
    %23 = vector.shape_cast %22 : vector<48xf32> to vector<48x1xf32>
    %cst_17 = arith.constant 3.200000e+01 : f32
    %24 = vector.broadcast %cst_17 : f32 to vector<48x1xf32>
    %25 = arith.divf %23, %24 : vector<48x1xf32>
    %26 = vector.broadcast %25 : vector<48x1xf32> to vector<48x32xf32>
    %27 = arith.subf %17, %26 : vector<48x32xf32>
    %28 = arith.mulf %27, %27 : vector<48x32xf32>
    %cst_18 = arith.constant dense<0.000000e+00> : vector<48xf32>
    %29 = vector.multi_reduction <add>, %28, %cst_18 [1] : vector<48x32xf32> to vector<48xf32>
    %30 = vector.shape_cast %29 : vector<48xf32> to vector<48x1xf32>
    %cst_19 = arith.constant 3.200000e+01 : f32
    %31 = vector.broadcast %cst_19 : f32 to vector<48x1xf32>
    %32 = arith.divf %30, %31 : vector<48x1xf32>
    %33 = vector.broadcast %25 : vector<48x1xf32> to vector<48x32xf32>
    %34 = arith.subf %17, %33 : vector<48x32xf32>
    %cst_20 = arith.constant 9.99999997E-7 : f32
    %35 = vector.broadcast %cst_20 : f32 to vector<48x1xf32>
    %36 = arith.addf %32, %35 : vector<48x1xf32>
    %37 = math.rsqrt %36 : vector<48x1xf32>
    %38 = vector.broadcast %37 : vector<48x1xf32> to vector<48x32xf32>
    %39 = arith.mulf %34, %38 : vector<48x32xf32>
    %40 = vector.broadcast %19 : vector<1x32xf32> to vector<48x32xf32>
    %41 = arith.mulf %39, %40 : vector<48x32xf32>
    %42 = vector.broadcast %21 : vector<1x32xf32> to vector<48x32xf32>
    %43 = arith.addf %41, %42 : vector<48x32xf32>
    %44 = arith.truncf %43 : vector<48x32xf32> to vector<48x32xbf16>
    %cst_21 = arith.constant 0.000000e+00 : f32
    %45 = vector.broadcast %cst_21 : f32 to vector<24x32xf32>
    %cst_22 = arith.constant 0.000000e+00 : f32
    %46 = vector.broadcast %cst_22 : f32 to vector<24x32xf32>
    %c0_23 = arith.constant 0 : index
    %c0_24 = arith.constant 0 : index
    %c0_25 = arith.constant 0 : index
    %c0_26 = arith.constant 0 : index
    %47 = vector.load %arg6[%c0_23, %c0_24, %c0_25, %c0_26] : memref<2x4x32x8xbf16, #tpu.memory_space<vmem>>, vector<1x1x32x8xbf16>
    %48 = vector.shape_cast %47 : vector<1x1x32x8xbf16> to vector<32x8xbf16>
    %cst_27 = arith.constant dense<0.000000e+00> : vector<48x8xf32>
    %49 = tpu.matmul %44, %48, %cst_27 {dimension_numbers = #tpu.dot_dimension_numbers<[1], [0], [0], [1], [0, 0, 1, 1], [], []>} : vector<48x32xbf16>, vector<32x8xbf16>, vector<48x8xf32> -> vector<48x8xf32>
    %c0_28 = arith.constant 0 : index
    %c0_29 = arith.constant 0 : index
    %c0_30 = arith.constant 0 : index
    %c0_31 = arith.constant 0 : index
    %50 = vector.load %arg7[%c0_28, %c0_29, %c0_30, %c0_31] : memref<2x4x1x8xf32, #tpu.memory_space<vmem>>, vector<1x1x1x8xf32>
    %51 = vector.shape_cast %50 : vector<1x1x1x8xf32> to vector<1x8xf32>
    %52 = vector.broadcast %51 : vector<1x8xf32> to vector<48x8xf32>
    %53 = arith.addf %49, %52 : vector<48x8xf32>
    %c0_32 = arith.constant 0 : index
    %c0_33 = arith.constant 0 : index
    %c0_34 = arith.constant 0 : index
    %c0_35 = arith.constant 0 : index
    %54 = vector.load %arg8[%c0_32, %c0_33, %c0_34, %c0_35] : memref<2x4x32x8xbf16, #tpu.memory_space<vmem>>, vector<1x1x32x8xbf16>
    %55 = vector.shape_cast %54 : vector<1x1x32x8xbf16> to vector<32x8xbf16>
    %cst_36 = arith.constant dense<0.000000e+00> : vector<48x8xf32>
    %56 = tpu.matmul %44, %55, %cst_36 {dimension_numbers = #tpu.dot_dimension_numbers<[1], [0], [0], [1], [0, 0, 1, 1], [], []>} : vector<48x32xbf16>, vector<32x8xbf16>, vector<48x8xf32> -> vector<48x8xf32>
    %c0_37 = arith.constant 0 : index
    %c0_38 = arith.constant 0 : index
    %c0_39 = arith.constant 0 : index
    %c0_40 = arith.constant 0 : index
    %57 = vector.load %arg9[%c0_37, %c0_38, %c0_39, %c0_40] : memref<2x4x1x8xf32, #tpu.memory_space<vmem>>, vector<1x1x1x8xf32>
    %58 = vector.shape_cast %57 : vector<1x1x1x8xf32> to vector<1x8xf32>
    %59 = vector.broadcast %58 : vector<1x8xf32> to vector<48x8xf32>
    %60 = arith.addf %56, %59 : vector<48x8xf32>
    %c0_41 = arith.constant 0 : index
    %c0_42 = arith.constant 0 : index
    %c0_43 = arith.constant 0 : index
    %c0_44 = arith.constant 0 : index
    %61 = vector.load %arg10[%c0_41, %c0_42, %c0_43, %c0_44] : memref<2x4x32x8xbf16, #tpu.memory_space<vmem>>, vector<1x1x32x8xbf16>
    %62 = vector.shape_cast %61 : vector<1x1x32x8xbf16> to vector<32x8xbf16>
    %cst_45 = arith.constant dense<0.000000e+00> : vector<48x8xf32>
    %63 = tpu.matmul %44, %62, %cst_45 {dimension_numbers = #tpu.dot_dimension_numbers<[1], [0], [0], [1], [0, 0, 1, 1], [], []>} : vector<48x32xbf16>, vector<32x8xbf16>, vector<48x8xf32> -> vector<48x8xf32>
    %c0_46 = arith.constant 0 : index
    %c0_47 = arith.constant 0 : index
    %c0_48 = arith.constant 0 : index
    %c0_49 = arith.constant 0 : index
    %64 = vector.load %arg11[%c0_46, %c0_47, %c0_48, %c0_49] : memref<2x4x1x8xf32, #tpu.memory_space<vmem>>, vector<1x1x1x8xf32>
    %65 = vector.shape_cast %64 : vector<1x1x1x8xf32> to vector<1x8xf32>
    %66 = vector.broadcast %65 : vector<1x8xf32> to vector<48x8xf32>
    %67 = arith.addf %63, %66 : vector<48x8xf32>
    %68 = vector.extract_strided_slice %53 {offsets = [0, 0], sizes = [24, 8], strides = [1, 1]} : vector<48x8xf32> to vector<24x8xf32>
    %69 = arith.truncf %68 : vector<24x8xf32> to vector<24x8xbf16>
    %70 = vector.extract_strided_slice %60 {offsets = [0, 0], sizes = [24, 8], strides = [1, 1]} : vector<48x8xf32> to vector<24x8xf32>
    %71 = arith.truncf %70 : vector<24x8xf32> to vector<24x8xbf16>
    %72 = vector.extract_strided_slice %67 {offsets = [0, 0], sizes = [24, 8], strides = [1, 1]} : vector<48x8xf32> to vector<24x8xf32>
    %73 = arith.truncf %72 : vector<24x8xf32> to vector<24x8xbf16>
    %cst_50 = arith.constant dense<0.000000e+00> : vector<24x24xf32>
    %74 = tpu.matmul %69, %71, %cst_50 {dimension_numbers = #tpu.dot_dimension_numbers<[1], [1], [0], [0], [0, 0, 1, 0], [], []>} : vector<24x8xbf16>, vector<24x8xbf16>, vector<24x24xf32> -> vector<24x24xf32>
    %75 = vector.broadcast %5 : vector<1x24xf32> to vector<24x24xf32>
    %76 = arith.addf %74, %75 : vector<24x24xf32>
    %cst_51 = arith.constant dense<0xFF800000> : vector<24xf32>
    %77 = vector.multi_reduction <maximumf>, %76, %cst_51 [1] : vector<24x24xf32> to vector<24xf32>
    %78 = vector.shape_cast %77 : vector<24xf32> to vector<24x1xf32>
    %79 = vector.broadcast %78 : vector<24x1xf32> to vector<24x24xf32>
    %80 = arith.subf %76, %79 : vector<24x24xf32>
    %81 = math.exp %80 : vector<24x24xf32>
    %cst_52 = arith.constant dense<0.000000e+00> : vector<24xf32>
    %82 = vector.multi_reduction <add>, %81, %cst_52 [1] : vector<24x24xf32> to vector<24xf32>
    %83 = vector.shape_cast %82 : vector<24xf32> to vector<24x1xf32>
    %84 = tpu.reciprocal %83 {approx = true} : vector<24x1xf32> -> vector<24x1xf32>
    %85 = arith.truncf %81 : vector<24x24xf32> to vector<24x24xbf16>
    %cst_53 = arith.constant dense<0.000000e+00> : vector<24x8xf32>
    %86 = tpu.matmul %85, %73, %cst_53 {dimension_numbers = #tpu.dot_dimension_numbers<[1], [0], [0], [1], [0, 0, 1, 1], [], []>} : vector<24x24xbf16>, vector<24x8xbf16>, vector<24x8xf32> -> vector<24x8xf32>
    %87 = vector.broadcast %84 : vector<24x1xf32> to vector<24x8xf32>
    %88 = arith.mulf %86, %87 : vector<24x8xf32>
    %89 = arith.truncf %88 : vector<24x8xf32> to vector<24x8xbf16>
    %c0_54 = arith.constant 0 : index
    %c0_55 = arith.constant 0 : index
    %c0_56 = arith.constant 0 : index
    %c0_57 = arith.constant 0 : index
    %90 = vector.load %arg12[%c0_54, %c0_55, %c0_56, %c0_57] : memref<2x4x8x32xbf16, #tpu.memory_space<vmem>>, vector<1x1x8x32xbf16>
    %91 = vector.shape_cast %90 : vector<1x1x8x32xbf16> to vector<8x32xbf16>
    %cst_58 = arith.constant dense<0.000000e+00> : vector<24x32xf32>
    %92 = tpu.matmul %89, %91, %cst_58 {dimension_numbers = #tpu.dot_dimension_numbers<[1], [0], [0], [1], [0, 0, 1, 1], [], []>} : vector<24x8xbf16>, vector<8x32xbf16>, vector<24x32xf32> -> vector<24x32xf32>
    %93 = arith.addf %45, %92 : vector<24x32xf32>
    %94 = vector.extract_strided_slice %53 {offsets = [24, 0], sizes = [24, 8], strides = [1, 1]} : vector<48x8xf32> to vector<24x8xf32>
    %95 = arith.truncf %94 : vector<24x8xf32> to vector<24x8xbf16>
    %96 = vector.extract_strided_slice %60 {offsets = [24, 0], sizes = [24, 8], strides = [1, 1]} : vector<48x8xf32> to vector<24x8xf32>
    %97 = arith.truncf %96 : vector<24x8xf32> to vector<24x8xbf16>
    %98 = vector.extract_strided_slice %67 {offsets = [24, 0], sizes = [24, 8], strides = [1, 1]} : vector<48x8xf32> to vector<24x8xf32>
    %99 = arith.truncf %98 : vector<24x8xf32> to vector<24x8xbf16>
    %cst_59 = arith.constant dense<0.000000e+00> : vector<24x24xf32>
    %100 = tpu.matmul %95, %97, %cst_59 {dimension_numbers = #tpu.dot_dimension_numbers<[1], [1], [0], [0], [0, 0, 1, 0], [], []>} : vector<24x8xbf16>, vector<24x8xbf16>, vector<24x24xf32> -> vector<24x24xf32>
    %101 = vector.broadcast %5 : vector<1x24xf32> to vector<24x24xf32>
    %102 = arith.addf %100, %101 : vector<24x24xf32>
    %cst_60 = arith.constant dense<0xFF800000> : vector<24xf32>
    %103 = vector.multi_reduction <maximumf>, %102, %cst_60 [1] : vector<24x24xf32> to vector<24xf32>
    %104 = vector.shape_cast %103 : vector<24xf32> to vector<24x1xf32>
    %105 = vector.broadcast %104 : vector<24x1xf32> to vector<24x24xf32>
    %106 = arith.subf %102, %105 : vector<24x24xf32>
    %107 = math.exp %106 : vector<24x24xf32>
    %cst_61 = arith.constant dense<0.000000e+00> : vector<24xf32>
    %108 = vector.multi_reduction <add>, %107, %cst_61 [1] : vector<24x24xf32> to vector<24xf32>
    %109 = vector.shape_cast %108 : vector<24xf32> to vector<24x1xf32>
    %110 = tpu.reciprocal %109 {approx = true} : vector<24x1xf32> -> vector<24x1xf32>
    %111 = arith.truncf %107 : vector<24x24xf32> to vector<24x24xbf16>
    %cst_62 = arith.constant dense<0.000000e+00> : vector<24x8xf32>
    %112 = tpu.matmul %111, %99, %cst_62 {dimension_numbers = #tpu.dot_dimension_numbers<[1], [0], [0], [1], [0, 0, 1, 1], [], []>} : vector<24x24xbf16>, vector<24x8xbf16>, vector<24x8xf32> -> vector<24x8xf32>
    %113 = vector.broadcast %110 : vector<24x1xf32> to vector<24x8xf32>
    %114 = arith.mulf %112, %113 : vector<24x8xf32>
    %115 = arith.truncf %114 : vector<24x8xf32> to vector<24x8xbf16>
    %c0_63 = arith.constant 0 : index
    %c0_64 = arith.constant 0 : index
    %c0_65 = arith.constant 0 : index
    %c0_66 = arith.constant 0 : index
    %116 = vector.load %arg12[%c0_63, %c0_64, %c0_65, %c0_66] : memref<2x4x8x32xbf16, #tpu.memory_space<vmem>>, vector<1x1x8x32xbf16>
    %117 = vector.shape_cast %116 : vector<1x1x8x32xbf16> to vector<8x32xbf16>
    %cst_67 = arith.constant dense<0.000000e+00> : vector<24x32xf32>
    %118 = tpu.matmul %115, %117, %cst_67 {dimension_numbers = #tpu.dot_dimension_numbers<[1], [0], [0], [1], [0, 0, 1, 1], [], []>} : vector<24x8xbf16>, vector<8x32xbf16>, vector<24x32xf32> -> vector<24x32xf32>
    %119 = arith.addf %46, %118 : vector<24x32xf32>
    %c0_68 = arith.constant 0 : index
    %c1 = arith.constant 1 : index
    %c0_69 = arith.constant 0 : index
    %c0_70 = arith.constant 0 : index
    %120 = vector.load %arg6[%c0_68, %c1, %c0_69, %c0_70] : memref<2x4x32x8xbf16, #tpu.memory_space<vmem>>, vector<1x1x32x8xbf16>
    %121 = vector.shape_cast %120 : vector<1x1x32x8xbf16> to vector<32x8xbf16>
    %cst_71 = arith.constant dense<0.000000e+00> : vector<48x8xf32>
    %122 = tpu.matmul %44, %121, %cst_71 {dimension_numbers = #tpu.dot_dimension_numbers<[1], [0], [0], [1], [0, 0, 1, 1], [], []>} : vector<48x32xbf16>, vector<32x8xbf16>, vector<48x8xf32> -> vector<48x8xf32>
    %c0_72 = arith.constant 0 : index
    %c1_73 = arith.constant 1 : index
    %c0_74 = arith.constant 0 : index
    %c0_75 = arith.constant 0 : index
    %123 = vector.load %arg7[%c0_72, %c1_73, %c0_74, %c0_75] : memref<2x4x1x8xf32, #tpu.memory_space<vmem>>, vector<1x1x1x8xf32>
    %124 = vector.shape_cast %123 : vector<1x1x1x8xf32> to vector<1x8xf32>
    %125 = vector.broadcast %124 : vector<1x8xf32> to vector<48x8xf32>
    %126 = arith.addf %122, %125 : vector<48x8xf32>
    %c0_76 = arith.constant 0 : index
    %c1_77 = arith.constant 1 : index
    %c0_78 = arith.constant 0 : index
    %c0_79 = arith.constant 0 : index
    %127 = vector.load %arg8[%c0_76, %c1_77, %c0_78, %c0_79] : memref<2x4x32x8xbf16, #tpu.memory_space<vmem>>, vector<1x1x32x8xbf16>
    %128 = vector.shape_cast %127 : vector<1x1x32x8xbf16> to vector<32x8xbf16>
    %cst_80 = arith.constant dense<0.000000e+00> : vector<48x8xf32>
    %129 = tpu.matmul %44, %128, %cst_80 {dimension_numbers = #tpu.dot_dimension_numbers<[1], [0], [0], [1], [0, 0, 1, 1], [], []>} : vector<48x32xbf16>, vector<32x8xbf16>, vector<48x8xf32> -> vector<48x8xf32>
    %c0_81 = arith.constant 0 : index
    %c1_82 = arith.constant 1 : index
    %c0_83 = arith.constant 0 : index
    %c0_84 = arith.constant 0 : index
    %130 = vector.load %arg9[%c0_81, %c1_82, %c0_83, %c0_84] : memref<2x4x1x8xf32, #tpu.memory_space<vmem>>, vector<1x1x1x8xf32>
    %131 = vector.shape_cast %130 : vector<1x1x1x8xf32> to vector<1x8xf32>
    %132 = vector.broadcast %131 : vector<1x8xf32> to vector<48x8xf32>
    %133 = arith.addf %129, %132 : vector<48x8xf32>
    %c0_85 = arith.constant 0 : index
    %c1_86 = arith.constant 1 : index
    %c0_87 = arith.constant 0 : index
    %c0_88 = arith.constant 0 : index
    %134 = vector.load %arg10[%c0_85, %c1_86, %c0_87, %c0_88] : memref<2x4x32x8xbf16, #tpu.memory_space<vmem>>, vector<1x1x32x8xbf16>
    %135 = vector.shape_cast %134 : vector<1x1x32x8xbf16> to vector<32x8xbf16>
    %cst_89 = arith.constant dense<0.000000e+00> : vector<48x8xf32>
    %136 = tpu.matmul %44, %135, %cst_89 {dimension_numbers = #tpu.dot_dimension_numbers<[1], [0], [0], [1], [0, 0, 1, 1], [], []>} : vector<48x32xbf16>, vector<32x8xbf16>, vector<48x8xf32> -> vector<48x8xf32>
    %c0_90 = arith.constant 0 : index
    %c1_91 = arith.constant 1 : index
    %c0_92 = arith.constant 0 : index
    %c0_93 = arith.constant 0 : index
    %137 = vector.load %arg11[%c0_90, %c1_91, %c0_92, %c0_93] : memref<2x4x1x8xf32, #tpu.memory_space<vmem>>, vector<1x1x1x8xf32>
    %138 = vector.shape_cast %137 : vector<1x1x1x8xf32> to vector<1x8xf32>
    %139 = vector.broadcast %138 : vector<1x8xf32> to vector<48x8xf32>
    %140 = arith.addf %136, %139 : vector<48x8xf32>
    %141 = vector.extract_strided_slice %126 {offsets = [0, 0], sizes = [24, 8], strides = [1, 1]} : vector<48x8xf32> to vector<24x8xf32>
    %142 = arith.truncf %141 : vector<24x8xf32> to vector<24x8xbf16>
    %143 = vector.extract_strided_slice %133 {offsets = [0, 0], sizes = [24, 8], strides = [1, 1]} : vector<48x8xf32> to vector<24x8xf32>
    %144 = arith.truncf %143 : vector<24x8xf32> to vector<24x8xbf16>
    %145 = vector.extract_strided_slice %140 {offsets = [0, 0], sizes = [24, 8], strides = [1, 1]} : vector<48x8xf32> to vector<24x8xf32>
    %146 = arith.truncf %145 : vector<24x8xf32> to vector<24x8xbf16>
    %cst_94 = arith.constant dense<0.000000e+00> : vector<24x24xf32>
    %147 = tpu.matmul %142, %144, %cst_94 {dimension_numbers = #tpu.dot_dimension_numbers<[1], [1], [0], [0], [0, 0, 1, 0], [], []>} : vector<24x8xbf16>, vector<24x8xbf16>, vector<24x24xf32> -> vector<24x24xf32>
    %148 = vector.broadcast %5 : vector<1x24xf32> to vector<24x24xf32>
    %149 = arith.addf %147, %148 : vector<24x24xf32>
    %cst_95 = arith.constant dense<0xFF800000> : vector<24xf32>
    %150 = vector.multi_reduction <maximumf>, %149, %cst_95 [1] : vector<24x24xf32> to vector<24xf32>
    %151 = vector.shape_cast %150 : vector<24xf32> to vector<24x1xf32>
    %152 = vector.broadcast %151 : vector<24x1xf32> to vector<24x24xf32>
    %153 = arith.subf %149, %152 : vector<24x24xf32>
    %154 = math.exp %153 : vector<24x24xf32>
    %cst_96 = arith.constant dense<0.000000e+00> : vector<24xf32>
    %155 = vector.multi_reduction <add>, %154, %cst_96 [1] : vector<24x24xf32> to vector<24xf32>
    %156 = vector.shape_cast %155 : vector<24xf32> to vector<24x1xf32>
    %157 = tpu.reciprocal %156 {approx = true} : vector<24x1xf32> -> vector<24x1xf32>
    %158 = arith.truncf %154 : vector<24x24xf32> to vector<24x24xbf16>
    %cst_97 = arith.constant dense<0.000000e+00> : vector<24x8xf32>
    %159 = tpu.matmul %158, %146, %cst_97 {dimension_numbers = #tpu.dot_dimension_numbers<[1], [0], [0], [1], [0, 0, 1, 1], [], []>} : vector<24x24xbf16>, vector<24x8xbf16>, vector<24x8xf32> -> vector<24x8xf32>
    %160 = vector.broadcast %157 : vector<24x1xf32> to vector<24x8xf32>
    %161 = arith.mulf %159, %160 : vector<24x8xf32>
    %162 = arith.truncf %161 : vector<24x8xf32> to vector<24x8xbf16>
    %c0_98 = arith.constant 0 : index
    %c1_99 = arith.constant 1 : index
    %c0_100 = arith.constant 0 : index
    %c0_101 = arith.constant 0 : index
    %163 = vector.load %arg12[%c0_98, %c1_99, %c0_100, %c0_101] : memref<2x4x8x32xbf16, #tpu.memory_space<vmem>>, vector<1x1x8x32xbf16>
    %164 = vector.shape_cast %163 : vector<1x1x8x32xbf16> to vector<8x32xbf16>
    %cst_102 = arith.constant dense<0.000000e+00> : vector<24x32xf32>
    %165 = tpu.matmul %162, %164, %cst_102 {dimension_numbers = #tpu.dot_dimension_numbers<[1], [0], [0], [1], [0, 0, 1, 1], [], []>} : vector<24x8xbf16>, vector<8x32xbf16>, vector<24x32xf32> -> vector<24x32xf32>
    %166 = arith.addf %93, %165 : vector<24x32xf32>
    %167 = vector.extract_strided_slice %126 {offsets = [24, 0], sizes = [24, 8], strides = [1, 1]} : vector<48x8xf32> to vector<24x8xf32>
    %168 = arith.truncf %167 : vector<24x8xf32> to vector<24x8xbf16>
    %169 = vector.extract_strided_slice %133 {offsets = [24, 0], sizes = [24, 8], strides = [1, 1]} : vector<48x8xf32> to vector<24x8xf32>
    %170 = arith.truncf %169 : vector<24x8xf32> to vector<24x8xbf16>
    %171 = vector.extract_strided_slice %140 {offsets = [24, 0], sizes = [24, 8], strides = [1, 1]} : vector<48x8xf32> to vector<24x8xf32>
    %172 = arith.truncf %171 : vector<24x8xf32> to vector<24x8xbf16>
    %cst_103 = arith.constant dense<0.000000e+00> : vector<24x24xf32>
    %173 = tpu.matmul %168, %170, %cst_103 {dimension_numbers = #tpu.dot_dimension_numbers<[1], [1], [0], [0], [0, 0, 1, 0], [], []>} : vector<24x8xbf16>, vector<24x8xbf16>, vector<24x24xf32> -> vector<24x24xf32>
    %174 = vector.broadcast %5 : vector<1x24xf32> to vector<24x24xf32>
    %175 = arith.addf %173, %174 : vector<24x24xf32>
    %cst_104 = arith.constant dense<0xFF800000> : vector<24xf32>
    %176 = vector.multi_reduction <maximumf>, %175, %cst_104 [1] : vector<24x24xf32> to vector<24xf32>
    %177 = vector.shape_cast %176 : vector<24xf32> to vector<24x1xf32>
    %178 = vector.broadcast %177 : vector<24x1xf32> to vector<24x24xf32>
    %179 = arith.subf %175, %178 : vector<24x24xf32>
    %180 = math.exp %179 : vector<24x24xf32>
    %cst_105 = arith.constant dense<0.000000e+00> : vector<24xf32>
    %181 = vector.multi_reduction <add>, %180, %cst_105 [1] : vector<24x24xf32> to vector<24xf32>
    %182 = vector.shape_cast %181 : vector<24xf32> to vector<24x1xf32>
    %183 = tpu.reciprocal %182 {approx = true} : vector<24x1xf32> -> vector<24x1xf32>
    %184 = arith.truncf %180 : vector<24x24xf32> to vector<24x24xbf16>
    %cst_106 = arith.constant dense<0.000000e+00> : vector<24x8xf32>
    %185 = tpu.matmul %184, %172, %cst_106 {dimension_numbers = #tpu.dot_dimension_numbers<[1], [0], [0], [1], [0, 0, 1, 1], [], []>} : vector<24x24xbf16>, vector<24x8xbf16>, vector<24x8xf32> -> vector<24x8xf32>
    %186 = vector.broadcast %183 : vector<24x1xf32> to vector<24x8xf32>
    %187 = arith.mulf %185, %186 : vector<24x8xf32>
    %188 = arith.truncf %187 : vector<24x8xf32> to vector<24x8xbf16>
    %c0_107 = arith.constant 0 : index
    %c1_108 = arith.constant 1 : index
    %c0_109 = arith.constant 0 : index
    %c0_110 = arith.constant 0 : index
    %189 = vector.load %arg12[%c0_107, %c1_108, %c0_109, %c0_110] : memref<2x4x8x32xbf16, #tpu.memory_space<vmem>>, vector<1x1x8x32xbf16>
    %190 = vector.shape_cast %189 : vector<1x1x8x32xbf16> to vector<8x32xbf16>
    %cst_111 = arith.constant dense<0.000000e+00> : vector<24x32xf32>
    %191 = tpu.matmul %188, %190, %cst_111 {dimension_numbers = #tpu.dot_dimension_numbers<[1], [0], [0], [1], [0, 0, 1, 1], [], []>} : vector<24x8xbf16>, vector<8x32xbf16>, vector<24x32xf32> -> vector<24x32xf32>
    %192 = arith.addf %119, %191 : vector<24x32xf32>
    %c0_112 = arith.constant 0 : index
    %c2 = arith.constant 2 : index
    %c0_113 = arith.constant 0 : index
    %c0_114 = arith.constant 0 : index
    %193 = vector.load %arg6[%c0_112, %c2, %c0_113, %c0_114] : memref<2x4x32x8xbf16, #tpu.memory_space<vmem>>, vector<1x1x32x8xbf16>
    %194 = vector.shape_cast %193 : vector<1x1x32x8xbf16> to vector<32x8xbf16>
    %cst_115 = arith.constant dense<0.000000e+00> : vector<48x8xf32>
    %195 = tpu.matmul %44, %194, %cst_115 {dimension_numbers = #tpu.dot_dimension_numbers<[1], [0], [0], [1], [0, 0, 1, 1], [], []>} : vector<48x32xbf16>, vector<32x8xbf16>, vector<48x8xf32> -> vector<48x8xf32>
    %c0_116 = arith.constant 0 : index
    %c2_117 = arith.constant 2 : index
    %c0_118 = arith.constant 0 : index
    %c0_119 = arith.constant 0 : index
    %196 = vector.load %arg7[%c0_116, %c2_117, %c0_118, %c0_119] : memref<2x4x1x8xf32, #tpu.memory_space<vmem>>, vector<1x1x1x8xf32>
    %197 = vector.shape_cast %196 : vector<1x1x1x8xf32> to vector<1x8xf32>
    %198 = vector.broadcast %197 : vector<1x8xf32> to vector<48x8xf32>
    %199 = arith.addf %195, %198 : vector<48x8xf32>
    %c0_120 = arith.constant 0 : index
    %c2_121 = arith.constant 2 : index
    %c0_122 = arith.constant 0 : index
    %c0_123 = arith.constant 0 : index
    %200 = vector.load %arg8[%c0_120, %c2_121, %c0_122, %c0_123] : memref<2x4x32x8xbf16, #tpu.memory_space<vmem>>, vector<1x1x32x8xbf16>
    %201 = vector.shape_cast %200 : vector<1x1x32x8xbf16> to vector<32x8xbf16>
    %cst_124 = arith.constant dense<0.000000e+00> : vector<48x8xf32>
    %202 = tpu.matmul %44, %201, %cst_124 {dimension_numbers = #tpu.dot_dimension_numbers<[1], [0], [0], [1], [0, 0, 1, 1], [], []>} : vector<48x32xbf16>, vector<32x8xbf16>, vector<48x8xf32> -> vector<48x8xf32>
    %c0_125 = arith.constant 0 : index
    %c2_126 = arith.constant 2 : index
    %c0_127 = arith.constant 0 : index
    %c0_128 = arith.constant 0 : index
    %203 = vector.load %arg9[%c0_125, %c2_126, %c0_127, %c0_128] : memref<2x4x1x8xf32, #tpu.memory_space<vmem>>, vector<1x1x1x8xf32>
    %204 = vector.shape_cast %203 : vector<1x1x1x8xf32> to vector<1x8xf32>
    %205 = vector.broadcast %204 : vector<1x8xf32> to vector<48x8xf32>
    %206 = arith.addf %202, %205 : vector<48x8xf32>
    %c0_129 = arith.constant 0 : index
    %c2_130 = arith.constant 2 : index
    %c0_131 = arith.constant 0 : index
    %c0_132 = arith.constant 0 : index
    %207 = vector.load %arg10[%c0_129, %c2_130, %c0_131, %c0_132] : memref<2x4x32x8xbf16, #tpu.memory_space<vmem>>, vector<1x1x32x8xbf16>
    %208 = vector.shape_cast %207 : vector<1x1x32x8xbf16> to vector<32x8xbf16>
    %cst_133 = arith.constant dense<0.000000e+00> : vector<48x8xf32>
    %209 = tpu.matmul %44, %208, %cst_133 {dimension_numbers = #tpu.dot_dimension_numbers<[1], [0], [0], [1], [0, 0, 1, 1], [], []>} : vector<48x32xbf16>, vector<32x8xbf16>, vector<48x8xf32> -> vector<48x8xf32>
    %c0_134 = arith.constant 0 : index
    %c2_135 = arith.constant 2 : index
    %c0_136 = arith.constant 0 : index
    %c0_137 = arith.constant 0 : index
    %210 = vector.load %arg11[%c0_134, %c2_135, %c0_136, %c0_137] : memref<2x4x1x8xf32, #tpu.memory_space<vmem>>, vector<1x1x1x8xf32>
    %211 = vector.shape_cast %210 : vector<1x1x1x8xf32> to vector<1x8xf32>
    %212 = vector.broadcast %211 : vector<1x8xf32> to vector<48x8xf32>
    %213 = arith.addf %209, %212 : vector<48x8xf32>
    %214 = vector.extract_strided_slice %199 {offsets = [0, 0], sizes = [24, 8], strides = [1, 1]} : vector<48x8xf32> to vector<24x8xf32>
    %215 = arith.truncf %214 : vector<24x8xf32> to vector<24x8xbf16>
    %216 = vector.extract_strided_slice %206 {offsets = [0, 0], sizes = [24, 8], strides = [1, 1]} : vector<48x8xf32> to vector<24x8xf32>
    %217 = arith.truncf %216 : vector<24x8xf32> to vector<24x8xbf16>
    %218 = vector.extract_strided_slice %213 {offsets = [0, 0], sizes = [24, 8], strides = [1, 1]} : vector<48x8xf32> to vector<24x8xf32>
    %219 = arith.truncf %218 : vector<24x8xf32> to vector<24x8xbf16>
    %cst_138 = arith.constant dense<0.000000e+00> : vector<24x24xf32>
    %220 = tpu.matmul %215, %217, %cst_138 {dimension_numbers = #tpu.dot_dimension_numbers<[1], [1], [0], [0], [0, 0, 1, 0], [], []>} : vector<24x8xbf16>, vector<24x8xbf16>, vector<24x24xf32> -> vector<24x24xf32>
    %221 = vector.broadcast %5 : vector<1x24xf32> to vector<24x24xf32>
    %222 = arith.addf %220, %221 : vector<24x24xf32>
    %cst_139 = arith.constant dense<0xFF800000> : vector<24xf32>
    %223 = vector.multi_reduction <maximumf>, %222, %cst_139 [1] : vector<24x24xf32> to vector<24xf32>
    %224 = vector.shape_cast %223 : vector<24xf32> to vector<24x1xf32>
    %225 = vector.broadcast %224 : vector<24x1xf32> to vector<24x24xf32>
    %226 = arith.subf %222, %225 : vector<24x24xf32>
    %227 = math.exp %226 : vector<24x24xf32>
    %cst_140 = arith.constant dense<0.000000e+00> : vector<24xf32>
    %228 = vector.multi_reduction <add>, %227, %cst_140 [1] : vector<24x24xf32> to vector<24xf32>
    %229 = vector.shape_cast %228 : vector<24xf32> to vector<24x1xf32>
    %230 = tpu.reciprocal %229 {approx = true} : vector<24x1xf32> -> vector<24x1xf32>
    %231 = arith.truncf %227 : vector<24x24xf32> to vector<24x24xbf16>
    %cst_141 = arith.constant dense<0.000000e+00> : vector<24x8xf32>
    %232 = tpu.matmul %231, %219, %cst_141 {dimension_numbers = #tpu.dot_dimension_numbers<[1], [0], [0], [1], [0, 0, 1, 1], [], []>} : vector<24x24xbf16>, vector<24x8xbf16>, vector<24x8xf32> -> vector<24x8xf32>
    %233 = vector.broadcast %230 : vector<24x1xf32> to vector<24x8xf32>
    %234 = arith.mulf %232, %233 : vector<24x8xf32>
    %235 = arith.truncf %234 : vector<24x8xf32> to vector<24x8xbf16>
    %c0_142 = arith.constant 0 : index
    %c2_143 = arith.constant 2 : index
    %c0_144 = arith.constant 0 : index
    %c0_145 = arith.constant 0 : index
    %236 = vector.load %arg12[%c0_142, %c2_143, %c0_144, %c0_145] : memref<2x4x8x32xbf16, #tpu.memory_space<vmem>>, vector<1x1x8x32xbf16>
    %237 = vector.shape_cast %236 : vector<1x1x8x32xbf16> to vector<8x32xbf16>
    %cst_146 = arith.constant dense<0.000000e+00> : vector<24x32xf32>
    %238 = tpu.matmul %235, %237, %cst_146 {dimension_numbers = #tpu.dot_dimension_numbers<[1], [0], [0], [1], [0, 0, 1, 1], [], []>} : vector<24x8xbf16>, vector<8x32xbf16>, vector<24x32xf32> -> vector<24x32xf32>
    %239 = arith.addf %166, %238 : vector<24x32xf32>
    %240 = vector.extract_strided_slice %199 {offsets = [24, 0], sizes = [24, 8], strides = [1, 1]} : vector<48x8xf32> to vector<24x8xf32>
    %241 = arith.truncf %240 : vector<24x8xf32> to vector<24x8xbf16>
    %242 = vector.extract_strided_slice %206 {offsets = [24, 0], sizes = [24, 8], strides = [1, 1]} : vector<48x8xf32> to vector<24x8xf32>
    %243 = arith.truncf %242 : vector<24x8xf32> to vector<24x8xbf16>
    %244 = vector.extract_strided_slice %213 {offsets = [24, 0], sizes = [24, 8], strides = [1, 1]} : vector<48x8xf32> to vector<24x8xf32>
    %245 = arith.truncf %244 : vector<24x8xf32> to vector<24x8xbf16>
    %cst_147 = arith.constant dense<0.000000e+00> : vector<24x24xf32>
    %246 = tpu.matmul %241, %243, %cst_147 {dimension_numbers = #tpu.dot_dimension_numbers<[1], [1], [0], [0], [0, 0, 1, 0], [], []>} : vector<24x8xbf16>, vector<24x8xbf16>, vector<24x24xf32> -> vector<24x24xf32>
    %247 = vector.broadcast %5 : vector<1x24xf32> to vector<24x24xf32>
    %248 = arith.addf %246, %247 : vector<24x24xf32>
    %cst_148 = arith.constant dense<0xFF800000> : vector<24xf32>
    %249 = vector.multi_reduction <maximumf>, %248, %cst_148 [1] : vector<24x24xf32> to vector<24xf32>
    %250 = vector.shape_cast %249 : vector<24xf32> to vector<24x1xf32>
    %251 = vector.broadcast %250 : vector<24x1xf32> to vector<24x24xf32>
    %252 = arith.subf %248, %251 : vector<24x24xf32>
    %253 = math.exp %252 : vector<24x24xf32>
    %cst_149 = arith.constant dense<0.000000e+00> : vector<24xf32>
    %254 = vector.multi_reduction <add>, %253, %cst_149 [1] : vector<24x24xf32> to vector<24xf32>
    %255 = vector.shape_cast %254 : vector<24xf32> to vector<24x1xf32>
    %256 = tpu.reciprocal %255 {approx = true} : vector<24x1xf32> -> vector<24x1xf32>
    %257 = arith.truncf %253 : vector<24x24xf32> to vector<24x24xbf16>
    %cst_150 = arith.constant dense<0.000000e+00> : vector<24x8xf32>
    %258 = tpu.matmul %257, %245, %cst_150 {dimension_numbers = #tpu.dot_dimension_numbers<[1], [0], [0], [1], [0, 0, 1, 1], [], []>} : vector<24x24xbf16>, vector<24x8xbf16>, vector<24x8xf32> -> vector<24x8xf32>
    %259 = vector.broadcast %256 : vector<24x1xf32> to vector<24x8xf32>
    %260 = arith.mulf %258, %259 : vector<24x8xf32>
    %261 = arith.truncf %260 : vector<24x8xf32> to vector<24x8xbf16>
    %c0_151 = arith.constant 0 : index
    %c2_152 = arith.constant 2 : index
    %c0_153 = arith.constant 0 : index
    %c0_154 = arith.constant 0 : index
    %262 = vector.load %arg12[%c0_151, %c2_152, %c0_153, %c0_154] : memref<2x4x8x32xbf16, #tpu.memory_space<vmem>>, vector<1x1x8x32xbf16>
    %263 = vector.shape_cast %262 : vector<1x1x8x32xbf16> to vector<8x32xbf16>
    %cst_155 = arith.constant dense<0.000000e+00> : vector<24x32xf32>
    %264 = tpu.matmul %261, %263, %cst_155 {dimension_numbers = #tpu.dot_dimension_numbers<[1], [0], [0], [1], [0, 0, 1, 1], [], []>} : vector<24x8xbf16>, vector<8x32xbf16>, vector<24x32xf32> -> vector<24x32xf32>
    %265 = arith.addf %192, %264 : vector<24x32xf32>
    %c0_156 = arith.constant 0 : index
    %c3 = arith.constant 3 : index
    %c0_157 = arith.constant 0 : index
    %c0_158 = arith.constant 0 : index
    %266 = vector.load %arg6[%c0_156, %c3, %c0_157, %c0_158] : memref<2x4x32x8xbf16, #tpu.memory_space<vmem>>, vector<1x1x32x8xbf16>
    %267 = vector.shape_cast %266 : vector<1x1x32x8xbf16> to vector<32x8xbf16>
    %cst_159 = arith.constant dense<0.000000e+00> : vector<48x8xf32>
    %268 = tpu.matmul %44, %267, %cst_159 {dimension_numbers = #tpu.dot_dimension_numbers<[1], [0], [0], [1], [0, 0, 1, 1], [], []>} : vector<48x32xbf16>, vector<32x8xbf16>, vector<48x8xf32> -> vector<48x8xf32>
    %c0_160 = arith.constant 0 : index
    %c3_161 = arith.constant 3 : index
    %c0_162 = arith.constant 0 : index
    %c0_163 = arith.constant 0 : index
    %269 = vector.load %arg7[%c0_160, %c3_161, %c0_162, %c0_163] : memref<2x4x1x8xf32, #tpu.memory_space<vmem>>, vector<1x1x1x8xf32>
    %270 = vector.shape_cast %269 : vector<1x1x1x8xf32> to vector<1x8xf32>
    %271 = vector.broadcast %270 : vector<1x8xf32> to vector<48x8xf32>
    %272 = arith.addf %268, %271 : vector<48x8xf32>
    %c0_164 = arith.constant 0 : index
    %c3_165 = arith.constant 3 : index
    %c0_166 = arith.constant 0 : index
    %c0_167 = arith.constant 0 : index
    %273 = vector.load %arg8[%c0_164, %c3_165, %c0_166, %c0_167] : memref<2x4x32x8xbf16, #tpu.memory_space<vmem>>, vector<1x1x32x8xbf16>
    %274 = vector.shape_cast %273 : vector<1x1x32x8xbf16> to vector<32x8xbf16>
    %cst_168 = arith.constant dense<0.000000e+00> : vector<48x8xf32>
    %275 = tpu.matmul %44, %274, %cst_168 {dimension_numbers = #tpu.dot_dimension_numbers<[1], [0], [0], [1], [0, 0, 1, 1], [], []>} : vector<48x32xbf16>, vector<32x8xbf16>, vector<48x8xf32> -> vector<48x8xf32>
    %c0_169 = arith.constant 0 : index
    %c3_170 = arith.constant 3 : index
    %c0_171 = arith.constant 0 : index
    %c0_172 = arith.constant 0 : index
    %276 = vector.load %arg9[%c0_169, %c3_170, %c0_171, %c0_172] : memref<2x4x1x8xf32, #tpu.memory_space<vmem>>, vector<1x1x1x8xf32>
    %277 = vector.shape_cast %276 : vector<1x1x1x8xf32> to vector<1x8xf32>
    %278 = vector.broadcast %277 : vector<1x8xf32> to vector<48x8xf32>
    %279 = arith.addf %275, %278 : vector<48x8xf32>
    %c0_173 = arith.constant 0 : index
    %c3_174 = arith.constant 3 : index
    %c0_175 = arith.constant 0 : index
    %c0_176 = arith.constant 0 : index
    %280 = vector.load %arg10[%c0_173, %c3_174, %c0_175, %c0_176] : memref<2x4x32x8xbf16, #tpu.memory_space<vmem>>, vector<1x1x32x8xbf16>
    %281 = vector.shape_cast %280 : vector<1x1x32x8xbf16> to vector<32x8xbf16>
    %cst_177 = arith.constant dense<0.000000e+00> : vector<48x8xf32>
    %282 = tpu.matmul %44, %281, %cst_177 {dimension_numbers = #tpu.dot_dimension_numbers<[1], [0], [0], [1], [0, 0, 1, 1], [], []>} : vector<48x32xbf16>, vector<32x8xbf16>, vector<48x8xf32> -> vector<48x8xf32>
    %c0_178 = arith.constant 0 : index
    %c3_179 = arith.constant 3 : index
    %c0_180 = arith.constant 0 : index
    %c0_181 = arith.constant 0 : index
    %283 = vector.load %arg11[%c0_178, %c3_179, %c0_180, %c0_181] : memref<2x4x1x8xf32, #tpu.memory_space<vmem>>, vector<1x1x1x8xf32>
    %284 = vector.shape_cast %283 : vector<1x1x1x8xf32> to vector<1x8xf32>
    %285 = vector.broadcast %284 : vector<1x8xf32> to vector<48x8xf32>
    %286 = arith.addf %282, %285 : vector<48x8xf32>
    %287 = vector.extract_strided_slice %272 {offsets = [0, 0], sizes = [24, 8], strides = [1, 1]} : vector<48x8xf32> to vector<24x8xf32>
    %288 = arith.truncf %287 : vector<24x8xf32> to vector<24x8xbf16>
    %289 = vector.extract_strided_slice %279 {offsets = [0, 0], sizes = [24, 8], strides = [1, 1]} : vector<48x8xf32> to vector<24x8xf32>
    %290 = arith.truncf %289 : vector<24x8xf32> to vector<24x8xbf16>
    %291 = vector.extract_strided_slice %286 {offsets = [0, 0], sizes = [24, 8], strides = [1, 1]} : vector<48x8xf32> to vector<24x8xf32>
    %292 = arith.truncf %291 : vector<24x8xf32> to vector<24x8xbf16>
    %cst_182 = arith.constant dense<0.000000e+00> : vector<24x24xf32>
    %293 = tpu.matmul %288, %290, %cst_182 {dimension_numbers = #tpu.dot_dimension_numbers<[1], [1], [0], [0], [0, 0, 1, 0], [], []>} : vector<24x8xbf16>, vector<24x8xbf16>, vector<24x24xf32> -> vector<24x24xf32>
    %294 = vector.broadcast %5 : vector<1x24xf32> to vector<24x24xf32>
    %295 = arith.addf %293, %294 : vector<24x24xf32>
    %cst_183 = arith.constant dense<0xFF800000> : vector<24xf32>
    %296 = vector.multi_reduction <maximumf>, %295, %cst_183 [1] : vector<24x24xf32> to vector<24xf32>
    %297 = vector.shape_cast %296 : vector<24xf32> to vector<24x1xf32>
    %298 = vector.broadcast %297 : vector<24x1xf32> to vector<24x24xf32>
    %299 = arith.subf %295, %298 : vector<24x24xf32>
    %300 = math.exp %299 : vector<24x24xf32>
    %cst_184 = arith.constant dense<0.000000e+00> : vector<24xf32>
    %301 = vector.multi_reduction <add>, %300, %cst_184 [1] : vector<24x24xf32> to vector<24xf32>
    %302 = vector.shape_cast %301 : vector<24xf32> to vector<24x1xf32>
    %303 = tpu.reciprocal %302 {approx = true} : vector<24x1xf32> -> vector<24x1xf32>
    %304 = arith.truncf %300 : vector<24x24xf32> to vector<24x24xbf16>
    %cst_185 = arith.constant dense<0.000000e+00> : vector<24x8xf32>
    %305 = tpu.matmul %304, %292, %cst_185 {dimension_numbers = #tpu.dot_dimension_numbers<[1], [0], [0], [1], [0, 0, 1, 1], [], []>} : vector<24x24xbf16>, vector<24x8xbf16>, vector<24x8xf32> -> vector<24x8xf32>
    %306 = vector.broadcast %303 : vector<24x1xf32> to vector<24x8xf32>
    %307 = arith.mulf %305, %306 : vector<24x8xf32>
    %308 = arith.truncf %307 : vector<24x8xf32> to vector<24x8xbf16>
    %c0_186 = arith.constant 0 : index
    %c3_187 = arith.constant 3 : index
    %c0_188 = arith.constant 0 : index
    %c0_189 = arith.constant 0 : index
    %309 = vector.load %arg12[%c0_186, %c3_187, %c0_188, %c0_189] : memref<2x4x8x32xbf16, #tpu.memory_space<vmem>>, vector<1x1x8x32xbf16>
    %310 = vector.shape_cast %309 : vector<1x1x8x32xbf16> to vector<8x32xbf16>
    %cst_190 = arith.constant dense<0.000000e+00> : vector<24x32xf32>
    %311 = tpu.matmul %308, %310, %cst_190 {dimension_numbers = #tpu.dot_dimension_numbers<[1], [0], [0], [1], [0, 0, 1, 1], [], []>} : vector<24x8xbf16>, vector<8x32xbf16>, vector<24x32xf32> -> vector<24x32xf32>
    %312 = arith.addf %239, %311 : vector<24x32xf32>
    %313 = vector.extract_strided_slice %272 {offsets = [24, 0], sizes = [24, 8], strides = [1, 1]} : vector<48x8xf32> to vector<24x8xf32>
    %314 = arith.truncf %313 : vector<24x8xf32> to vector<24x8xbf16>
    %315 = vector.extract_strided_slice %279 {offsets = [24, 0], sizes = [24, 8], strides = [1, 1]} : vector<48x8xf32> to vector<24x8xf32>
    %316 = arith.truncf %315 : vector<24x8xf32> to vector<24x8xbf16>
    %317 = vector.extract_strided_slice %286 {offsets = [24, 0], sizes = [24, 8], strides = [1, 1]} : vector<48x8xf32> to vector<24x8xf32>
    %318 = arith.truncf %317 : vector<24x8xf32> to vector<24x8xbf16>
    %cst_191 = arith.constant dense<0.000000e+00> : vector<24x24xf32>
    %319 = tpu.matmul %314, %316, %cst_191 {dimension_numbers = #tpu.dot_dimension_numbers<[1], [1], [0], [0], [0, 0, 1, 0], [], []>} : vector<24x8xbf16>, vector<24x8xbf16>, vector<24x24xf32> -> vector<24x24xf32>
    %320 = vector.broadcast %5 : vector<1x24xf32> to vector<24x24xf32>
    %321 = arith.addf %319, %320 : vector<24x24xf32>
    %cst_192 = arith.constant dense<0xFF800000> : vector<24xf32>
    %322 = vector.multi_reduction <maximumf>, %321, %cst_192 [1] : vector<24x24xf32> to vector<24xf32>
    %323 = vector.shape_cast %322 : vector<24xf32> to vector<24x1xf32>
    %324 = vector.broadcast %323 : vector<24x1xf32> to vector<24x24xf32>
    %325 = arith.subf %321, %324 : vector<24x24xf32>
    %326 = math.exp %325 : vector<24x24xf32>
    %cst_193 = arith.constant dense<0.000000e+00> : vector<24xf32>
    %327 = vector.multi_reduction <add>, %326, %cst_193 [1] : vector<24x24xf32> to vector<24xf32>
    %328 = vector.shape_cast %327 : vector<24xf32> to vector<24x1xf32>
    %329 = tpu.reciprocal %328 {approx = true} : vector<24x1xf32> -> vector<24x1xf32>
    %330 = arith.truncf %326 : vector<24x24xf32> to vector<24x24xbf16>
    %cst_194 = arith.constant dense<0.000000e+00> : vector<24x8xf32>
    %331 = tpu.matmul %330, %318, %cst_194 {dimension_numbers = #tpu.dot_dimension_numbers<[1], [0], [0], [1], [0, 0, 1, 1], [], []>} : vector<24x24xbf16>, vector<24x8xbf16>, vector<24x8xf32> -> vector<24x8xf32>
    %332 = vector.broadcast %329 : vector<24x1xf32> to vector<24x8xf32>
    %333 = arith.mulf %331, %332 : vector<24x8xf32>
    %334 = arith.truncf %333 : vector<24x8xf32> to vector<24x8xbf16>
    %c0_195 = arith.constant 0 : index
    %c3_196 = arith.constant 3 : index
    %c0_197 = arith.constant 0 : index
    %c0_198 = arith.constant 0 : index
    %335 = vector.load %arg12[%c0_195, %c3_196, %c0_197, %c0_198] : memref<2x4x8x32xbf16, #tpu.memory_space<vmem>>, vector<1x1x8x32xbf16>
    %336 = vector.shape_cast %335 : vector<1x1x8x32xbf16> to vector<8x32xbf16>
    %cst_199 = arith.constant dense<0.000000e+00> : vector<24x32xf32>
    %337 = tpu.matmul %334, %336, %cst_199 {dimension_numbers = #tpu.dot_dimension_numbers<[1], [0], [0], [1], [0, 0, 1, 1], [], []>} : vector<24x8xbf16>, vector<8x32xbf16>, vector<24x32xf32> -> vector<24x32xf32>
    %338 = arith.addf %265, %337 : vector<24x32xf32>
    %339 = tpu.concatenate %312, %338 in 0 : vector<24x32xf32>, vector<24x32xf32> -> vector<48x32xf32>
    %c0_200 = arith.constant 0 : index
    %c0_201 = arith.constant 0 : index
    %c0_202 = arith.constant 0 : index
    %340 = vector.load %arg13[%c0_200, %c0_201, %c0_202] : memref<2x1x32xf32, #tpu.memory_space<vmem>>, vector<1x1x32xf32>
    %341 = vector.shape_cast %340 : vector<1x1x32xf32> to vector<1x32xf32>
    %342 = vector.broadcast %341 : vector<1x32xf32> to vector<48x32xf32>
    %343 = arith.addf %339, %342 : vector<48x32xf32>
    %c0_203 = arith.constant 0 : index
    %c0_204 = arith.constant 0 : index
    %c0_205 = arith.constant 0 : index
    %344 = vector.load %arg14[%c0_203, %c0_204, %c0_205] : memref<2x1x32xf32, #tpu.memory_space<vmem>>, vector<1x1x32xf32>
    %345 = vector.shape_cast %344 : vector<1x1x32xf32> to vector<1x32xf32>
    %346 = vector.broadcast %345 : vector<1x32xf32> to vector<48x32xf32>
    %347 = arith.mulf %343, %346 : vector<48x32xf32>
    %348 = arith.addf %17, %347 : vector<48x32xf32>
    %c0_206 = arith.constant 0 : index
    %c0_207 = arith.constant 0 : index
    %c0_208 = arith.constant 0 : index
    %349 = vector.load %arg15[%c0_206, %c0_207, %c0_208] : memref<2x1x32xf32, #tpu.memory_space<vmem>>, vector<1x1x32xf32>
    %350 = vector.shape_cast %349 : vector<1x1x32xf32> to vector<1x32xf32>
    %c0_209 = arith.constant 0 : index
    %c0_210 = arith.constant 0 : index
    %c0_211 = arith.constant 0 : index
    %351 = vector.load %arg16[%c0_209, %c0_210, %c0_211] : memref<2x1x32xf32, #tpu.memory_space<vmem>>, vector<1x1x32xf32>
    %352 = vector.shape_cast %351 : vector<1x1x32xf32> to vector<1x32xf32>
    %cst_212 = arith.constant dense<0.000000e+00> : vector<48xf32>
    %353 = vector.multi_reduction <add>, %348, %cst_212 [1] : vector<48x32xf32> to vector<48xf32>
    %354 = vector.shape_cast %353 : vector<48xf32> to vector<48x1xf32>
    %cst_213 = arith.constant 3.200000e+01 : f32
    %355 = vector.broadcast %cst_213 : f32 to vector<48x1xf32>
    %356 = arith.divf %354, %355 : vector<48x1xf32>
    %357 = vector.broadcast %356 : vector<48x1xf32> to vector<48x32xf32>
    %358 = arith.subf %348, %357 : vector<48x32xf32>
    %359 = arith.mulf %358, %358 : vector<48x32xf32>
    %cst_214 = arith.constant dense<0.000000e+00> : vector<48xf32>
    %360 = vector.multi_reduction <add>, %359, %cst_214 [1] : vector<48x32xf32> to vector<48xf32>
    %361 = vector.shape_cast %360 : vector<48xf32> to vector<48x1xf32>
    %cst_215 = arith.constant 3.200000e+01 : f32
    %362 = vector.broadcast %cst_215 : f32 to vector<48x1xf32>
    %363 = arith.divf %361, %362 : vector<48x1xf32>
    %364 = vector.broadcast %356 : vector<48x1xf32> to vector<48x32xf32>
    %365 = arith.subf %348, %364 : vector<48x32xf32>
    %cst_216 = arith.constant 9.99999997E-7 : f32
    %366 = vector.broadcast %cst_216 : f32 to vector<48x1xf32>
    %367 = arith.addf %363, %366 : vector<48x1xf32>
    %368 = math.rsqrt %367 : vector<48x1xf32>
    %369 = vector.broadcast %368 : vector<48x1xf32> to vector<48x32xf32>
    %370 = arith.mulf %365, %369 : vector<48x32xf32>
    %371 = vector.broadcast %350 : vector<1x32xf32> to vector<48x32xf32>
    %372 = arith.mulf %370, %371 : vector<48x32xf32>
    %373 = vector.broadcast %352 : vector<1x32xf32> to vector<48x32xf32>
    %374 = arith.addf %372, %373 : vector<48x32xf32>
    %c0_217 = arith.constant 0 : index
    %c0_218 = arith.constant 0 : index
    %c0_219 = arith.constant 0 : index
    %375 = vector.load %arg17[%c0_217, %c0_218, %c0_219] : memref<2x32x32xbf16, #tpu.memory_space<vmem>>, vector<1x32x32xbf16>
    %376 = vector.shape_cast %375 : vector<1x32x32xbf16> to vector<32x32xbf16>
    %c0_220 = arith.constant 0 : index
    %c0_221 = arith.constant 0 : index
    %c0_222 = arith.constant 0 : index
    %377 = vector.load %arg18[%c0_220, %c0_221, %c0_222] : memref<2x1x32xf32, #tpu.memory_space<vmem>>, vector<1x1x32xf32>
    %378 = vector.shape_cast %377 : vector<1x1x32xf32> to vector<1x32xf32>
    %379 = arith.truncf %374 : vector<48x32xf32> to vector<48x32xbf16>
    %cst_223 = arith.constant dense<0.000000e+00> : vector<48x32xf32>
    %380 = tpu.matmul %379, %376, %cst_223 {dimension_numbers = #tpu.dot_dimension_numbers<[1], [0], [0], [1], [0, 0, 1, 1], [], []>} : vector<48x32xbf16>, vector<32x32xbf16>, vector<48x32xf32> -> vector<48x32xf32>
    %381 = vector.broadcast %378 : vector<1x32xf32> to vector<48x32xf32>
    %382 = arith.addf %380, %381 : vector<48x32xf32>
    %c0_224 = arith.constant 0 : index
    %c0_225 = arith.constant 0 : index
    %c0_226 = arith.constant 0 : index
    %383 = vector.load %arg19[%c0_224, %c0_225, %c0_226] : memref<2x32x32xbf16, #tpu.memory_space<vmem>>, vector<1x32x32xbf16>
    %384 = vector.shape_cast %383 : vector<1x32x32xbf16> to vector<32x32xbf16>
    %c0_227 = arith.constant 0 : index
    %c0_228 = arith.constant 0 : index
    %c0_229 = arith.constant 0 : index
    %385 = vector.load %arg20[%c0_227, %c0_228, %c0_229] : memref<2x1x32xf32, #tpu.memory_space<vmem>>, vector<1x1x32xf32>
    %386 = vector.shape_cast %385 : vector<1x1x32xf32> to vector<1x32xf32>
    %387 = arith.truncf %374 : vector<48x32xf32> to vector<48x32xbf16>
    %cst_230 = arith.constant dense<0.000000e+00> : vector<48x32xf32>
    %388 = tpu.matmul %387, %384, %cst_230 {dimension_numbers = #tpu.dot_dimension_numbers<[1], [0], [0], [1], [0, 0, 1, 1], [], []>} : vector<48x32xbf16>, vector<32x32xbf16>, vector<48x32xf32> -> vector<48x32xf32>
    %389 = vector.broadcast %386 : vector<1x32xf32> to vector<48x32xf32>
    %390 = arith.addf %388, %389 : vector<48x32xf32>
    %391 = arith.negf %382 : vector<48x32xf32>
    %392 = math.exp %391 : vector<48x32xf32>
    %cst_231 = arith.constant 1.000000e+00 : f32
    %393 = vector.broadcast %cst_231 : f32 to vector<48x32xf32>
    %394 = arith.addf %393, %392 : vector<48x32xf32>
    %395 = arith.divf %393, %394 : vector<48x32xf32>
    %396 = arith.mulf %382, %395 : vector<48x32xf32>
    %397 = arith.mulf %396, %390 : vector<48x32xf32>
    %c0_232 = arith.constant 0 : index
    %c0_233 = arith.constant 0 : index
    %c0_234 = arith.constant 0 : index
    %398 = vector.load %arg21[%c0_232, %c0_233, %c0_234] : memref<2x32x32xbf16, #tpu.memory_space<vmem>>, vector<1x32x32xbf16>
    %399 = vector.shape_cast %398 : vector<1x32x32xbf16> to vector<32x32xbf16>
    %c0_235 = arith.constant 0 : index
    %c0_236 = arith.constant 0 : index
    %c0_237 = arith.constant 0 : index
    %400 = vector.load %arg22[%c0_235, %c0_236, %c0_237] : memref<2x1x32xf32, #tpu.memory_space<vmem>>, vector<1x1x32xf32>
    %401 = vector.shape_cast %400 : vector<1x1x32xf32> to vector<1x32xf32>
    %402 = arith.truncf %397 : vector<48x32xf32> to vector<48x32xbf16>
    %cst_238 = arith.constant dense<0.000000e+00> : vector<48x32xf32>
    %403 = tpu.matmul %402, %399, %cst_238 {dimension_numbers = #tpu.dot_dimension_numbers<[1], [0], [0], [1], [0, 0, 1, 1], [], []>} : vector<48x32xbf16>, vector<32x32xbf16>, vector<48x32xf32> -> vector<48x32xf32>
    %404 = vector.broadcast %401 : vector<1x32xf32> to vector<48x32xf32>
    %405 = arith.addf %403, %404 : vector<48x32xf32>
    %c0_239 = arith.constant 0 : index
    %c0_240 = arith.constant 0 : index
    %c0_241 = arith.constant 0 : index
    %406 = vector.load %arg23[%c0_239, %c0_240, %c0_241] : memref<2x1x32xf32, #tpu.memory_space<vmem>>, vector<1x1x32xf32>
    %407 = vector.shape_cast %406 : vector<1x1x32xf32> to vector<1x32xf32>
    %408 = vector.broadcast %407 : vector<1x32xf32> to vector<48x32xf32>
    %409 = arith.mulf %405, %408 : vector<48x32xf32>
    %410 = arith.addf %348, %409 : vector<48x32xf32>
    %c1_242 = arith.constant 1 : index
    %c0_243 = arith.constant 0 : index
    %c0_244 = arith.constant 0 : index
    %411 = vector.load %arg4[%c1_242, %c0_243, %c0_244] : memref<2x1x32xf32, #tpu.memory_space<vmem>>, vector<1x1x32xf32>
    %412 = vector.shape_cast %411 : vector<1x1x32xf32> to vector<1x32xf32>
    %c1_245 = arith.constant 1 : index
    %c0_246 = arith.constant 0 : index
    %c0_247 = arith.constant 0 : index
    %413 = vector.load %arg5[%c1_245, %c0_246, %c0_247] : memref<2x1x32xf32, #tpu.memory_space<vmem>>, vector<1x1x32xf32>
    %414 = vector.shape_cast %413 : vector<1x1x32xf32> to vector<1x32xf32>
    %cst_248 = arith.constant dense<0.000000e+00> : vector<48xf32>
    %415 = vector.multi_reduction <add>, %410, %cst_248 [1] : vector<48x32xf32> to vector<48xf32>
    %416 = vector.shape_cast %415 : vector<48xf32> to vector<48x1xf32>
    %cst_249 = arith.constant 3.200000e+01 : f32
    %417 = vector.broadcast %cst_249 : f32 to vector<48x1xf32>
    %418 = arith.divf %416, %417 : vector<48x1xf32>
    %419 = vector.broadcast %418 : vector<48x1xf32> to vector<48x32xf32>
    %420 = arith.subf %410, %419 : vector<48x32xf32>
    %421 = arith.mulf %420, %420 : vector<48x32xf32>
    %cst_250 = arith.constant dense<0.000000e+00> : vector<48xf32>
    %422 = vector.multi_reduction <add>, %421, %cst_250 [1] : vector<48x32xf32> to vector<48xf32>
    %423 = vector.shape_cast %422 : vector<48xf32> to vector<48x1xf32>
    %cst_251 = arith.constant 3.200000e+01 : f32
    %424 = vector.broadcast %cst_251 : f32 to vector<48x1xf32>
    %425 = arith.divf %423, %424 : vector<48x1xf32>
    %426 = vector.broadcast %418 : vector<48x1xf32> to vector<48x32xf32>
    %427 = arith.subf %410, %426 : vector<48x32xf32>
    %cst_252 = arith.constant 9.99999997E-7 : f32
    %428 = vector.broadcast %cst_252 : f32 to vector<48x1xf32>
    %429 = arith.addf %425, %428 : vector<48x1xf32>
    %430 = math.rsqrt %429 : vector<48x1xf32>
    %431 = vector.broadcast %430 : vector<48x1xf32> to vector<48x32xf32>
    %432 = arith.mulf %427, %431 : vector<48x32xf32>
    %433 = vector.broadcast %412 : vector<1x32xf32> to vector<48x32xf32>
    %434 = arith.mulf %432, %433 : vector<48x32xf32>
    %435 = vector.broadcast %414 : vector<1x32xf32> to vector<48x32xf32>
    %436 = arith.addf %434, %435 : vector<48x32xf32>
    %437 = arith.truncf %436 : vector<48x32xf32> to vector<48x32xbf16>
    %cst_253 = arith.constant 0.000000e+00 : f32
    %438 = vector.broadcast %cst_253 : f32 to vector<24x32xf32>
    %cst_254 = arith.constant 0.000000e+00 : f32
    %439 = vector.broadcast %cst_254 : f32 to vector<24x32xf32>
    %c1_255 = arith.constant 1 : index
    %c0_256 = arith.constant 0 : index
    %c0_257 = arith.constant 0 : index
    %c0_258 = arith.constant 0 : index
    %440 = vector.load %arg6[%c1_255, %c0_256, %c0_257, %c0_258] : memref<2x4x32x8xbf16, #tpu.memory_space<vmem>>, vector<1x1x32x8xbf16>
    %441 = vector.shape_cast %440 : vector<1x1x32x8xbf16> to vector<32x8xbf16>
    %cst_259 = arith.constant dense<0.000000e+00> : vector<48x8xf32>
    %442 = tpu.matmul %437, %441, %cst_259 {dimension_numbers = #tpu.dot_dimension_numbers<[1], [0], [0], [1], [0, 0, 1, 1], [], []>} : vector<48x32xbf16>, vector<32x8xbf16>, vector<48x8xf32> -> vector<48x8xf32>
    %c1_260 = arith.constant 1 : index
    %c0_261 = arith.constant 0 : index
    %c0_262 = arith.constant 0 : index
    %c0_263 = arith.constant 0 : index
    %443 = vector.load %arg7[%c1_260, %c0_261, %c0_262, %c0_263] : memref<2x4x1x8xf32, #tpu.memory_space<vmem>>, vector<1x1x1x8xf32>
    %444 = vector.shape_cast %443 : vector<1x1x1x8xf32> to vector<1x8xf32>
    %445 = vector.broadcast %444 : vector<1x8xf32> to vector<48x8xf32>
    %446 = arith.addf %442, %445 : vector<48x8xf32>
    %c1_264 = arith.constant 1 : index
    %c0_265 = arith.constant 0 : index
    %c0_266 = arith.constant 0 : index
    %c0_267 = arith.constant 0 : index
    %447 = vector.load %arg8[%c1_264, %c0_265, %c0_266, %c0_267] : memref<2x4x32x8xbf16, #tpu.memory_space<vmem>>, vector<1x1x32x8xbf16>
    %448 = vector.shape_cast %447 : vector<1x1x32x8xbf16> to vector<32x8xbf16>
    %cst_268 = arith.constant dense<0.000000e+00> : vector<48x8xf32>
    %449 = tpu.matmul %437, %448, %cst_268 {dimension_numbers = #tpu.dot_dimension_numbers<[1], [0], [0], [1], [0, 0, 1, 1], [], []>} : vector<48x32xbf16>, vector<32x8xbf16>, vector<48x8xf32> -> vector<48x8xf32>
    %c1_269 = arith.constant 1 : index
    %c0_270 = arith.constant 0 : index
    %c0_271 = arith.constant 0 : index
    %c0_272 = arith.constant 0 : index
    %450 = vector.load %arg9[%c1_269, %c0_270, %c0_271, %c0_272] : memref<2x4x1x8xf32, #tpu.memory_space<vmem>>, vector<1x1x1x8xf32>
    %451 = vector.shape_cast %450 : vector<1x1x1x8xf32> to vector<1x8xf32>
    %452 = vector.broadcast %451 : vector<1x8xf32> to vector<48x8xf32>
    %453 = arith.addf %449, %452 : vector<48x8xf32>
    %c1_273 = arith.constant 1 : index
    %c0_274 = arith.constant 0 : index
    %c0_275 = arith.constant 0 : index
    %c0_276 = arith.constant 0 : index
    %454 = vector.load %arg10[%c1_273, %c0_274, %c0_275, %c0_276] : memref<2x4x32x8xbf16, #tpu.memory_space<vmem>>, vector<1x1x32x8xbf16>
    %455 = vector.shape_cast %454 : vector<1x1x32x8xbf16> to vector<32x8xbf16>
    %cst_277 = arith.constant dense<0.000000e+00> : vector<48x8xf32>
    %456 = tpu.matmul %437, %455, %cst_277 {dimension_numbers = #tpu.dot_dimension_numbers<[1], [0], [0], [1], [0, 0, 1, 1], [], []>} : vector<48x32xbf16>, vector<32x8xbf16>, vector<48x8xf32> -> vector<48x8xf32>
    %c1_278 = arith.constant 1 : index
    %c0_279 = arith.constant 0 : index
    %c0_280 = arith.constant 0 : index
    %c0_281 = arith.constant 0 : index
    %457 = vector.load %arg11[%c1_278, %c0_279, %c0_280, %c0_281] : memref<2x4x1x8xf32, #tpu.memory_space<vmem>>, vector<1x1x1x8xf32>
    %458 = vector.shape_cast %457 : vector<1x1x1x8xf32> to vector<1x8xf32>
    %459 = vector.broadcast %458 : vector<1x8xf32> to vector<48x8xf32>
    %460 = arith.addf %456, %459 : vector<48x8xf32>
    %461 = vector.extract_strided_slice %446 {offsets = [0, 0], sizes = [24, 8], strides = [1, 1]} : vector<48x8xf32> to vector<24x8xf32>
    %462 = arith.truncf %461 : vector<24x8xf32> to vector<24x8xbf16>
    %463 = vector.extract_strided_slice %453 {offsets = [0, 0], sizes = [24, 8], strides = [1, 1]} : vector<48x8xf32> to vector<24x8xf32>
    %464 = arith.truncf %463 : vector<24x8xf32> to vector<24x8xbf16>
    %465 = vector.extract_strided_slice %460 {offsets = [0, 0], sizes = [24, 8], strides = [1, 1]} : vector<48x8xf32> to vector<24x8xf32>
    %466 = arith.truncf %465 : vector<24x8xf32> to vector<24x8xbf16>
    %cst_282 = arith.constant dense<0.000000e+00> : vector<24x24xf32>
    %467 = tpu.matmul %462, %464, %cst_282 {dimension_numbers = #tpu.dot_dimension_numbers<[1], [1], [0], [0], [0, 0, 1, 0], [], []>} : vector<24x8xbf16>, vector<24x8xbf16>, vector<24x24xf32> -> vector<24x24xf32>
    %468 = vector.broadcast %5 : vector<1x24xf32> to vector<24x24xf32>
    %469 = arith.addf %467, %468 : vector<24x24xf32>
    %cst_283 = arith.constant dense<0xFF800000> : vector<24xf32>
    %470 = vector.multi_reduction <maximumf>, %469, %cst_283 [1] : vector<24x24xf32> to vector<24xf32>
    %471 = vector.shape_cast %470 : vector<24xf32> to vector<24x1xf32>
    %472 = vector.broadcast %471 : vector<24x1xf32> to vector<24x24xf32>
    %473 = arith.subf %469, %472 : vector<24x24xf32>
    %474 = math.exp %473 : vector<24x24xf32>
    %cst_284 = arith.constant dense<0.000000e+00> : vector<24xf32>
    %475 = vector.multi_reduction <add>, %474, %cst_284 [1] : vector<24x24xf32> to vector<24xf32>
    %476 = vector.shape_cast %475 : vector<24xf32> to vector<24x1xf32>
    %477 = tpu.reciprocal %476 {approx = true} : vector<24x1xf32> -> vector<24x1xf32>
    %478 = arith.truncf %474 : vector<24x24xf32> to vector<24x24xbf16>
    %cst_285 = arith.constant dense<0.000000e+00> : vector<24x8xf32>
    %479 = tpu.matmul %478, %466, %cst_285 {dimension_numbers = #tpu.dot_dimension_numbers<[1], [0], [0], [1], [0, 0, 1, 1], [], []>} : vector<24x24xbf16>, vector<24x8xbf16>, vector<24x8xf32> -> vector<24x8xf32>
    %480 = vector.broadcast %477 : vector<24x1xf32> to vector<24x8xf32>
    %481 = arith.mulf %479, %480 : vector<24x8xf32>
    %482 = arith.truncf %481 : vector<24x8xf32> to vector<24x8xbf16>
    %c1_286 = arith.constant 1 : index
    %c0_287 = arith.constant 0 : index
    %c0_288 = arith.constant 0 : index
    %c0_289 = arith.constant 0 : index
    %483 = vector.load %arg12[%c1_286, %c0_287, %c0_288, %c0_289] : memref<2x4x8x32xbf16, #tpu.memory_space<vmem>>, vector<1x1x8x32xbf16>
    %484 = vector.shape_cast %483 : vector<1x1x8x32xbf16> to vector<8x32xbf16>
    %cst_290 = arith.constant dense<0.000000e+00> : vector<24x32xf32>
    %485 = tpu.matmul %482, %484, %cst_290 {dimension_numbers = #tpu.dot_dimension_numbers<[1], [0], [0], [1], [0, 0, 1, 1], [], []>} : vector<24x8xbf16>, vector<8x32xbf16>, vector<24x32xf32> -> vector<24x32xf32>
    %486 = arith.addf %438, %485 : vector<24x32xf32>
    %487 = vector.extract_strided_slice %446 {offsets = [24, 0], sizes = [24, 8], strides = [1, 1]} : vector<48x8xf32> to vector<24x8xf32>
    %488 = arith.truncf %487 : vector<24x8xf32> to vector<24x8xbf16>
    %489 = vector.extract_strided_slice %453 {offsets = [24, 0], sizes = [24, 8], strides = [1, 1]} : vector<48x8xf32> to vector<24x8xf32>
    %490 = arith.truncf %489 : vector<24x8xf32> to vector<24x8xbf16>
    %491 = vector.extract_strided_slice %460 {offsets = [24, 0], sizes = [24, 8], strides = [1, 1]} : vector<48x8xf32> to vector<24x8xf32>
    %492 = arith.truncf %491 : vector<24x8xf32> to vector<24x8xbf16>
    %cst_291 = arith.constant dense<0.000000e+00> : vector<24x24xf32>
    %493 = tpu.matmul %488, %490, %cst_291 {dimension_numbers = #tpu.dot_dimension_numbers<[1], [1], [0], [0], [0, 0, 1, 0], [], []>} : vector<24x8xbf16>, vector<24x8xbf16>, vector<24x24xf32> -> vector<24x24xf32>
    %494 = vector.broadcast %5 : vector<1x24xf32> to vector<24x24xf32>
    %495 = arith.addf %493, %494 : vector<24x24xf32>
    %cst_292 = arith.constant dense<0xFF800000> : vector<24xf32>
    %496 = vector.multi_reduction <maximumf>, %495, %cst_292 [1] : vector<24x24xf32> to vector<24xf32>
    %497 = vector.shape_cast %496 : vector<24xf32> to vector<24x1xf32>
    %498 = vector.broadcast %497 : vector<24x1xf32> to vector<24x24xf32>
    %499 = arith.subf %495, %498 : vector<24x24xf32>
    %500 = math.exp %499 : vector<24x24xf32>
    %cst_293 = arith.constant dense<0.000000e+00> : vector<24xf32>
    %501 = vector.multi_reduction <add>, %500, %cst_293 [1] : vector<24x24xf32> to vector<24xf32>
    %502 = vector.shape_cast %501 : vector<24xf32> to vector<24x1xf32>
    %503 = tpu.reciprocal %502 {approx = true} : vector<24x1xf32> -> vector<24x1xf32>
    %504 = arith.truncf %500 : vector<24x24xf32> to vector<24x24xbf16>
    %cst_294 = arith.constant dense<0.000000e+00> : vector<24x8xf32>
    %505 = tpu.matmul %504, %492, %cst_294 {dimension_numbers = #tpu.dot_dimension_numbers<[1], [0], [0], [1], [0, 0, 1, 1], [], []>} : vector<24x24xbf16>, vector<24x8xbf16>, vector<24x8xf32> -> vector<24x8xf32>
    %506 = vector.broadcast %503 : vector<24x1xf32> to vector<24x8xf32>
    %507 = arith.mulf %505, %506 : vector<24x8xf32>
    %508 = arith.truncf %507 : vector<24x8xf32> to vector<24x8xbf16>
    %c1_295 = arith.constant 1 : index
    %c0_296 = arith.constant 0 : index
    %c0_297 = arith.constant 0 : index
    %c0_298 = arith.constant 0 : index
    %509 = vector.load %arg12[%c1_295, %c0_296, %c0_297, %c0_298] : memref<2x4x8x32xbf16, #tpu.memory_space<vmem>>, vector<1x1x8x32xbf16>
    %510 = vector.shape_cast %509 : vector<1x1x8x32xbf16> to vector<8x32xbf16>
    %cst_299 = arith.constant dense<0.000000e+00> : vector<24x32xf32>
    %511 = tpu.matmul %508, %510, %cst_299 {dimension_numbers = #tpu.dot_dimension_numbers<[1], [0], [0], [1], [0, 0, 1, 1], [], []>} : vector<24x8xbf16>, vector<8x32xbf16>, vector<24x32xf32> -> vector<24x32xf32>
    %512 = arith.addf %439, %511 : vector<24x32xf32>
    %c1_300 = arith.constant 1 : index
    %c1_301 = arith.constant 1 : index
    %c0_302 = arith.constant 0 : index
    %c0_303 = arith.constant 0 : index
    %513 = vector.load %arg6[%c1_300, %c1_301, %c0_302, %c0_303] : memref<2x4x32x8xbf16, #tpu.memory_space<vmem>>, vector<1x1x32x8xbf16>
    %514 = vector.shape_cast %513 : vector<1x1x32x8xbf16> to vector<32x8xbf16>
    %cst_304 = arith.constant dense<0.000000e+00> : vector<48x8xf32>
    %515 = tpu.matmul %437, %514, %cst_304 {dimension_numbers = #tpu.dot_dimension_numbers<[1], [0], [0], [1], [0, 0, 1, 1], [], []>} : vector<48x32xbf16>, vector<32x8xbf16>, vector<48x8xf32> -> vector<48x8xf32>
    %c1_305 = arith.constant 1 : index
    %c1_306 = arith.constant 1 : index
    %c0_307 = arith.constant 0 : index
    %c0_308 = arith.constant 0 : index
    %516 = vector.load %arg7[%c1_305, %c1_306, %c0_307, %c0_308] : memref<2x4x1x8xf32, #tpu.memory_space<vmem>>, vector<1x1x1x8xf32>
    %517 = vector.shape_cast %516 : vector<1x1x1x8xf32> to vector<1x8xf32>
    %518 = vector.broadcast %517 : vector<1x8xf32> to vector<48x8xf32>
    %519 = arith.addf %515, %518 : vector<48x8xf32>
    %c1_309 = arith.constant 1 : index
    %c1_310 = arith.constant 1 : index
    %c0_311 = arith.constant 0 : index
    %c0_312 = arith.constant 0 : index
    %520 = vector.load %arg8[%c1_309, %c1_310, %c0_311, %c0_312] : memref<2x4x32x8xbf16, #tpu.memory_space<vmem>>, vector<1x1x32x8xbf16>
    %521 = vector.shape_cast %520 : vector<1x1x32x8xbf16> to vector<32x8xbf16>
    %cst_313 = arith.constant dense<0.000000e+00> : vector<48x8xf32>
    %522 = tpu.matmul %437, %521, %cst_313 {dimension_numbers = #tpu.dot_dimension_numbers<[1], [0], [0], [1], [0, 0, 1, 1], [], []>} : vector<48x32xbf16>, vector<32x8xbf16>, vector<48x8xf32> -> vector<48x8xf32>
    %c1_314 = arith.constant 1 : index
    %c1_315 = arith.constant 1 : index
    %c0_316 = arith.constant 0 : index
    %c0_317 = arith.constant 0 : index
    %523 = vector.load %arg9[%c1_314, %c1_315, %c0_316, %c0_317] : memref<2x4x1x8xf32, #tpu.memory_space<vmem>>, vector<1x1x1x8xf32>
    %524 = vector.shape_cast %523 : vector<1x1x1x8xf32> to vector<1x8xf32>
    %525 = vector.broadcast %524 : vector<1x8xf32> to vector<48x8xf32>
    %526 = arith.addf %522, %525 : vector<48x8xf32>
    %c1_318 = arith.constant 1 : index
    %c1_319 = arith.constant 1 : index
    %c0_320 = arith.constant 0 : index
    %c0_321 = arith.constant 0 : index
    %527 = vector.load %arg10[%c1_318, %c1_319, %c0_320, %c0_321] : memref<2x4x32x8xbf16, #tpu.memory_space<vmem>>, vector<1x1x32x8xbf16>
    %528 = vector.shape_cast %527 : vector<1x1x32x8xbf16> to vector<32x8xbf16>
    %cst_322 = arith.constant dense<0.000000e+00> : vector<48x8xf32>
    %529 = tpu.matmul %437, %528, %cst_322 {dimension_numbers = #tpu.dot_dimension_numbers<[1], [0], [0], [1], [0, 0, 1, 1], [], []>} : vector<48x32xbf16>, vector<32x8xbf16>, vector<48x8xf32> -> vector<48x8xf32>
    %c1_323 = arith.constant 1 : index
    %c1_324 = arith.constant 1 : index
    %c0_325 = arith.constant 0 : index
    %c0_326 = arith.constant 0 : index
    %530 = vector.load %arg11[%c1_323, %c1_324, %c0_325, %c0_326] : memref<2x4x1x8xf32, #tpu.memory_space<vmem>>, vector<1x1x1x8xf32>
    %531 = vector.shape_cast %530 : vector<1x1x1x8xf32> to vector<1x8xf32>
    %532 = vector.broadcast %531 : vector<1x8xf32> to vector<48x8xf32>
    %533 = arith.addf %529, %532 : vector<48x8xf32>
    %534 = vector.extract_strided_slice %519 {offsets = [0, 0], sizes = [24, 8], strides = [1, 1]} : vector<48x8xf32> to vector<24x8xf32>
    %535 = arith.truncf %534 : vector<24x8xf32> to vector<24x8xbf16>
    %536 = vector.extract_strided_slice %526 {offsets = [0, 0], sizes = [24, 8], strides = [1, 1]} : vector<48x8xf32> to vector<24x8xf32>
    %537 = arith.truncf %536 : vector<24x8xf32> to vector<24x8xbf16>
    %538 = vector.extract_strided_slice %533 {offsets = [0, 0], sizes = [24, 8], strides = [1, 1]} : vector<48x8xf32> to vector<24x8xf32>
    %539 = arith.truncf %538 : vector<24x8xf32> to vector<24x8xbf16>
    %cst_327 = arith.constant dense<0.000000e+00> : vector<24x24xf32>
    %540 = tpu.matmul %535, %537, %cst_327 {dimension_numbers = #tpu.dot_dimension_numbers<[1], [1], [0], [0], [0, 0, 1, 0], [], []>} : vector<24x8xbf16>, vector<24x8xbf16>, vector<24x24xf32> -> vector<24x24xf32>
    %541 = vector.broadcast %5 : vector<1x24xf32> to vector<24x24xf32>
    %542 = arith.addf %540, %541 : vector<24x24xf32>
    %cst_328 = arith.constant dense<0xFF800000> : vector<24xf32>
    %543 = vector.multi_reduction <maximumf>, %542, %cst_328 [1] : vector<24x24xf32> to vector<24xf32>
    %544 = vector.shape_cast %543 : vector<24xf32> to vector<24x1xf32>
    %545 = vector.broadcast %544 : vector<24x1xf32> to vector<24x24xf32>
    %546 = arith.subf %542, %545 : vector<24x24xf32>
    %547 = math.exp %546 : vector<24x24xf32>
    %cst_329 = arith.constant dense<0.000000e+00> : vector<24xf32>
    %548 = vector.multi_reduction <add>, %547, %cst_329 [1] : vector<24x24xf32> to vector<24xf32>
    %549 = vector.shape_cast %548 : vector<24xf32> to vector<24x1xf32>
    %550 = tpu.reciprocal %549 {approx = true} : vector<24x1xf32> -> vector<24x1xf32>
    %551 = arith.truncf %547 : vector<24x24xf32> to vector<24x24xbf16>
    %cst_330 = arith.constant dense<0.000000e+00> : vector<24x8xf32>
    %552 = tpu.matmul %551, %539, %cst_330 {dimension_numbers = #tpu.dot_dimension_numbers<[1], [0], [0], [1], [0, 0, 1, 1], [], []>} : vector<24x24xbf16>, vector<24x8xbf16>, vector<24x8xf32> -> vector<24x8xf32>
    %553 = vector.broadcast %550 : vector<24x1xf32> to vector<24x8xf32>
    %554 = arith.mulf %552, %553 : vector<24x8xf32>
    %555 = arith.truncf %554 : vector<24x8xf32> to vector<24x8xbf16>
    %c1_331 = arith.constant 1 : index
    %c1_332 = arith.constant 1 : index
    %c0_333 = arith.constant 0 : index
    %c0_334 = arith.constant 0 : index
    %556 = vector.load %arg12[%c1_331, %c1_332, %c0_333, %c0_334] : memref<2x4x8x32xbf16, #tpu.memory_space<vmem>>, vector<1x1x8x32xbf16>
    %557 = vector.shape_cast %556 : vector<1x1x8x32xbf16> to vector<8x32xbf16>
    %cst_335 = arith.constant dense<0.000000e+00> : vector<24x32xf32>
    %558 = tpu.matmul %555, %557, %cst_335 {dimension_numbers = #tpu.dot_dimension_numbers<[1], [0], [0], [1], [0, 0, 1, 1], [], []>} : vector<24x8xbf16>, vector<8x32xbf16>, vector<24x32xf32> -> vector<24x32xf32>
    %559 = arith.addf %486, %558 : vector<24x32xf32>
    %560 = vector.extract_strided_slice %519 {offsets = [24, 0], sizes = [24, 8], strides = [1, 1]} : vector<48x8xf32> to vector<24x8xf32>
    %561 = arith.truncf %560 : vector<24x8xf32> to vector<24x8xbf16>
    %562 = vector.extract_strided_slice %526 {offsets = [24, 0], sizes = [24, 8], strides = [1, 1]} : vector<48x8xf32> to vector<24x8xf32>
    %563 = arith.truncf %562 : vector<24x8xf32> to vector<24x8xbf16>
    %564 = vector.extract_strided_slice %533 {offsets = [24, 0], sizes = [24, 8], strides = [1, 1]} : vector<48x8xf32> to vector<24x8xf32>
    %565 = arith.truncf %564 : vector<24x8xf32> to vector<24x8xbf16>
    %cst_336 = arith.constant dense<0.000000e+00> : vector<24x24xf32>
    %566 = tpu.matmul %561, %563, %cst_336 {dimension_numbers = #tpu.dot_dimension_numbers<[1], [1], [0], [0], [0, 0, 1, 0], [], []>} : vector<24x8xbf16>, vector<24x8xbf16>, vector<24x24xf32> -> vector<24x24xf32>
    %567 = vector.broadcast %5 : vector<1x24xf32> to vector<24x24xf32>
    %568 = arith.addf %566, %567 : vector<24x24xf32>
    %cst_337 = arith.constant dense<0xFF800000> : vector<24xf32>
    %569 = vector.multi_reduction <maximumf>, %568, %cst_337 [1] : vector<24x24xf32> to vector<24xf32>
    %570 = vector.shape_cast %569 : vector<24xf32> to vector<24x1xf32>
    %571 = vector.broadcast %570 : vector<24x1xf32> to vector<24x24xf32>
    %572 = arith.subf %568, %571 : vector<24x24xf32>
    %573 = math.exp %572 : vector<24x24xf32>
    %cst_338 = arith.constant dense<0.000000e+00> : vector<24xf32>
    %574 = vector.multi_reduction <add>, %573, %cst_338 [1] : vector<24x24xf32> to vector<24xf32>
    %575 = vector.shape_cast %574 : vector<24xf32> to vector<24x1xf32>
    %576 = tpu.reciprocal %575 {approx = true} : vector<24x1xf32> -> vector<24x1xf32>
    %577 = arith.truncf %573 : vector<24x24xf32> to vector<24x24xbf16>
    %cst_339 = arith.constant dense<0.000000e+00> : vector<24x8xf32>
    %578 = tpu.matmul %577, %565, %cst_339 {dimension_numbers = #tpu.dot_dimension_numbers<[1], [0], [0], [1], [0, 0, 1, 1], [], []>} : vector<24x24xbf16>, vector<24x8xbf16>, vector<24x8xf32> -> vector<24x8xf32>
    %579 = vector.broadcast %576 : vector<24x1xf32> to vector<24x8xf32>
    %580 = arith.mulf %578, %579 : vector<24x8xf32>
    %581 = arith.truncf %580 : vector<24x8xf32> to vector<24x8xbf16>
    %c1_340 = arith.constant 1 : index
    %c1_341 = arith.constant 1 : index
    %c0_342 = arith.constant 0 : index
    %c0_343 = arith.constant 0 : index
    %582 = vector.load %arg12[%c1_340, %c1_341, %c0_342, %c0_343] : memref<2x4x8x32xbf16, #tpu.memory_space<vmem>>, vector<1x1x8x32xbf16>
    %583 = vector.shape_cast %582 : vector<1x1x8x32xbf16> to vector<8x32xbf16>
    %cst_344 = arith.constant dense<0.000000e+00> : vector<24x32xf32>
    %584 = tpu.matmul %581, %583, %cst_344 {dimension_numbers = #tpu.dot_dimension_numbers<[1], [0], [0], [1], [0, 0, 1, 1], [], []>} : vector<24x8xbf16>, vector<8x32xbf16>, vector<24x32xf32> -> vector<24x32xf32>
    %585 = arith.addf %512, %584 : vector<24x32xf32>
    %c1_345 = arith.constant 1 : index
    %c2_346 = arith.constant 2 : index
    %c0_347 = arith.constant 0 : index
    %c0_348 = arith.constant 0 : index
    %586 = vector.load %arg6[%c1_345, %c2_346, %c0_347, %c0_348] : memref<2x4x32x8xbf16, #tpu.memory_space<vmem>>, vector<1x1x32x8xbf16>
    %587 = vector.shape_cast %586 : vector<1x1x32x8xbf16> to vector<32x8xbf16>
    %cst_349 = arith.constant dense<0.000000e+00> : vector<48x8xf32>
    %588 = tpu.matmul %437, %587, %cst_349 {dimension_numbers = #tpu.dot_dimension_numbers<[1], [0], [0], [1], [0, 0, 1, 1], [], []>} : vector<48x32xbf16>, vector<32x8xbf16>, vector<48x8xf32> -> vector<48x8xf32>
    %c1_350 = arith.constant 1 : index
    %c2_351 = arith.constant 2 : index
    %c0_352 = arith.constant 0 : index
    %c0_353 = arith.constant 0 : index
    %589 = vector.load %arg7[%c1_350, %c2_351, %c0_352, %c0_353] : memref<2x4x1x8xf32, #tpu.memory_space<vmem>>, vector<1x1x1x8xf32>
    %590 = vector.shape_cast %589 : vector<1x1x1x8xf32> to vector<1x8xf32>
    %591 = vector.broadcast %590 : vector<1x8xf32> to vector<48x8xf32>
    %592 = arith.addf %588, %591 : vector<48x8xf32>
    %c1_354 = arith.constant 1 : index
    %c2_355 = arith.constant 2 : index
    %c0_356 = arith.constant 0 : index
    %c0_357 = arith.constant 0 : index
    %593 = vector.load %arg8[%c1_354, %c2_355, %c0_356, %c0_357] : memref<2x4x32x8xbf16, #tpu.memory_space<vmem>>, vector<1x1x32x8xbf16>
    %594 = vector.shape_cast %593 : vector<1x1x32x8xbf16> to vector<32x8xbf16>
    %cst_358 = arith.constant dense<0.000000e+00> : vector<48x8xf32>
    %595 = tpu.matmul %437, %594, %cst_358 {dimension_numbers = #tpu.dot_dimension_numbers<[1], [0], [0], [1], [0, 0, 1, 1], [], []>} : vector<48x32xbf16>, vector<32x8xbf16>, vector<48x8xf32> -> vector<48x8xf32>
    %c1_359 = arith.constant 1 : index
    %c2_360 = arith.constant 2 : index
    %c0_361 = arith.constant 0 : index
    %c0_362 = arith.constant 0 : index
    %596 = vector.load %arg9[%c1_359, %c2_360, %c0_361, %c0_362] : memref<2x4x1x8xf32, #tpu.memory_space<vmem>>, vector<1x1x1x8xf32>
    %597 = vector.shape_cast %596 : vector<1x1x1x8xf32> to vector<1x8xf32>
    %598 = vector.broadcast %597 : vector<1x8xf32> to vector<48x8xf32>
    %599 = arith.addf %595, %598 : vector<48x8xf32>
    %c1_363 = arith.constant 1 : index
    %c2_364 = arith.constant 2 : index
    %c0_365 = arith.constant 0 : index
    %c0_366 = arith.constant 0 : index
    %600 = vector.load %arg10[%c1_363, %c2_364, %c0_365, %c0_366] : memref<2x4x32x8xbf16, #tpu.memory_space<vmem>>, vector<1x1x32x8xbf16>
    %601 = vector.shape_cast %600 : vector<1x1x32x8xbf16> to vector<32x8xbf16>
    %cst_367 = arith.constant dense<0.000000e+00> : vector<48x8xf32>
    %602 = tpu.matmul %437, %601, %cst_367 {dimension_numbers = #tpu.dot_dimension_numbers<[1], [0], [0], [1], [0, 0, 1, 1], [], []>} : vector<48x32xbf16>, vector<32x8xbf16>, vector<48x8xf32> -> vector<48x8xf32>
    %c1_368 = arith.constant 1 : index
    %c2_369 = arith.constant 2 : index
    %c0_370 = arith.constant 0 : index
    %c0_371 = arith.constant 0 : index
    %603 = vector.load %arg11[%c1_368, %c2_369, %c0_370, %c0_371] : memref<2x4x1x8xf32, #tpu.memory_space<vmem>>, vector<1x1x1x8xf32>
    %604 = vector.shape_cast %603 : vector<1x1x1x8xf32> to vector<1x8xf32>
    %605 = vector.broadcast %604 : vector<1x8xf32> to vector<48x8xf32>
    %606 = arith.addf %602, %605 : vector<48x8xf32>
    %607 = vector.extract_strided_slice %592 {offsets = [0, 0], sizes = [24, 8], strides = [1, 1]} : vector<48x8xf32> to vector<24x8xf32>
    %608 = arith.truncf %607 : vector<24x8xf32> to vector<24x8xbf16>
    %609 = vector.extract_strided_slice %599 {offsets = [0, 0], sizes = [24, 8], strides = [1, 1]} : vector<48x8xf32> to vector<24x8xf32>
    %610 = arith.truncf %609 : vector<24x8xf32> to vector<24x8xbf16>
    %611 = vector.extract_strided_slice %606 {offsets = [0, 0], sizes = [24, 8], strides = [1, 1]} : vector<48x8xf32> to vector<24x8xf32>
    %612 = arith.truncf %611 : vector<24x8xf32> to vector<24x8xbf16>
    %cst_372 = arith.constant dense<0.000000e+00> : vector<24x24xf32>
    %613 = tpu.matmul %608, %610, %cst_372 {dimension_numbers = #tpu.dot_dimension_numbers<[1], [1], [0], [0], [0, 0, 1, 0], [], []>} : vector<24x8xbf16>, vector<24x8xbf16>, vector<24x24xf32> -> vector<24x24xf32>
    %614 = vector.broadcast %5 : vector<1x24xf32> to vector<24x24xf32>
    %615 = arith.addf %613, %614 : vector<24x24xf32>
    %cst_373 = arith.constant dense<0xFF800000> : vector<24xf32>
    %616 = vector.multi_reduction <maximumf>, %615, %cst_373 [1] : vector<24x24xf32> to vector<24xf32>
    %617 = vector.shape_cast %616 : vector<24xf32> to vector<24x1xf32>
    %618 = vector.broadcast %617 : vector<24x1xf32> to vector<24x24xf32>
    %619 = arith.subf %615, %618 : vector<24x24xf32>
    %620 = math.exp %619 : vector<24x24xf32>
    %cst_374 = arith.constant dense<0.000000e+00> : vector<24xf32>
    %621 = vector.multi_reduction <add>, %620, %cst_374 [1] : vector<24x24xf32> to vector<24xf32>
    %622 = vector.shape_cast %621 : vector<24xf32> to vector<24x1xf32>
    %623 = tpu.reciprocal %622 {approx = true} : vector<24x1xf32> -> vector<24x1xf32>
    %624 = arith.truncf %620 : vector<24x24xf32> to vector<24x24xbf16>
    %cst_375 = arith.constant dense<0.000000e+00> : vector<24x8xf32>
    %625 = tpu.matmul %624, %612, %cst_375 {dimension_numbers = #tpu.dot_dimension_numbers<[1], [0], [0], [1], [0, 0, 1, 1], [], []>} : vector<24x24xbf16>, vector<24x8xbf16>, vector<24x8xf32> -> vector<24x8xf32>
    %626 = vector.broadcast %623 : vector<24x1xf32> to vector<24x8xf32>
    %627 = arith.mulf %625, %626 : vector<24x8xf32>
    %628 = arith.truncf %627 : vector<24x8xf32> to vector<24x8xbf16>
    %c1_376 = arith.constant 1 : index
    %c2_377 = arith.constant 2 : index
    %c0_378 = arith.constant 0 : index
    %c0_379 = arith.constant 0 : index
    %629 = vector.load %arg12[%c1_376, %c2_377, %c0_378, %c0_379] : memref<2x4x8x32xbf16, #tpu.memory_space<vmem>>, vector<1x1x8x32xbf16>
    %630 = vector.shape_cast %629 : vector<1x1x8x32xbf16> to vector<8x32xbf16>
    %cst_380 = arith.constant dense<0.000000e+00> : vector<24x32xf32>
    %631 = tpu.matmul %628, %630, %cst_380 {dimension_numbers = #tpu.dot_dimension_numbers<[1], [0], [0], [1], [0, 0, 1, 1], [], []>} : vector<24x8xbf16>, vector<8x32xbf16>, vector<24x32xf32> -> vector<24x32xf32>
    %632 = arith.addf %559, %631 : vector<24x32xf32>
    %633 = vector.extract_strided_slice %592 {offsets = [24, 0], sizes = [24, 8], strides = [1, 1]} : vector<48x8xf32> to vector<24x8xf32>
    %634 = arith.truncf %633 : vector<24x8xf32> to vector<24x8xbf16>
    %635 = vector.extract_strided_slice %599 {offsets = [24, 0], sizes = [24, 8], strides = [1, 1]} : vector<48x8xf32> to vector<24x8xf32>
    %636 = arith.truncf %635 : vector<24x8xf32> to vector<24x8xbf16>
    %637 = vector.extract_strided_slice %606 {offsets = [24, 0], sizes = [24, 8], strides = [1, 1]} : vector<48x8xf32> to vector<24x8xf32>
    %638 = arith.truncf %637 : vector<24x8xf32> to vector<24x8xbf16>
    %cst_381 = arith.constant dense<0.000000e+00> : vector<24x24xf32>
    %639 = tpu.matmul %634, %636, %cst_381 {dimension_numbers = #tpu.dot_dimension_numbers<[1], [1], [0], [0], [0, 0, 1, 0], [], []>} : vector<24x8xbf16>, vector<24x8xbf16>, vector<24x24xf32> -> vector<24x24xf32>
    %640 = vector.broadcast %5 : vector<1x24xf32> to vector<24x24xf32>
    %641 = arith.addf %639, %640 : vector<24x24xf32>
    %cst_382 = arith.constant dense<0xFF800000> : vector<24xf32>
    %642 = vector.multi_reduction <maximumf>, %641, %cst_382 [1] : vector<24x24xf32> to vector<24xf32>
    %643 = vector.shape_cast %642 : vector<24xf32> to vector<24x1xf32>
    %644 = vector.broadcast %643 : vector<24x1xf32> to vector<24x24xf32>
    %645 = arith.subf %641, %644 : vector<24x24xf32>
    %646 = math.exp %645 : vector<24x24xf32>
    %cst_383 = arith.constant dense<0.000000e+00> : vector<24xf32>
    %647 = vector.multi_reduction <add>, %646, %cst_383 [1] : vector<24x24xf32> to vector<24xf32>
    %648 = vector.shape_cast %647 : vector<24xf32> to vector<24x1xf32>
    %649 = tpu.reciprocal %648 {approx = true} : vector<24x1xf32> -> vector<24x1xf32>
    %650 = arith.truncf %646 : vector<24x24xf32> to vector<24x24xbf16>
    %cst_384 = arith.constant dense<0.000000e+00> : vector<24x8xf32>
    %651 = tpu.matmul %650, %638, %cst_384 {dimension_numbers = #tpu.dot_dimension_numbers<[1], [0], [0], [1], [0, 0, 1, 1], [], []>} : vector<24x24xbf16>, vector<24x8xbf16>, vector<24x8xf32> -> vector<24x8xf32>
    %652 = vector.broadcast %649 : vector<24x1xf32> to vector<24x8xf32>
    %653 = arith.mulf %651, %652 : vector<24x8xf32>
    %654 = arith.truncf %653 : vector<24x8xf32> to vector<24x8xbf16>
    %c1_385 = arith.constant 1 : index
    %c2_386 = arith.constant 2 : index
    %c0_387 = arith.constant 0 : index
    %c0_388 = arith.constant 0 : index
    %655 = vector.load %arg12[%c1_385, %c2_386, %c0_387, %c0_388] : memref<2x4x8x32xbf16, #tpu.memory_space<vmem>>, vector<1x1x8x32xbf16>
    %656 = vector.shape_cast %655 : vector<1x1x8x32xbf16> to vector<8x32xbf16>
    %cst_389 = arith.constant dense<0.000000e+00> : vector<24x32xf32>
    %657 = tpu.matmul %654, %656, %cst_389 {dimension_numbers = #tpu.dot_dimension_numbers<[1], [0], [0], [1], [0, 0, 1, 1], [], []>} : vector<24x8xbf16>, vector<8x32xbf16>, vector<24x32xf32> -> vector<24x32xf32>
    %658 = arith.addf %585, %657 : vector<24x32xf32>
    %c1_390 = arith.constant 1 : index
    %c3_391 = arith.constant 3 : index
    %c0_392 = arith.constant 0 : index
    %c0_393 = arith.constant 0 : index
    %659 = vector.load %arg6[%c1_390, %c3_391, %c0_392, %c0_393] : memref<2x4x32x8xbf16, #tpu.memory_space<vmem>>, vector<1x1x32x8xbf16>
    %660 = vector.shape_cast %659 : vector<1x1x32x8xbf16> to vector<32x8xbf16>
    %cst_394 = arith.constant dense<0.000000e+00> : vector<48x8xf32>
    %661 = tpu.matmul %437, %660, %cst_394 {dimension_numbers = #tpu.dot_dimension_numbers<[1], [0], [0], [1], [0, 0, 1, 1], [], []>} : vector<48x32xbf16>, vector<32x8xbf16>, vector<48x8xf32> -> vector<48x8xf32>
    %c1_395 = arith.constant 1 : index
    %c3_396 = arith.constant 3 : index
    %c0_397 = arith.constant 0 : index
    %c0_398 = arith.constant 0 : index
    %662 = vector.load %arg7[%c1_395, %c3_396, %c0_397, %c0_398] : memref<2x4x1x8xf32, #tpu.memory_space<vmem>>, vector<1x1x1x8xf32>
    %663 = vector.shape_cast %662 : vector<1x1x1x8xf32> to vector<1x8xf32>
    %664 = vector.broadcast %663 : vector<1x8xf32> to vector<48x8xf32>
    %665 = arith.addf %661, %664 : vector<48x8xf32>
    %c1_399 = arith.constant 1 : index
    %c3_400 = arith.constant 3 : index
    %c0_401 = arith.constant 0 : index
    %c0_402 = arith.constant 0 : index
    %666 = vector.load %arg8[%c1_399, %c3_400, %c0_401, %c0_402] : memref<2x4x32x8xbf16, #tpu.memory_space<vmem>>, vector<1x1x32x8xbf16>
    %667 = vector.shape_cast %666 : vector<1x1x32x8xbf16> to vector<32x8xbf16>
    %cst_403 = arith.constant dense<0.000000e+00> : vector<48x8xf32>
    %668 = tpu.matmul %437, %667, %cst_403 {dimension_numbers = #tpu.dot_dimension_numbers<[1], [0], [0], [1], [0, 0, 1, 1], [], []>} : vector<48x32xbf16>, vector<32x8xbf16>, vector<48x8xf32> -> vector<48x8xf32>
    %c1_404 = arith.constant 1 : index
    %c3_405 = arith.constant 3 : index
    %c0_406 = arith.constant 0 : index
    %c0_407 = arith.constant 0 : index
    %669 = vector.load %arg9[%c1_404, %c3_405, %c0_406, %c0_407] : memref<2x4x1x8xf32, #tpu.memory_space<vmem>>, vector<1x1x1x8xf32>
    %670 = vector.shape_cast %669 : vector<1x1x1x8xf32> to vector<1x8xf32>
    %671 = vector.broadcast %670 : vector<1x8xf32> to vector<48x8xf32>
    %672 = arith.addf %668, %671 : vector<48x8xf32>
    %c1_408 = arith.constant 1 : index
    %c3_409 = arith.constant 3 : index
    %c0_410 = arith.constant 0 : index
    %c0_411 = arith.constant 0 : index
    %673 = vector.load %arg10[%c1_408, %c3_409, %c0_410, %c0_411] : memref<2x4x32x8xbf16, #tpu.memory_space<vmem>>, vector<1x1x32x8xbf16>
    %674 = vector.shape_cast %673 : vector<1x1x32x8xbf16> to vector<32x8xbf16>
    %cst_412 = arith.constant dense<0.000000e+00> : vector<48x8xf32>
    %675 = tpu.matmul %437, %674, %cst_412 {dimension_numbers = #tpu.dot_dimension_numbers<[1], [0], [0], [1], [0, 0, 1, 1], [], []>} : vector<48x32xbf16>, vector<32x8xbf16>, vector<48x8xf32> -> vector<48x8xf32>
    %c1_413 = arith.constant 1 : index
    %c3_414 = arith.constant 3 : index
    %c0_415 = arith.constant 0 : index
    %c0_416 = arith.constant 0 : index
    %676 = vector.load %arg11[%c1_413, %c3_414, %c0_415, %c0_416] : memref<2x4x1x8xf32, #tpu.memory_space<vmem>>, vector<1x1x1x8xf32>
    %677 = vector.shape_cast %676 : vector<1x1x1x8xf32> to vector<1x8xf32>
    %678 = vector.broadcast %677 : vector<1x8xf32> to vector<48x8xf32>
    %679 = arith.addf %675, %678 : vector<48x8xf32>
    %680 = vector.extract_strided_slice %665 {offsets = [0, 0], sizes = [24, 8], strides = [1, 1]} : vector<48x8xf32> to vector<24x8xf32>
    %681 = arith.truncf %680 : vector<24x8xf32> to vector<24x8xbf16>
    %682 = vector.extract_strided_slice %672 {offsets = [0, 0], sizes = [24, 8], strides = [1, 1]} : vector<48x8xf32> to vector<24x8xf32>
    %683 = arith.truncf %682 : vector<24x8xf32> to vector<24x8xbf16>
    %684 = vector.extract_strided_slice %679 {offsets = [0, 0], sizes = [24, 8], strides = [1, 1]} : vector<48x8xf32> to vector<24x8xf32>
    %685 = arith.truncf %684 : vector<24x8xf32> to vector<24x8xbf16>
    %cst_417 = arith.constant dense<0.000000e+00> : vector<24x24xf32>
    %686 = tpu.matmul %681, %683, %cst_417 {dimension_numbers = #tpu.dot_dimension_numbers<[1], [1], [0], [0], [0, 0, 1, 0], [], []>} : vector<24x8xbf16>, vector<24x8xbf16>, vector<24x24xf32> -> vector<24x24xf32>
    %687 = vector.broadcast %5 : vector<1x24xf32> to vector<24x24xf32>
    %688 = arith.addf %686, %687 : vector<24x24xf32>
    %cst_418 = arith.constant dense<0xFF800000> : vector<24xf32>
    %689 = vector.multi_reduction <maximumf>, %688, %cst_418 [1] : vector<24x24xf32> to vector<24xf32>
    %690 = vector.shape_cast %689 : vector<24xf32> to vector<24x1xf32>
    %691 = vector.broadcast %690 : vector<24x1xf32> to vector<24x24xf32>
    %692 = arith.subf %688, %691 : vector<24x24xf32>
    %693 = math.exp %692 : vector<24x24xf32>
    %cst_419 = arith.constant dense<0.000000e+00> : vector<24xf32>
    %694 = vector.multi_reduction <add>, %693, %cst_419 [1] : vector<24x24xf32> to vector<24xf32>
    %695 = vector.shape_cast %694 : vector<24xf32> to vector<24x1xf32>
    %696 = tpu.reciprocal %695 {approx = true} : vector<24x1xf32> -> vector<24x1xf32>
    %697 = arith.truncf %693 : vector<24x24xf32> to vector<24x24xbf16>
    %cst_420 = arith.constant dense<0.000000e+00> : vector<24x8xf32>
    %698 = tpu.matmul %697, %685, %cst_420 {dimension_numbers = #tpu.dot_dimension_numbers<[1], [0], [0], [1], [0, 0, 1, 1], [], []>} : vector<24x24xbf16>, vector<24x8xbf16>, vector<24x8xf32> -> vector<24x8xf32>
    %699 = vector.broadcast %696 : vector<24x1xf32> to vector<24x8xf32>
    %700 = arith.mulf %698, %699 : vector<24x8xf32>
    %701 = arith.truncf %700 : vector<24x8xf32> to vector<24x8xbf16>
    %c1_421 = arith.constant 1 : index
    %c3_422 = arith.constant 3 : index
    %c0_423 = arith.constant 0 : index
    %c0_424 = arith.constant 0 : index
    %702 = vector.load %arg12[%c1_421, %c3_422, %c0_423, %c0_424] : memref<2x4x8x32xbf16, #tpu.memory_space<vmem>>, vector<1x1x8x32xbf16>
    %703 = vector.shape_cast %702 : vector<1x1x8x32xbf16> to vector<8x32xbf16>
    %cst_425 = arith.constant dense<0.000000e+00> : vector<24x32xf32>
    %704 = tpu.matmul %701, %703, %cst_425 {dimension_numbers = #tpu.dot_dimension_numbers<[1], [0], [0], [1], [0, 0, 1, 1], [], []>} : vector<24x8xbf16>, vector<8x32xbf16>, vector<24x32xf32> -> vector<24x32xf32>
    %705 = arith.addf %632, %704 : vector<24x32xf32>
    %706 = vector.extract_strided_slice %665 {offsets = [24, 0], sizes = [24, 8], strides = [1, 1]} : vector<48x8xf32> to vector<24x8xf32>
    %707 = arith.truncf %706 : vector<24x8xf32> to vector<24x8xbf16>
    %708 = vector.extract_strided_slice %672 {offsets = [24, 0], sizes = [24, 8], strides = [1, 1]} : vector<48x8xf32> to vector<24x8xf32>
    %709 = arith.truncf %708 : vector<24x8xf32> to vector<24x8xbf16>
    %710 = vector.extract_strided_slice %679 {offsets = [24, 0], sizes = [24, 8], strides = [1, 1]} : vector<48x8xf32> to vector<24x8xf32>
    %711 = arith.truncf %710 : vector<24x8xf32> to vector<24x8xbf16>
    %cst_426 = arith.constant dense<0.000000e+00> : vector<24x24xf32>
    %712 = tpu.matmul %707, %709, %cst_426 {dimension_numbers = #tpu.dot_dimension_numbers<[1], [1], [0], [0], [0, 0, 1, 0], [], []>} : vector<24x8xbf16>, vector<24x8xbf16>, vector<24x24xf32> -> vector<24x24xf32>
    %713 = vector.broadcast %5 : vector<1x24xf32> to vector<24x24xf32>
    %714 = arith.addf %712, %713 : vector<24x24xf32>
    %cst_427 = arith.constant dense<0xFF800000> : vector<24xf32>
    %715 = vector.multi_reduction <maximumf>, %714, %cst_427 [1] : vector<24x24xf32> to vector<24xf32>
    %716 = vector.shape_cast %715 : vector<24xf32> to vector<24x1xf32>
    %717 = vector.broadcast %716 : vector<24x1xf32> to vector<24x24xf32>
    %718 = arith.subf %714, %717 : vector<24x24xf32>
    %719 = math.exp %718 : vector<24x24xf32>
    %cst_428 = arith.constant dense<0.000000e+00> : vector<24xf32>
    %720 = vector.multi_reduction <add>, %719, %cst_428 [1] : vector<24x24xf32> to vector<24xf32>
    %721 = vector.shape_cast %720 : vector<24xf32> to vector<24x1xf32>
    %722 = tpu.reciprocal %721 {approx = true} : vector<24x1xf32> -> vector<24x1xf32>
    %723 = arith.truncf %719 : vector<24x24xf32> to vector<24x24xbf16>
    %cst_429 = arith.constant dense<0.000000e+00> : vector<24x8xf32>
    %724 = tpu.matmul %723, %711, %cst_429 {dimension_numbers = #tpu.dot_dimension_numbers<[1], [0], [0], [1], [0, 0, 1, 1], [], []>} : vector<24x24xbf16>, vector<24x8xbf16>, vector<24x8xf32> -> vector<24x8xf32>
    %725 = vector.broadcast %722 : vector<24x1xf32> to vector<24x8xf32>
    %726 = arith.mulf %724, %725 : vector<24x8xf32>
    %727 = arith.truncf %726 : vector<24x8xf32> to vector<24x8xbf16>
    %c1_430 = arith.constant 1 : index
    %c3_431 = arith.constant 3 : index
    %c0_432 = arith.constant 0 : index
    %c0_433 = arith.constant 0 : index
    %728 = vector.load %arg12[%c1_430, %c3_431, %c0_432, %c0_433] : memref<2x4x8x32xbf16, #tpu.memory_space<vmem>>, vector<1x1x8x32xbf16>
    %729 = vector.shape_cast %728 : vector<1x1x8x32xbf16> to vector<8x32xbf16>
    %cst_434 = arith.constant dense<0.000000e+00> : vector<24x32xf32>
    %730 = tpu.matmul %727, %729, %cst_434 {dimension_numbers = #tpu.dot_dimension_numbers<[1], [0], [0], [1], [0, 0, 1, 1], [], []>} : vector<24x8xbf16>, vector<8x32xbf16>, vector<24x32xf32> -> vector<24x32xf32>
    %731 = arith.addf %658, %730 : vector<24x32xf32>
    %732 = tpu.concatenate %705, %731 in 0 : vector<24x32xf32>, vector<24x32xf32> -> vector<48x32xf32>
    %c1_435 = arith.constant 1 : index
    %c0_436 = arith.constant 0 : index
    %c0_437 = arith.constant 0 : index
    %733 = vector.load %arg13[%c1_435, %c0_436, %c0_437] : memref<2x1x32xf32, #tpu.memory_space<vmem>>, vector<1x1x32xf32>
    %734 = vector.shape_cast %733 : vector<1x1x32xf32> to vector<1x32xf32>
    %735 = vector.broadcast %734 : vector<1x32xf32> to vector<48x32xf32>
    %736 = arith.addf %732, %735 : vector<48x32xf32>
    %c1_438 = arith.constant 1 : index
    %c0_439 = arith.constant 0 : index
    %c0_440 = arith.constant 0 : index
    %737 = vector.load %arg14[%c1_438, %c0_439, %c0_440] : memref<2x1x32xf32, #tpu.memory_space<vmem>>, vector<1x1x32xf32>
    %738 = vector.shape_cast %737 : vector<1x1x32xf32> to vector<1x32xf32>
    %739 = vector.broadcast %738 : vector<1x32xf32> to vector<48x32xf32>
    %740 = arith.mulf %736, %739 : vector<48x32xf32>
    %741 = arith.addf %410, %740 : vector<48x32xf32>
    %c1_441 = arith.constant 1 : index
    %c0_442 = arith.constant 0 : index
    %c0_443 = arith.constant 0 : index
    %742 = vector.load %arg15[%c1_441, %c0_442, %c0_443] : memref<2x1x32xf32, #tpu.memory_space<vmem>>, vector<1x1x32xf32>
    %743 = vector.shape_cast %742 : vector<1x1x32xf32> to vector<1x32xf32>
    %c1_444 = arith.constant 1 : index
    %c0_445 = arith.constant 0 : index
    %c0_446 = arith.constant 0 : index
    %744 = vector.load %arg16[%c1_444, %c0_445, %c0_446] : memref<2x1x32xf32, #tpu.memory_space<vmem>>, vector<1x1x32xf32>
    %745 = vector.shape_cast %744 : vector<1x1x32xf32> to vector<1x32xf32>
    %cst_447 = arith.constant dense<0.000000e+00> : vector<48xf32>
    %746 = vector.multi_reduction <add>, %741, %cst_447 [1] : vector<48x32xf32> to vector<48xf32>
    %747 = vector.shape_cast %746 : vector<48xf32> to vector<48x1xf32>
    %cst_448 = arith.constant 3.200000e+01 : f32
    %748 = vector.broadcast %cst_448 : f32 to vector<48x1xf32>
    %749 = arith.divf %747, %748 : vector<48x1xf32>
    %750 = vector.broadcast %749 : vector<48x1xf32> to vector<48x32xf32>
    %751 = arith.subf %741, %750 : vector<48x32xf32>
    %752 = arith.mulf %751, %751 : vector<48x32xf32>
    %cst_449 = arith.constant dense<0.000000e+00> : vector<48xf32>
    %753 = vector.multi_reduction <add>, %752, %cst_449 [1] : vector<48x32xf32> to vector<48xf32>
    %754 = vector.shape_cast %753 : vector<48xf32> to vector<48x1xf32>
    %cst_450 = arith.constant 3.200000e+01 : f32
    %755 = vector.broadcast %cst_450 : f32 to vector<48x1xf32>
    %756 = arith.divf %754, %755 : vector<48x1xf32>
    %757 = vector.broadcast %749 : vector<48x1xf32> to vector<48x32xf32>
    %758 = arith.subf %741, %757 : vector<48x32xf32>
    %cst_451 = arith.constant 9.99999997E-7 : f32
    %759 = vector.broadcast %cst_451 : f32 to vector<48x1xf32>
    %760 = arith.addf %756, %759 : vector<48x1xf32>
    %761 = math.rsqrt %760 : vector<48x1xf32>
    %762 = vector.broadcast %761 : vector<48x1xf32> to vector<48x32xf32>
    %763 = arith.mulf %758, %762 : vector<48x32xf32>
    %764 = vector.broadcast %743 : vector<1x32xf32> to vector<48x32xf32>
    %765 = arith.mulf %763, %764 : vector<48x32xf32>
    %766 = vector.broadcast %745 : vector<1x32xf32> to vector<48x32xf32>
    %767 = arith.addf %765, %766 : vector<48x32xf32>
    %c1_452 = arith.constant 1 : index
    %c0_453 = arith.constant 0 : index
    %c0_454 = arith.constant 0 : index
    %768 = vector.load %arg17[%c1_452, %c0_453, %c0_454] : memref<2x32x32xbf16, #tpu.memory_space<vmem>>, vector<1x32x32xbf16>
    %769 = vector.shape_cast %768 : vector<1x32x32xbf16> to vector<32x32xbf16>
    %c1_455 = arith.constant 1 : index
    %c0_456 = arith.constant 0 : index
    %c0_457 = arith.constant 0 : index
    %770 = vector.load %arg18[%c1_455, %c0_456, %c0_457] : memref<2x1x32xf32, #tpu.memory_space<vmem>>, vector<1x1x32xf32>
    %771 = vector.shape_cast %770 : vector<1x1x32xf32> to vector<1x32xf32>
    %772 = arith.truncf %767 : vector<48x32xf32> to vector<48x32xbf16>
    %cst_458 = arith.constant dense<0.000000e+00> : vector<48x32xf32>
    %773 = tpu.matmul %772, %769, %cst_458 {dimension_numbers = #tpu.dot_dimension_numbers<[1], [0], [0], [1], [0, 0, 1, 1], [], []>} : vector<48x32xbf16>, vector<32x32xbf16>, vector<48x32xf32> -> vector<48x32xf32>
    %774 = vector.broadcast %771 : vector<1x32xf32> to vector<48x32xf32>
    %775 = arith.addf %773, %774 : vector<48x32xf32>
    %c1_459 = arith.constant 1 : index
    %c0_460 = arith.constant 0 : index
    %c0_461 = arith.constant 0 : index
    %776 = vector.load %arg19[%c1_459, %c0_460, %c0_461] : memref<2x32x32xbf16, #tpu.memory_space<vmem>>, vector<1x32x32xbf16>
    %777 = vector.shape_cast %776 : vector<1x32x32xbf16> to vector<32x32xbf16>
    %c1_462 = arith.constant 1 : index
    %c0_463 = arith.constant 0 : index
    %c0_464 = arith.constant 0 : index
    %778 = vector.load %arg20[%c1_462, %c0_463, %c0_464] : memref<2x1x32xf32, #tpu.memory_space<vmem>>, vector<1x1x32xf32>
    %779 = vector.shape_cast %778 : vector<1x1x32xf32> to vector<1x32xf32>
    %780 = arith.truncf %767 : vector<48x32xf32> to vector<48x32xbf16>
    %cst_465 = arith.constant dense<0.000000e+00> : vector<48x32xf32>
    %781 = tpu.matmul %780, %777, %cst_465 {dimension_numbers = #tpu.dot_dimension_numbers<[1], [0], [0], [1], [0, 0, 1, 1], [], []>} : vector<48x32xbf16>, vector<32x32xbf16>, vector<48x32xf32> -> vector<48x32xf32>
    %782 = vector.broadcast %779 : vector<1x32xf32> to vector<48x32xf32>
    %783 = arith.addf %781, %782 : vector<48x32xf32>
    %784 = arith.negf %775 : vector<48x32xf32>
    %785 = math.exp %784 : vector<48x32xf32>
    %cst_466 = arith.constant 1.000000e+00 : f32
    %786 = vector.broadcast %cst_466 : f32 to vector<48x32xf32>
    %787 = arith.addf %786, %785 : vector<48x32xf32>
    %788 = arith.divf %786, %787 : vector<48x32xf32>
    %789 = arith.mulf %775, %788 : vector<48x32xf32>
    %790 = arith.mulf %789, %783 : vector<48x32xf32>
    %c1_467 = arith.constant 1 : index
    %c0_468 = arith.constant 0 : index
    %c0_469 = arith.constant 0 : index
    %791 = vector.load %arg21[%c1_467, %c0_468, %c0_469] : memref<2x32x32xbf16, #tpu.memory_space<vmem>>, vector<1x32x32xbf16>
    %792 = vector.shape_cast %791 : vector<1x32x32xbf16> to vector<32x32xbf16>
    %c1_470 = arith.constant 1 : index
    %c0_471 = arith.constant 0 : index
    %c0_472 = arith.constant 0 : index
    %793 = vector.load %arg22[%c1_470, %c0_471, %c0_472] : memref<2x1x32xf32, #tpu.memory_space<vmem>>, vector<1x1x32xf32>
    %794 = vector.shape_cast %793 : vector<1x1x32xf32> to vector<1x32xf32>
    %795 = arith.truncf %790 : vector<48x32xf32> to vector<48x32xbf16>
    %cst_473 = arith.constant dense<0.000000e+00> : vector<48x32xf32>
    %796 = tpu.matmul %795, %792, %cst_473 {dimension_numbers = #tpu.dot_dimension_numbers<[1], [0], [0], [1], [0, 0, 1, 1], [], []>} : vector<48x32xbf16>, vector<32x32xbf16>, vector<48x32xf32> -> vector<48x32xf32>
    %797 = vector.broadcast %794 : vector<1x32xf32> to vector<48x32xf32>
    %798 = arith.addf %796, %797 : vector<48x32xf32>
    %c1_474 = arith.constant 1 : index
    %c0_475 = arith.constant 0 : index
    %c0_476 = arith.constant 0 : index
    %799 = vector.load %arg23[%c1_474, %c0_475, %c0_476] : memref<2x1x32xf32, #tpu.memory_space<vmem>>, vector<1x1x32xf32>
    %800 = vector.shape_cast %799 : vector<1x1x32xf32> to vector<1x32xf32>
    %801 = vector.broadcast %800 : vector<1x32xf32> to vector<48x32xf32>
    %802 = arith.mulf %798, %801 : vector<48x32xf32>
    %803 = arith.addf %741, %802 : vector<48x32xf32>
    %c0_477 = arith.constant 0 : index
    %c0_478 = arith.constant 0 : index
    %804 = vector.load %arg24[%c0_477, %c0_478] : memref<1x32xf32, #tpu.memory_space<vmem>>, vector<1x32xf32>
    %c0_479 = arith.constant 0 : index
    %c0_480 = arith.constant 0 : index
    %805 = vector.load %arg25[%c0_479, %c0_480] : memref<1x32xf32, #tpu.memory_space<vmem>>, vector<1x32xf32>
    %cst_481 = arith.constant dense<0.000000e+00> : vector<48xf32>
    %806 = vector.multi_reduction <add>, %803, %cst_481 [1] : vector<48x32xf32> to vector<48xf32>
    %807 = vector.shape_cast %806 : vector<48xf32> to vector<48x1xf32>
    %cst_482 = arith.constant 3.200000e+01 : f32
    %808 = vector.broadcast %cst_482 : f32 to vector<48x1xf32>
    %809 = arith.divf %807, %808 : vector<48x1xf32>
    %810 = vector.broadcast %809 : vector<48x1xf32> to vector<48x32xf32>
    %811 = arith.subf %803, %810 : vector<48x32xf32>
    %812 = arith.mulf %811, %811 : vector<48x32xf32>
    %cst_483 = arith.constant dense<0.000000e+00> : vector<48xf32>
    %813 = vector.multi_reduction <add>, %812, %cst_483 [1] : vector<48x32xf32> to vector<48xf32>
    %814 = vector.shape_cast %813 : vector<48xf32> to vector<48x1xf32>
    %cst_484 = arith.constant 3.200000e+01 : f32
    %815 = vector.broadcast %cst_484 : f32 to vector<48x1xf32>
    %816 = arith.divf %814, %815 : vector<48x1xf32>
    %817 = vector.broadcast %809 : vector<48x1xf32> to vector<48x32xf32>
    %818 = arith.subf %803, %817 : vector<48x32xf32>
    %cst_485 = arith.constant 9.99999997E-7 : f32
    %819 = vector.broadcast %cst_485 : f32 to vector<48x1xf32>
    %820 = arith.addf %816, %819 : vector<48x1xf32>
    %821 = math.rsqrt %820 : vector<48x1xf32>
    %822 = vector.broadcast %821 : vector<48x1xf32> to vector<48x32xf32>
    %823 = arith.mulf %818, %822 : vector<48x32xf32>
    %824 = vector.broadcast %804 : vector<1x32xf32> to vector<48x32xf32>
    %825 = arith.mulf %823, %824 : vector<48x32xf32>
    %826 = vector.broadcast %805 : vector<1x32xf32> to vector<48x32xf32>
    %827 = arith.addf %825, %826 : vector<48x32xf32>
    %828 = vector.extract_strided_slice %827 {offsets = [0, 0], sizes = [24, 32], strides = [1, 1]} : vector<48x32xf32> to vector<24x32xf32>
    %829 = vector.extract_strided_slice %828 {offsets = [0, 0], sizes = [1, 32], strides = [1, 1]} : vector<24x32xf32> to vector<1x32xf32>
    %830 = vector.broadcast %11 : vector<24x1xf32> to vector<24x32xf32>
    %831 = arith.mulf %828, %830 : vector<24x32xf32>
    %cst_486 = arith.constant dense<0.000000e+00> : vector<32xf32>
    %832 = vector.multi_reduction <add>, %831, %cst_486 [0] : vector<24x32xf32> to vector<32xf32>
    %833 = vector.shape_cast %832 : vector<32xf32> to vector<1x32xf32>
    %834 = arith.subf %833, %829 : vector<1x32xf32>
    %cst_487 = arith.constant 6.250000e-02 : f32
    %835 = vector.broadcast %cst_487 : f32 to vector<1x32xf32>
    %836 = arith.mulf %834, %835 : vector<1x32xf32>
    %837 = tpu.concatenate %829, %836 in 0 : vector<1x32xf32>, vector<1x32xf32> -> vector<2x32xf32>
    %c0_488 = arith.constant 0 : index
    %c0_489 = arith.constant 0 : index
    %c0_490 = arith.constant 0 : index
    %838 = vector.load %arg26[%c0_488, %c0_489, %c0_490] : memref<2x2x32xf32, #tpu.memory_space<vmem>>, vector<1x2x32xf32>
    %839 = vector.shape_cast %838 : vector<1x2x32xf32> to vector<2x32xf32>
    %840 = vector.shape_cast %837 : vector<2x32xf32> to vector<1x2x32xf32>
    tpu.vector_store %arg26[%c0_488, %c0_489, %c0_490], %840 {strides = array<i32>} : memref<2x2x32xf32, #tpu.memory_space<vmem>>, vector<1x2x32xf32>,
    %841 = vector.extract_strided_slice %827 {offsets = [24, 0], sizes = [24, 32], strides = [1, 1]} : vector<48x32xf32> to vector<24x32xf32>
    %842 = vector.extract_strided_slice %841 {offsets = [0, 0], sizes = [1, 32], strides = [1, 1]} : vector<24x32xf32> to vector<1x32xf32>
    %843 = vector.broadcast %11 : vector<24x1xf32> to vector<24x32xf32>
    %844 = arith.mulf %841, %843 : vector<24x32xf32>
    %cst_491 = arith.constant dense<0.000000e+00> : vector<32xf32>
    %845 = vector.multi_reduction <add>, %844, %cst_491 [0] : vector<24x32xf32> to vector<32xf32>
    %846 = vector.shape_cast %845 : vector<32xf32> to vector<1x32xf32>
    %847 = arith.subf %846, %842 : vector<1x32xf32>
    %cst_492 = arith.constant 6.250000e-02 : f32
    %848 = vector.broadcast %cst_492 : f32 to vector<1x32xf32>
    %849 = arith.mulf %847, %848 : vector<1x32xf32>
    %850 = tpu.concatenate %842, %849 in 0 : vector<1x32xf32>, vector<1x32xf32> -> vector<2x32xf32>
    %c1_493 = arith.constant 1 : index
    %c0_494 = arith.constant 0 : index
    %c0_495 = arith.constant 0 : index
    %851 = vector.load %arg26[%c1_493, %c0_494, %c0_495] : memref<2x2x32xf32, #tpu.memory_space<vmem>>, vector<1x2x32xf32>
    %852 = vector.shape_cast %851 : vector<1x2x32xf32> to vector<2x32xf32>
    %853 = vector.shape_cast %850 : vector<2x32xf32> to vector<1x2x32xf32>
    tpu.vector_store %arg26[%c1_493, %c0_494, %c0_495], %853 {strides = array<i32>} : memref<2x2x32xf32, #tpu.memory_space<vmem>>, vector<1x2x32xf32>,
    return
  }
  func.func @transform_0(%arg0: i32) -> (i32, i32) {
    %c0_i32 = arith.constant 0 : i32
    %c0_i32_0 = arith.constant 0 : i32
    return %arg0, %c0_i32 : i32, i32
  }
  func.func @transform_1(%arg0: i32) -> (i32, i32) {
    %c0_i32 = arith.constant 0 : i32
    %c0_i32_0 = arith.constant 0 : i32
    %c0_i32_1 = arith.constant 0 : i32
    return %c0_i32, %c0_i32_0 : i32, i32
  }
  func.func @transform_2(%arg0: i32) -> (i32, i32) {
    %c0_i32 = arith.constant 0 : i32
    %c0_i32_0 = arith.constant 0 : i32
    %c0_i32_1 = arith.constant 0 : i32
    return %c0_i32, %c0_i32_0 : i32, i32
  }
  func.func @transform_3(%arg0: i32) -> (i32, i32, i32) {
    %c0_i32 = arith.constant 0 : i32
    %c0_i32_0 = arith.constant 0 : i32
    %c0_i32_1 = arith.constant 0 : i32
    %c0_i32_2 = arith.constant 0 : i32
    return %c0_i32, %c0_i32_0, %c0_i32_1 : i32, i32, i32
  }
  func.func @transform_4(%arg0: i32) -> (i32, i32, i32) {
    %c0_i32 = arith.constant 0 : i32
    %c0_i32_0 = arith.constant 0 : i32
    %c0_i32_1 = arith.constant 0 : i32
    %c0_i32_2 = arith.constant 0 : i32
    return %c0_i32, %c0_i32_0, %c0_i32_1 : i32, i32, i32
  }
  func.func @transform_5(%arg0: i32) -> (i32, i32, i32, i32) {
    %c0_i32 = arith.constant 0 : i32
    %c0_i32_0 = arith.constant 0 : i32
    %c0_i32_1 = arith.constant 0 : i32
    %c0_i32_2 = arith.constant 0 : i32
    %c0_i32_3 = arith.constant 0 : i32
    return %c0_i32, %c0_i32_0, %c0_i32_1, %c0_i32_2 : i32, i32, i32, i32
  }
  func.func @transform_6(%arg0: i32) -> (i32, i32, i32, i32) {
    %c0_i32 = arith.constant 0 : i32
    %c0_i32_0 = arith.constant 0 : i32
    %c0_i32_1 = arith.constant 0 : i32
    %c0_i32_2 = arith.constant 0 : i32
    %c0_i32_3 = arith.constant 0 : i32
    return %c0_i32, %c0_i32_0, %c0_i32_1, %c0_i32_2 : i32, i32, i32, i32
  }
  func.func @transform_7(%arg0: i32) -> (i32, i32, i32, i32) {
    %c0_i32 = arith.constant 0 : i32
    %c0_i32_0 = arith.constant 0 : i32
    %c0_i32_1 = arith.constant 0 : i32
    %c0_i32_2 = arith.constant 0 : i32
    %c0_i32_3 = arith.constant 0 : i32
    return %c0_i32, %c0_i32_0, %c0_i32_1, %c0_i32_2 : i32, i32, i32, i32
  }
  func.func @transform_8(%arg0: i32) -> (i32, i32, i32, i32) {
    %c0_i32 = arith.constant 0 : i32
    %c0_i32_0 = arith.constant 0 : i32
    %c0_i32_1 = arith.constant 0 : i32
    %c0_i32_2 = arith.constant 0 : i32
    %c0_i32_3 = arith.constant 0 : i32
    return %c0_i32, %c0_i32_0, %c0_i32_1, %c0_i32_2 : i32, i32, i32, i32
  }
  func.func @transform_9(%arg0: i32) -> (i32, i32, i32, i32) {
    %c0_i32 = arith.constant 0 : i32
    %c0_i32_0 = arith.constant 0 : i32
    %c0_i32_1 = arith.constant 0 : i32
    %c0_i32_2 = arith.constant 0 : i32
    %c0_i32_3 = arith.constant 0 : i32
    return %c0_i32, %c0_i32_0, %c0_i32_1, %c0_i32_2 : i32, i32, i32, i32
  }
  func.func @transform_10(%arg0: i32) -> (i32, i32, i32, i32) {
    %c0_i32 = arith.constant 0 : i32
    %c0_i32_0 = arith.constant 0 : i32
    %c0_i32_1 = arith.constant 0 : i32
    %c0_i32_2 = arith.constant 0 : i32
    %c0_i32_3 = arith.constant 0 : i32
    return %c0_i32, %c0_i32_0, %c0_i32_1, %c0_i32_2 : i32, i32, i32, i32
  }
  func.func @transform_11(%arg0: i32) -> (i32, i32, i32, i32) {
    %c0_i32 = arith.constant 0 : i32
    %c0_i32_0 = arith.constant 0 : i32
    %c0_i32_1 = arith.constant 0 : i32
    %c0_i32_2 = arith.constant 0 : i32
    %c0_i32_3 = arith.constant 0 : i32
    return %c0_i32, %c0_i32_0, %c0_i32_1, %c0_i32_2 : i32, i32, i32, i32
  }
  func.func @transform_12(%arg0: i32) -> (i32, i32, i32) {
    %c0_i32 = arith.constant 0 : i32
    %c0_i32_0 = arith.constant 0 : i32
    %c0_i32_1 = arith.constant 0 : i32
    %c0_i32_2 = arith.constant 0 : i32
    return %c0_i32, %c0_i32_0, %c0_i32_1 : i32, i32, i32
  }
  func.func @transform_13(%arg0: i32) -> (i32, i32, i32) {
    %c0_i32 = arith.constant 0 : i32
    %c0_i32_0 = arith.constant 0 : i32
    %c0_i32_1 = arith.constant 0 : i32
    %c0_i32_2 = arith.constant 0 : i32
    return %c0_i32, %c0_i32_0, %c0_i32_1 : i32, i32, i32
  }
  func.func @transform_14(%arg0: i32) -> (i32, i32, i32) {
    %c0_i32 = arith.constant 0 : i32
    %c0_i32_0 = arith.constant 0 : i32
    %c0_i32_1 = arith.constant 0 : i32
    %c0_i32_2 = arith.constant 0 : i32
    return %c0_i32, %c0_i32_0, %c0_i32_1 : i32, i32, i32
  }
  func.func @transform_15(%arg0: i32) -> (i32, i32, i32) {
    %c0_i32 = arith.constant 0 : i32
    %c0_i32_0 = arith.constant 0 : i32
    %c0_i32_1 = arith.constant 0 : i32
    %c0_i32_2 = arith.constant 0 : i32
    return %c0_i32, %c0_i32_0, %c0_i32_1 : i32, i32, i32
  }
  func.func @transform_16(%arg0: i32) -> (i32, i32, i32) {
    %c0_i32 = arith.constant 0 : i32
    %c0_i32_0 = arith.constant 0 : i32
    %c0_i32_1 = arith.constant 0 : i32
    %c0_i32_2 = arith.constant 0 : i32
    return %c0_i32, %c0_i32_0, %c0_i32_1 : i32, i32, i32
  }
  func.func @transform_17(%arg0: i32) -> (i32, i32, i32) {
    %c0_i32 = arith.constant 0 : i32
    %c0_i32_0 = arith.constant 0 : i32
    %c0_i32_1 = arith.constant 0 : i32
    %c0_i32_2 = arith.constant 0 : i32
    return %c0_i32, %c0_i32_0, %c0_i32_1 : i32, i32, i32
  }
  func.func @transform_18(%arg0: i32) -> (i32, i32, i32) {
    %c0_i32 = arith.constant 0 : i32
    %c0_i32_0 = arith.constant 0 : i32
    %c0_i32_1 = arith.constant 0 : i32
    %c0_i32_2 = arith.constant 0 : i32
    return %c0_i32, %c0_i32_0, %c0_i32_1 : i32, i32, i32
  }
  func.func @transform_19(%arg0: i32) -> (i32, i32, i32) {
    %c0_i32 = arith.constant 0 : i32
    %c0_i32_0 = arith.constant 0 : i32
    %c0_i32_1 = arith.constant 0 : i32
    %c0_i32_2 = arith.constant 0 : i32
    return %c0_i32, %c0_i32_0, %c0_i32_1 : i32, i32, i32
  }
  func.func @transform_20(%arg0: i32) -> (i32, i32, i32) {
    %c0_i32 = arith.constant 0 : i32
    %c0_i32_0 = arith.constant 0 : i32
    %c0_i32_1 = arith.constant 0 : i32
    %c0_i32_2 = arith.constant 0 : i32
    return %c0_i32, %c0_i32_0, %c0_i32_1 : i32, i32, i32
  }
  func.func @transform_21(%arg0: i32) -> (i32, i32, i32) {
    %c0_i32 = arith.constant 0 : i32
    %c0_i32_0 = arith.constant 0 : i32
    %c0_i32_1 = arith.constant 0 : i32
    %c0_i32_2 = arith.constant 0 : i32
    return %c0_i32, %c0_i32_0, %c0_i32_1 : i32, i32, i32
  }
  func.func @transform_22(%arg0: i32) -> (i32, i32, i32) {
    %c0_i32 = arith.constant 0 : i32
    %c0_i32_0 = arith.constant 0 : i32
    %c0_i32_1 = arith.constant 0 : i32
    %c0_i32_2 = arith.constant 0 : i32
    return %c0_i32, %c0_i32_0, %c0_i32_1 : i32, i32, i32
  }
  func.func @transform_23(%arg0: i32) -> (i32, i32) {
    %c0_i32 = arith.constant 0 : i32
    %c0_i32_0 = arith.constant 0 : i32
    %c0_i32_1 = arith.constant 0 : i32
    return %c0_i32, %c0_i32_0 : i32, i32
  }
  func.func @transform_24(%arg0: i32) -> (i32, i32) {
    %c0_i32 = arith.constant 0 : i32
    %c0_i32_0 = arith.constant 0 : i32
    %c0_i32_1 = arith.constant 0 : i32
    return %c0_i32, %c0_i32_0 : i32, i32
  }
  func.func @transform_25(%arg0: i32) -> (i32, i32, i32) {
    %c0_i32 = arith.constant 0 : i32
    %c0_i32_0 = arith.constant 0 : i32
    %c0_i32_1 = arith.constant 0 : i32
    return %arg0, %c0_i32, %c0_i32_0 : i32, i32, i32
  }
}

</mosaic_0001>

<bundles_post_ra>
// kernel: virchow_forward.1
= control target key start
LH: loop header
LB: loop body
LE: loop exit
PB: predicated region body
PF: predicated region fallthrough
CT: control target
= control target key end

     0   :  { %s9943_s29 = smov 0   ;;  %s11795_s0 = inlined_call_operand.vmem [shape: f32[96,48], index: 0, kind: input, shape index: {}]   ;;  %s11796_s1 = inlined_call_operand.vmem [shape: f32[48,32], index: 1, kind: input, shape index: {}]   ;;  %s11797_s2 = inlined_call_operand.vmem [shape: bf16[48,32], index: 2, kind: input, shape index: {}]   ;;  %s11798_s3 = inlined_call_operand.vmem [shape: f32[2,1,32], index: 3, kind: input, shape index: {}]   ;;  %s11799_s4 = inlined_call_operand.vmem [shape: f32[2,1,32], index: 4, kind: input, shape index: {}]   ;;  %s11800_s5 = inlined_call_operand.vmem [shape: bf16[2,4,32,8], index: 5, kind: input, shape index: {}]   ;;  %s11801_s6 = inlined_call_operand.vmem [shape: f32[2,4,1,8], index: 6, kind: input, shape index: {}]   ;;  %s11802_s7 = inlined_call_operand.vmem [shape: bf16[2,4,32,8], index: 7, kind: input, shape index: {}]   ;;  %s11803_s8 = inlined_call_operand.vmem [shape: f32[2,4,1,8], index: 8, kind: input, shape index: {}]   ;;  %s11804_s9 = inlined_call_operand.vmem [shape: bf16[2,4,32,8], index: 9, kind: input, shape index: {}]   ;;  %s11805_s10 = inlined_call_operand.vmem [shape: f32[2,4,1,8], index: 10, kind: input, shape index: {}]   ;;  %s11806_s11 = inlined_call_operand.vmem [shape: bf16[2,4,8,32], index: 11, kind: input, shape index: {}]   ;;  %s11807_s12 = inlined_call_operand.vmem [shape: f32[2,1,32], index: 12, kind: input, shape index: {}]   ;;  %s11808_s13 = inlined_call_operand.vmem [shape: f32[2,1,32], index: 13, kind: input, shape index: {}]   ;;  %s11809_s14 = inlined_call_operand.vmem [shape: f32[2,1,32], index: 14, kind: input, shape index: {}]   ;;  %s11810_s15 = inlined_call_operand.vmem [shape: f32[2,1,32], index: 15, kind: input, shape index: {}]   ;;  %s11811_s16 = inlined_call_operand.vmem [shape: bf16[2,32,32], index: 16, kind: input, shape index: {}]   ;;  %s11812_s17 = inlined_call_operand.vmem [shape: f32[2,1,32], index: 17, kind: input, shape index: {}]   ;;  %s11813_s18 = inlined_call_operand.vmem [shape: bf16[2,32,32], index: 18, kind: input, shape index: {}]   ;;  %s11814_s19 = inlined_call_operand.vmem [shape: f32[2,1,32], index: 19, kind: input, shape index: {}]   ;;  %s11815_s20 = inlined_call_operand.vmem [shape: bf16[2,32,32], index: 20, kind: input, shape index: {}]   ;;  %s11816_s21 = inlined_call_operand.vmem [shape: f32[2,1,32], index: 21, kind: input, shape index: {}]   ;;  %s11817_s22 = inlined_call_operand.vmem [shape: f32[2,1,32], index: 22, kind: input, shape index: {}]   ;;  %s11818_s23 = inlined_call_operand.vmem [shape: f32[1,32], index: 23, kind: input, shape index: {}]   ;;  %s11819_s24 = inlined_call_operand.vmem [shape: f32[1,32], index: 24, kind: input, shape index: {}]   ;;  %s11820_s25 = inlined_call_operand.vmem [shape: f32[4,2,32], index: 25, kind: output, shape index: {}]  }
   0x1   :  { %11833 = sst [smem:[#allocation2_spill]] %s11795_s0 }
   0x2   :  { %11834 = sst [smem:[#allocation3_spill]] %s11796_s1 }
   0x3   :  { %11835 = sst [smem:[#allocation4_spill]] %s11797_s2 }
   0x4   :  { %11836 = sst [smem:[#allocation5_spill]] %s11798_s3 }
   0x5   :  { %11837 = sst [smem:[#allocation6_spill]] %s11799_s4 }
   0x6   :  { %11838 = sst [smem:[#allocation7_spill]] %s11800_s5 }
   0x7   :  { %11839 = sst [smem:[#allocation8_spill]] %s11801_s6 }
   0x8   :  { %11840 = sst [smem:[#allocation9_spill]] %s11802_s7 }
   0x9   :  { %11841 = sst [smem:[#allocation10_spill]] %s11803_s8 }
   0xa   :  { %11842 = sst [smem:[#allocation11_spill]] %s11804_s9 }
   0xb   :  { %11843 = sst [smem:[#allocation12_spill]] %s11820_s25 }
   0xc LB: > { %s11830_s2 = sadd.s32 4294967295, %s9808_s29   ;;  %p7731_p0 = scmp.ge.s32.totalorder %s9808_s29, 1  ;;  %s9808_s29 = sphi %s9943_s29, %s35_s29  }
   0xd   : > { %p688_p1 = scmp.lt.s32.totalorder %s9808_s29, 3 }
   0xf   : > { %p689_p2 = pnand %p7731_p0, %p688_p1 }
  0x10   : > { %s11844_s7 = sld [smem:[#allocation4_spill]] (!%p689_p2)  ;;  %s756_s1 = smul.u32 (!%p689_p2), 6, %s11830_s2 }
  0x11   : > { %692 = sbr.rel (%p689_p2) target bundleno = 11021 (0x2b0d), region = 120  ;;  %s11845_s5 = sld [smem:[#allocation2_spill]] (!%p689_p2) }
  0x12   : > { %p757_p3 = scmp.lt.s32.totalorder (!%p689_p2), %s756_s1, 11  ;;  %s11846_s3 = sld [smem:[#allocation3_spill]] (!%p689_p2) }
  0x13   : > { %s11849_s26 = sld [smem:[#allocation5_spill]] (!%p689_p2)  ;;  %s11854_s2 = sadd.s32 (!%p689_p2), 4294967295, %s9808_s29  }
  0x14   : > { %s11850_s28 = sld [smem:[#allocation6_spill]] (!%p689_p2) }
  0x15   : > { %s11852_s9 = sld [smem:[#allocation8_spill]] (!%p689_p2) }
  0x16   : > { %v9439_v0 = vld [vmem:[%s11844_s7 + $0x10] sm:$0xff]   ;;  %v9810_v1 = vmov 0.0   ;;  %v9440_v2 = vld [vmem:[%s11844_s7 + $0x8] sm:$0xff]   ;;  %vm9811_vm0 = vmmov 0   ;;  %v9441_v3 = vld [vmem:[%s11844_s7] sm:$0xff]   ;;  %s11857_s1 = smov (!%p757_p3, %s756_s1), 11 }
  0x17   : > { %8514 = vmatprep.subr.bf16.mxu0 %v9810_v1  ;;  %8532 = vmatprep.subr.bf16.mxu1 %v9810_v1  ;;  %s7732_s4 = sshll.u32 %s11857_s1, 3  ;;  %vm822_vm1 = vcmask 392192   ;;  %vm891_vm2 = vcmask 261120   ;;  %s11847_s1 = sld [smem:[#allocation7_spill]]  ;;  %vm1253_vm3 = vcmask 64512   ;;  %vm1353_vm4 = vcmask 1043456  }
  0x18   : > { %8515 = vmatpush3.bf16.msra.mxu0 %v9439_v0  ;;  %8520 = vmatprep.mubr.msk.bf16.mxu0 %vm9811_vm0, %v9810_v1  ;;  %s760_s0 = scalar_lea.vmem %s11845_s5, %s7732_s4  ;;  %v798_v13 = vld [vmem:[%s11846_s3] sm:$0xff]  ;;  %v799_v17 = vld [vmem:[%s11846_s3 + $0x8] sm:$0xff]  ;;  %v800_v22 = vld [vmem:[%s11846_s3 + $0x10] sm:$0xff]  ;;  %s11848_s4 = sld [smem:[#allocation11_spill]]  ;;  %vm1314_vm6 = vcmask 195584   ;;  %vm7645_vm8 = vcmask 1040384  }
  0x19   : > { %8516 = vmatprep.subr.bf16.mxu0 %v9810_v1  ;;  %8536 = vmatprep.mubr.msk.bf16.mxu1 %vm9811_vm0, %v9810_v1  ;;  %v783_v4 = vld [vmem:[%s760_s0] sm:$0xff]  ;;  %v784_v5 = vld [vmem:[%s760_s0 + $0x8] sm:$0xff]  ;;  %v785_v7 = vld [vmem:[%s760_s0 + $0x10] sm:$0xff]  ;;  %s11853_s27 = sld [smem:[#allocation10_spill]]  ;;  %vm7647_vm9 = vcmask 254976  }
  0x1a   : > { %v795_v6 = vpack.c.bf16 %v784_v5, %v783_v4  ;;  %v786_v8 = vld [vmem:[%s760_s0 + $0x18] sm:$0xff]  ;;  %v787_v10 = vld [vmem:[%s760_s0 + $0x20] sm:$0xff]  ;;  %v788_v11 = vld [vmem:[%s760_s0 + $0x28] sm:$0xff]  ;;  %s11851_s0 = sld [smem:[#allocation9_spill]] }
  0x1b   : > { %v796_v9 = vpack.c.bf16 %v786_v8, %v785_v7  ;;  %v797_v12 = vpack.c.bf16 %v788_v11, %v787_v10  ;;  %v801_v27 = vld [vmem:[%s11846_s3 + $0x18] sm:$0xff]  ;;  %v802_v32 = vld [vmem:[%s11846_s3 + $0x20] sm:$0xff]  ;;  %v803_v37 = vld [vmem:[%s11846_s3 + $0x28] sm:$0xff]  ;;  %s7733_s3 = sshll.u32 %s11854_s2, 1  ;;  %s11855_s7 = sld [smem:[#allocation12_spill]] }
  0x1c   : > { %8517 = vmatpush3.bf16.msra.mxu0 %v9440_v2  ;;  %p763_p4 = scmp.lt.s32.totalorder %s7733_s3, 3 }
  0x1d   : > { %8518 = vmatprep.subr.bf16.mxu0 %v9810_v1  ;;  %v9442_v10 = vld [vmem:[%s11847_s1 + $0x8] sm:$0xff]  }
  0x1e   : > { %v9443_v11 = vld [vmem:[%s11848_s4 + $0x8] sm:$0xff]   ;;  %8533 = vmatpush3.bf16.msra.mxu1 %v9442_v10  ;;  %s11859_s3 = smov (!%p763_p4, %s7733_s3), 3 }
  0x1f   : > { %8534 = vmatprep.subr.bf16.mxu1 %v9810_v1  ;;  %s7734_s5 = sshll.u32 %s11859_s3, 1 }
  0x20   : > { %8519 = vmatpush3.bf16.msra.mxu0 %v9441_v3 }
  0x21   : > { %8564 = vmatprep.subr.bf16.mxu0 %v9810_v1  ;;  %s766_s30 = scalar_lea.vmem %s11855_s7, %s7734_s5 }
  0x23   : > { %8521 = vmatmul.mubr.msk.bf16.vlgmr.msra.gmra.mxu0 %vm822_vm1, %v795_v6 }
  0x24   : > { %8524 = vmatprep.mubr.msk.bf16.mxu0 %vm9811_vm0, %v9810_v1  ;;  %8565 = vmatpush3.bf16.msra.mxu0 %v9443_v11 }
  0x25   : > { %8566 = vmatprep.subr.bf16.mxu0 %v9810_v1 }
  0x2b   : > { %8525 = vmatmul.mubr.msk.bf16.gmra.mxu0 %vm822_vm1, %v796_v9 }
  0x2c   : > { %8528 = vmatprep.mubr.msk.bf16.mxu0 %vm9811_vm0, %v9810_v1 }
  0x33   : > { %8529 = vmatmul.mubr.msk.bf16.gmra.mxu0 %vm822_vm1, %v797_v12  ;;  %v9444_v12 = vld [vmem:[%s11847_s1] sm:$0xff]  }
  0x34   : > { %8568 = vmatprep.mubr.msk.bf16.mxu0 %vm9811_vm0, %v9810_v1  ;;  %8535 = vmatpush3.bf16.msra.mxu1 %v9444_v12 }
  0x35   : > { %8548 = vmatprep.subr.bf16.mxu1 %v9810_v1 }
  0xe3   : > { %v866_v14 = vpop.f32.mrf.mxu0 }
  0xe4   : > { %v9983_v15 = vadd.f32 %v866_v14, %v798_v13  ;;  %v9445_v13 = vld [vmem:[%s11848_s4] sm:$0xff]  }
  0xe5   : > { %v8522_v16 = vpop.f32.mrf.mxu0  ;;  %8567 = vmatpush3.bf16.msra.mxu0 %v9445_v13 }
  0xe6   : > { %v892_v18 = vsel %vm891_vm2, %v9983_v15, 0.0 }
  0xe7   : > { %893 = vadd.xlane.f32.xlu0 %v892_v18  ;;  %v869_v19 = vpop.f32.mrf.mxu0 }
  0xe8   : > { %v9990_v20 = vadd.f32 %v869_v19, %v799_v17 }
  0xe9   : > { %v8523_v21 = vpop.f32.mrf.mxu0 }
  0xea   : > { %v895_v23 = vsel %vm891_vm2, %v9990_v20, 0.0 }
  0xeb   : > { %896 = vadd.xlane.f32.xlu0 %v895_v23  ;;  %v874_v24 = vpop.f32.mrf.mxu0 }
  0xec   : > { %v9997_v25 = vadd.f32 %v874_v24, %v800_v22 }
  0xed   : > { %v8526_v26 = vpop.f32.mrf.mxu0 }
  0xee   : > { %v898_v28 = vsel %vm891_vm2, %v9997_v25, 0.0 }
  0xef   : > { %899 = vadd.xlane.f32.xlu1 %v898_v28  ;;  %v877_v29 = vpop.f32.mrf.mxu0 }
  0xf0   : > { %v10004_v30 = vadd.f32 %v877_v29, %v801_v27 }
  0xf1   : > { %v8527_v31 = vpop.f32.mrf.mxu0 }
  0xf2   : > { %v901_v33 = vsel %vm891_vm2, %v10004_v30, 0.0 }
  0xf3   : > { %902 = vadd.xlane.f32.xlu1 %v901_v33  ;;  %v882_v34 = vpop.f32.mrf.mxu0 }
  0xf4   : > { %v10011_v35 = vadd.f32 %v882_v34, %v802_v32 }
  0xf5   : > { %v8530_v36 = vpop.f32.mrf.mxu0 }
  0xf6   : > { %v904_v38 = vsel %vm891_vm2, %v10011_v35, 0.0  ;;  %v7741_v36 = vld [vmem:[%s11849_s26] ss:$0 sm:$0xff] }
  0xf7   : > { %905 = vadd.xlane.f32.xlu0 %v904_v38  ;;  %v885_v39 = vpop.f32.mrf.mxu0 }
  0xf8   : > { %v10018_v40 = vadd.f32 %v885_v39, %v803_v37 }
  0xf9   : > { %v8531_v41 = vpop.f32.mrf.mxu0 }
  0xfa   : > { %v907_v42 = vsel %vm891_vm2, %v10018_v40, 0.0 }
  0xfb   : > { %908 = vadd.xlane.f32.xlu1 %v907_v42 }
 0x170   : > { %v894_v43 = vpop.xlane.xlu0 %893 }
 0x171   : > { %v911_v44 = vmul.f32 0.03125, %v894_v43 }
 0x173   : > { %v10023_v45 = vsub.f32 %v9983_v15, %v911_v44  ;;  %v7742_v44 = vld [vmem:[%s11850_s28] ss:$0 sm:$0xff] }
 0x174   : > { %v897_v46 = vpop.xlane.xlu0 %896 }
 0x175   : > { %v912_v47 = vmul.f32 0.03125, %v897_v46  ;;  %v923_v48 = vmul.f32 %v10023_v45, %v10023_v45 }
 0x177   : > { %v10028_v49 = vsub.f32 %v9990_v20, %v912_v47  ;;  %v929_v50 = vsel %vm891_vm2, %v923_v48, 0.0 }
 0x178   : > { %v900_v51 = vpop.xlane.xlu1 %899  ;;  %930 = vadd.xlane.f32.xlu0 %v929_v50 }
 0x179   : > { %v913_v52 = vmul.f32 0.03125, %v900_v51  ;;  %v924_v53 = vmul.f32 %v10028_v49, %v10028_v49 }
 0x17b   : > { %v10034_v54 = vsub.f32 %v9997_v25, %v913_v52  ;;  %v932_v55 = vsel %vm891_vm2, %v924_v53, 0.0  ;;  %v9446_v52 = vld [vmem:[%s11851_s0 + $0x8] sm:$0xff]  }
 0x17c   : > { %v903_v56 = vpop.xlane.xlu1 %902  ;;  %933 = vadd.xlane.f32.xlu1 %v932_v55 }
 0x17d   : > { %v914_v57 = vmul.f32 0.03125, %v903_v56  ;;  %v925_v58 = vmul.f32 %v10034_v54, %v10034_v54  ;;  %v9447_v56 = vld [vmem:[%s11851_s0] sm:$0xff]  }
 0x17f   : > { %v10040_v59 = vsub.f32 %v10004_v30, %v914_v57  ;;  %v935_v60 = vsel %vm891_vm2, %v925_v58, 0.0 }
 0x180   : > { %936 = vadd.xlane.f32.xlu0 %v935_v60  ;;  %v906_v61 = vpop.xlane.xlu0 %905 }
 0x181   : > { %v915_v62 = vmul.f32 0.03125, %v906_v61  ;;  %v926_v63 = vmul.f32 %v10040_v59, %v10040_v59 }
 0x183   : > { %v10046_v0 = vsub.f32 %v10011_v35, %v915_v62  ;;  %v938_v2 = vsel %vm891_vm2, %v926_v63, 0.0 }
 0x184   : > { %939 = vadd.xlane.f32.xlu1 %v938_v2  ;;  %v909_v3 = vpop.xlane.xlu1 %908 }
 0x185   : > { %v916_v4 = vmul.f32 0.03125, %v909_v3  ;;  %v927_v5 = vmul.f32 %v10046_v0, %v10046_v0 }
 0x187   : > { %v10052_v6 = vsub.f32 %v10018_v40, %v916_v4  ;;  %v941_v7 = vsel %vm891_vm2, %v927_v5, 0.0 }
 0x188   : > { %942 = vadd.xlane.f32.xlu0 %v941_v7 }
 0x189   : > { %v928_v8 = vmul.f32 %v10052_v6, %v10052_v6 }
 0x18b   : > { %v944_v9 = vsel %vm891_vm2, %v928_v8, 0.0  ;;  %v10135_v8 = vld [vmem:[%s11852_s9] ss:$0 sm:$0xff] }
 0x18c   : > { %945 = vadd.xlane.f32.xlu1 %v944_v9 }
 0x201   : > { %v931_v14 = vpop.xlane.xlu0 %930 }
 0x202   : > { %v947_v16 = vmul.f32 0.03125, %v931_v14 }
 0x204   : > { %v953_v17 = vadd.f32 1e-06, %v947_v16 }
 0x205   : > { %v934_v18 = vpop.xlane.xlu1 %933 }
 0x206   : > { %9502 = vrsqrt.f32 %v953_v17  ;;  %v948_v19 = vmul.f32 0.03125, %v934_v18 }
 0x208   : > { %v954_v21 = vadd.f32 1e-06, %v948_v19 }
 0x209   : > { %v937_v22 = vpop.xlane.xlu0 %936 }
 0x20a   : > { %9504 = vrsqrt.f32 %v954_v21  ;;  %v949_v23 = vmul.f32 0.03125, %v937_v22 }
 0x20c   : > { %v955_v24 = vadd.f32 1e-06, %v949_v23 }
 0x20d   : > { %v940_v26 = vpop.xlane.xlu1 %939 }
 0x20e   : > { %9506 = vrsqrt.f32 %v955_v24  ;;  %v950_v27 = vmul.f32 0.03125, %v940_v26  ;;  %v10145_v24 = vld [vmem:[%s11805_s10] ss:$0 sm:$0xff] }
 0x210   : > { %v956_v28 = vadd.f32 1e-06, %v950_v27 }
 0x211   : > { %v943_v29 = vpop.xlane.xlu0 %942 }
 0x212   : > { %9508 = vrsqrt.f32 %v956_v28  ;;  %v951_v31 = vmul.f32 0.03125, %v943_v29 }
 0x213   : > { %v9503_v32 = vpop.eup %9502 }
 0x214   : > { %v965_v33 = vmul.f32 %v9503_v32, %v10023_v45  ;;  %v957_v34 = vadd.f32 1e-06, %v951_v31 }
 0x215   : > { %v946_v37 = vpop.xlane.xlu1 %945 }
 0x216   : > { %9510 = vrsqrt.f32 %v957_v34  ;;  %v952_v38 = vmul.f32 0.03125, %v946_v37  ;;  %v977_v41 = vmul.f32 %v7741_v36, %v965_v33 }
 0x217   : > { %v9505_v39 = vpop.eup %9504 }
 0x218   : > { %v966_v42 = vmul.f32 %v9505_v39, %v10028_v49  ;;  %v958_v43 = vadd.f32 1e-06, %v952_v38  ;;  %v989_v47 = vadd.f32 %v7742_v44, %v977_v41 }
 0x21a   : > { %v978_v46 = vmul.f32 %v7741_v36, %v966_v42  ;;  %9512 = vrsqrt.f32 %v958_v43 }
 0x21b   : > { %v9507_v45 = vpop.eup %9506 }
 0x21c   : > { %v990_v48 = vadd.f32 %v7742_v44, %v978_v46  ;;  %v967_v50 = vmul.f32 %v9507_v45, %v10034_v54 }
 0x21e   : > { %v10082_v51 = vpack.c.bf16 %v990_v48, %v989_v47  ;;  %v979_v49 = vmul.f32 %v7741_v36, %v967_v50 }
 0x21f   : > { %v9509_v53 = vpop.eup %9508 }
 0x220   : > { %v968_v55 = vmul.f32 %v9509_v53, %v10040_v59  ;;  %8537 = vmatmul.mubr.msk.bf16.vlgmr.msra.gmra.mxu1 %vm891_vm2, %v10082_v51  ;;  %8569 = vmatmul.mubr.msk.bf16.vlgmr.msra.gmra.mxu0 %vm891_vm2, %v10082_v51  ;;  %v991_v58 = vadd.f32 %v7742_v44, %v979_v49  ;;  %v7749_v53 = vld [vmem:[%s11853_s27] ss:$0 sm:$0xff] }
 0x221   : > { %8540 = vmatprep.mubr.msk.bf16.mxu1 %vm9811_vm0, %v9810_v1  ;;  %8572 = vmatprep.mubr.msk.bf16.mxu0 %vm9811_vm0, %v9810_v1 }
 0x222   : > { %v980_v54 = vmul.f32 %v7741_v36, %v968_v55  ;;  %8549 = vmatpush3.bf16.msra.mxu1 %v9446_v52 }
 0x223   : > { %v9511_v57 = vpop.eup %9510  ;;  %8550 = vmatprep.subr.bf16.mxu1 %v9810_v1 }
 0x224   : > { %v992_v59 = vadd.f32 %v7742_v44, %v980_v54  ;;  %v969_v60 = vmul.f32 %v9511_v57, %v10046_v0 }
 0x226   : > { %v10101_v61 = vpack.c.bf16 %v992_v59, %v991_v58  ;;  %8551 = vmatpush3.bf16.msra.mxu1 %v9447_v56  ;;  %v981_v63 = vmul.f32 %v7741_v36, %v969_v60 }
 0x227   : > { %v9513_v62 = vpop.eup %9512 }
 0x228   : > { %v970_v2 = vmul.f32 %v9513_v62, %v10052_v6  ;;  %8541 = vmatmul.mubr.msk.bf16.gmra.mxu1 %vm891_vm2, %v10101_v61  ;;  %8573 = vmatmul.mubr.msk.bf16.gmra.mxu0 %vm891_vm2, %v10101_v61  ;;  %v993_v3 = vadd.f32 %v7742_v44, %v981_v63 }
 0x229   : > { %8544 = vmatprep.mubr.msk.bf16.mxu1 %vm9811_vm0, %v9810_v1  ;;  %8576 = vmatprep.mubr.msk.bf16.mxu0 %vm9811_vm0, %v9810_v1 }
 0x22a   : > { %v982_v0 = vmul.f32 %v7741_v36, %v970_v2 }
 0x22c   : > { %v994_v4 = vadd.f32 %v7742_v44, %v982_v0 }
 0x22e   : > { %v10112_v5 = vpack.c.bf16 %v994_v4, %v993_v3 }
 0x230   : > { %8545 = vmatmul.mubr.msk.bf16.gmra.mxu1 %vm891_vm2, %v10112_v5  ;;  %8577 = vmatmul.mubr.msk.bf16.gmra.mxu0 %vm891_vm2, %v10112_v5 }
 0x231   : > { %8552 = vmatprep.mubr.msk.bf16.mxu1 %vm9811_vm0, %v9810_v1 }
 0x238   : > { %8553 = vmatmul.mubr.msk.bf16.vlgmr.msra.gmra.mxu1 %vm891_vm2, %v10082_v51 }
 0x239   : > { %8556 = vmatprep.mubr.msk.bf16.mxu1 %vm9811_vm0, %v9810_v1 }
 0x240   : > { %8557 = vmatmul.mubr.msk.bf16.gmra.mxu1 %vm891_vm2, %v10101_v61 }
 0x241   : > { %8560 = vmatprep.mubr.msk.bf16.mxu1 %vm9811_vm0, %v9810_v1 }
 0x248   : > { %8561 = vmatmul.mubr.msk.bf16.gmra.mxu1 %vm891_vm2, %v10112_v5 }
 0x2e0   : > { %v1064_v6 = vpop.f32.mrf.mxu1  ;;  %v10130_v7 = vpop.f32.mrf.mxu0 }
 0x2e1   : > { %v1065_v13 = vadd.f32 %v10135_v8, %v1064_v6 }
 0x2e2   : > { %v8538_v9 = vpop.f32.mrf.mxu1  ;;  %v8570_v10 = vpop.f32.mrf.mxu0 }
 0x2e4   : > { %v1067_v11 = vpop.f32.mrf.mxu1  ;;  %v10137_v12 = vpop.f32.mrf.mxu0 }
 0x2e5   : > { %v1068_v14 = vadd.f32 %v10135_v8, %v1067_v11 }
 0x2e6   : > { %v8539_v16 = vpop.f32.mrf.mxu1  ;;  %v8571_v17 = vpop.f32.mrf.mxu0 }
 0x2e7   : > { %v1247_v18 = vpack.c.bf16 %v1068_v14, %v1065_v13 }
 0x2e8   : > { %v1072_v19 = vpop.f32.mrf.mxu1  ;;  %v1232_v21 = vpop.f32.mrf.mxu0 }
 0x2e9   : > { %8584 = vmatprep.mubr.msk.bf16.mxu0 %vm1253_vm3, %v1247_v18  ;;  %v1233_v0 = vadd.f32 %v10145_v24, %v1232_v21  ;;  %v1073_v14 = vadd.f32 %v10135_v8, %v1072_v19  ;;  %v1228_v18 = vadd.f32 %v10145_v24, %v10137_v12 }
 0x2ea   : > { %v8542_v22 = vpop.f32.mrf.mxu1  ;;  %v8574_v23 = vpop.f32.mrf.mxu0 }
 0x2eb   : > { %v1252_v6 = vpack.c.bf16 %v1233_v0, %v1233_v0  ;;  %v1225_v23 = vadd.f32 %v10145_v24, %v10130_v7  ;;  %v7785_v0 = vld [vmem:[%s11853_s27 + $0x1] ss:$0 sm:$0xff] }
 0x2ec   : > { %v1075_v26 = vpop.f32.mrf.mxu1  ;;  %v1235_v27 = vpop.f32.mrf.mxu0 }
 0x2ed   : > { %v1236_v28 = vadd.f32 %v10145_v24, %v1235_v27  ;;  %v1076_v34 = vadd.f32 %v10135_v8, %v1075_v26  ;;  %v1248_v26 = vpack.c.bf16 %v1073_v14, %v1073_v14  ;;  %v1251_v19 = vpack.c.bf16 %v1228_v18, %v1225_v23 }
 0x2ee   : > { %v8543_v29 = vpop.f32.mrf.mxu1  ;;  %v8575_v31 = vpop.f32.mrf.mxu0  ;;  %v1355_v27 = vsel %vm1353_vm4, %v1252_v6, 0 }
 0x2f0   : > { %v1080_v32 = vpop.f32.mrf.mxu1  ;;  %v1240_v33 = vpop.f32.mrf.mxu0 }
 0x2f1   : > { %v1081_v36 = vadd.f32 %v10135_v8, %v1080_v32  ;;  %v1241_v37 = vadd.f32 %v10145_v24, %v1240_v33  ;;  %v9449_v32 = vld [vmem:[%s11851_s0 + $0x10] sm:$0xff]  }
 0x2f2   : > { %v8546_v38 = vpop.f32.mrf.mxu1  ;;  %v8578_v39 = vpop.f32.mrf.mxu0 }
 0x2f3   : > { %v1411_v41 = vpack.c.bf16 %v1081_v36, %v1076_v34  ;;  %v10151_v42 = vpack.c.bf16 %v1241_v37, %v1236_v28  ;;  %v9812_v36 = vmov -1e+30  }
 0x2f4   : > { %v1083_v43 = vpop.f32.mrf.mxu1  ;;  %v1243_v44 = vpop.f32.mrf.mxu0 }
 0x2f5   : > { %8600 = vmatprep.mubr.msk.bf16.mxu1 %vm1253_vm3, %v1411_v41  ;;  %v1244_v28 = vadd.f32 %v10145_v24, %v1243_v44  ;;  %v1084_v7 = vadd.f32 %v10135_v8, %v1083_v43  ;;  %v9448_v24 = vld [vmem:[%s11851_s0 + $0x18] sm:$0xff]   ;;  %v769_v8 = vlaneseq }
 0x2f6   : > { %v8547_v46 = vpop.f32.mrf.mxu1  ;;  %v8579_v45 = vpop.f32.mrf.mxu0 }
 0x2f7   : > { %v10174_v12 = vpack.c.bf16 %v1244_v28, %v1244_v28  ;;  %v1412_v31 = vpack.c.bf16 %v1084_v7, %v1084_v7  ;;  %v770_v33 = vand.u32 127, %v769_v8 }
 0x2f8   : > { %v1144_v47 = vpop.f32.mrf.mxu1 }
 0x2f9   : > { %v1145_v57 = vadd.f32 %v7749_v53, %v1144_v47  ;;  %vm771_vm5 = vcmp.lt.s32.totalorder %v770_v33, 17 }
 0x2fa   : > { %v8554_v48 = vpop.f32.mrf.mxu1  ;;  %v10202_v37 = vsel %vm771_vm5, 0.0, %v9812_v36 }
 0x2fc   : > { %v1147_v50 = vpop.f32.mrf.mxu1 }
 0x2fd   : > { %v1148_v55 = vadd.f32 %v7749_v53, %v1147_v50 }
 0x2fe   : > { %v8555_v52 = vpop.f32.mrf.mxu1 }
 0x2ff   : > { %v1249_v60 = vpack.c.bf16 %v1148_v55, %v1145_v57 }
 0x300   : > { %v1152_v49 = vpop.f32.mrf.mxu1 }
 0x301   : > { %v1153_v54 = vadd.f32 %v7749_v53, %v1152_v49  ;;  %v1261_v11 = vsel %vm1253_vm3, %v1249_v60, 0 }
 0x302   : > { %v8558_v56 = vpop.f32.mrf.mxu1 }
 0x303   : > { %v1250_v58 = vpack.c.bf16 %v1153_v54, %v1153_v54 }
 0x304   : > { %v1155_v59 = vpop.f32.mrf.mxu1 }
 0x305   : > { %v1264_v62 = vsel %vm1253_vm3, %v1250_v58, 0  ;;  %9364 = vmatprep.subr.msk.bf16.mxu0 %vm1253_vm3, %v1250_v58  ;;  %v1156_v16 = vadd.f32 %v7749_v53, %v1155_v59 }
 0x306   : > { %v8559_v63 = vpop.f32.mrf.mxu1  ;;  %8581 = vmatpush3.bf16.xpose.msra.mxu0 %v1264_v62 }
 0x307   : > { %9365 = vmatprep.subr.msk.bf16.mxu0 %vm1253_vm3, %v1249_v60 }
 0x308   : > { %v1160_v2 = vpop.f32.mrf.mxu1 }
 0x309   : > { %v1161_v9 = vadd.f32 %v7749_v53, %v1160_v2 }
 0x30a   : > { %v8562_v3 = vpop.f32.mrf.mxu1 }
 0x30b   : > { %v1413_v21 = vpack.c.bf16 %v1161_v9, %v1156_v16 }
 0x30c   : > { %v1163_v4 = vpop.f32.mrf.mxu1 }
 0x30d   : > { %v1164_v10 = vadd.f32 %v7749_v53, %v1163_v4  ;;  %v1424_v29 = vsel %vm1253_vm3, %v1413_v21, 0 }
 0x30e   : > { %v8563_v13 = vpop.f32.mrf.mxu1  ;;  %8583 = vmatpush3.bf16.xpose.msra.mxu0 %v1261_v11 }
 0x30f   : > { %v1414_v17 = vpack.c.bf16 %v1164_v10, %v1164_v10  ;;  %9366 = vmatprep.subr.msk.bf16.mxu0 %vm1353_vm4, %v1252_v6 }
 0x311   : > { %v1427_v22 = vsel %vm1253_vm3, %v1414_v17, 0  ;;  %9367 = vmatprep.subr.msk.bf16.mxu1 %vm1253_vm3, %v1414_v17 }
 0x312   : > { %8597 = vmatpush3.bf16.xpose.msra.mxu1 %v1427_v22 }
 0x313   : > { %9368 = vmatprep.subr.msk.bf16.mxu1 %vm1253_vm3, %v1413_v21 }
 0x315   : > { %8585 = vmatmul.mubr.msk.bf16.vlgmr.msra.gmra.mxu0 %vm1253_vm3, %v1248_v26 }
 0x316   : > { %8589 = vmatpush3.bf16.msra.mxu0 %v1355_v27 }
 0x317   : > { %8590 = vmatprep.subr.bf16.mxu0 %v1251_v19 }
 0x31a   : > { %8591 = vmatpush3.bf16.msra.mxu0 %v1251_v19  ;;  %8599 = vmatpush3.bf16.xpose.msra.mxu1 %v1424_v29 }
 0x31b   : > { %9369 = vmatprep.subr.msk.bf16.mxu0 %vm1353_vm4, %v10174_v12  ;;  %8628 = vmatprep.subr.bf16.mxu1 %v9810_v1 }
 0x321   : > { %8601 = vmatmul.mubr.msk.bf16.vlgmr.msra.gmra.mxu1 %vm1253_vm3, %v1412_v31 }
 0x322   : > { %8629 = vmatpush3.bf16.msra.mxu1 %v9448_v24  ;;  %8632 = vmatprep.mubr.msk.bf16.mxu1 %vm9811_vm0, %v9810_v1 }
 0x323   : > { %8630 = vmatprep.subr.bf16.mxu1 %v9810_v1 }
 0x326   : > { %8631 = vmatpush3.bf16.msra.mxu1 %v9449_v32 }
 0x329   : > { %8633 = vmatmul.mubr.msk.bf16.vlgmr.msra.gmra.mxu1 %vm891_vm2, %v10082_v51 }
 0x32a   : > { %8636 = vmatprep.mubr.msk.bf16.mxu1 %vm9811_vm0, %v9810_v1 }
 0x331   : > { %8637 = vmatmul.mubr.msk.bf16.gmra.mxu1 %vm891_vm2, %v10101_v61 }
 0x332   : > { %8640 = vmatprep.mubr.msk.bf16.mxu1 %vm9811_vm0, %v9810_v1 }
 0x339   : > { %8641 = vmatmul.mubr.msk.bf16.gmra.mxu1 %vm891_vm2, %v10112_v5 }
 0x3d5   : > { %v8586_v34 = vpop.f32.mrf.mxu0 }
 0x3d6   : > { %v1309_v43 = vadd.f32 %v8586_v34, %v10202_v37 }
 0x3d7   : > { %v1300_v38 = vpop.f32.mrf.mxu0 }
 0x3d8   : > { %v1301_v39 = vadd.f32 %v1300_v38, %v10202_v37  ;;  %v1321_v48 = vsel %vm1314_vm6, %v1309_v43, -inf }
 0x3d9   : > { %v8587_v41 = vpop.f32.mrf.mxu0 }
 0x3da   : > { %v1315_v44 = vsel %vm1314_vm6, %v1301_v39, -inf }
 0x3db   : > { %v1303_v46 = vpop.f32.mrf.mxu0  ;;  %1316 = vmax.xlane.f32.xlu0 %v1315_v44 }
 0x3dc   : > { %v1304_v45 = vadd.f32 %v1303_v46, %v10202_v37 }
 0x3de   : > { %v1318_v47 = vsel %vm1314_vm6, %v1304_v45, -inf }
 0x3df   : > { %1319 = vmax.xlane.f32.xlu1 %v1318_v47  ;;  %1322 = vmax.xlane.f32.xlu0 %v1321_v48 }
 0x3e1   : > { %v8602_v50 = vpop.f32.mrf.mxu1 }
 0x3e2   : > { %v1472_v55 = vadd.f32 %v8602_v50, %v10202_v37 }
 0x3e3   : > { %v1463_v52 = vpop.f32.mrf.mxu1 }
 0x3e4   : > { %v1464_v53 = vadd.f32 %v1463_v52, %v10202_v37  ;;  %v1483_v59 = vsel %vm1314_vm6, %v1472_v55, -inf }
 0x3e5   : > { %v8603_v49 = vpop.f32.mrf.mxu1 }
 0x3e6   : > { %v1477_v54 = vsel %vm1314_vm6, %v1464_v53, -inf }
 0x3e7   : > { %v1466_v56 = vpop.f32.mrf.mxu1  ;;  %1478 = vmax.xlane.f32.xlu1 %v1477_v54 }
 0x3e8   : > { %v1467_v57 = vadd.f32 %v1466_v56, %v10202_v37 }
 0x3e9   : > { %v1712_v58 = vpop.f32.mrf.mxu1 }
 0x3ea   : > { %v1480_v60 = vsel %vm1314_vm6, %v1467_v57, -inf  ;;  %v1713_v10 = vadd.f32 %v7785_v0, %v1712_v58 }
 0x3eb   : > { %v8634_v62 = vpop.f32.mrf.mxu1  ;;  %1484 = vmax.xlane.f32.xlu1 %v1483_v59  ;;  %1481 = vmax.xlane.f32.xlu0 %v1480_v60 }
 0x3ed   : > { %v1715_v63 = vpop.f32.mrf.mxu1 }
 0x3ee   : > { %v1716_v4 = vadd.f32 %v7785_v0, %v1715_v63  ;;  %v9450_v63 = vld [vmem:[%s11847_s1 + $0x18] sm:$0xff]  }
 0x3ef   : > { %v8635_v2 = vpop.f32.mrf.mxu1 }
 0x3f0   : > { %v1819_v14 = vpack.c.bf16 %v1716_v4, %v1713_v10  ;;  %v9452_v2 = vld [vmem:[%s11848_s4 + $0x18] sm:$0xff]  }
 0x3f1   : > { %v1720_v3 = vpop.f32.mrf.mxu1 }
 0x3f2   : > { %v1721_v6 = vadd.f32 %v7785_v0, %v1720_v3  ;;  %v1830_v28 = vsel %vm1253_vm3, %v1819_v14, 0  ;;  %v10298_v3 = vld [vmem:[%s11806_s11] sm:$0xf] }
 0x3f3   : > { %v8638_v9 = vpop.f32.mrf.mxu1  ;;  %v10304_v4 = vsel %vm1353_vm4, %v10298_v3, 0 }
 0x3f4   : > { %v1820_v11 = vpack.c.bf16 %v1721_v6, %v1721_v6 }
 0x3f5   : > { %v1723_v13 = vpop.f32.mrf.mxu1 }
 0x3f6   : > { %v1833_v16 = vsel %vm1253_vm3, %v1820_v11, 0  ;;  %v1724_v17 = vadd.f32 %v7785_v0, %v1723_v13  ;;  %9370 = vmatprep.subr.msk.bf16.mxu1 %vm1253_vm3, %v1820_v11 }
 0x3f7   : > { %v8639_v18 = vpop.f32.mrf.mxu1  ;;  %8661 = vmatpush3.bf16.xpose.msra.mxu1 %v1833_v16 }
 0x3f8   : > { %9371 = vmatprep.subr.msk.bf16.mxu1 %vm1253_vm3, %v1819_v14 }
 0x3f9   : > { %v1728_v21 = vpop.f32.mrf.mxu1 }
 0x3fa   : > { %v1729_v22 = vadd.f32 %v7785_v0, %v1728_v21  ;;  %v7774_v21 = vld [vmem:[%s11852_s9 + $0x1] ss:$0 sm:$0xff] }
 0x3fb   : > { %v8642_v23 = vpop.f32.mrf.mxu1 }
 0x3fc   : > { %v10222_v26 = vpack.c.bf16 %v1729_v22, %v1724_v17 }
 0x3fd   : > { %v1731_v19 = vpop.f32.mrf.mxu1 }
 0x3fe   : > { %v10224_v27 = vadd.f32 %v7785_v0, %v1731_v19  ;;  %v9453_v0 = vld [vmem:[%s11848_s4 + $0x10] sm:$0xff]  }
 0x3ff   : > { %v8643_v29 = vpop.f32.mrf.mxu1  ;;  %8663 = vmatpush3.bf16.xpose.msra.mxu1 %v1830_v28 }
 0x464   : > { %v1317_v7 = vpop.xlane.xlu0 %1316 }
 0x465   : > { %v1324_v24 = vsub.f32 %v1301_v39, %v1317_v7 }
 0x467   : > { %v1327_v31 = vmul.f32 1.442695, %v1324_v24 }
 0x468   : > { %v1320_v32 = vpop.xlane.xlu1 %1319  ;;  %v1323_v33 = vpop.xlane.xlu0 %1322 }
 0x469   : > { %v1325_v34 = vsub.f32 %v1304_v45, %v1320_v32  ;;  %v1326_v36 = vsub.f32 %v1309_v43, %v1323_v33  ;;  %9514 = vpow2.f32 %v1327_v31 }
 0x46b   : > { %v1329_v38 = vmul.f32 1.442695, %v1325_v34  ;;  %v1331_v41 = vmul.f32 1.442695, %v1326_v36 }
 0x46d   : > { %9516 = vpow2.f32 %v1329_v38 }
 0x46e   : > { %9518 = vpow2.f32 %v1331_v41 }
 0x470   : > { %v1479_v44 = vpop.xlane.xlu1 %1478 }
 0x471   : > { %v1486_v46 = vsub.f32 %v1464_v53, %v1479_v44 }
 0x473   : > { %v1489_v47 = vmul.f32 1.442695, %v1486_v46 }
 0x474   : > { %v1485_v48 = vpop.xlane.xlu1 %1484  ;;  %v1482_v50 = vpop.xlane.xlu0 %1481 }
 0x475   : > { %v1488_v52 = vsub.f32 %v1472_v55, %v1485_v48  ;;  %v1487_v49 = vsub.f32 %v1467_v57, %v1482_v50  ;;  %9520 = vpow2.f32 %v1489_v47  ;;  %v1516_v55 = vsel %vm1353_vm4, %v10174_v12, 0 }
 0x476   : > { %v10227_v39 = vpop.eup %9514 }
 0x477   : > { %v1493_v54 = vmul.f32 1.442695, %v1488_v52  ;;  %v1491_v56 = vmul.f32 1.442695, %v1487_v49 }
 0x479   : > { %9522 = vpow2.f32 %v1493_v54 }
 0x47a   : > { %v10229_v45 = vpop.eup %9516  ;;  %9524 = vpow2.f32 %v1491_v56 }
 0x47b   : > { %v10231_v43 = vpop.eup %9518  ;;  %v1345_v58 = vpack.c.bf16 %v10229_v45, %v10227_v39 }
 0x47c   : > { %v1346_v53 = vpack.c.bf16 %v10231_v43, %v10231_v43 }
 0x47d   : > { %8592 = vmatprep.mubr.msk.bf16.mxu0 %vm1314_vm6, %v1345_v58 }
 0x47e   : > { %8593 = vmatmul.mubr.msk.bf16.vlgmr.msra.gmra.mxu0 %vm1314_vm6, %v1346_v53  ;;  %v7796_v53 = vld [vmem:[%s11805_s10 + $0x1] ss:$0 sm:$0xff] }
 0x47f   : > { %8605 = vmatpush3.bf16.msra.mxu0 %v1516_v55 }
 0x480   : > { %8606 = vmatprep.subr.bf16.mxu0 %v10151_v42 }
 0x482   : > { %v10244_v57 = vpop.eup %9520 }
 0x483   : > { %8607 = vmatpush3.bf16.msra.mxu0 %v10151_v42  ;;  %v9451_v42 = vld [vmem:[%s11847_s1 + $0x10] sm:$0xff]  }
 0x484   : > { %8612 = vmatprep.subr.bf16.mxu0 %v9810_v1 }
 0x486   : > { %v10246_v59 = vpop.eup %9522 }
 0x487   : > { %v10248_v60 = vpop.eup %9524  ;;  %v1508_v62 = vpack.c.bf16 %v10246_v59, %v10246_v59 }
 0x488   : > { %v1507_v12 = vpack.c.bf16 %v10248_v60, %v10244_v57 }
 0x48a   : > { %8608 = vmatprep.mubr.msk.bf16.mxu0 %vm1314_vm6, %v1507_v12 }
 0x48b   : > { %8609 = vmatmul.mubr.msk.bf16.vlgmr.msra.gmra.mxu0 %vm1314_vm6, %v1508_v62 }
 0x48c   : > { %8613 = vmatpush3.bf16.msra.mxu0 %v9450_v63  ;;  %8616 = vmatprep.mubr.msk.bf16.mxu0 %vm9811_vm0, %v9810_v1 }
 0x48d   : > { %8614 = vmatprep.subr.bf16.mxu0 %v9810_v1 }
 0x490   : > { %8615 = vmatpush3.bf16.msra.mxu0 %v9451_v42 }
 0x491   : > { %8644 = vmatprep.subr.bf16.mxu0 %v9810_v1 }
 0x493   : > { %8617 = vmatmul.mubr.msk.bf16.vlgmr.msra.gmra.mxu0 %vm891_vm2, %v10082_v51 }
 0x494   : > { %8620 = vmatprep.mubr.msk.bf16.mxu0 %vm9811_vm0, %v9810_v1  ;;  %8645 = vmatpush3.bf16.msra.mxu0 %v9452_v2 }
 0x495   : > { %8646 = vmatprep.subr.bf16.mxu0 %v9810_v1 }
 0x498   : > { %8647 = vmatpush3.bf16.msra.mxu0 %v9453_v0 }
 0x499   : > { %9374 = vmatprep.subr.msk.bf16.mxu0 %vm1353_vm4, %v10298_v3 }
 0x49b   : > { %8621 = vmatmul.mubr.msk.bf16.gmra.mxu0 %vm891_vm2, %v10101_v61 }
 0x49c   : > { %8624 = vmatprep.mubr.msk.bf16.mxu0 %vm9811_vm0, %v9810_v1 }
 0x4a3   : > { %8625 = vmatmul.mubr.msk.bf16.gmra.mxu0 %vm891_vm2, %v10112_v5 }
 0x4a4   : > { %8648 = vmatprep.mubr.msk.bf16.mxu0 %vm9811_vm0, %v9810_v1 }
 0x4ab   : > { %8649 = vmatmul.mubr.msk.bf16.vlgmr.msra.gmra.mxu0 %vm891_vm2, %v10082_v51 }
 0x4ac   : > { %8652 = vmatprep.mubr.msk.bf16.mxu0 %vm9811_vm0, %v9810_v1  ;;  %8683 = vmatpush3.bf16.msra.mxu0 %v10304_v4 }
 0x4b3   : > { %8653 = vmatmul.mubr.msk.bf16.gmra.mxu0 %vm891_vm2, %v10101_v61 }
 0x4b4   : > { %8656 = vmatprep.mubr.msk.bf16.mxu0 %vm9811_vm0, %v9810_v1 }
 0x4bb   : > { %8657 = vmatmul.mubr.msk.bf16.gmra.mxu0 %vm891_vm2, %v10112_v5 }
 0x53e   : > { %v10307_v6 = vpop.f32.mrf.mxu0 }
 0x540   : > { %v10309_v9 = vpop.f32.mrf.mxu0 }
 0x542   : > { %v8595_v10 = vpop.f32.mrf.mxu0 }
 0x544   : > { %v10311_v11 = vpop.f32.mrf.mxu0 }
 0x54b   : > { %v10313_v13 = vpop.f32.mrf.mxu0 }
 0x54d   : > { %v10315_v14 = vpop.f32.mrf.mxu0 }
 0x54f   : > { %v8611_v16 = vpop.f32.mrf.mxu0 }
 0x551   : > { %v10317_v17 = vpop.f32.mrf.mxu0 }
 0x553   : > { %v1630_v18 = vpop.f32.mrf.mxu0 }
 0x554   : > { %v1631_v19 = vadd.f32 %v7774_v21, %v1630_v18 }
 0x555   : > { %v8618_v22 = vpop.f32.mrf.mxu0 }
 0x557   : > { %v1633_v23 = vpop.f32.mrf.mxu0 }
 0x558   : > { %v1634_v28 = vadd.f32 %v7774_v21, %v1633_v23 }
 0x559   : > { %v8619_v29 = vpop.f32.mrf.mxu0 }
 0x55a   : > { %v1817_v7 = vpack.c.bf16 %v1634_v28, %v1631_v19 }
 0x55b   : > { %v1638_v24 = vpop.f32.mrf.mxu0 }
 0x55c   : > { %v1639_v31 = vadd.f32 %v7774_v21, %v1638_v24  ;;  %8664 = vmatprep.mubr.msk.bf16.mxu1 %vm1253_vm3, %v1817_v7 }
 0x55d   : > { %v8622_v32 = vpop.f32.mrf.mxu0 }
 0x55e   : > { %v1818_v33 = vpack.c.bf16 %v1639_v31, %v1639_v31 }
 0x55f   : > { %v1641_v34 = vpop.f32.mrf.mxu0 }
 0x560   : > { %v10323_v36 = vadd.f32 %v7774_v21, %v1641_v34  ;;  %8665 = vmatmul.mubr.msk.bf16.vlgmr.msra.gmra.mxu1 %vm1253_vm3, %v1818_v33 }
 0x561   : > { %v8623_v38 = vpop.f32.mrf.mxu0 }
 0x563   : > { %v1646_v41 = vpop.f32.mrf.mxu0 }
 0x564   : > { %v10326_v44 = vadd.f32 %v7774_v21, %v1646_v41 }
 0x565   : > { %v8626_v46 = vpop.f32.mrf.mxu0 }
 0x566   : > { %v2093_v47 = vpack.c.bf16 %v10326_v44, %v10323_v36 }
 0x567   : > { %v1649_v48 = vpop.f32.mrf.mxu0 }
 0x568   : > { %v10330_v50 = vadd.f32 %v7774_v21, %v1649_v48 }
 0x569   : > { %v8627_v52 = vpop.f32.mrf.mxu0 }
 0x56b   : > { %v1794_v49 = vpop.f32.mrf.mxu0 }
 0x56c   : > { %v1795_v42 = vadd.f32 %v7796_v53, %v1794_v49 }
 0x56d   : > { %v8650_v54 = vpop.f32.mrf.mxu0 }
 0x56f   : > { %v1797_v56 = vpop.f32.mrf.mxu0 }
 0x570   : > { %v1798_v62 = vadd.f32 %v7796_v53, %v1797_v56  ;;  %v7806_v56 = vld [vmem:[%s11806_s11 + $0x4] sm:$0xf] }
 0x571   : > { %v8651_v58 = vpop.f32.mrf.mxu0 }
 0x572   : > { %v1821_v10 = vpack.c.bf16 %v1798_v62, %v1795_v42 }
 0x573   : > { %v1802_v55 = vpop.f32.mrf.mxu0 }
 0x574   : > { %v1803_v12 = vadd.f32 %v7796_v53, %v1802_v55 }
 0x575   : > { %v8654_v63 = vpop.f32.mrf.mxu0 }
 0x576   : > { %v1822_v2 = vpack.c.bf16 %v1803_v12, %v1803_v12 }
 0x577   : > { %v1805_v0 = vpop.f32.mrf.mxu0 }
 0x578   : > { %v1922_v16 = vsel %vm1353_vm4, %v1822_v2, 0  ;;  %v1806_v18 = vadd.f32 %v7796_v53, %v1805_v0  ;;  %9372 = vmatprep.subr.msk.bf16.mxu1 %vm1353_vm4, %v1822_v2 }
 0x579   : > { %v8655_v21 = vpop.f32.mrf.mxu0  ;;  %8669 = vmatpush3.bf16.msra.mxu1 %v1922_v16 }
 0x57a   : > { %8670 = vmatprep.subr.bf16.mxu1 %v1821_v10 }
 0x57b   : > { %v1810_v22 = vpop.f32.mrf.mxu0 }
 0x57c   : > { %v1811_v23 = vadd.f32 %v7796_v53, %v1810_v22 }
 0x57d   : > { %v8658_v19 = vpop.f32.mrf.mxu0  ;;  %8671 = vmatpush3.bf16.msra.mxu1 %v1821_v10 }
 0x57e   : > { %v10337_v28 = vpack.c.bf16 %v1811_v23, %v1806_v18  ;;  %9373 = vmatprep.subr.msk.bf16.mxu1 %vm1353_vm4, %v7806_v56 }
 0x57f   : > { %v1813_v29 = vpop.f32.mrf.mxu0 }
 0x580   : > { %v1814_v7 = vadd.f32 %v7796_v53, %v1813_v29 }
 0x581   : > { %v8659_v24 = vpop.f32.mrf.mxu0 }
 0x582   : > { %v10339_v31 = vpack.c.bf16 %v1814_v7, %v1814_v7  ;;  %v10357_v7 = vsel %vm1353_vm4, %v7806_v56, 0  ;;  %v2096_v24 = vpack.c.bf16 %v10224_v27, %v10224_v27 }
 0x584   : > { %9377 = vmatprep.subr.msk.bf16.mxu0 %vm1353_vm4, %v10339_v31 }
 0x620   : > { %v8666_v32 = vpop.f32.mrf.mxu1 }
 0x621   : > { %v1878_v41 = vadd.f32 %v8666_v32, %v10202_v37  ;;  %v1333_v32 = vsel %vm1314_vm6, %v10227_v39, 0.0 }
 0x622   : > { %v1869_v33 = vpop.f32.mrf.mxu1 }
 0x623   : > { %v1870_v34 = vadd.f32 %v1869_v33, %v10202_v37  ;;  %v1889_v54 = vsel %vm1314_vm6, %v1878_v41, -inf  ;;  %v1336_v33 = vsel %vm1314_vm6, %v10229_v45, 0.0 }
 0x624   : > { %v8667_v38 = vpop.f32.mrf.mxu1 }
 0x625   : > { %v1883_v46 = vsel %vm1314_vm6, %v1870_v34, -inf }
 0x626   : > { %v1872_v48 = vpop.f32.mrf.mxu1  ;;  %1884 = vmax.xlane.f32.xlu0 %v1883_v46 }
 0x627   : > { %v1873_v52 = vadd.f32 %v1872_v48, %v10202_v37 }
 0x629   : > { %v1886_v49 = vsel %vm1314_vm6, %v1873_v52, -inf }
 0x62a   : > { %1887 = vmax.xlane.f32.xlu1 %v1886_v49  ;;  %1890 = vmax.xlane.f32.xlu0 %v1889_v54 }
 0x6af   : > { %v1885_v58 = vpop.xlane.xlu0 %1884 }
 0x6b0   : > { %v1892_v53 = vsub.f32 %v1870_v34, %v1885_v58  ;;  %v1339_v34 = vsel %vm1314_vm6, %v10231_v43, 0.0 }
 0x6b2   : > { %v1895_v55 = vmul.f32 1.442695, %v1892_v53 }
 0x6b3   : > { %v1888_v62 = vpop.xlane.xlu1 %1887  ;;  %v1891_v12 = vpop.xlane.xlu0 %1890 }
 0x6b4   : > { %9526 = vpow2.f32 %v1895_v55  ;;  %v1893_v63 = vsub.f32 %v1873_v52, %v1888_v62  ;;  %v1894_v42 = vsub.f32 %v1878_v41, %v1891_v12  ;;  %v2198_v62 = vsel %vm1353_vm4, %v10339_v31, 0 }
 0x6b6   : > { %v1897_v2 = vmul.f32 1.442695, %v1893_v63  ;;  %v1899_v0 = vmul.f32 1.442695, %v1894_v42 }
 0x6b8   : > { %9528 = vpow2.f32 %v1897_v2 }
 0x6b9   : > { %9530 = vpow2.f32 %v1899_v0 }
 0x6c1   : > { %v9527_v10 = vpop.eup %9526 }
 0x6c2   : > { %v1901_v16 = vsel %vm1314_vm6, %v9527_v10, 0.0 }
 0x6c3   : > { %1902 = vadd.xlane.f32.xlu1 %v1901_v16 }
 0x6c5   : > { %v9529_v18 = vpop.eup %9528 }
 0x6c6   : > { %v9531_v21 = vpop.eup %9530  ;;  %v1904_v22 = vsel %vm1314_vm6, %v9529_v18, 0.0  ;;  %v1913_v23 = vpack.c.bf16 %v9529_v18, %v9527_v10 }
 0x6c7   : > { %1905 = vadd.xlane.f32.xlu0 %v1904_v22  ;;  %v1907_v19 = vsel %vm1314_vm6, %v9531_v21, 0.0  ;;  %v1914_v29 = vpack.c.bf16 %v9531_v21, %v9531_v21  ;;  %v2094_v21 = vpack.c.bf16 %v10330_v50, %v10330_v50 }
 0x6c8   : > { %1908 = vadd.xlane.f32.xlu1 %v1907_v19  ;;  %8672 = vmatprep.mubr.msk.bf16.mxu1 %vm1314_vm6, %v1913_v23 }
 0x6c9   : > { %8673 = vmatmul.mubr.msk.bf16.vlgmr.msra.gmra.mxu1 %vm1314_vm6, %v1914_v29 }
 0x6ca   : > { %8677 = vmatpush3.bf16.msra.mxu1 %v10357_v7 }
 0x6cb   : > { %9375 = vmatprep.subr.msk.bf16.mxu1 %vm1253_vm3, %v2096_v24  ;;  %1334 = vadd.xlane.f32.xlu0 %v1333_v32 }
 0x6cc   : > { %1337 = vadd.xlane.f32.xlu1 %v1336_v33 }
 0x6cf   : > { %1340 = vadd.xlane.f32.xlu0 %v1339_v34 }
 0x74c   : > { %v1903_v38 = vpop.xlane.xlu1 %1902 }
 0x750   : > { %v1906_v27 = vpop.xlane.xlu0 %1905 }
 0x751   : > { %v1909_v41 = vpop.xlane.xlu1 %1908 }
 0x754   : > { %v1335_v46 = vpop.xlane.xlu0 %1334 }
 0x755   : > { %v1338_v48 = vpop.xlane.xlu1 %1337  ;;  %9532 = vrcp.f32 %v1335_v46 }
 0x756   : > { %9534 = vrcp.f32 %v1338_v48  ;;  %v1495_v48 = vsel %vm1314_vm6, %v10244_v57, 0.0 }
 0x758   : > { %v1341_v52 = vpop.xlane.xlu0 %1340 }
 0x759   : > { %9536 = vrcp.f32 %v1341_v52  ;;  %v1498_v52 = vsel %vm1314_vm6, %v10248_v60, 0.0 }
 0x75a   : > { %9538 = vrcp.f32 %v1903_v38 }
 0x75b   : > { %9540 = vrcp.f32 %v1909_v41 }
 0x75c   : > { %9542 = vrcp.f32 %v1906_v27 }
 0x762   : > { %v9533_v39 = vpop.eup %9532 }
 0x763   : > { %v9535_v49 = vpop.eup %9534  ;;  %v1405_v54 = vmul.f32 %v9533_v39, %v10309_v9  ;;  %v1501_v39 = vsel %vm1314_vm6, %v10246_v59, 0.0 }
 0x764   : > { %v1406_v45 = vmul.f32 %v9535_v49, %v10311_v11 }
 0x766   : > { %v9537_v58 = vpop.eup %9536  ;;  %v1408_v53 = vpack.c.bf16 %v1406_v45, %v1405_v54 }
 0x767   : > { %v1407_v43 = vmul.f32 %v9537_v58, %v10307_v6  ;;  %v9539_v11 = vpop.eup %9538 }
 0x768   : > { %8684 = vmatprep.mubr.msk.bf16.mxu0 %vm1253_vm3, %v1408_v53  ;;  %v9541_v63 = vpop.eup %9540 }
 0x769   : > { %v1409_v55 = vpack.c.bf16 %v1407_v43, %v1407_v43  ;;  %v9543_v42 = vpop.eup %9542 }
 0x76b   : > { %8685 = vmatmul.mubr.msk.bf16.vlgmr.msra.gmra.mxu0 %vm1253_vm3, %v1409_v55 }
 0x76c   : > { %8697 = vmatpush3.bf16.msra.mxu0 %v2198_v62 }
 0x76d   : > { %8698 = vmatprep.subr.bf16.mxu0 %v10337_v28 }
 0x770   : > { %8699 = vmatpush3.bf16.msra.mxu0 %v10337_v28  ;;  %v2109_v28 = vsel %vm1253_vm3, %v2096_v24, 0 }
 0x771   : > { %9378 = vmatprep.subr.msk.bf16.mxu0 %vm1353_vm4, %v7806_v56  ;;  %v2106_v56 = vsel %vm1253_vm3, %v10222_v26, 0 }
 0x789   : > { %v8674_v9 = vpop.f32.mrf.mxu1 }
 0x78a   : > { %v1974_v2 = vmul.f32 %v9541_v63, %v8674_v9 }
 0x78b   : > { %v1958_v6 = vpop.f32.mrf.mxu1 }
 0x78c   : > { %v1972_v0 = vmul.f32 %v9539_v11, %v1958_v6  ;;  %v1976_v18 = vpack.c.bf16 %v1974_v2, %v1974_v2 }
 0x78d   : > { %v8675_v12 = vpop.f32.mrf.mxu1 }
 0x78f   : > { %v1961_v31 = vpop.f32.mrf.mxu1 }
 0x790   : > { %v1973_v10 = vmul.f32 %v9543_v42, %v1961_v31 }
 0x792   : > { %v1975_v16 = vpack.c.bf16 %v1973_v10, %v1972_v0 }
 0x794   : > { %8678 = vmatprep.mubr.msk.bf16.mxu1 %vm1253_vm3, %v1975_v16 }
 0x795   : > { %8679 = vmatmul.mubr.msk.bf16.vlgmr.msra.gmra.mxu1 %vm1253_vm3, %v1976_v18 }
 0x796   : > { %8689 = vmatpush3.bf16.xpose.msra.mxu1 %v2109_v28  ;;  %8692 = vmatprep.mubr.msk.bf16.mxu1 %vm1253_vm3, %v2093_v47 }
 0x797   : > { %9376 = vmatprep.subr.msk.bf16.mxu1 %vm1253_vm3, %v10222_v26 }
 0x79e   : > { %8691 = vmatpush3.bf16.xpose.msra.mxu1 %v2106_v56 }
 0x79f   : > { %9379 = vmatprep.subr.msk.bf16.mxu1 %vm1353_vm4, %v10298_v3 }
 0x7a5   : > { %8693 = vmatmul.mubr.msk.bf16.vlgmr.msra.gmra.mxu1 %vm1253_vm3, %v2094_v21 }
 0x7a6   : > { %8711 = vmatpush3.bf16.msra.mxu1 %v10304_v4 }
 0x7a7   : > { %8732 = vmatprep.subr.bf16.mxu1 %v9810_v1 }
 0x82b   : > { %v8686_v36 = vpop.f32.mrf.mxu0 }
 0x82d   : > { %v2079_v44 = vpop.f32.mrf.mxu0 }
 0x82f   : > { %v8687_v47 = vpop.f32.mrf.mxu0 }
 0x855   : > { %v8680_v22 = vpop.f32.mrf.mxu1 }
 0x856   : > { %v10399_v23 = vadd.f32 %v8686_v36, %v8680_v22  ;;  %v10448_v22 = vpop.f32.mrf.mxu0 }
 0x857   : > { %v2022_v26 = vpop.f32.mrf.mxu1 }
 0x858   : > { %v10401_v19 = vadd.f32 %v2079_v44, %v2022_v26  ;;  %v9454_v44 = vld [vmem:[%s11851_s0 + $0x28] sm:$0xff]  }
 0x859   : > { %v8681_v29 = vpop.f32.mrf.mxu1 }
 0x85b   : > { %v10403_v3 = vpop.f32.mrf.mxu1 }
 0x865   : > { %v8694_v24 = vpop.f32.mrf.mxu1 }
 0x866   : > { %v2154_v4 = vadd.f32 %v8694_v24, %v10202_v37 }
 0x867   : > { %v2145_v50 = vpop.f32.mrf.mxu1 }
 0x868   : > { %v2146_v32 = vadd.f32 %v2145_v50, %v10202_v37  ;;  %v2165_v46 = vsel %vm1314_vm6, %v2154_v4, -inf }
 0x869   : > { %v8695_v33 = vpop.f32.mrf.mxu1 }
 0x86a   : > { %v2159_v34 = vsel %vm1314_vm6, %v2146_v32, -inf }
 0x86b   : > { %v2148_v38 = vpop.f32.mrf.mxu1  ;;  %2160 = vmax.xlane.f32.xlu1 %v2159_v34 }
 0x86c   : > { %v2149_v27 = vadd.f32 %v2148_v38, %v10202_v37 }
 0x86e   : > { %v2162_v41 = vsel %vm1314_vm6, %v2149_v27, -inf }
 0x86f   : > { %2163 = vmax.xlane.f32.xlu0 %v2162_v41  ;;  %2166 = vmax.xlane.f32.xlu1 %v2165_v46 }
 0x873   : > { %1496 = vadd.xlane.f32.xlu0 %v1495_v48  ;;  %1499 = vadd.xlane.f32.xlu1 %v1498_v52 }
 0x877   : > { %1502 = vadd.xlane.f32.xlu0 %v1501_v39  ;;  %v9456_v39 = vld [vmem:[%s11847_s1 + $0x28] sm:$0xff]  }
 0x8f4   : > { %v2161_v49 = vpop.xlane.xlu1 %2160 }
 0x8f5   : > { %v2168_v54 = vsub.f32 %v2146_v32, %v2161_v49 }
 0x8f7   : > { %v2171_v45 = vmul.f32 1.442695, %v2168_v54 }
 0x8f8   : > { %v2164_v58 = vpop.xlane.xlu0 %2163  ;;  %v2167_v53 = vpop.xlane.xlu1 %2166 }
 0x8f9   : > { %9544 = vpow2.f32 %v2171_v45  ;;  %v2169_v43 = vsub.f32 %v2149_v27, %v2164_v58  ;;  %v2170_v55 = vsub.f32 %v2154_v4, %v2167_v53  ;;  %v9457_v58 = vld [vmem:[%s11847_s1 + $0x20] sm:$0xff]  }
 0x8fb   : > { %v2173_v62 = vmul.f32 1.442695, %v2169_v43  ;;  %v2175_v9 = vmul.f32 1.442695, %v2170_v55  ;;  %v9458_v55 = vld [vmem:[%s11848_s4 + $0x28] sm:$0xff]  }
 0x8fc   : > { %v1497_v57 = vpop.xlane.xlu0 %1496  ;;  %v1500_v6 = vpop.xlane.xlu1 %1499 }
 0x8fd   : > { %9546 = vpow2.f32 %v2173_v62 }
 0x8fe   : > { %9548 = vpow2.f32 %v2175_v9  ;;  %v7835_v9 = vld [vmem:[%s11853_s27 + $0x2] ss:$0 sm:$0xff] }
 0x8ff   : > { %9550 = vrcp.f32 %v1497_v57 }
 0x900   : > { %9552 = vrcp.f32 %v1500_v6  ;;  %v1503_v60 = vpop.xlane.xlu0 %1502  ;;  %v9459_v6 = vld [vmem:[%s11848_s4 + $0x20] sm:$0xff]  }
 0x901   : > { %9554 = vrcp.f32 %v1503_v60 }
 0x906   : > { %v9545_v59 = vpop.eup %9544 }
 0x907   : > { %v2177_v11 = vsel %vm1314_vm6, %v9545_v59, 0.0 }
 0x908   : > { %2178 = vadd.xlane.f32.xlu1 %v2177_v11 }
 0x90a   : > { %v9547_v12 = vpop.eup %9546 }
 0x90b   : > { %v9549_v63 = vpop.eup %9548  ;;  %v2180_v42 = vsel %vm1314_vm6, %v9547_v12, 0.0  ;;  %v2189_v2 = vpack.c.bf16 %v9547_v12, %v9545_v59 }
 0x90c   : > { %v9551_v31 = vpop.eup %9550  ;;  %2181 = vadd.xlane.f32.xlu0 %v2180_v42  ;;  %v2183_v0 = vsel %vm1314_vm6, %v9549_v63, 0.0  ;;  %v2190_v10 = vpack.c.bf16 %v9549_v63, %v9549_v63 }
 0x90d   : > { %v9553_v16 = vpop.eup %9552  ;;  %2184 = vadd.xlane.f32.xlu1 %v2183_v0  ;;  %8700 = vmatprep.mubr.msk.bf16.mxu0 %vm1314_vm6, %v2189_v2  ;;  %v1566_v18 = vmul.f32 %v9551_v31, %v10315_v14  ;;  %v9455_v14 = vld [vmem:[%s11851_s0 + $0x20] sm:$0xff]  }
 0x90e   : > { %v9555_v28 = vpop.eup %9554  ;;  %8701 = vmatmul.mubr.msk.bf16.vlgmr.msra.gmra.mxu0 %vm1314_vm6, %v2190_v10  ;;  %v1567_v56 = vmul.f32 %v9553_v16, %v10317_v17 }
 0x90f   : > { %v1568_v21 = vmul.f32 %v9555_v28, %v10313_v13  ;;  %8705 = vmatpush3.bf16.msra.mxu0 %v10357_v7 }
 0x910   : > { %v1569_v36 = vpack.c.bf16 %v1567_v56, %v1566_v18  ;;  %8716 = vmatprep.subr.bf16.mxu0 %v9810_v1 }
 0x911   : > { %v1570_v47 = vpack.c.bf16 %v1568_v21, %v1568_v21 }
 0x912   : > { %8712 = vmatprep.mubr.msk.bf16.mxu1 %vm1253_vm3, %v1569_v36 }
 0x913   : > { %8713 = vmatmul.mubr.msk.bf16.vlgmr.msra.gmra.mxu1 %vm1253_vm3, %v1570_v47 }
 0x914   : > { %8733 = vmatpush3.bf16.msra.mxu1 %v9454_v44  ;;  %8736 = vmatprep.mubr.msk.bf16.mxu1 %vm9811_vm0, %v9810_v1 }
 0x915   : > { %8734 = vmatprep.subr.bf16.mxu1 %v9810_v1 }
 0x918   : > { %8735 = vmatpush3.bf16.msra.mxu1 %v9455_v14 }
 0x91b   : > { %8737 = vmatmul.mubr.msk.bf16.vlgmr.msra.gmra.mxu1 %vm891_vm2, %v10082_v51 }
 0x91c   : > { %8740 = vmatprep.mubr.msk.bf16.mxu1 %vm9811_vm0, %v9810_v1 }
 0x923   : > { %8741 = vmatmul.mubr.msk.bf16.gmra.mxu1 %vm891_vm2, %v10101_v61 }
 0x924   : > { %8744 = vmatprep.mubr.msk.bf16.mxu1 %vm9811_vm0, %v9810_v1 }
 0x92b   : > { %8745 = vmatmul.mubr.msk.bf16.gmra.mxu1 %vm891_vm2, %v10112_v5 }
 0x991   : > { %v2179_v13 = vpop.xlane.xlu1 %2178 }
 0x992   : > { %9556 = vrcp.f32 %v2179_v13 }
 0x995   : > { %v2182_v7 = vpop.xlane.xlu0 %2181 }
 0x996   : > { %v2185_v17 = vpop.xlane.xlu1 %2184 }
 0x997   : > { %9558 = vrcp.f32 %v2185_v17 }
 0x998   : > { %9560 = vrcp.f32 %v2182_v7 }
 0x99f   : > { %v9557_v24 = vpop.eup %9556 }
 0x9a4   : > { %v9559_v32 = vpop.eup %9558 }
 0x9a5   : > { %v9561_v4 = vpop.eup %9560 }
 0x9ce   : > { %v8702_v26 = vpop.f32.mrf.mxu0 }
 0x9cf   : > { %v2250_v34 = vmul.f32 %v9559_v32, %v8702_v26  ;;  %v7824_v32 = vld [vmem:[%s11852_s9 + $0x2] ss:$0 sm:$0xff] }
 0x9d0   : > { %v2234_v29 = vpop.f32.mrf.mxu0 }
 0x9d1   : > { %v2248_v27 = vmul.f32 %v9557_v24, %v2234_v29  ;;  %v2252_v49 = vpack.c.bf16 %v2250_v34, %v2250_v34 }
 0x9d2   : > { %v8703_v50 = vpop.f32.mrf.mxu0 }
 0x9d3   : > { %v10450_v33 = vpop.f32.mrf.mxu1 }
 0x9d4   : > { %v2237_v38 = vpop.f32.mrf.mxu0 }
 0x9d5   : > { %v2249_v41 = vmul.f32 %v9561_v4, %v2237_v38  ;;  %v10452_v46 = vpop.f32.mrf.mxu1 }
 0x9d7   : > { %v2251_v48 = vpack.c.bf16 %v2249_v41, %v2248_v27  ;;  %v8715_v52 = vpop.f32.mrf.mxu1 }
 0x9d9   : > { %8706 = vmatprep.mubr.msk.bf16.mxu0 %vm1253_vm3, %v2251_v48  ;;  %v10458_v54 = vpop.f32.mrf.mxu1 }
 0x9da   : > { %8707 = vmatmul.mubr.msk.bf16.vlgmr.msra.gmra.mxu0 %vm1253_vm3, %v2252_v49 }
 0x9db   : > { %8717 = vmatpush3.bf16.msra.mxu0 %v9456_v39  ;;  %v2502_v45 = vpop.f32.mrf.mxu1  ;;  %8720 = vmatprep.mubr.msk.bf16.mxu0 %vm9811_vm0, %v9810_v1 }
 0x9dc   : > { %8718 = vmatprep.subr.bf16.mxu0 %v9810_v1  ;;  %v2503_v12 = vadd.f32 %v7835_v9, %v2502_v45 }
 0x9dd   : > { %v8738_v53 = vpop.f32.mrf.mxu1 }
 0x9df   : > { %8719 = vmatpush3.bf16.msra.mxu0 %v9457_v58  ;;  %v2505_v43 = vpop.f32.mrf.mxu1 }
 0x9e0   : > { %8748 = vmatprep.subr.bf16.mxu0 %v9810_v1  ;;  %v2506_v60 = vadd.f32 %v7835_v9, %v2505_v43 }
 0x9e1   : > { %v8739_v62 = vpop.f32.mrf.mxu1 }
 0x9e2   : > { %8721 = vmatmul.mubr.msk.bf16.vlgmr.msra.gmra.mxu0 %vm891_vm2, %v10082_v51  ;;  %v2609_v2 = vpack.c.bf16 %v2506_v60, %v2503_v12 }
 0x9e3   : > { %v2510_v57 = vpop.f32.mrf.mxu1  ;;  %8724 = vmatprep.mubr.msk.bf16.mxu0 %vm9811_vm0, %v9810_v1  ;;  %8749 = vmatpush3.bf16.msra.mxu0 %v9458_v55 }
 0x9e4   : > { %v2511_v59 = vadd.f32 %v7835_v9, %v2510_v57  ;;  %8750 = vmatprep.subr.bf16.mxu0 %v9810_v1  ;;  %v2620_v56 = vsel %vm1253_vm3, %v2609_v2, 0 }
 0x9e5   : > { %v8742_v11 = vpop.f32.mrf.mxu1 }
 0x9e6   : > { %v2610_v63 = vpack.c.bf16 %v2511_v59, %v2511_v59 }
 0x9e7   : > { %v2513_v42 = vpop.f32.mrf.mxu1  ;;  %8751 = vmatpush3.bf16.msra.mxu0 %v9459_v6 }
 0x9e8   : > { %v2623_v31 = vsel %vm1253_vm3, %v2610_v63, 0  ;;  %9380 = vmatprep.subr.msk.bf16.mxu1 %vm1253_vm3, %v2610_v63  ;;  %v2514_v47 = vadd.f32 %v7835_v9, %v2513_v42 }
 0x9e9   : > { %v8743_v0 = vpop.f32.mrf.mxu1  ;;  %8765 = vmatpush3.bf16.xpose.msra.mxu1 %v2623_v31  ;;  %v7846_v31 = vld [vmem:[%s11805_s10 + $0x2] ss:$0 sm:$0xff] }
 0x9ea   : > { %8725 = vmatmul.mubr.msk.bf16.gmra.mxu0 %vm891_vm2, %v10101_v61  ;;  %9381 = vmatprep.subr.msk.bf16.mxu1 %vm1253_vm3, %v2609_v2 }
 0x9eb   : > { %v2518_v10 = vpop.f32.mrf.mxu1  ;;  %8728 = vmatprep.mubr.msk.bf16.mxu0 %vm9811_vm0, %v9810_v1 }
 0x9ec   : > { %v2519_v44 = vadd.f32 %v7835_v9, %v2518_v10 }
 0x9ed   : > { %v8746_v16 = vpop.f32.mrf.mxu1 }
 0x9ee   : > { %v2831_v14 = vpack.c.bf16 %v2519_v44, %v2514_v47 }
 0x9ef   : > { %v2521_v18 = vpop.f32.mrf.mxu1 }
 0x9f0   : > { %v2522_v28 = vadd.f32 %v7835_v9, %v2521_v18  ;;  %v2842_v17 = vsel %vm1253_vm3, %v2831_v14, 0 }
 0x9f1   : > { %v8747_v21 = vpop.f32.mrf.mxu1  ;;  %8767 = vmatpush3.bf16.xpose.msra.mxu1 %v2620_v56 }
 0x9f2   : > { %v2832_v36 = vpack.c.bf16 %v2522_v28, %v2522_v28  ;;  %8729 = vmatmul.mubr.msk.bf16.gmra.mxu0 %vm891_vm2, %v10112_v5 }
 0x9f3   : > { %8752 = vmatprep.mubr.msk.bf16.mxu0 %vm9811_vm0, %v9810_v1 }
 0x9f4   : > { %9384 = vmatprep.subr.msk.bf16.mxu0 %vm1253_vm3, %v2832_v36  ;;  %v2845_v13 = vsel %vm1253_vm3, %v2832_v36, 0 }
 0x9fa   : > { %8753 = vmatmul.mubr.msk.bf16.vlgmr.msra.gmra.mxu0 %vm891_vm2, %v10082_v51 }
 0x9fb   : > { %8787 = vmatpush3.bf16.xpose.msra.mxu0 %v2845_v13  ;;  %8756 = vmatprep.mubr.msk.bf16.mxu0 %vm9811_vm0, %v9810_v1 }
 0x9fc   : > { %9385 = vmatprep.subr.msk.bf16.mxu0 %vm1253_vm3, %v2831_v14 }
 0xa02   : > { %8757 = vmatmul.mubr.msk.bf16.gmra.mxu0 %vm891_vm2, %v10101_v61 }
 0xa03   : > { %8789 = vmatpush3.bf16.xpose.msra.mxu0 %v2842_v17  ;;  %8760 = vmatprep.mubr.msk.bf16.mxu0 %vm9811_vm0, %v9810_v1 }
 0xa0a   : > { %8761 = vmatmul.mubr.msk.bf16.gmra.mxu0 %vm891_vm2, %v10112_v5 }
 0xa9a   : > { %v10508_v7 = vpop.f32.mrf.mxu0 }
 0xa9c   : > { %v10510_v26 = vpop.f32.mrf.mxu0 }
 0xa9e   : > { %v8709_v29 = vpop.f32.mrf.mxu0 }
 0xaa0   : > { %v10512_v24 = vpop.f32.mrf.mxu0 }
 0xaa2   : > { %v2420_v50 = vpop.f32.mrf.mxu0 }
 0xaa3   : > { %v2421_v38 = vadd.f32 %v7824_v32, %v2420_v50 }
 0xaa4   : > { %v8722_v4 = vpop.f32.mrf.mxu0 }
 0xaa6   : > { %v2423_v34 = vpop.f32.mrf.mxu0 }
 0xaa7   : > { %v2424_v27 = vadd.f32 %v7824_v32, %v2423_v34 }
 0xaa8   : > { %v8723_v41 = vpop.f32.mrf.mxu0 }
 0xaa9   : > { %v2607_v48 = vpack.c.bf16 %v2424_v27, %v2421_v38 }
 0xaaa   : > { %v2428_v52 = vpop.f32.mrf.mxu0 }
 0xaab   : > { %v2429_v39 = vadd.f32 %v7824_v32, %v2428_v52  ;;  %8768 = vmatprep.mubr.msk.bf16.mxu1 %vm1253_vm3, %v2607_v48 }
 0xaac   : > { %v8726_v49 = vpop.f32.mrf.mxu0 }
 0xaad   : > { %v2608_v45 = vpack.c.bf16 %v2429_v39, %v2429_v39 }
 0xaae   : > { %v2431_v58 = vpop.f32.mrf.mxu0 }
 0xaaf   : > { %8769 = vmatmul.mubr.msk.bf16.vlgmr.msra.gmra.mxu1 %vm1253_vm3, %v2608_v45  ;;  %v2432_v55 = vadd.f32 %v7824_v32, %v2431_v58 }
 0xab0   : > { %v8727_v53 = vpop.f32.mrf.mxu0 }
 0xab2   : > { %v2436_v43 = vpop.f32.mrf.mxu0 }
 0xab3   : > { %v2437_v62 = vadd.f32 %v7824_v32, %v2436_v43 }
 0xab4   : > { %v8730_v9 = vpop.f32.mrf.mxu0 }
 0xab5   : > { %v2829_v57 = vpack.c.bf16 %v2437_v62, %v2432_v55  ;;  %v7856_v9 = vld [vmem:[%s11806_s11 + $0x8] sm:$0xf] }
 0xab6   : > { %v2439_v6 = vpop.f32.mrf.mxu0  ;;  %9387 = vmatprep.subr.msk.bf16.mxu0 %vm1353_vm4, %v7856_v9 }
 0xab7   : > { %v2440_v60 = vadd.f32 %v7824_v32, %v2439_v6  ;;  %8790 = vmatprep.mubr.msk.bf16.mxu0 %vm1253_vm3, %v2829_v57  ;;  %v2776_v57 = vsel %vm1353_vm4, %v7856_v9, 0 }
 0xab8   : > { %v8731_v59 = vpop.f32.mrf.mxu0 }
 0xab9   : > { %v2830_v11 = vpack.c.bf16 %v2440_v60, %v2440_v60 }
 0xaba   : > { %v2584_v12 = vpop.f32.mrf.mxu0 }
 0xabb   : > { %8791 = vmatmul.mubr.msk.bf16.vlgmr.msra.gmra.mxu0 %vm1253_vm3, %v2830_v11  ;;  %v2585_v28 = vadd.f32 %v7846_v31, %v2584_v12 }
 0xabc   : > { %v8754_v63 = vpop.f32.mrf.mxu0  ;;  %8803 = vmatpush3.bf16.msra.mxu0 %v2776_v57 }
 0xabd   : > { %8824 = vmatprep.subr.bf16.mxu0 %v9810_v1 }
 0xabe   : > { %v2587_v42 = vpop.f32.mrf.mxu0 }
 0xabf   : > { %v2588_v10 = vadd.f32 %v7846_v31, %v2587_v42 }
 0xac0   : > { %v8755_v2 = vpop.f32.mrf.mxu0 }
 0xac1   : > { %v2611_v36 = vpack.c.bf16 %v2588_v10, %v2585_v28 }
 0xac2   : > { %v2592_v0 = vpop.f32.mrf.mxu0 }
 0xac3   : > { %v2593_v16 = vadd.f32 %v7846_v31, %v2592_v0 }
 0xac4   : > { %v8758_v18 = vpop.f32.mrf.mxu0 }
 0xac5   : > { %v2612_v56 = vpack.c.bf16 %v2593_v16, %v2593_v16 }
 0xac6   : > { %v2595_v21 = vpop.f32.mrf.mxu0 }
 0xac7   : > { %v2712_v44 = vsel %vm1353_vm4, %v2612_v56, 0  ;;  %v2596_v47 = vadd.f32 %v7846_v31, %v2595_v21  ;;  %9382 = vmatprep.subr.msk.bf16.mxu1 %vm1353_vm4, %v2612_v56 }
 0xac8   : > { %v8759_v14 = vpop.f32.mrf.mxu0  ;;  %8773 = vmatpush3.bf16.msra.mxu1 %v2712_v44 }
 0xac9   : > { %8774 = vmatprep.subr.bf16.mxu1 %v2611_v36 }
 0xaca   : > { %v2600_v13 = vpop.f32.mrf.mxu0 }
 0xacb   : > { %v2601_v17 = vadd.f32 %v7846_v31, %v2600_v13 }
 0xacc   : > { %v8762_v29 = vpop.f32.mrf.mxu0  ;;  %8775 = vmatpush3.bf16.msra.mxu1 %v2611_v36 }
 0xacd   : > { %v10526_v50 = vpack.c.bf16 %v2601_v17, %v2596_v47  ;;  %9383 = vmatprep.subr.msk.bf16.mxu1 %vm1353_vm4, %v7856_v9 }
 0xace   : > { %v2603_v32 = vpop.f32.mrf.mxu0 }
 0xacf   : > { %v2604_v4 = vadd.f32 %v7846_v31, %v2603_v32 }
 0xad0   : > { %v8763_v34 = vpop.f32.mrf.mxu0 }
 0xad1   : > { %v2834_v13 = vpack.c.bf16 %v2604_v4, %v2604_v4 }
 0xb6f   : > { %v8770_v38 = vpop.f32.mrf.mxu1 }
 0xb70   : > { %v2668_v52 = vadd.f32 %v8770_v38, %v10202_v37 }
 0xb71   : > { %v2659_v27 = vpop.f32.mrf.mxu1 }
 0xb72   : > { %v2660_v41 = vadd.f32 %v2659_v27, %v10202_v37  ;;  %v2679_v53 = vsel %vm1314_vm6, %v2668_v52, -inf }
 0xb73   : > { %v8771_v48 = vpop.f32.mrf.mxu1 }
 0xb74   : > { %v2673_v39 = vsel %vm1314_vm6, %v2660_v41, -inf }
 0xb75   : > { %v2662_v49 = vpop.f32.mrf.mxu1  ;;  %2674 = vmax.xlane.f32.xlu0 %v2673_v39 }
 0xb76   : > { %v2663_v45 = vadd.f32 %v2662_v49, %v10202_v37 }
 0xb78   : > { %v2676_v58 = vsel %vm1314_vm6, %v2663_v45, -inf }
 0xb79   : > { %2677 = vmax.xlane.f32.xlu1 %v2676_v58  ;;  %2680 = vmax.xlane.f32.xlu0 %v2679_v53 }
 0xb7b   : > { %v8792_v43 = vpop.f32.mrf.mxu0 }
 0xb7c   : > { %v2890_v17 = vadd.f32 %v8792_v43, %v10202_v37 }
 0xb7d   : > { %v2881_v55 = vpop.f32.mrf.mxu0 }
 0xb7e   : > { %v2882_v56 = vadd.f32 %v2881_v55, %v10202_v37  ;;  %v2901_v34 = vsel %vm1314_vm6, %v2890_v17, -inf }
 0xb7f   : > { %v8793_v62 = vpop.f32.mrf.mxu0 }
 0xb80   : > { %v2895_v29 = vsel %vm1314_vm6, %v2882_v56, -inf }
 0xb81   : > { %v2884_v16 = vpop.f32.mrf.mxu0 }
 0xb82   : > { %v2885_v44 = vadd.f32 %v2884_v16, %v10202_v37 }
 0xb84   : > { %v2898_v32 = vsel %vm1314_vm6, %v2885_v44, -inf }
 0xbfe   : > { %v2675_v6 = vpop.xlane.xlu0 %2674 }
 0xbff   : > { %v2682_v60 = vsub.f32 %v2660_v41, %v2675_v6 }
 0xc01   : > { %v2685_v59 = vmul.f32 1.442695, %v2682_v60 }
 0xc02   : > { %v2678_v11 = vpop.xlane.xlu1 %2677  ;;  %v2681_v12 = vpop.xlane.xlu0 %2680 }
 0xc03   : > { %9562 = vpow2.f32 %v2685_v59  ;;  %v2683_v63 = vsub.f32 %v2663_v45, %v2678_v11  ;;  %v2684_v42 = vsub.f32 %v2668_v52, %v2681_v12 }
 0xc05   : > { %v2687_v2 = vmul.f32 1.442695, %v2683_v63  ;;  %v2689_v31 = vmul.f32 1.442695, %v2684_v42 }
 0xc07   : > { %9564 = vpow2.f32 %v2687_v2 }
 0xc08   : > { %9566 = vpow2.f32 %v2689_v31 }
 0xc10   : > { %v9563_v0 = vpop.eup %9562 }
 0xc11   : > { %v2691_v10 = vsel %vm1314_vm6, %v9563_v0, 0.0 }
 0xc12   : > { %2692 = vadd.xlane.f32.xlu1 %v2691_v10 }
 0xc14   : > { %v9565_v18 = vpop.eup %9564 }
 0xc15   : > { %v9567_v28 = vpop.eup %9566  ;;  %v2694_v21 = vsel %vm1314_vm6, %v9565_v18, 0.0  ;;  %v2703_v36 = vpack.c.bf16 %v9565_v18, %v9563_v0 }
 0xc16   : > { %2695 = vadd.xlane.f32.xlu0 %v2694_v21  ;;  %v2697_v47 = vsel %vm1314_vm6, %v9567_v28, 0.0  ;;  %v2704_v14 = vpack.c.bf16 %v9567_v28, %v9567_v28  ;;  %v2934_v21 = vsel %vm1353_vm4, %v2834_v13, 0 }
 0xc17   : > { %2698 = vadd.xlane.f32.xlu1 %v2697_v47  ;;  %8776 = vmatprep.mubr.msk.bf16.mxu1 %vm1314_vm6, %v2703_v36  ;;  %v9460_v36 = vld [vmem:[%s11847_s1 + $0x38] sm:$0xff]   ;;  %v9461_v47 = vld [vmem:[%s11847_s1 + $0x30] sm:$0xff]  }
 0xc18   : > { %8777 = vmatmul.mubr.msk.bf16.vlgmr.msra.gmra.mxu1 %vm1314_vm6, %v2704_v14  ;;  %v9463_v14 = vld [vmem:[%s11848_s4 + $0x30] sm:$0xff]  }
 0xc19   : > { %8781 = vmatpush3.bf16.msra.mxu1 %v2776_v57 }
 0xc1a   : > { %9386 = vmatprep.subr.msk.bf16.mxu1 %vm1353_vm4, %v2834_v13  ;;  %2896 = vmax.xlane.f32.xlu0 %v2895_v29 }
 0xc1b   : > { %2899 = vmax.xlane.f32.xlu1 %v2898_v32 }
 0xc1e   : > { %2902 = vmax.xlane.f32.xlu0 %v2901_v34 }
 0xc9b   : > { %v2693_v38 = vpop.xlane.xlu1 %2692 }
 0xc9f   : > { %v2696_v27 = vpop.xlane.xlu0 %2695 }
 0xca0   : > { %v2699_v41 = vpop.xlane.xlu1 %2698 }
 0xca3   : > { %v2897_v4 = vpop.xlane.xlu0 %2896 }
 0xca4   : > { %v2900_v48 = vpop.xlane.xlu1 %2899  ;;  %v2904_v52 = vsub.f32 %v2882_v56, %v2897_v4 }
 0xca5   : > { %v2905_v39 = vsub.f32 %v2885_v44, %v2900_v48 }
 0xca6   : > { %v2907_v49 = vmul.f32 1.442695, %v2904_v52 }
 0xca7   : > { %v2909_v45 = vmul.f32 1.442695, %v2905_v39  ;;  %v2903_v58 = vpop.xlane.xlu0 %2902 }
 0xca8   : > { %9568 = vpow2.f32 %v2907_v49  ;;  %v2906_v53 = vsub.f32 %v2890_v17, %v2903_v58 }
 0xca9   : > { %9570 = vpow2.f32 %v2909_v45 }
 0xcaa   : > { %v2911_v43 = vmul.f32 1.442695, %v2906_v53 }
 0xcac   : > { %9572 = vpow2.f32 %v2911_v43 }
 0xcad   : > { %9574 = vrcp.f32 %v2693_v38 }
 0xcae   : > { %9576 = vrcp.f32 %v2699_v41 }
 0xcaf   : > { %9578 = vrcp.f32 %v2696_v27 }
 0xcb5   : > { %v9569_v55 = vpop.eup %9568 }
 0xcb6   : > { %v9571_v62 = vpop.eup %9570  ;;  %v2913_v9 = vsel %vm1314_vm6, %v9569_v55, 0.0 }
 0xcb7   : > { %v2916_v57 = vsel %vm1314_vm6, %v9571_v62, 0.0  ;;  %2914 = vadd.xlane.f32.xlu1 %v2913_v9  ;;  %v2925_v56 = vpack.c.bf16 %v9571_v62, %v9569_v55 }
 0xcb8   : > { %2917 = vadd.xlane.f32.xlu0 %v2916_v57 }
 0xcb9   : > { %v9573_v6 = vpop.eup %9572 }
 0xcba   : > { %v2919_v60 = vsel %vm1314_vm6, %v9573_v6, 0.0  ;;  %v9575_v12 = vpop.eup %9574  ;;  %v2926_v44 = vpack.c.bf16 %v9573_v6, %v9573_v6 }
 0xcbb   : > { %2920 = vadd.xlane.f32.xlu1 %v2919_v60  ;;  %v9577_v42 = vpop.eup %9576 }
 0xcbc   : > { %v9579_v2 = vpop.eup %9578 }
 0xcd8   : > { %v8778_v59 = vpop.f32.mrf.mxu1 }
 0xcd9   : > { %v2764_v31 = vmul.f32 %v9577_v42, %v8778_v59  ;;  %v9465_v59 = vld [vmem:[%s11851_s0 + $0x30] sm:$0xff]  }
 0xcda   : > { %v2748_v11 = vpop.f32.mrf.mxu1 }
 0xcdb   : > { %v2762_v10 = vmul.f32 %v9575_v12, %v2748_v11  ;;  %v2766_v28 = vpack.c.bf16 %v2764_v31, %v2764_v31  ;;  %v7870_v12 = vld [vmem:[%s11852_s9 + $0x3] ss:$0 sm:$0xff] }
 0xcdc   : > { %v8779_v63 = vpop.f32.mrf.mxu1 }
 0xcde   : > { %v2751_v0 = vpop.f32.mrf.mxu1 }
 0xcdf   : > { %v2763_v16 = vmul.f32 %v9579_v2, %v2751_v0 }
 0xce1   : > { %v2765_v18 = vpack.c.bf16 %v2763_v16, %v2762_v10 }
 0xce3   : > { %8782 = vmatprep.mubr.msk.bf16.mxu1 %vm1253_vm3, %v2765_v18 }
 0xce4   : > { %8783 = vmatmul.mubr.msk.bf16.vlgmr.msra.gmra.mxu1 %vm1253_vm3, %v2766_v28 }
 0xce5   : > { %8795 = vmatpush3.bf16.msra.mxu1 %v2934_v21  ;;  %8798 = vmatprep.mubr.msk.bf16.mxu1 %vm1314_vm6, %v2925_v56 }
 0xce6   : > { %8796 = vmatprep.subr.bf16.mxu1 %v10526_v50 }
 0xce9   : > { %8797 = vmatpush3.bf16.msra.mxu1 %v10526_v50  ;;  %v9462_v50 = vld [vmem:[%s11848_s4 + $0x38] sm:$0xff]  }
 0xcea   : > { %8808 = vmatprep.subr.bf16.mxu1 %v9810_v1 }
 0xcec   : > { %8799 = vmatmul.mubr.msk.bf16.vlgmr.msra.gmra.mxu1 %vm1314_vm6, %v2926_v44 }
 0xced   : > { %8809 = vmatpush3.bf16.msra.mxu1 %v9460_v36  ;;  %8812 = vmatprep.mubr.msk.bf16.mxu1 %vm9811_vm0, %v9810_v1 }
 0xcee   : > { %8810 = vmatprep.subr.bf16.mxu1 %v9810_v1 }
 0xcf1   : > { %8811 = vmatpush3.bf16.msra.mxu1 %v9461_v47 }
 0xcf2   : > { %8840 = vmatprep.subr.bf16.mxu1 %v9810_v1 }
 0xcf4   : > { %8813 = vmatmul.mubr.msk.bf16.vlgmr.msra.gmra.mxu1 %vm891_vm2, %v10082_v51 }
 0xcf5   : > { %8816 = vmatprep.mubr.msk.bf16.mxu1 %vm9811_vm0, %v9810_v1  ;;  %8841 = vmatpush3.bf16.msra.mxu1 %v9462_v50 }
 0xcf6   : > { %8842 = vmatprep.subr.bf16.mxu1 %v9810_v1 }
 0xcf9   : > { %8843 = vmatpush3.bf16.msra.mxu1 %v9463_v14  ;;  %v7892_v14 = vld [vmem:[%s11805_s10 + $0x3] ss:$0 sm:$0xff] }
 0xcfc   : > { %8817 = vmatmul.mubr.msk.bf16.gmra.mxu1 %vm891_vm2, %v10101_v61 }
 0xcfd   : > { %8820 = vmatprep.mubr.msk.bf16.mxu1 %vm9811_vm0, %v9810_v1 }
 0xd04   : > { %8821 = vmatmul.mubr.msk.bf16.gmra.mxu1 %vm891_vm2, %v10112_v5 }
 0xd05   : > { %8844 = vmatprep.mubr.msk.bf16.mxu1 %vm9811_vm0, %v9810_v1 }
 0xd0c   : > { %8845 = vmatmul.mubr.msk.bf16.vlgmr.msra.gmra.mxu1 %vm891_vm2, %v10082_v51 }
 0xd0d   : > { %8848 = vmatprep.mubr.msk.bf16.mxu1 %vm9811_vm0, %v9810_v1 }
 0xd14   : > { %8849 = vmatmul.mubr.msk.bf16.gmra.mxu1 %vm891_vm2, %v10101_v61 }
 0xd15   : > { %8852 = vmatprep.mubr.msk.bf16.mxu1 %vm9811_vm0, %v9810_v1 }
 0xd1c   : > { %8853 = vmatmul.mubr.msk.bf16.gmra.mxu1 %vm891_vm2, %v10112_v5 }
 0xd40   : > { %v2915_v13 = vpop.xlane.xlu1 %2914 }
 0xd41   : > { %v2918_v29 = vpop.xlane.xlu0 %2917  ;;  %9580 = vrcp.f32 %v2915_v13 }
 0xd44   : > { %v2921_v17 = vpop.xlane.xlu1 %2920 }
 0xd45   : > { %9582 = vrcp.f32 %v2921_v17 }
 0xd46   : > { %9584 = vrcp.f32 %v2918_v29 }
 0xd4e   : > { %v9581_v39 = vpop.eup %9580 }
 0xd52   : > { %v9583_v45 = vpop.eup %9582 }
 0xd53   : > { %v9585_v58 = vpop.eup %9584 }
 0xda4   : > { %v8784_v32 = vpop.f32.mrf.mxu1 }
 0xda5   : > { %v10604_v34 = vadd.f32 %v8784_v32, %v10399_v23 }
 0xda6   : > { %v2812_v38 = vpop.f32.mrf.mxu1 }
 0xda7   : > { %v10607_v27 = vadd.f32 %v2812_v38, %v10401_v19  ;;  %v9464_v19 = vld [vmem:[%s11851_s0 + $0x38] sm:$0xff]  }
 0xda8   : > { %v8785_v41 = vpop.f32.mrf.mxu1 }
 0xdaa   : > { %v10609_v4 = vpop.f32.mrf.mxu1 }
 0xdac   : > { %v8800_v48 = vpop.f32.mrf.mxu1 }
 0xdad   : > { %v2986_v53 = vmul.f32 %v9583_v45, %v8800_v48 }
 0xdae   : > { %v2970_v52 = vpop.f32.mrf.mxu1 }
 0xdaf   : > { %v2984_v55 = vmul.f32 %v9581_v39, %v2970_v52  ;;  %v2988_v57 = vpack.c.bf16 %v2986_v53, %v2986_v53 }
 0xdb0   : > { %v8801_v49 = vpop.f32.mrf.mxu1 }
 0xdb2   : > { %v2973_v43 = vpop.f32.mrf.mxu1 }
 0xdb3   : > { %v2985_v62 = vmul.f32 %v9585_v58, %v2973_v43 }
 0xdb4   : > { %v3105_v9 = vpop.f32.mrf.mxu1 }
 0xdb5   : > { %v2987_v23 = vpack.c.bf16 %v2985_v62, %v2984_v55  ;;  %v3106_v50 = vadd.f32 %v7870_v12, %v3105_v9 }
 0xdb6   : > { %v8814_v6 = vpop.f32.mrf.mxu1 }
 0xdb7   : > { %8804 = vmatprep.mubr.msk.bf16.mxu0 %vm1253_vm3, %v2987_v23  ;;  %v2356_v23 = vadd.f32 %v10450_v33, %v10508_v7  ;;  %v7881_v33 = vld [vmem:[%s11853_s27 + $0x3] ss:$0 sm:$0xff] }
 0xdb8   : > { %8805 = vmatmul.mubr.msk.bf16.vlgmr.msra.gmra.mxu0 %vm1253_vm3, %v2988_v57  ;;  %v3108_v60 = vpop.f32.mrf.mxu1  ;;  %v2348_v57 = vadd.f32 %v10452_v46, %v10510_v26 }
 0xdb9   : > { %8825 = vmatpush3.bf16.msra.mxu0 %v9464_v19  ;;  %8828 = vmatprep.mubr.msk.bf16.mxu0 %vm9811_vm0, %v9810_v1  ;;  %v3109_v44 = vadd.f32 %v7870_v12, %v3108_v60 }
 0xdba   : > { %v8815_v11 = vpop.f32.mrf.mxu1  ;;  %8826 = vmatprep.subr.bf16.mxu0 %v9810_v1 }
 0xdbb   : > { %v3292_v17 = vpack.c.bf16 %v3109_v44, %v3106_v50 }
 0xdbc   : > { %v3113_v63 = vpop.f32.mrf.mxu1 }
 0xdbd   : > { %v10625_v42 = vadd.f32 %v7870_v12, %v3113_v63  ;;  %8827 = vmatpush3.bf16.msra.mxu0 %v9465_v59 }
 0xdbe   : > { %v8818_v2 = vpop.f32.mrf.mxu1 }
 0xdc0   : > { %v3116_v31 = vpop.f32.mrf.mxu1  ;;  %8829 = vmatmul.mubr.msk.bf16.vlgmr.msra.gmra.mxu0 %vm891_vm2, %v10082_v51 }
 0xdc1   : > { %8832 = vmatprep.mubr.msk.bf16.mxu0 %vm9811_vm0, %v9810_v1  ;;  %v3117_v16 = vadd.f32 %v7870_v12, %v3116_v31 }
 0xdc2   : > { %v8819_v0 = vpop.f32.mrf.mxu1 }
 0xdc4   : > { %v3121_v10 = vpop.f32.mrf.mxu1 }
 0xdc5   : > { %v3122_v18 = vadd.f32 %v7870_v12, %v3121_v10 }
 0xdc6   : > { %v8822_v28 = vpop.f32.mrf.mxu1 }
 0xdc7   : > { %v3514_v56 = vpack.c.bf16 %v3122_v18, %v3117_v16 }
 0xdc8   : > { %v3124_v21 = vpop.f32.mrf.mxu1  ;;  %8833 = vmatmul.mubr.msk.bf16.gmra.mxu0 %vm891_vm2, %v10101_v61 }
 0xdc9   : > { %v10633_v36 = vadd.f32 %v7870_v12, %v3124_v21  ;;  %8882 = vmatprep.mubr.msk.bf16.mxu1 %vm1253_vm3, %v3514_v56  ;;  %8836 = vmatprep.mubr.msk.bf16.mxu0 %vm9811_vm0, %v9810_v1 }
 0xdca   : > { %v8823_v51 = vpop.f32.mrf.mxu1 }
 0xdcc   : > { %v3269_v47 = vpop.f32.mrf.mxu1 }
 0xdcd   : > { %v3270_v29 = vadd.f32 %v7892_v14, %v3269_v47 }
 0xdce   : > { %v8846_v13 = vpop.f32.mrf.mxu1 }
 0xdd0   : > { %8837 = vmatmul.mubr.msk.bf16.gmra.mxu0 %vm891_vm2, %v10112_v5  ;;  %v3272_v61 = vpop.f32.mrf.mxu1 }
 0xdd1   : > { %v3273_v32 = vadd.f32 %v7892_v14, %v3272_v61  ;;  %8860 = vmatprep.mubr.msk.bf16.mxu0 %vm1253_vm3, %v3292_v17 }
 0xdd2   : > { %v8847_v38 = vpop.f32.mrf.mxu1 }
 0xdd3   : > { %v10644_v41 = vpack.c.bf16 %v3273_v32, %v3270_v29 }
 0xdd4   : > { %v3277_v48 = vpop.f32.mrf.mxu1 }
 0xdd5   : > { %v3278_v47 = vadd.f32 %v7892_v14, %v3277_v48 }
 0xdd6   : > { %v8850_v52 = vpop.f32.mrf.mxu1 }
 0xdd7   : > { %v3297_v17 = vpack.c.bf16 %v3278_v47, %v3278_v47 }
 0xdd8   : > { %v3280_v39 = vpop.f32.mrf.mxu1 }
 0xdd9   : > { %v3281_v49 = vadd.f32 %v7892_v14, %v3280_v39  ;;  %v3397_v48 = vsel %vm1353_vm4, %v3297_v17, 0 }
 0xdda   : > { %v8851_v45 = vpop.f32.mrf.mxu1 }
 0xddc   : > { %v3285_v58 = vpop.f32.mrf.mxu1 }
 0xddd   : > { %v3286_v53 = vadd.f32 %v7892_v14, %v3285_v58 }
 0xdde   : > { %v8854_v43 = vpop.f32.mrf.mxu1 }
 0xddf   : > { %v10646_v55 = vpack.c.bf16 %v3286_v53, %v3281_v49  ;;  %v3515_v53 = vpack.c.bf16 %v10633_v36, %v10633_v36 }
 0xde0   : > { %v3288_v62 = vpop.f32.mrf.mxu1 }
 0xde1   : > { %v10648_v5 = vadd.f32 %v7892_v14, %v3288_v62  ;;  %v3293_v14 = vpack.c.bf16 %v10625_v42, %v10625_v42 }
 0xde2   : > { %v8855_v9 = vpop.f32.mrf.mxu1 }
 0xe78   : > { %v8806_v19 = vpop.f32.mrf.mxu0 }
 0xe79   : > { %v10654_v6 = vadd.f32 %v8806_v19, %v2356_v23 }
 0xe7a   : > { %v3029_v60 = vpop.f32.mrf.mxu0 }
 0xe7b   : > { %v10656_v59 = vadd.f32 %v3029_v60, %v2348_v57 }
 0xe7c   : > { %v8807_v11 = vpop.f32.mrf.mxu0 }
 0xe7e   : > { %v10658_v12 = vpop.f32.mrf.mxu0 }
 0xe80   : > { %v3187_v63 = vpop.f32.mrf.mxu0 }
 0xe81   : > { %v3188_v26 = vadd.f32 %v7881_v33, %v3187_v63 }
 0xe82   : > { %v8830_v2 = vpop.f32.mrf.mxu0 }
 0xe84   : > { %v3190_v31 = vpop.f32.mrf.mxu0 }
 0xe85   : > { %v3191_v10 = vadd.f32 %v7881_v33, %v3190_v31  ;;  %v7902_v31 = vld [vmem:[%s11806_s11 + $0xc] sm:$0xf] }
 0xe86   : > { %v8831_v0 = vpop.f32.mrf.mxu0 }
 0xe87   : > { %v3294_v56 = vpack.c.bf16 %v3191_v10, %v3188_v26  ;;  %v3461_v0 = vsel %vm1353_vm4, %v7902_v31, 0 }
 0xe88   : > { %v3195_v7 = vpop.f32.mrf.mxu0 }
 0xe89   : > { %v3196_v16 = vadd.f32 %v7881_v33, %v3195_v7  ;;  %v3305_v32 = vsel %vm1253_vm3, %v3294_v56, 0 }
 0xe8a   : > { %v8834_v46 = vpop.f32.mrf.mxu0 }
 0xe8b   : > { %v3295_v18 = vpack.c.bf16 %v3196_v16, %v3196_v16 }
 0xe8c   : > { %v3198_v28 = vpop.f32.mrf.mxu0 }
 0xe8d   : > { %v3308_v21 = vsel %vm1253_vm3, %v3295_v18, 0  ;;  %9388 = vmatprep.subr.msk.bf16.mxu0 %vm1253_vm3, %v3295_v18  ;;  %v3199_v52 = vadd.f32 %v7881_v33, %v3198_v28 }
 0xe8e   : > { %v8835_v51 = vpop.f32.mrf.mxu0  ;;  %8857 = vmatpush3.bf16.xpose.msra.mxu0 %v3308_v21 }
 0xe8f   : > { %9389 = vmatprep.subr.msk.bf16.mxu0 %vm1253_vm3, %v3294_v56 }
 0xe90   : > { %v3203_v44 = vpop.f32.mrf.mxu0 }
 0xe91   : > { %v3204_v61 = vadd.f32 %v7881_v33, %v3203_v44 }
 0xe92   : > { %v8838_v50 = vpop.f32.mrf.mxu0 }
 0xe93   : > { %v3516_v49 = vpack.c.bf16 %v3204_v61, %v3199_v52  ;;  %v3519_v52 = vpack.c.bf16 %v10648_v5, %v10648_v5 }
 0xe94   : > { %v3206_v13 = vpop.f32.mrf.mxu0 }
 0xe95   : > { %v3207_v29 = vadd.f32 %v7881_v33, %v3206_v13  ;;  %v3527_v58 = vsel %vm1253_vm3, %v3516_v49, 0 }
 0xe96   : > { %v8839_v38 = vpop.f32.mrf.mxu0  ;;  %8859 = vmatpush3.bf16.xpose.msra.mxu0 %v3305_v32 }
 0xe97   : > { %v3517_v39 = vpack.c.bf16 %v3207_v29, %v3207_v29  ;;  %9390 = vmatprep.subr.msk.bf16.mxu0 %vm1353_vm4, %v3297_v17 }
 0xe99   : > { %v3530_v45 = vsel %vm1253_vm3, %v3517_v39, 0  ;;  %9392 = vmatprep.subr.msk.bf16.mxu1 %vm1253_vm3, %v3517_v39 }
 0xe9a   : > { %8879 = vmatpush3.bf16.xpose.msra.mxu1 %v3530_v45 }
 0xe9b   : > { %9393 = vmatprep.subr.msk.bf16.mxu1 %vm1253_vm3, %v3516_v49 }
 0xe9d   : > { %8861 = vmatmul.mubr.msk.bf16.vlgmr.msra.gmra.mxu0 %vm1253_vm3, %v3293_v14 }
 0xe9e   : > { %8865 = vmatpush3.bf16.msra.mxu0 %v3397_v48 }
 0xe9f   : > { %8866 = vmatprep.subr.bf16.mxu0 %v10644_v41 }
 0xea2   : > { %8867 = vmatpush3.bf16.msra.mxu0 %v10644_v41  ;;  %8881 = vmatpush3.bf16.xpose.msra.mxu1 %v3527_v58 }
 0xea3   : > { %9391 = vmatprep.subr.msk.bf16.mxu0 %vm1353_vm4, %v7902_v31  ;;  %9395 = vmatprep.subr.msk.bf16.mxu1 %vm1353_vm4, %v7902_v31 }
 0xea9   : > { %8883 = vmatmul.mubr.msk.bf16.vlgmr.msra.gmra.mxu1 %vm1253_vm3, %v3515_v53 }
 0xeaa   : > { %8895 = vmatpush3.bf16.msra.mxu1 %v3461_v0 }
 0xeab   : > { %8916 = vmatprep.subr.bf16.mxu1 %v9810_v1 }
 0xf5d   : > { %v8862_v42 = vpop.f32.mrf.mxu0 }
 0xf5e   : > { %v3353_v23 = vadd.f32 %v8862_v42, %v10202_v37 }
 0xf5f   : > { %v3344_v43 = vpop.f32.mrf.mxu0 }
 0xf60   : > { %v3345_v62 = vadd.f32 %v3344_v43, %v10202_v37  ;;  %v3364_v11 = vsel %vm1314_vm6, %v3353_v23, -inf }
 0xf61   : > { %v8863_v9 = vpop.f32.mrf.mxu0 }
 0xf62   : > { %v3358_v19 = vsel %vm1314_vm6, %v3345_v62, -inf }
 0xf63   : > { %v3347_v57 = vpop.f32.mrf.mxu0  ;;  %3359 = vmax.xlane.f32.xlu0 %v3358_v19 }
 0xf64   : > { %v3348_v60 = vadd.f32 %v3347_v57, %v10202_v37 }
 0xf66   : > { %v3361_v41 = vsel %vm1314_vm6, %v3348_v60, -inf }
 0xf67   : > { %3362 = vmax.xlane.f32.xlu1 %v3361_v41  ;;  %3365 = vmax.xlane.f32.xlu0 %v3364_v11 }
 0xf69   : > { %v8884_v36 = vpop.f32.mrf.mxu1 }
 0xf6a   : > { %v3575_v39 = vadd.f32 %v8884_v36, %v10202_v37 }
 0xf6b   : > { %v3566_v63 = vpop.f32.mrf.mxu1 }
 0xf6c   : > { %v3567_v13 = vadd.f32 %v3566_v63, %v10202_v37  ;;  %v3586_v14 = vsel %vm1314_vm6, %v3575_v39, -inf }
 0xf6d   : > { %v8885_v2 = vpop.f32.mrf.mxu1 }
 0xf6e   : > { %v3580_v49 = vsel %vm1314_vm6, %v3567_v13, -inf }
 0xf6f   : > { %v3569_v44 = vpop.f32.mrf.mxu1 }
 0xf70   : > { %v3570_v29 = vadd.f32 %v3569_v44, %v10202_v37 }
 0xf72   : > { %v3583_v45 = vsel %vm1314_vm6, %v3570_v29, -inf }
 0xfec   : > { %v3360_v33 = vpop.xlane.xlu0 %3359 }
 0xfed   : > { %v3367_v7 = vsub.f32 %v3345_v62, %v3360_v33 }
 0xfef   : > { %v3370_v10 = vmul.f32 1.442695, %v3367_v7 }
 0xff0   : > { %v3363_v16 = vpop.xlane.xlu1 %3362  ;;  %v3366_v46 = vpop.xlane.xlu0 %3365 }
 0xff1   : > { %9586 = vpow2.f32 %v3370_v10  ;;  %v3368_v26 = vsub.f32 %v3348_v60, %v3363_v16  ;;  %v3369_v18 = vsub.f32 %v3353_v23, %v3366_v46 }
 0xff3   : > { %v3372_v28 = vmul.f32 1.442695, %v3368_v26  ;;  %v3374_v56 = vmul.f32 1.442695, %v3369_v18 }
 0xff5   : > { %9588 = vpow2.f32 %v3372_v28 }
 0xff6   : > { %9590 = vpow2.f32 %v3374_v56 }
 0xffe   : > { %v9587_v21 = vpop.eup %9586 }
 0xfff   : > { %v3376_v51 = vsel %vm1314_vm6, %v9587_v21, 0.0 }
0x1000   : > { %3377 = vadd.xlane.f32.xlu1 %v3376_v51 }
0x1002   : > { %v9589_v47 = vpop.eup %9588 }
0x1003   : > { %v9591_v50 = vpop.eup %9590  ;;  %v3379_v17 = vsel %vm1314_vm6, %v9589_v47, 0.0  ;;  %v3388_v61 = vpack.c.bf16 %v9589_v47, %v9587_v21  ;;  %v3619_v47 = vsel %vm1353_vm4, %v3519_v52, 0 }
0x1004   : > { %v3389_v32 = vpack.c.bf16 %v9591_v50, %v9591_v50  ;;  %3380 = vadd.xlane.f32.xlu0 %v3379_v17  ;;  %v3382_v38 = vsel %vm1314_vm6, %v9591_v50, 0.0 }
0x1005   : > { %3383 = vadd.xlane.f32.xlu1 %v3382_v38  ;;  %8868 = vmatprep.mubr.msk.bf16.mxu0 %vm1314_vm6, %v3388_v61 }
0x1006   : > { %8869 = vmatmul.mubr.msk.bf16.vlgmr.msra.gmra.mxu0 %vm1314_vm6, %v3389_v32  ;;  %v7911_v32 = vld [vmem:[%s11807_s12] ss:$0 sm:$0xff] }
0x1007   : > { %8873 = vmatpush3.bf16.msra.mxu0 %v3461_v0 }
0x1008   : > { %9394 = vmatprep.subr.msk.bf16.mxu0 %vm1353_vm4, %v3519_v52  ;;  %3581 = vmax.xlane.f32.xlu0 %v3580_v49  ;;  %v2083_v52 = vadd.f32 %v10448_v22, %v10403_v3 }
0x1009   : > { %3584 = vmax.xlane.f32.xlu1 %v3583_v45  ;;  %v7912_v45 = vld [vmem:[%s11808_s13] ss:$0 sm:$0xff] }
0x100c   : > { %3587 = vmax.xlane.f32.xlu0 %v3586_v14 }
0x1089   : > { %v3378_v48 = vpop.xlane.xlu1 %3377 }
0x108d   : > { %v3381_v58 = vpop.xlane.xlu0 %3380 }
0x108e   : > { %v3384_v53 = vpop.xlane.xlu1 %3383 }
0x1091   : > { %v3582_v5 = vpop.xlane.xlu0 %3581 }
0x1092   : > { %v3585_v42 = vpop.xlane.xlu1 %3584  ;;  %v3589_v43 = vsub.f32 %v3567_v13, %v3582_v5 }
0x1093   : > { %v3590_v62 = vsub.f32 %v3570_v29, %v3585_v42 }
0x1094   : > { %v3592_v9 = vmul.f32 1.442695, %v3589_v43 }
0x1095   : > { %v3594_v23 = vmul.f32 1.442695, %v3590_v62  ;;  %v3588_v19 = vpop.xlane.xlu0 %3587 }
0x1096   : > { %9592 = vpow2.f32 %v3592_v9  ;;  %v3591_v57 = vsub.f32 %v3575_v39, %v3588_v19 }
0x1097   : > { %9594 = vpow2.f32 %v3594_v23 }
0x1098   : > { %v3596_v60 = vmul.f32 1.442695, %v3591_v57 }
0x109a   : > { %9596 = vpow2.f32 %v3596_v60 }
0x109b   : > { %9598 = vrcp.f32 %v3378_v48  ;;  %v2827_v48 = vadd.f32 %v10609_v4, %v2083_v52 }
0x109c   : > { %9600 = vrcp.f32 %v3384_v53 }
0x109d   : > { %9602 = vrcp.f32 %v3381_v58 }
0x10a3   : > { %v9593_v41 = vpop.eup %9592 }
0x10a4   : > { %v9595_v11 = vpop.eup %9594  ;;  %v3598_v36 = vsel %vm1314_vm6, %v9593_v41, 0.0 }
0x10a5   : > { %v3601_v63 = vsel %vm1314_vm6, %v9595_v11, 0.0  ;;  %3599 = vadd.xlane.f32.xlu1 %v3598_v36  ;;  %v3610_v44 = vpack.c.bf16 %v9595_v11, %v9593_v41 }
0x10a6   : > { %3602 = vadd.xlane.f32.xlu0 %v3601_v63 }
0x10a7   : > { %v9597_v2 = vpop.eup %9596 }
0x10a8   : > { %v3604_v31 = vsel %vm1314_vm6, %v9597_v2, 0.0  ;;  %v9599_v7 = vpop.eup %9598  ;;  %v3611_v50 = vpack.c.bf16 %v9597_v2, %v9597_v2 }
0x10a9   : > { %3605 = vadd.xlane.f32.xlu1 %v3604_v31  ;;  %v9601_v16 = vpop.eup %9600 }
0x10aa   : > { %v9603_v46 = vpop.eup %9602 }
0x10c6   : > { %v8870_v0 = vpop.f32.mrf.mxu0 }
0x10c7   : > { %v3449_v26 = vmul.f32 %v9601_v16, %v8870_v0  ;;  %v2351_v16 = vadd.f32 %v10458_v54, %v10512_v24 }
0x10c8   : > { %v3433_v33 = vpop.f32.mrf.mxu0 }
0x10c9   : > { %v3447_v28 = vmul.f32 %v9599_v7, %v3433_v33  ;;  %v3451_v51 = vpack.c.bf16 %v3449_v26, %v3449_v26 }
0x10ca   : > { %v8871_v10 = vpop.f32.mrf.mxu0 }
0x10cc   : > { %v3436_v18 = vpop.f32.mrf.mxu0 }
0x10cd   : > { %v3448_v56 = vmul.f32 %v9603_v46, %v3436_v18 }
0x10cf   : > { %v3450_v21 = vpack.c.bf16 %v3448_v56, %v3447_v28  ;;  %v3044_v56 = vadd.f32 %v10658_v12, %v2351_v16  ;;  %v7913_v16 = vld [vmem:[%s11809_s14] ss:$0 sm:$0xff] }
0x10d1   : > { %8874 = vmatprep.mubr.msk.bf16.mxu0 %vm1253_vm3, %v3450_v21 }
0x10d2   : > { %8875 = vmatmul.mubr.msk.bf16.vlgmr.msra.gmra.mxu0 %vm1253_vm3, %v3451_v51 }
0x10d3   : > { %8887 = vmatpush3.bf16.msra.mxu0 %v3619_v47  ;;  %8890 = vmatprep.mubr.msk.bf16.mxu0 %vm1314_vm6, %v3610_v44 }
0x10d4   : > { %8888 = vmatprep.subr.bf16.mxu0 %v10646_v55 }
0x10d7   : > { %8889 = vmatpush3.bf16.msra.mxu0 %v10646_v55 }
0x10d8   : > { %8900 = vmatprep.subr.bf16.mxu0 %v9810_v1 }
0x10da   : > { %8891 = vmatmul.mubr.msk.bf16.vlgmr.msra.gmra.mxu0 %vm1314_vm6, %v3611_v50 }
0x10db   : > { %8904 = vmatprep.mubr.msk.bf16.mxu0 %vm9811_vm0, %v9810_v1 }
0x112e   : > { %v3600_v13 = vpop.xlane.xlu1 %3599 }
0x112f   : > { %v3603_v61 = vpop.xlane.xlu0 %3602  ;;  %9604 = vrcp.f32 %v3600_v13 }
0x1132   : > { %v3606_v17 = vpop.xlane.xlu1 %3605 }
0x1133   : > { %9606 = vrcp.f32 %v3606_v17 }
0x1134   : > { %9608 = vrcp.f32 %v3603_v61 }
0x113c   : > { %v9605_v19 = vpop.eup %9604 }
0x1140   : > { %v9607_v57 = vpop.eup %9606 }
0x1141   : > { %v9609_v41 = vpop.eup %9608 }
0x1192   : > { %v8876_v29 = vpop.f32.mrf.mxu0 }
0x1193   : > { %v3513_v55 = vadd.f32 %v8876_v29, %v10604_v34 }
0x1194   : > { %v3497_v38 = vpop.f32.mrf.mxu0 }
0x1195   : > { %v3740_v39 = vadd.f32 %v7911_v32, %v3513_v55  ;;  %v3511_v49 = vadd.f32 %v3497_v38, %v10607_v27 }
0x1196   : > { %v8877_v14 = vpop.f32.mrf.mxu0 }
0x1197   : > { %v3738_v58 = vadd.f32 %v7911_v32, %v3511_v49  ;;  %v3753_v5 = vmul.f32 %v7912_v45, %v3740_v39 }
0x1198   : > { %v3500_v53 = vpop.f32.mrf.mxu0 }
0x1199   : > { %v3751_v42 = vmul.f32 %v7912_v45, %v3738_v58  ;;  %v3512_v43 = vadd.f32 %v3500_v53, %v2827_v48  ;;  %v10738_v23 = vadd.f32 %v3753_v5, %v9997_v25  ;;  %v9466_v58 = vld [vmem:[%s11811_s16 + $0x8] sm:$0xff]   ;;  %v9468_v5 = vld [vmem:[%s11811_s16] sm:$0xff]  }
0x119a   : > { %v8892_v34 = vpop.f32.mrf.mxu0  ;;  %v9467_v53 = vld [vmem:[%s11813_s18 + $0x8] sm:$0xff]   ;;  %8901 = vmatpush3.bf16.msra.mxu0 %v9466_v58 }
0x119b   : > { %v3739_v62 = vadd.f32 %v7911_v32, %v3512_v43  ;;  %v10733_v9 = vadd.f32 %v3751_v42, %v9983_v15  ;;  %v3671_v11 = vmul.f32 %v9607_v57, %v8892_v34  ;;  %v3771_v2 = vsel %vm891_vm2, %v10738_v23, 0.0  ;;  %v9469_v42 = vld [vmem:[%s11813_s18] sm:$0xff]   ;;  %8902 = vmatprep.subr.bf16.mxu0 %v9810_v1 }
0x119c   : > { %v3655_v3 = vpop.f32.mrf.mxu0 }
0x119d   : > { %v3752_v22 = vmul.f32 %v7912_v45, %v3739_v62  ;;  %v3765_v27 = vsel %vm891_vm2, %v10733_v9, 0.0  ;;  %v3669_v15 = vmul.f32 %v9605_v19, %v3655_v3  ;;  %v3673_v0 = vpack.c.bf16 %v3671_v11, %v3671_v11 }
0x119e   : > { %3766 = vadd.xlane.f32.xlu0 %v3765_v27  ;;  %v8893_v4 = vpop.f32.mrf.mxu0  ;;  %8903 = vmatpush3.bf16.msra.mxu0 %v9468_v5 }
0x119f   : > { %v10741_v60 = vadd.f32 %v3752_v22, %v9990_v20  ;;  %8932 = vmatprep.subr.bf16.mxu0 %v9810_v1 }
0x11a0   : > { %v3658_v36 = vpop.f32.mrf.mxu0 }
0x11a1   : > { %v3670_v63 = vmul.f32 %v9609_v41, %v3658_v36  ;;  %v3768_v31 = vsel %vm891_vm2, %v10741_v60, 0.0 }
0x11a2   : > { %3772 = vadd.xlane.f32.xlu0 %v3771_v2  ;;  %3769 = vadd.xlane.f32.xlu1 %v3768_v31 }
0x11a3   : > { %v3672_v25 = vpack.c.bf16 %v3670_v63, %v3669_v15 }
0x11a5   : > { %8896 = vmatprep.mubr.msk.bf16.mxu1 %vm1253_vm3, %v3672_v25 }
0x11a6   : > { %8897 = vmatmul.mubr.msk.bf16.vlgmr.msra.gmra.mxu1 %vm1253_vm3, %v3673_v0 }
0x11a7   : > { %8920 = vmatprep.mubr.msk.bf16.mxu1 %vm9811_vm0, %v9810_v1  ;;  %8917 = vmatpush3.bf16.msra.mxu1 %v9467_v53 }
0x11a8   : > { %8918 = vmatprep.subr.bf16.mxu1 %v9810_v1 }
0x11ab   : > { %8919 = vmatpush3.bf16.msra.mxu1 %v9469_v42 }
0x11ac   : > { %8948 = vmatprep.subr.bf16.mxu1 %v9810_v1 }
0x1227   : > { %v3767_v33 = vpop.xlane.xlu0 %3766 }
0x1228   : > { %v3783_v51 = vmul.f32 0.03125, %v3767_v33 }
0x122a   : > { %v10760_v54 = vsub.f32 %v10733_v9, %v3783_v51 }
0x122b   : > { %v3770_v18 = vpop.xlane.xlu1 %3769  ;;  %v3773_v50 = vpop.xlane.xlu0 %3772 }
0x122c   : > { %v3784_v47 = vmul.f32 0.03125, %v3770_v18  ;;  %v3785_v24 = vmul.f32 0.03125, %v3773_v50 }
0x1266   : > { %v8898_v20 = vpop.f32.mrf.mxu1 }
0x1267   : > { %v3730_v7 = vadd.f32 %v8898_v20, %v10654_v6 }
0x1268   : > { %v3714_v10 = vpop.f32.mrf.mxu1 }
0x1269   : > { %v3743_v46 = vadd.f32 %v7911_v32, %v3730_v7  ;;  %v3728_v26 = vadd.f32 %v3714_v10, %v10656_v59  ;;  %v3790_v59 = vsub.f32 %v10741_v60, %v3784_v47 }
0x126a   : > { %v8899_v28 = vpop.f32.mrf.mxu1 }
0x126b   : > { %v3741_v21 = vadd.f32 %v7911_v32, %v3728_v26  ;;  %v3756_v13 = vmul.f32 %v7912_v45, %v3743_v46  ;;  %v7914_v28 = vld [vmem:[%s11810_s15] ss:$0 sm:$0xff] }
0x126c   : > { %v3717_v44 = vpop.f32.mrf.mxu1 }
0x126d   : > { %v3754_v17 = vmul.f32 %v7912_v45, %v3741_v21  ;;  %v3729_v61 = vadd.f32 %v3717_v44, %v3044_v56  ;;  %v10766_v38 = vadd.f32 %v3756_v13, %v10018_v40 }
0x126f   : > { %v3742_v6 = vadd.f32 %v7911_v32, %v3729_v61  ;;  %v10757_v29 = vadd.f32 %v3754_v17, %v10004_v30  ;;  %v3795_v30 = vmul.f32 %v10760_v54, %v10760_v54  ;;  %v10774_v32 = vsub.f32 %v10738_v23, %v3785_v24  ;;  %v9470_v17 = vld [vmem:[%s11815_s20 + $0x8] sm:$0xff]  }
0x1270   : > { %v3780_v39 = vsel %vm891_vm2, %v10766_v38, 0.0 }
0x1271   : > { %v3755_v55 = vmul.f32 %v7912_v45, %v3742_v6  ;;  %v3774_v12 = vsel %vm891_vm2, %v10757_v29, 0.0  ;;  %v3796_v45 = vmul.f32 %v3790_v59, %v3790_v59  ;;  %v3797_v14 = vmul.f32 %v10774_v32, %v10774_v32  ;;  %v9471_v6 = vld [vmem:[%s11815_s20] sm:$0xff]  }
0x1272   : > { %3775 = vadd.xlane.f32.xlu1 %v3774_v12 }
0x1273   : > { %v10769_v52 = vadd.f32 %v3755_v55, %v10011_v35  ;;  %v3804_v40 = vsel %vm891_vm2, %v3796_v45, 0.0  ;;  %v3801_v35 = vsel %vm891_vm2, %v3795_v30, 0.0  ;;  %v3807_v48 = vsel %vm891_vm2, %v3797_v14, 0.0 }
0x1275   : > { %v3777_v49 = vsel %vm891_vm2, %v10769_v52, 0.0 }
0x1276   : > { %3781 = vadd.xlane.f32.xlu1 %v3780_v39  ;;  %3778 = vadd.xlane.f32.xlu0 %v3777_v49 }
0x127a   : > { %3805 = vadd.xlane.f32.xlu1 %v3804_v40  ;;  %3802 = vadd.xlane.f32.xlu0 %v3801_v35 }
0x127e   : > { %3808 = vadd.xlane.f32.xlu0 %v3807_v48 }
0x12fb   : > { %v3776_v43 = vpop.xlane.xlu1 %3775 }
0x12fc   : > { %v3786_v34 = vmul.f32 0.03125, %v3776_v43 }
0x12fe   : > { %v10802_v62 = vsub.f32 %v10757_v29, %v3786_v34 }
0x12ff   : > { %v3782_v3 = vpop.xlane.xlu1 %3781  ;;  %v3779_v22 = vpop.xlane.xlu0 %3778 }
0x1300   : > { %v3788_v27 = vmul.f32 0.03125, %v3782_v3  ;;  %v3787_v19 = vmul.f32 0.03125, %v3779_v22  ;;  %v3798_v4 = vmul.f32 %v10802_v62, %v10802_v62 }
0x1302   : > { %v10807_v57 = vsub.f32 %v10766_v38, %v3788_v27  ;;  %v10810_v41 = vsub.f32 %v10769_v52, %v3787_v19  ;;  %v3810_v11 = vsel %vm891_vm2, %v3798_v4, 0.0 }
0x1303   : > { %3811 = vadd.xlane.f32.xlu1 %v3810_v11  ;;  %v3806_v36 = vpop.xlane.xlu1 %3805  ;;  %v3803_v15 = vpop.xlane.xlu0 %3802 }
0x1304   : > { %v3820_v63 = vmul.f32 0.03125, %v3806_v36  ;;  %v3819_v2 = vmul.f32 0.03125, %v3803_v15  ;;  %v3800_v31 = vmul.f32 %v10807_v57, %v10807_v57  ;;  %v3799_v25 = vmul.f32 %v10810_v41, %v10810_v41 }
0x1306   : > { %v3826_v0 = vadd.f32 1e-06, %v3820_v63  ;;  %v3825_v20 = vadd.f32 1e-06, %v3819_v2  ;;  %v3816_v33 = vsel %vm891_vm2, %v3800_v31, 0.0  ;;  %v3813_v7 = vsel %vm891_vm2, %v3799_v25, 0.0 }
0x1307   : > { %3817 = vadd.xlane.f32.xlu1 %v3816_v33  ;;  %3814 = vadd.xlane.f32.xlu0 %v3813_v7  ;;  %v3809_v50 = vpop.xlane.xlu0 %3808 }
0x1308   : > { %9610 = vrsqrt.f32 %v3826_v0  ;;  %v3821_v13 = vmul.f32 0.03125, %v3809_v50 }
0x1309   : > { %9612 = vrsqrt.f32 %v3825_v20 }
0x130a   : > { %v3827_v61 = vadd.f32 1e-06, %v3821_v13 }
0x130c   : > { %9614 = vrsqrt.f32 %v3827_v61 }
0x1315   : > { %v9611_v10 = vpop.eup %9610 }
0x1316   : > { %v9613_v46 = vpop.eup %9612  ;;  %v3838_v26 = vmul.f32 %v9611_v10, %v3790_v59 }
0x1317   : > { %v3837_v18 = vmul.f32 %v9613_v46, %v10760_v54 }
0x1318   : > { %v3850_v56 = vmul.f32 %v7913_v16, %v3838_v26 }
0x1319   : > { %v3849_v21 = vmul.f32 %v7913_v16, %v3837_v18  ;;  %v9615_v40 = vpop.eup %9614 }
0x131a   : > { %v3862_v51 = vadd.f32 %v7914_v28, %v3850_v56  ;;  %v3839_v35 = vmul.f32 %v9615_v40, %v10774_v32  ;;  %v10862_v56 = vld [vmem:[%s11814_s19] ss:$0 sm:$0xff] }
0x131b   : > { %v3861_v44 = vadd.f32 %v7914_v28, %v3849_v21 }
0x131c   : > { %v3851_v58 = vmul.f32 %v7913_v16, %v3839_v35 }
0x131d   : > { %v3872_v47 = vpack.c.bf16 %v3862_v51, %v3861_v44 }
0x131e   : > { %v3863_v34 = vadd.f32 %v7914_v28, %v3851_v58 }
0x131f   : > { %8905 = vmatmul.mubr.msk.bf16.vlgmr.msra.gmra.mxu0 %vm891_vm2, %v3872_v47  ;;  %8921 = vmatmul.mubr.msk.bf16.vlgmr.msra.gmra.mxu1 %vm891_vm2, %v3872_v47 }
0x1320   : > { %8908 = vmatprep.mubr.msk.bf16.mxu0 %vm9811_vm0, %v9810_v1  ;;  %8924 = vmatprep.mubr.msk.bf16.mxu1 %vm9811_vm0, %v9810_v1 }
0x1321   : > { %8933 = vmatpush3.bf16.msra.mxu0 %v9470_v17 }
0x1322   : > { %8934 = vmatprep.subr.bf16.mxu0 %v9810_v1 }
0x1325   : > { %8935 = vmatpush3.bf16.msra.mxu0 %v9471_v6 }
0x1326   : > { %8964 = vmatprep.subr.bf16.mxu0 %v9810_v1 }
0x138c   : > { %v3812_v54 = vpop.xlane.xlu1 %3811 }
0x138d   : > { %v3822_v24 = vmul.f32 0.03125, %v3812_v54 }
0x138f   : > { %v3828_v59 = vadd.f32 1e-06, %v3822_v24 }
0x1390   : > { %v3818_v55 = vpop.xlane.xlu1 %3817  ;;  %v3815_v12 = vpop.xlane.xlu0 %3814 }
0x1391   : > { %9616 = vrsqrt.f32 %v3828_v59  ;;  %v3824_v30 = vmul.f32 0.03125, %v3818_v55  ;;  %v3823_v39 = vmul.f32 0.03125, %v3815_v12 }
0x1393   : > { %v3830_v49 = vadd.f32 1e-06, %v3824_v30  ;;  %v3829_v45 = vadd.f32 1e-06, %v3823_v39 }
0x1395   : > { %9618 = vrsqrt.f32 %v3830_v49 }
0x1396   : > { %9620 = vrsqrt.f32 %v3829_v45 }
0x139e   : > { %v9617_v14 = vpop.eup %9616 }
0x139f   : > { %v3840_v48 = vmul.f32 %v9617_v14, %v10802_v62 }
0x13a1   : > { %v3852_v53 = vmul.f32 %v7913_v16, %v3840_v48 }
0x13a2   : > { %v9619_v5 = vpop.eup %9618 }
0x13a3   : > { %v9621_v42 = vpop.eup %9620  ;;  %v3842_v43 = vmul.f32 %v9619_v5, %v10807_v57  ;;  %v3864_v3 = vadd.f32 %v7914_v28, %v3852_v53 }
0x13a4   : > { %v3841_v22 = vmul.f32 %v9621_v42, %v10810_v41  ;;  %v7915_v41 = vld [vmem:[%s11812_s17] ss:$0 sm:$0xff] }
0x13a5   : > { %v3873_v27 = vpack.c.bf16 %v3864_v3, %v3863_v34  ;;  %v3854_v19 = vmul.f32 %v7913_v16, %v3842_v43 }
0x13a6   : > { %v3853_v4 = vmul.f32 %v7913_v16, %v3841_v22 }
0x13a7   : > { %8909 = vmatmul.mubr.msk.bf16.gmra.mxu0 %vm891_vm2, %v3873_v27  ;;  %8925 = vmatmul.mubr.msk.bf16.gmra.mxu1 %vm891_vm2, %v3873_v27  ;;  %v3866_v62 = vadd.f32 %v7914_v28, %v3854_v19 }
0x13a8   : > { %8912 = vmatprep.mubr.msk.bf16.mxu0 %vm9811_vm0, %v9810_v1  ;;  %8928 = vmatprep.mubr.msk.bf16.mxu1 %vm9811_vm0, %v9810_v1  ;;  %v3865_v32 = vadd.f32 %v7914_v28, %v3853_v4 }
0x13aa   : > { %v3874_v57 = vpack.c.bf16 %v3866_v62, %v3865_v32 }
0x13af   : > { %8913 = vmatmul.mubr.msk.bf16.gmra.mxu0 %vm891_vm2, %v3874_v57  ;;  %8929 = vmatmul.mubr.msk.bf16.gmra.mxu1 %vm891_vm2, %v3874_v57 }
0x13b0   : > { %8936 = vmatprep.mubr.msk.bf16.mxu0 %vm9811_vm0, %v9810_v1  ;;  %8952 = vmatprep.mubr.msk.bf16.mxu1 %vm9811_vm0, %v9810_v1 }
0x13df   : > { %v3936_v11 = vpop.f32.mrf.mxu0  ;;  %v4016_v36 = vpop.f32.mrf.mxu1 }
0x13e0   : > { %v3937_v15 = vadd.f32 %v7915_v41, %v3936_v11  ;;  %v4017_v44 = vadd.f32 %v10862_v56, %v4016_v36 }
0x13e1   : > { %v8906_v63 = vpop.f32.mrf.mxu0  ;;  %v8922_v2 = vpop.f32.mrf.mxu1 }
0x13e2   : > { %v7927_v31 = vmul.f32 -1.442695, %v3937_v15 }
0x13e3   : > { %v3939_v25 = vpop.f32.mrf.mxu0  ;;  %v4019_v0 = vpop.f32.mrf.mxu1 }
0x13e4   : > { %9622 = vpow2.f32 %v7927_v31  ;;  %v3940_v20 = vadd.f32 %v7915_v41, %v3939_v25  ;;  %v4020_v50 = vadd.f32 %v10862_v56, %v4019_v0 }
0x13e5   : > { %v8907_v33 = vpop.f32.mrf.mxu0  ;;  %v8923_v7 = vpop.f32.mrf.mxu1 }
0x13e6   : > { %v7928_v10 = vmul.f32 -1.442695, %v3940_v20 }
0x13e8   : > { %9624 = vpow2.f32 %v7928_v10 }
0x13f1   : > { %v9623_v16 = vpop.eup %9622 }
0x13f2   : > { %v4057_v46 = vadd.f32 1.0, %v9623_v16 }
0x13f4   : > { %9626 = vrcp.f32 %v4057_v46 }
0x13f5   : > { %v9625_v26 = vpop.eup %9624 }
0x13f6   : > { %v4058_v18 = vadd.f32 1.0, %v9625_v26 }
0x13f8   : > { %9628 = vrcp.f32 %v4058_v18 }
0x1401   : > { %v9627_v28 = vpop.eup %9626 }
0x1402   : > { %v4075_v21 = vmul.f32 %v9627_v28, %v3937_v15 }
0x1404   : > { %v4081_v13 = vmul.f32 %v4075_v21, %v4017_v44 }
0x1405   : > { %v9629_v51 = vpop.eup %9628 }
0x1406   : > { %v4076_v47 = vmul.f32 %v9629_v51, %v3940_v20 }
0x1408   : > { %v4082_v17 = vmul.f32 %v4076_v47, %v4020_v50  ;;  %v7933_v50 = vld [vmem:[%s11816_s21] ss:$0 sm:$0xff] }
0x140a   : > { %v4092_v61 = vpack.c.bf16 %v4082_v17, %v4081_v13  ;;  %v7939_v17 = vld [vmem:[%s11817_s22] ss:$0 sm:$0xff] }
0x140c   : > { %8937 = vmatmul.mubr.msk.bf16.vlgmr.msra.gmra.mxu0 %vm891_vm2, %v4092_v61 }
0x140d   : > { %8940 = vmatprep.mubr.msk.bf16.mxu0 %vm9811_vm0, %v9810_v1 }
0x1467   : > { %v3944_v6 = vpop.f32.mrf.mxu0  ;;  %v4024_v54 = vpop.f32.mrf.mxu1 }
0x1468   : > { %v3945_v24 = vadd.f32 %v7915_v41, %v3944_v6 }
0x1469   : > { %v8910_v59 = vpop.f32.mrf.mxu0  ;;  %v8926_v55 = vpop.f32.mrf.mxu1 }
0x146a   : > { %v7929_v12 = vmul.f32 -1.442695, %v3945_v24 }
0x146b   : > { %v3947_v30 = vpop.f32.mrf.mxu0  ;;  %v4027_v39 = vpop.f32.mrf.mxu1 }
0x146c   : > { %9630 = vpow2.f32 %v7929_v12  ;;  %v3948_v49 = vadd.f32 %v7915_v41, %v3947_v30  ;;  %v4028_v20 = vadd.f32 %v10862_v56, %v4027_v39 }
0x146d   : > { %v8911_v45 = vpop.f32.mrf.mxu0  ;;  %v8927_v40 = vpop.f32.mrf.mxu1 }
0x146e   : > { %v7930_v35 = vmul.f32 -1.442695, %v3948_v49 }
0x146f   : > { %v3952_v14 = vpop.f32.mrf.mxu0  ;;  %v4032_v48 = vpop.f32.mrf.mxu1 }
0x1470   : > { %9632 = vpow2.f32 %v7930_v35  ;;  %v3953_v58 = vadd.f32 %v7915_v41, %v3952_v14  ;;  %v4033_v18 = vadd.f32 %v10862_v56, %v4032_v48 }
0x1471   : > { %v8914_v53 = vpop.f32.mrf.mxu0  ;;  %v8930_v5 = vpop.f32.mrf.mxu1 }
0x1472   : > { %v7931_v42 = vmul.f32 -1.442695, %v3953_v58 }
0x1473   : > { %v3955_v43 = vpop.f32.mrf.mxu0  ;;  %v4035_v34 = vpop.f32.mrf.mxu1 }
0x1474   : > { %9634 = vpow2.f32 %v7931_v42  ;;  %v3956_v3 = vadd.f32 %v7915_v41, %v3955_v43  ;;  %v4025_v41 = vadd.f32 %v10862_v56, %v4024_v54  ;;  %v4036_v21 = vadd.f32 %v10862_v56, %v4035_v34 }
0x1475   : > { %v8915_v22 = vpop.f32.mrf.mxu0  ;;  %v8931_v27 = vpop.f32.mrf.mxu1 }
0x1476   : > { %v7932_v19 = vmul.f32 -1.442695, %v3956_v3 }
0x1478   : > { %9636 = vpow2.f32 %v7932_v19 }
0x1479   : > { %v9631_v4 = vpop.eup %9630 }
0x147a   : > { %v4059_v32 = vadd.f32 1.0, %v9631_v4 }
0x147c   : > { %9638 = vrcp.f32 %v4059_v32 }
0x147d   : > { %v9633_v62 = vpop.eup %9632 }
0x147e   : > { %v4060_v57 = vadd.f32 1.0, %v9633_v62 }
0x1480   : > { %9640 = vrcp.f32 %v4060_v57 }
0x1481   : > { %v9635_v11 = vpop.eup %9634 }
0x1482   : > { %v4061_v36 = vadd.f32 1.0, %v9635_v11 }
0x1484   : > { %9642 = vrcp.f32 %v4061_v36 }
0x1485   : > { %v9637_v15 = vpop.eup %9636 }
0x1486   : > { %v4062_v63 = vadd.f32 1.0, %v9637_v15 }
0x1488   : > { %9644 = vrcp.f32 %v4062_v63 }
0x1489   : > { %v9639_v2 = vpop.eup %9638 }
0x148a   : > { %v4077_v31 = vmul.f32 %v9639_v2, %v3945_v24 }
0x148c   : > { %v4083_v33 = vmul.f32 %v4077_v31, %v4025_v41 }
0x148d   : > { %v9641_v25 = vpop.eup %9640 }
0x148e   : > { %v4078_v0 = vmul.f32 %v9641_v25, %v3948_v49 }
0x1490   : > { %v4084_v7 = vmul.f32 %v4078_v0, %v4028_v20 }
0x1491   : > { %v9643_v10 = vpop.eup %9642 }
0x1492   : > { %v4093_v16 = vpack.c.bf16 %v4084_v7, %v4083_v33  ;;  %v4079_v46 = vmul.f32 %v9643_v10, %v3953_v58  ;;  %v9472_v33 = vld [vmem:[%s11847_s1 + $0x48] sm:$0xff]   ;;  %v9474_v7 = vld [vmem:[%s11847_s1 + $0x40] sm:$0xff]  }
0x1493   : > { %8949 = vmatpush3.bf16.msra.mxu1 %v9472_v33  ;;  %v9475_v10 = vld [vmem:[%s11851_s0 + $0x40] sm:$0xff]  }
0x1494   : > { %8941 = vmatmul.mubr.msk.bf16.gmra.mxu0 %vm891_vm2, %v4093_v16  ;;  %v4085_v51 = vmul.f32 %v4079_v46, %v4033_v18  ;;  %8950 = vmatprep.subr.bf16.mxu1 %v9810_v1 }
0x1495   : > { %v9645_v26 = vpop.eup %9644  ;;  %8944 = vmatprep.mubr.msk.bf16.mxu0 %vm9811_vm0, %v9810_v1 }
0x1496   : > { %v4080_v28 = vmul.f32 %v9645_v26, %v3956_v3 }
0x1497   : > { %8951 = vmatpush3.bf16.msra.mxu1 %v9474_v7 }
0x1498   : > { %v4086_v44 = vmul.f32 %v4080_v28, %v4036_v21  ;;  %8980 = vmatprep.subr.bf16.mxu1 %v9810_v1 }
0x149a   : > { %v4094_v47 = vpack.c.bf16 %v4086_v44, %v4085_v51 }
0x149c   : > { %8945 = vmatmul.mubr.msk.bf16.gmra.mxu0 %vm891_vm2, %v4094_v47 }
0x149d   : > { %8968 = vmatprep.mubr.msk.bf16.mxu0 %vm9811_vm0, %v9810_v1 }
0x14cc   : > { %v4156_v13 = vpop.f32.mrf.mxu0 }
0x14cd   : > { %v4157_v61 = vadd.f32 %v7933_v50, %v4156_v13 }
0x14ce   : > { %v8938_v6 = vpop.f32.mrf.mxu0 }
0x14cf   : > { %v4186_v56 = vmul.f32 %v7939_v17, %v4157_v61 }
0x14d0   : > { %v4159_v54 = vpop.f32.mrf.mxu0 }
0x14d1   : > { %v10886_v24 = vadd.f32 %v4186_v56, %v10733_v9  ;;  %v4160_v59 = vadd.f32 %v7933_v50, %v4159_v54 }
0x14d2   : > { %v8939_v55 = vpop.f32.mrf.mxu0 }
0x14d3   : > { %v4187_v12 = vmul.f32 %v7939_v17, %v4160_v59  ;;  %v4202_v30 = vsel %vm891_vm2, %v10886_v24, 0.0 }
0x14d4   : > { %4203 = vadd.xlane.f32.xlu0 %v4202_v30 }
0x14d5   : > { %v10891_v39 = vadd.f32 %v4187_v12, %v10741_v60 }
0x14d7   : > { %v4205_v49 = vsel %vm891_vm2, %v10891_v39, 0.0 }
0x14d8   : > { %4206 = vadd.xlane.f32.xlu1 %v4205_v49 }
0x1554   : > { %v4164_v45 = vpop.f32.mrf.mxu0 }
0x1555   : > { %v4165_v40 = vadd.f32 %v7933_v50, %v4164_v45 }
0x1556   : > { %v8942_v35 = vpop.f32.mrf.mxu0 }
0x1557   : > { %v4188_v14 = vmul.f32 %v7939_v17, %v4165_v40 }
0x1558   : > { %v4167_v9 = vpop.f32.mrf.mxu0 }
0x1559   : > { %v10896_v48 = vadd.f32 %v4188_v14, %v10738_v23  ;;  %v4168_v58 = vadd.f32 %v7933_v50, %v4167_v9 }
0x155a   : > { %v8943_v53 = vpop.f32.mrf.mxu0 }
0x155b   : > { %v4189_v5 = vmul.f32 %v7939_v17, %v4168_v58  ;;  %v4208_v42 = vsel %vm891_vm2, %v10896_v48, 0.0 }
0x155c   : > { %4209 = vadd.xlane.f32.xlu0 %v4208_v42  ;;  %v4172_v60 = vpop.f32.mrf.mxu0 }
0x155d   : > { %v10901_v43 = vadd.f32 %v4189_v5, %v10757_v29  ;;  %v4204_v34 = vpop.xlane.xlu0 %4203  ;;  %v4173_v3 = vadd.f32 %v7933_v50, %v4172_v60  ;;  %v7942_v5 = vld [vmem:[%s11849_s26 + $0x1] ss:$0 sm:$0xff] }
0x155e   : > { %v4220_v22 = vmul.f32 0.03125, %v4204_v34  ;;  %v8946_v27 = vpop.f32.mrf.mxu0 }
0x155f   : > { %v4190_v19 = vmul.f32 %v7939_v17, %v4173_v3  ;;  %v4211_v23 = vsel %vm891_vm2, %v10901_v43, 0.0  ;;  %v7943_v3 = vld [vmem:[%s11850_s28 + $0x1] ss:$0 sm:$0xff] }
0x1560   : > { %v10906_v4 = vsub.f32 %v10886_v24, %v4220_v22  ;;  %4212 = vadd.xlane.f32.xlu1 %v4211_v23  ;;  %v4175_v32 = vpop.f32.mrf.mxu0 }
0x1561   : > { %v10909_v62 = vadd.f32 %v4190_v19, %v10769_v52  ;;  %v4207_v57 = vpop.xlane.xlu1 %4206  ;;  %v4176_v11 = vadd.f32 %v7933_v50, %v4175_v32  ;;  %v9477_v32 = vld [vmem:[%s11848_s4 + $0x40] sm:$0xff]  }
0x1562   : > { %v4221_v29 = vmul.f32 0.03125, %v4207_v57  ;;  %v8947_v36 = vpop.f32.mrf.mxu0  ;;  %v4232_v2 = vmul.f32 %v10906_v4, %v10906_v4 }
0x1563   : > { %v4191_v15 = vmul.f32 %v7939_v17, %v4176_v11  ;;  %v4214_v63 = vsel %vm891_vm2, %v10909_v62, 0.0 }
0x1564   : > { %v4227_v31 = vsub.f32 %v10891_v39, %v4221_v29  ;;  %4215 = vadd.xlane.f32.xlu0 %v4214_v63  ;;  %v4238_v52 = vsel %vm891_vm2, %v4232_v2, 0.0 }
0x1565   : > { %v10917_v25 = vadd.f32 %v4191_v15, %v10766_v38  ;;  %v9473_v38 = vld [vmem:[%s11851_s0 + $0x48] sm:$0xff]  }
0x1566   : > { %v4233_v0 = vmul.f32 %v4227_v31, %v4227_v31  ;;  %8965 = vmatpush3.bf16.msra.mxu0 %v9473_v38 }
0x1567   : > { %v4217_v41 = vsel %vm891_vm2, %v10917_v25, 0.0  ;;  %8966 = vmatprep.subr.bf16.mxu0 %v9810_v1 }
0x1568   : > { %4239 = vadd.xlane.f32.xlu0 %v4238_v52  ;;  %4218 = vadd.xlane.f32.xlu1 %v4217_v41  ;;  %v4241_v20 = vsel %vm891_vm2, %v4233_v0, 0.0 }
0x156a   : > { %8967 = vmatpush3.bf16.msra.mxu0 %v9475_v10 }
0x156c   : > { %4242 = vadd.xlane.f32.xlu1 %v4241_v20 }
0x15e5   : > { %v4210_v16 = vpop.xlane.xlu0 %4209 }
0x15e6   : > { %v4222_v46 = vmul.f32 0.03125, %v4210_v16 }
0x15e8   : > { %v10939_v26 = vsub.f32 %v10896_v48, %v4222_v46 }
0x15e9   : > { %v4213_v18 = vpop.xlane.xlu1 %4212 }
0x15ea   : > { %v4223_v28 = vmul.f32 0.03125, %v4213_v18  ;;  %v4234_v21 = vmul.f32 %v10939_v26, %v10939_v26 }
0x15ec   : > { %v10944_v51 = vsub.f32 %v10901_v43, %v4223_v28  ;;  %v4244_v44 = vsel %vm891_vm2, %v4234_v21, 0.0 }
0x15ed   : > { %4245 = vadd.xlane.f32.xlu0 %v4244_v44  ;;  %v4216_v47 = vpop.xlane.xlu0 %4215 }
0x15ee   : > { %v4224_v50 = vmul.f32 0.03125, %v4216_v47  ;;  %v4235_v13 = vmul.f32 %v10944_v51, %v10944_v51 }
0x15f0   : > { %v10950_v17 = vsub.f32 %v10909_v62, %v4224_v50  ;;  %v4247_v61 = vsel %vm891_vm2, %v4235_v13, 0.0 }
0x15f1   : > { %v4240_v6 = vpop.xlane.xlu0 %4239  ;;  %4248 = vadd.xlane.f32.xlu1 %v4247_v61  ;;  %v4219_v56 = vpop.xlane.xlu1 %4218 }
0x15f2   : > { %v4256_v54 = vmul.f32 0.03125, %v4240_v6  ;;  %v4225_v59 = vmul.f32 0.03125, %v4219_v56  ;;  %v4236_v55 = vmul.f32 %v10950_v17, %v10950_v17 }
0x15f4   : > { %v4262_v12 = vadd.f32 1e-06, %v4256_v54  ;;  %v4231_v30 = vsub.f32 %v10917_v25, %v4225_v59  ;;  %v4250_v49 = vsel %vm891_vm2, %v4236_v55, 0.0  ;;  %v11016_v59 = vld [vmem:[%s11852_s9 + $0x4] ss:$0 sm:$0xff] }
0x15f5   : > { %4251 = vadd.xlane.f32.xlu0 %v4250_v49  ;;  %v4243_v45 = vpop.xlane.xlu1 %4242  ;;  %v7960_v55 = vld [vmem:[%s11853_s27 + $0x4] ss:$0 sm:$0xff] }
0x15f6   : > { %9646 = vrsqrt.f32 %v4262_v12  ;;  %v4257_v40 = vmul.f32 0.03125, %v4243_v45  ;;  %v4237_v35 = vmul.f32 %v4231_v30, %v4231_v30 }
0x15f8   : > { %v4263_v14 = vadd.f32 1e-06, %v4257_v40  ;;  %v4253_v9 = vsel %vm891_vm2, %v4237_v35, 0.0 }
0x15f9   : > { %4254 = vadd.xlane.f32.xlu1 %v4253_v9 }
0x15fa   : > { %9648 = vrsqrt.f32 %v4263_v14 }
0x1603   : > { %v9647_v58 = vpop.eup %9646 }
0x1604   : > { %v4274_v53 = vmul.f32 %v9647_v58, %v10906_v4  ;;  %v9476_v4 = vld [vmem:[%s11848_s4 + $0x48] sm:$0xff]  }
0x1606   : > { %v4286_v60 = vmul.f32 %v7942_v5, %v4274_v53 }
0x1607   : > { %v9649_v42 = vpop.eup %9648 }
0x1608   : > { %v4275_v34 = vmul.f32 %v9649_v42, %v4227_v31  ;;  %v4298_v27 = vadd.f32 %v7943_v3, %v4286_v60 }
0x160a   : > { %v4287_v22 = vmul.f32 %v7942_v5, %v4275_v34 }
0x160c   : > { %v4299_v19 = vadd.f32 %v7943_v3, %v4287_v22 }
0x160e   : > { %v10965_v23 = vpack.c.bf16 %v4299_v19, %v4298_v27 }
0x1610   : > { %8953 = vmatmul.mubr.msk.bf16.vlgmr.msra.gmra.mxu1 %vm891_vm2, %v10965_v23  ;;  %8969 = vmatmul.mubr.msk.bf16.vlgmr.msra.gmra.mxu0 %vm891_vm2, %v10965_v23 }
0x1611   : > { %8956 = vmatprep.mubr.msk.bf16.mxu1 %vm9811_vm0, %v9810_v1  ;;  %8972 = vmatprep.mubr.msk.bf16.mxu0 %vm9811_vm0, %v9810_v1 }
0x1612   : > { %8981 = vmatpush3.bf16.msra.mxu1 %v9476_v4 }
0x1613   : > { %8982 = vmatprep.subr.bf16.mxu1 %v9810_v1 }
0x1616   : > { %8983 = vmatpush3.bf16.msra.mxu1 %v9477_v32 }
0x1676   : > { %v4246_v57 = vpop.xlane.xlu0 %4245 }
0x1677   : > { %v4258_v11 = vmul.f32 0.03125, %v4246_v57 }
0x1679   : > { %v4264_v29 = vadd.f32 1e-06, %v4258_v11 }
0x167a   : > { %v4249_v36 = vpop.xlane.xlu1 %4248 }
0x167b   : > { %9650 = vrsqrt.f32 %v4264_v29  ;;  %v4259_v15 = vmul.f32 0.03125, %v4249_v36 }
0x167d   : > { %v4265_v63 = vadd.f32 1e-06, %v4259_v15 }
0x167e   : > { %v4252_v2 = vpop.xlane.xlu0 %4251 }
0x167f   : > { %9652 = vrsqrt.f32 %v4265_v63  ;;  %v4260_v31 = vmul.f32 0.03125, %v4252_v2 }
0x1681   : > { %v4266_v52 = vadd.f32 1e-06, %v4260_v31 }
0x1682   : > { %v4255_v41 = vpop.xlane.xlu1 %4254 }
0x1683   : > { %9654 = vrsqrt.f32 %v4266_v52  ;;  %v4261_v0 = vmul.f32 0.03125, %v4255_v41 }
0x1685   : > { %v4267_v20 = vadd.f32 1e-06, %v4261_v0 }
0x1687   : > { %9656 = vrsqrt.f32 %v4267_v20 }
0x1688   : > { %v9651_v33 = vpop.eup %9650 }
0x1689   : > { %v4276_v38 = vmul.f32 %v9651_v33, %v10939_v26 }
0x168b   : > { %v4288_v10 = vmul.f32 %v7942_v5, %v4276_v38 }
0x168c   : > { %v9653_v7 = vpop.eup %9652 }
0x168d   : > { %v4277_v16 = vmul.f32 %v9653_v7, %v10944_v51  ;;  %v4300_v28 = vadd.f32 %v7943_v3, %v4288_v10 }
0x168f   : > { %v4289_v46 = vmul.f32 %v7942_v5, %v4277_v16 }
0x1690   : > { %v9655_v18 = vpop.eup %9654 }
0x1691   : > { %v4301_v21 = vadd.f32 %v7943_v3, %v4289_v46  ;;  %v4278_v44 = vmul.f32 %v9655_v18, %v10950_v17 }
0x1693   : > { %v10985_v47 = vpack.c.bf16 %v4301_v21, %v4300_v28  ;;  %v4290_v13 = vmul.f32 %v7942_v5, %v4278_v44 }
0x1694   : > { %v9657_v50 = vpop.eup %9656 }
0x1695   : > { %v4279_v61 = vmul.f32 %v9657_v50, %v4231_v30  ;;  %8957 = vmatmul.mubr.msk.bf16.gmra.mxu1 %vm891_vm2, %v10985_v47  ;;  %8973 = vmatmul.mubr.msk.bf16.gmra.mxu0 %vm891_vm2, %v10985_v47  ;;  %v4302_v51 = vadd.f32 %v7943_v3, %v4290_v13 }
0x1696   : > { %8960 = vmatprep.mubr.msk.bf16.mxu1 %vm9811_vm0, %v9810_v1  ;;  %8976 = vmatprep.mubr.msk.bf16.mxu0 %vm9811_vm0, %v9810_v1 }
0x1697   : > { %v4291_v26 = vmul.f32 %v7942_v5, %v4279_v61 }
0x1699   : > { %v4303_v17 = vadd.f32 %v7943_v3, %v4291_v26 }
0x169b   : > { %v10995_v6 = vpack.c.bf16 %v4303_v17, %v4302_v51  ;;  %v7971_v17 = vld [vmem:[%s11805_s10 + $0x4] ss:$0 sm:$0xff] }
0x169d   : > { %8961 = vmatmul.mubr.msk.bf16.gmra.mxu1 %vm891_vm2, %v10995_v6  ;;  %8977 = vmatmul.mubr.msk.bf16.gmra.mxu0 %vm891_vm2, %v10995_v6 }
0x169e   : > { %8984 = vmatprep.mubr.msk.bf16.mxu1 %vm9811_vm0, %v9810_v1 }
0x16a5   : > { %8985 = vmatmul.mubr.msk.bf16.vlgmr.msra.gmra.mxu1 %vm891_vm2, %v10965_v23 }
0x16a6   : > { %8988 = vmatprep.mubr.msk.bf16.mxu1 %vm9811_vm0, %v9810_v1 }
0x16ad   : > { %8989 = vmatmul.mubr.msk.bf16.gmra.mxu1 %vm891_vm2, %v10985_v47 }
0x16ae   : > { %8992 = vmatprep.mubr.msk.bf16.mxu1 %vm9811_vm0, %v9810_v1 }
0x16b5   : > { %8993 = vmatmul.mubr.msk.bf16.gmra.mxu1 %vm891_vm2, %v10995_v6 }
0x16d0   : > { %v4375_v56 = vpop.f32.mrf.mxu1  ;;  %v4457_v54 = vpop.f32.mrf.mxu0 }
0x16d1   : > { %v4376_v40 = vadd.f32 %v11016_v59, %v4375_v56  ;;  %v4458_v35 = vadd.f32 %v7960_v55, %v4457_v54 }
0x16d2   : > { %v8954_v12 = vpop.f32.mrf.mxu1  ;;  %v8970_v30 = vpop.f32.mrf.mxu0 }
0x16d4   : > { %v4378_v49 = vpop.f32.mrf.mxu1  ;;  %v4460_v45 = vpop.f32.mrf.mxu0 }
0x16d5   : > { %v4379_v14 = vadd.f32 %v11016_v59, %v4378_v49  ;;  %v4461_v9 = vadd.f32 %v7960_v55, %v4460_v45 }
0x16d6   : > { %v8955_v58 = vpop.f32.mrf.mxu1  ;;  %v8971_v53 = vpop.f32.mrf.mxu0 }
0x16d7   : > { %v4562_v5 = vpack.c.bf16 %v4379_v14, %v4376_v40  ;;  %v4564_v42 = vpack.c.bf16 %v4461_v9, %v4458_v35 }
0x16d9   : > { %9000 = vmatprep.mubr.msk.bf16.mxu0 %vm1253_vm3, %v4562_v5  ;;  %v4575_v0 = vsel %vm1253_vm3, %v4564_v42, 0 }
0x1755   : > { %v4383_v60 = vpop.f32.mrf.mxu1  ;;  %v4465_v34 = vpop.f32.mrf.mxu0 }
0x1756   : > { %v4466_v3 = vadd.f32 %v7960_v55, %v4465_v34  ;;  %v4384_v38 = vadd.f32 %v11016_v59, %v4383_v60  ;;  %v9478_v34 = vld [vmem:[%s11851_s0 + $0x58] sm:$0xff]  }
0x1757   : > { %v8958_v22 = vpop.f32.mrf.mxu1  ;;  %v8974_v27 = vpop.f32.mrf.mxu0 }
0x1758   : > { %v4565_v19 = vpack.c.bf16 %v4466_v3, %v4466_v3  ;;  %v4563_v21 = vpack.c.bf16 %v4384_v38, %v4384_v38 }
0x1759   : > { %v4386_v4 = vpop.f32.mrf.mxu1  ;;  %v4468_v32 = vpop.f32.mrf.mxu0 }
0x175a   : > { %v4578_v57 = vsel %vm1253_vm3, %v4565_v19, 0  ;;  %9396 = vmatprep.subr.msk.bf16.mxu0 %vm1253_vm3, %v4565_v19  ;;  %v4387_v18 = vadd.f32 %v11016_v59, %v4386_v4  ;;  %v4469_v44 = vadd.f32 %v7960_v55, %v4468_v32 }
0x175b   : > { %v8959_v11 = vpop.f32.mrf.mxu1  ;;  %v8975_v29 = vpop.f32.mrf.mxu0  ;;  %8997 = vmatpush3.bf16.xpose.msra.mxu0 %v4578_v57 }
0x175c   : > { %9397 = vmatprep.subr.msk.bf16.mxu0 %vm1253_vm3, %v4564_v42 }
0x175d   : > { %v4391_v36 = vpop.f32.mrf.mxu1  ;;  %v4473_v15 = vpop.f32.mrf.mxu0 }
0x175e   : > { %v4392_v10 = vadd.f32 %v11016_v59, %v4391_v36  ;;  %v4474_v46 = vadd.f32 %v7960_v55, %v4473_v15 }
0x175f   : > { %v8962_v63 = vpop.f32.mrf.mxu1  ;;  %v8978_v2 = vpop.f32.mrf.mxu0 }
0x1760   : > { %v4724_v50 = vpack.c.bf16 %v4392_v10, %v4387_v18  ;;  %v4726_v61 = vpack.c.bf16 %v4474_v46, %v4469_v44 }
0x1761   : > { %v4394_v31 = vpop.f32.mrf.mxu1  ;;  %v4476_v52 = vpop.f32.mrf.mxu0 }
0x1762   : > { %v4477_v41 = vadd.f32 %v7960_v55, %v4476_v52  ;;  %v4737_v9 = vsel %vm1253_vm3, %v4726_v61, 0  ;;  %v4395_v53 = vadd.f32 %v11016_v59, %v4394_v31  ;;  %v9479_v59 = vld [vmem:[%s11851_s0 + $0x50] sm:$0xff]  }
0x1763   : > { %v8963_v20 = vpop.f32.mrf.mxu1  ;;  %v8979_v33 = vpop.f32.mrf.mxu0  ;;  %8999 = vmatpush3.bf16.xpose.msra.mxu0 %v4575_v0 }
0x1764   : > { %v4727_v7 = vpack.c.bf16 %v4477_v41, %v4477_v41  ;;  %v4725_v3 = vpack.c.bf16 %v4395_v53, %v4395_v53 }
0x1765   : > { %v4539_v16 = vpop.f32.mrf.mxu1 }
0x1766   : > { %9399 = vmatprep.subr.msk.bf16.mxu0 %vm1253_vm3, %v4727_v7  ;;  %v4740_v26 = vsel %vm1253_vm3, %v4727_v7, 0  ;;  %v4540_v30 = vadd.f32 %v7971_v17, %v4539_v16 }
0x1767   : > { %v8986_v28 = vpop.f32.mrf.mxu1 }
0x1769   : > { %v4542_v13 = vpop.f32.mrf.mxu1 }
0x176a   : > { %9001 = vmatmul.mubr.msk.bf16.vlgmr.msra.gmra.mxu0 %vm1253_vm3, %v4563_v21  ;;  %v4543_v54 = vadd.f32 %v7971_v17, %v4542_v13 }
0x176b   : > { %v8987_v51 = vpop.f32.mrf.mxu1  ;;  %9013 = vmatpush3.bf16.xpose.msra.mxu0 %v4740_v26  ;;  %9016 = vmatprep.mubr.msk.bf16.mxu0 %vm1253_vm3, %v4724_v50 }
0x176c   : > { %9400 = vmatprep.subr.msk.bf16.mxu0 %vm1253_vm3, %v4726_v61  ;;  %v4566_v40 = vpack.c.bf16 %v4543_v54, %v4540_v30  ;;  %v8002_v61 = vld [vmem:[%s11853_s27 + $0x5] ss:$0 sm:$0xff] }
0x176d   : > { %v4547_v56 = vpop.f32.mrf.mxu1 }
0x176e   : > { %v4548_v55 = vadd.f32 %v7971_v17, %v4547_v56 }
0x176f   : > { %v8990_v12 = vpop.f32.mrf.mxu1 }
0x1770   : > { %v4567_v49 = vpack.c.bf16 %v4548_v55, %v4548_v55 }
0x1771   : > { %v4550_v45 = vpop.f32.mrf.mxu1 }
0x1772   : > { %v4667_v35 = vsel %vm1353_vm4, %v4567_v49, 0  ;;  %v4551_v14 = vadd.f32 %v7971_v17, %v4550_v45  ;;  %9398 = vmatprep.subr.msk.bf16.mxu1 %vm1353_vm4, %v4567_v49 }
0x1773   : > { %v8991_v58 = vpop.f32.mrf.mxu1  ;;  %9005 = vmatpush3.bf16.msra.mxu1 %v4667_v35  ;;  %9015 = vmatpush3.bf16.xpose.msra.mxu0 %v4737_v9 }
0x1774   : > { %9006 = vmatprep.subr.bf16.mxu1 %v4566_v40  ;;  %9044 = vmatprep.subr.bf16.mxu0 %v9810_v1 }
0x1775   : > { %v4555_v5 = vpop.f32.mrf.mxu1 }
0x1776   : > { %v4556_v42 = vadd.f32 %v7971_v17, %v4555_v5 }
0x1777   : > { %v8994_v60 = vpop.f32.mrf.mxu1  ;;  %9007 = vmatpush3.bf16.msra.mxu1 %v4566_v40 }
0x1778   : > { %v11047_v22 = vpack.c.bf16 %v4556_v42, %v4551_v14 }
0x1779   : > { %v4558_v27 = vpop.f32.mrf.mxu1 }
0x177a   : > { %v4559_v19 = vadd.f32 %v7971_v17, %v4558_v27  ;;  %9017 = vmatmul.mubr.msk.bf16.vlgmr.msra.gmra.mxu0 %vm1253_vm3, %v4725_v3 }
0x177b   : > { %v8995_v4 = vpop.f32.mrf.mxu1  ;;  %9045 = vmatpush3.bf16.msra.mxu0 %v9478_v34  ;;  %9048 = vmatprep.mubr.msk.bf16.mxu0 %vm9811_vm0, %v9810_v1 }
0x177c   : > { %v11055_v32 = vpack.c.bf16 %v4559_v19, %v4559_v19  ;;  %9046 = vmatprep.subr.bf16.mxu0 %v9810_v1 }
0x177e   : > { %9401 = vmatprep.subr.msk.bf16.mxu1 %vm1353_vm4, %v11055_v32 }
0x177f   : > { %9047 = vmatpush3.bf16.msra.mxu0 %v9479_v59 }
0x1782   : > { %9049 = vmatmul.mubr.msk.bf16.vlgmr.msra.gmra.mxu0 %vm891_vm2, %v10965_v23 }
0x1783   : > { %9052 = vmatprep.mubr.msk.bf16.mxu0 %vm9811_vm0, %v9810_v1 }
0x178a   : > { %9053 = vmatmul.mubr.msk.bf16.gmra.mxu0 %vm891_vm2, %v10985_v47 }
0x178b   : > { %9056 = vmatprep.mubr.msk.bf16.mxu0 %vm9811_vm0, %v9810_v1 }
0x1792   : > { %9057 = vmatmul.mubr.msk.bf16.gmra.mxu0 %vm891_vm2, %v10995_v6 }
0x182a   : > { %v9002_v57 = vpop.f32.mrf.mxu0 }
0x182b   : > { %v4623_v15 = vadd.f32 %v9002_v57, %v10202_v37 }
0x182c   : > { %v4614_v11 = vpop.f32.mrf.mxu0 }
0x182d   : > { %v4615_v29 = vadd.f32 %v4614_v11, %v10202_v37  ;;  %v4634_v41 = vsel %vm1314_vm6, %v4623_v15, -inf }
0x182e   : > { %v9003_v36 = vpop.f32.mrf.mxu0 }
0x182f   : > { %v4628_v63 = vsel %vm1314_vm6, %v4615_v29, -inf }
0x1830   : > { %v4617_v2 = vpop.f32.mrf.mxu0  ;;  %4629 = vmax.xlane.f32.xlu0 %v4628_v63 }
0x1831   : > { %v4618_v31 = vadd.f32 %v4617_v2, %v10202_v37 }
0x1833   : > { %v4631_v52 = vsel %vm1314_vm6, %v4618_v31, -inf }
0x1834   : > { %4632 = vmax.xlane.f32.xlu1 %v4631_v52  ;;  %4635 = vmax.xlane.f32.xlu0 %v4634_v41 }
0x183a   : > { %v9018_v0 = vpop.f32.mrf.mxu0 }
0x183b   : > { %v4785_v7 = vadd.f32 %v9018_v0, %v10202_v37 }
0x183c   : > { %v4776_v20 = vpop.f32.mrf.mxu0 }
0x183d   : > { %v4777_v33 = vadd.f32 %v4776_v20, %v10202_v37  ;;  %v4796_v28 = vsel %vm1314_vm6, %v4785_v7, -inf }
0x183e   : > { %v9019_v38 = vpop.f32.mrf.mxu0 }
0x183f   : > { %v4790_v10 = vsel %vm1314_vm6, %v4777_v33, -inf }
0x1840   : > { %v4779_v16 = vpop.f32.mrf.mxu0  ;;  %4791 = vmax.xlane.f32.xlu1 %v4790_v10 }
0x1841   : > { %v4780_v46 = vadd.f32 %v4779_v16, %v10202_v37 }
0x1842   : > { %v5025_v18 = vpop.f32.mrf.mxu0 }
0x1843   : > { %v4793_v21 = vsel %vm1314_vm6, %v4780_v46, -inf  ;;  %v5026_v54 = vadd.f32 %v8002_v61, %v5025_v18 }
0x1844   : > { %v9050_v44 = vpop.f32.mrf.mxu0  ;;  %4797 = vmax.xlane.f32.xlu1 %v4796_v28  ;;  %4794 = vmax.xlane.f32.xlu0 %v4793_v21 }
0x1846   : > { %v5028_v50 = vpop.f32.mrf.mxu0 }
0x1847   : > { %v5029_v51 = vadd.f32 %v8002_v61, %v5028_v50  ;;  %v9480_v50 = vld [vmem:[%s11847_s1 + $0x58] sm:$0xff]  }
0x1848   : > { %v9051_v13 = vpop.f32.mrf.mxu0 }
0x1849   : > { %v5132_v30 = vpack.c.bf16 %v5029_v51, %v5026_v54  ;;  %v9482_v13 = vld [vmem:[%s11848_s4 + $0x58] sm:$0xff]  }
0x184a   : > { %v5033_v26 = vpop.f32.mrf.mxu0 }
0x184b   : > { %v5034_v17 = vadd.f32 %v8002_v61, %v5033_v26  ;;  %v5143_v42 = vsel %vm1253_vm3, %v5132_v30, 0  ;;  %v11164_v26 = vld [vmem:[%s11806_s11 + $0x10] sm:$0xf] }
0x184c   : > { %v9054_v56 = vpop.f32.mrf.mxu0  ;;  %v11170_v51 = vsel %vm1353_vm4, %v11164_v26, 0 }
0x184d   : > { %v5133_v55 = vpack.c.bf16 %v5034_v17, %v5034_v17 }
0x184e   : > { %v5036_v12 = vpop.f32.mrf.mxu0 }
0x184f   : > { %v5146_v49 = vsel %vm1253_vm3, %v5133_v55, 0  ;;  %v5037_v45 = vadd.f32 %v8002_v61, %v5036_v12  ;;  %9402 = vmatprep.subr.msk.bf16.mxu0 %vm1253_vm3, %v5133_v55 }
0x1850   : > { %v9055_v40 = vpop.f32.mrf.mxu0  ;;  %9077 = vmatpush3.bf16.xpose.msra.mxu0 %v5146_v49 }
0x1851   : > { %9403 = vmatprep.subr.msk.bf16.mxu0 %vm1253_vm3, %v5132_v30 }
0x1852   : > { %v5041_v35 = vpop.f32.mrf.mxu0 }
0x1853   : > { %v5042_v14 = vadd.f32 %v8002_v61, %v5041_v35  ;;  %v7991_v35 = vld [vmem:[%s11852_s9 + $0x5] ss:$0 sm:$0xff] }
0x1854   : > { %v9058_v9 = vpop.f32.mrf.mxu0 }
0x1855   : > { %v11088_v58 = vpack.c.bf16 %v5042_v14, %v5037_v45 }
0x1856   : > { %v5044_v53 = vpop.f32.mrf.mxu0 }
0x1857   : > { %v11090_v5 = vadd.f32 %v8002_v61, %v5044_v53  ;;  %v9483_v61 = vld [vmem:[%s11848_s4 + $0x50] sm:$0xff]  }
0x1858   : > { %v9059_v60 = vpop.f32.mrf.mxu0  ;;  %9079 = vmatpush3.bf16.xpose.msra.mxu0 %v5143_v42 }
0x18b9   : > { %v4630_v34 = vpop.xlane.xlu0 %4629 }
0x18ba   : > { %v4637_v3 = vsub.f32 %v4615_v29, %v4630_v34 }
0x18bc   : > { %v4640_v27 = vmul.f32 1.442695, %v4637_v3 }
0x18bd   : > { %v4633_v19 = vpop.xlane.xlu1 %4632  ;;  %v4636_v4 = vpop.xlane.xlu0 %4635 }
0x18be   : > { %v4638_v59 = vsub.f32 %v4618_v31, %v4633_v19  ;;  %v4639_v57 = vsub.f32 %v4623_v15, %v4636_v4  ;;  %9658 = vpow2.f32 %v4640_v27 }
0x18c0   : > { %v4642_v11 = vmul.f32 1.442695, %v4638_v59  ;;  %v4644_v36 = vmul.f32 1.442695, %v4639_v57 }
0x18c2   : > { %9660 = vpow2.f32 %v4642_v11 }
0x18c3   : > { %9662 = vpow2.f32 %v4644_v36 }
0x18c9   : > { %v4792_v63 = vpop.xlane.xlu1 %4791 }
0x18ca   : > { %v4799_v2 = vsub.f32 %v4777_v33, %v4792_v63  ;;  %v4829_v33 = vsel %vm1353_vm4, %v11055_v32, 0 }
0x18cb   : > { %v11093_v20 = vpop.eup %9658 }
0x18cc   : > { %v4802_v52 = vmul.f32 1.442695, %v4799_v2 }
0x18cd   : > { %v4798_v41 = vpop.xlane.xlu1 %4797  ;;  %v4795_v0 = vpop.xlane.xlu0 %4794 }
0x18ce   : > { %v4801_v38 = vsub.f32 %v4785_v7, %v4798_v41  ;;  %v4800_v10 = vsub.f32 %v4780_v46, %v4795_v0  ;;  %9664 = vpow2.f32 %v4802_v52 }
0x18cf   : > { %v11095_v29 = vpop.eup %9660 }
0x18d0   : > { %v11097_v16 = vpop.eup %9662  ;;  %v4806_v31 = vmul.f32 1.442695, %v4801_v38  ;;  %v4804_v15 = vmul.f32 1.442695, %v4800_v10  ;;  %v4658_v18 = vpack.c.bf16 %v11095_v29, %v11093_v20 }
0x18d1   : > { %v4659_v28 = vpack.c.bf16 %v11097_v16, %v11097_v16 }
0x18d2   : > { %9666 = vpow2.f32 %v4806_v31  ;;  %9008 = vmatprep.mubr.msk.bf16.mxu1 %vm1314_vm6, %v4658_v18 }
0x18d3   : > { %9668 = vpow2.f32 %v4804_v15  ;;  %9009 = vmatmul.mubr.msk.bf16.vlgmr.msra.gmra.mxu1 %vm1314_vm6, %v4659_v28  ;;  %v8013_v28 = vld [vmem:[%s11805_s10 + $0x5] ss:$0 sm:$0xff] }
0x18d4   : > { %9021 = vmatpush3.bf16.msra.mxu1 %v4829_v33 }
0x18d5   : > { %9022 = vmatprep.subr.bf16.mxu1 %v11047_v22 }
0x18d8   : > { %9023 = vmatpush3.bf16.msra.mxu1 %v11047_v22  ;;  %v9481_v22 = vld [vmem:[%s11847_s1 + $0x50] sm:$0xff]  }
0x18d9   : > { %9028 = vmatprep.subr.bf16.mxu1 %v9810_v1 }
0x18db   : > { %v11110_v7 = vpop.eup %9664 }
0x18df   : > { %v11112_v46 = vpop.eup %9666 }
0x18e0   : > { %v11114_v21 = vpop.eup %9668  ;;  %v4821_v44 = vpack.c.bf16 %v11112_v46, %v11112_v46 }
0x18e1   : > { %v4820_v32 = vpack.c.bf16 %v11114_v21, %v11110_v7 }
0x18e3   : > { %9024 = vmatprep.mubr.msk.bf16.mxu1 %vm1314_vm6, %v4820_v32 }
0x18e4   : > { %9025 = vmatmul.mubr.msk.bf16.vlgmr.msra.gmra.mxu1 %vm1314_vm6, %v4821_v44 }
0x18e5   : > { %9029 = vmatpush3.bf16.msra.mxu1 %v9480_v50  ;;  %9032 = vmatprep.mubr.msk.bf16.mxu1 %vm9811_vm0, %v9810_v1 }
0x18e6   : > { %9030 = vmatprep.subr.bf16.mxu1 %v9810_v1 }
0x18e9   : > { %9031 = vmatpush3.bf16.msra.mxu1 %v9481_v22 }
0x18ea   : > { %9060 = vmatprep.subr.bf16.mxu1 %v9810_v1 }
0x18ec   : > { %9033 = vmatmul.mubr.msk.bf16.vlgmr.msra.gmra.mxu1 %vm891_vm2, %v10965_v23 }
0x18ed   : > { %9036 = vmatprep.mubr.msk.bf16.mxu1 %vm9811_vm0, %v9810_v1  ;;  %9061 = vmatpush3.bf16.msra.mxu1 %v9482_v13 }
0x18ee   : > { %9062 = vmatprep.subr.bf16.mxu1 %v9810_v1 }
0x18f1   : > { %9063 = vmatpush3.bf16.msra.mxu1 %v9483_v61 }
0x18f2   : > { %9406 = vmatprep.subr.msk.bf16.mxu1 %vm1353_vm4, %v11164_v26 }
0x18f4   : > { %9037 = vmatmul.mubr.msk.bf16.gmra.mxu1 %vm891_vm2, %v10985_v47 }
0x18f5   : > { %9040 = vmatprep.mubr.msk.bf16.mxu1 %vm9811_vm0, %v9810_v1 }
0x18fc   : > { %9041 = vmatmul.mubr.msk.bf16.gmra.mxu1 %vm891_vm2, %v10995_v6 }
0x18fd   : > { %9064 = vmatprep.mubr.msk.bf16.mxu1 %vm9811_vm0, %v9810_v1 }
0x1904   : > { %9065 = vmatmul.mubr.msk.bf16.vlgmr.msra.gmra.mxu1 %vm891_vm2, %v10965_v23 }
0x1905   : > { %9068 = vmatprep.mubr.msk.bf16.mxu1 %vm9811_vm0, %v9810_v1  ;;  %9099 = vmatpush3.bf16.msra.mxu1 %v11170_v51 }
0x190c   : > { %9069 = vmatmul.mubr.msk.bf16.gmra.mxu1 %vm891_vm2, %v10985_v47 }
0x190d   : > { %9072 = vmatprep.mubr.msk.bf16.mxu1 %vm9811_vm0, %v9810_v1 }
0x1914   : > { %9073 = vmatmul.mubr.msk.bf16.gmra.mxu1 %vm891_vm2, %v10995_v6 }
0x1993   : > { %v11173_v17 = vpop.f32.mrf.mxu1 }
0x1995   : > { %v11175_v56 = vpop.f32.mrf.mxu1 }
0x1997   : > { %v9011_v54 = vpop.f32.mrf.mxu1 }
0x1999   : > { %v11177_v55 = vpop.f32.mrf.mxu1 }
0x19a4   : > { %v11179_v12 = vpop.f32.mrf.mxu1 }
0x19a6   : > { %v11181_v30 = vpop.f32.mrf.mxu1 }
0x19a8   : > { %v9027_v49 = vpop.f32.mrf.mxu1 }
0x19aa   : > { %v11183_v45 = vpop.f32.mrf.mxu1 }
0x19ac   : > { %v4943_v40 = vpop.f32.mrf.mxu1 }
0x19ad   : > { %v4944_v53 = vadd.f32 %v7991_v35, %v4943_v40 }
0x19ae   : > { %v9034_v14 = vpop.f32.mrf.mxu1 }
0x19b0   : > { %v4946_v9 = vpop.f32.mrf.mxu1 }
0x19b1   : > { %v4947_v42 = vadd.f32 %v7991_v35, %v4946_v9 }
0x19b2   : > { %v9035_v60 = vpop.f32.mrf.mxu1 }
0x19b3   : > { %v5130_v34 = vpack.c.bf16 %v4947_v42, %v4944_v53 }
0x19b4   : > { %v4951_v3 = vpop.f32.mrf.mxu1 }
0x19b5   : > { %v4952_v27 = vadd.f32 %v7991_v35, %v4951_v3  ;;  %9080 = vmatprep.mubr.msk.bf16.mxu0 %vm1253_vm3, %v5130_v34 }
0x19b6   : > { %v9038_v19 = vpop.f32.mrf.mxu1 }
0x19b7   : > { %v5131_v4 = vpack.c.bf16 %v4952_v27, %v4952_v27 }
0x19b8   : > { %v4954_v59 = vpop.f32.mrf.mxu1 }
0x19b9   : > { %v11189_v57 = vadd.f32 %v7991_v35, %v4954_v59  ;;  %9081 = vmatmul.mubr.msk.bf16.vlgmr.msra.gmra.mxu0 %vm1253_vm3, %v5131_v4 }
0x19ba   : > { %v9039_v11 = vpop.f32.mrf.mxu1 }
0x19bc   : > { %v4959_v36 = vpop.f32.mrf.mxu1 }
0x19bd   : > { %v11192_v63 = vadd.f32 %v7991_v35, %v4959_v36 }
0x19be   : > { %v9042_v2 = vpop.f32.mrf.mxu1 }
0x19bf   : > { %v5406_v52 = vpack.c.bf16 %v11192_v63, %v11189_v57 }
0x19c0   : > { %v4962_v41 = vpop.f32.mrf.mxu1 }
0x19c1   : > { %v11196_v0 = vadd.f32 %v7991_v35, %v4962_v41 }
0x19c2   : > { %v9043_v38 = vpop.f32.mrf.mxu1 }
0x19c4   : > { %v5107_v10 = vpop.f32.mrf.mxu1 }
0x19c5   : > { %v5108_v22 = vadd.f32 %v8013_v28, %v5107_v10 }
0x19c6   : > { %v9066_v31 = vpop.f32.mrf.mxu1 }
0x19c8   : > { %v5110_v15 = vpop.f32.mrf.mxu1 }
0x19c9   : > { %v5111_v44 = vadd.f32 %v8013_v28, %v5110_v15  ;;  %v8023_v15 = vld [vmem:[%s11806_s11 + $0x14] sm:$0xf] }
0x19ca   : > { %v9067_v18 = vpop.f32.mrf.mxu1 }
0x19cb   : > { %v5134_v54 = vpack.c.bf16 %v5111_v44, %v5108_v22 }
0x19cc   : > { %v5115_v33 = vpop.f32.mrf.mxu1 }
0x19cd   : > { %v5116_v32 = vadd.f32 %v8013_v28, %v5115_v33 }
0x19ce   : > { %v9070_v50 = vpop.f32.mrf.mxu1 }
0x19cf   : > { %v5135_v13 = vpack.c.bf16 %v5116_v32, %v5116_v32 }
0x19d0   : > { %v5118_v61 = vpop.f32.mrf.mxu1 }
0x19d1   : > { %v5235_v49 = vsel %vm1353_vm4, %v5135_v13, 0  ;;  %v5119_v40 = vadd.f32 %v8013_v28, %v5118_v61  ;;  %9404 = vmatprep.subr.msk.bf16.mxu0 %vm1353_vm4, %v5135_v13 }
0x19d2   : > { %v9071_v35 = vpop.f32.mrf.mxu1  ;;  %9085 = vmatpush3.bf16.msra.mxu0 %v5235_v49 }
0x19d3   : > { %9086 = vmatprep.subr.bf16.mxu0 %v5134_v54 }
0x19d4   : > { %v5123_v14 = vpop.f32.mrf.mxu1 }
0x19d5   : > { %v5124_v9 = vadd.f32 %v8013_v28, %v5123_v14 }
0x19d6   : > { %v9074_v53 = vpop.f32.mrf.mxu1  ;;  %9087 = vmatpush3.bf16.msra.mxu0 %v5134_v54 }
0x19d7   : > { %v11203_v42 = vpack.c.bf16 %v5124_v9, %v5119_v40  ;;  %9405 = vmatprep.subr.msk.bf16.mxu0 %vm1353_vm4, %v8023_v15 }
0x19d8   : > { %v5126_v60 = vpop.f32.mrf.mxu1 }
0x19d9   : > { %v5127_v34 = vadd.f32 %v8013_v28, %v5126_v60 }
0x19da   : > { %v9075_v3 = vpop.f32.mrf.mxu1 }
0x19db   : > { %v11205_v27 = vpack.c.bf16 %v5127_v34, %v5127_v34  ;;  %v11223_v34 = vsel %vm1353_vm4, %v8023_v15, 0  ;;  %v5409_v3 = vpack.c.bf16 %v11090_v5, %v11090_v5 }
0x19dd   : > { %9409 = vmatprep.subr.msk.bf16.mxu1 %vm1353_vm4, %v11205_v27 }
0x1a79   : > { %v9082_v19 = vpop.f32.mrf.mxu0 }
0x1a7a   : > { %v5191_v36 = vadd.f32 %v9082_v19, %v10202_v37  ;;  %v4646_v19 = vsel %vm1314_vm6, %v11093_v20, 0.0 }
0x1a7b   : > { %v5182_v4 = vpop.f32.mrf.mxu0 }
0x1a7c   : > { %v5183_v59 = vadd.f32 %v5182_v4, %v10202_v37  ;;  %v5202_v31 = vsel %vm1314_vm6, %v5191_v36, -inf  ;;  %v4649_v4 = vsel %vm1314_vm6, %v11095_v29, 0.0 }
0x1a7d   : > { %v9083_v11 = vpop.f32.mrf.mxu0 }
0x1a7e   : > { %v5196_v2 = vsel %vm1314_vm6, %v5183_v59, -inf }
0x1a7f   : > { %v5185_v41 = vpop.f32.mrf.mxu0  ;;  %5197 = vmax.xlane.f32.xlu0 %v5196_v2 }
0x1a80   : > { %v5186_v38 = vadd.f32 %v5185_v41, %v10202_v37 }
0x1a82   : > { %v5199_v10 = vsel %vm1314_vm6, %v5186_v38, -inf }
0x1a83   : > { %5200 = vmax.xlane.f32.xlu1 %v5199_v10  ;;  %5203 = vmax.xlane.f32.xlu0 %v5202_v31 }
0x1b08   : > { %v5198_v18 = vpop.xlane.xlu0 %5197 }
0x1b09   : > { %v5205_v28 = vsub.f32 %v5183_v59, %v5198_v18  ;;  %v4652_v59 = vsel %vm1314_vm6, %v11097_v16, 0.0 }
0x1b0b   : > { %v5208_v33 = vmul.f32 1.442695, %v5205_v28 }
0x1b0c   : > { %v5201_v44 = vpop.xlane.xlu1 %5200  ;;  %v5204_v32 = vpop.xlane.xlu0 %5203 }
0x1b0d   : > { %9670 = vpow2.f32 %v5208_v33  ;;  %v5206_v50 = vsub.f32 %v5186_v38, %v5201_v44  ;;  %v5207_v22 = vsub.f32 %v5191_v36, %v5204_v32  ;;  %v5511_v44 = vsel %vm1353_vm4, %v11205_v27, 0 }
0x1b0f   : > { %v5210_v13 = vmul.f32 1.442695, %v5206_v50  ;;  %v5212_v61 = vmul.f32 1.442695, %v5207_v22 }
0x1b11   : > { %9672 = vpow2.f32 %v5210_v13 }
0x1b12   : > { %9674 = vpow2.f32 %v5212_v61 }
0x1b1a   : > { %v9671_v54 = vpop.eup %9670 }
0x1b1b   : > { %v5214_v49 = vsel %vm1314_vm6, %v9671_v54, 0.0 }
0x1b1c   : > { %5215 = vadd.xlane.f32.xlu1 %v5214_v49 }
0x1b1e   : > { %v9673_v40 = vpop.eup %9672 }
0x1b1f   : > { %v9675_v35 = vpop.eup %9674  ;;  %v5217_v14 = vsel %vm1314_vm6, %v9673_v40, 0.0  ;;  %v5226_v9 = vpack.c.bf16 %v9673_v40, %v9671_v54 }
0x1b20   : > { %v5227_v53 = vpack.c.bf16 %v9675_v35, %v9675_v35  ;;  %5218 = vadd.xlane.f32.xlu0 %v5217_v14  ;;  %v5220_v60 = vsel %vm1314_vm6, %v9675_v35, 0.0  ;;  %v5407_v35 = vpack.c.bf16 %v11196_v0, %v11196_v0 }
0x1b21   : > { %5221 = vadd.xlane.f32.xlu1 %v5220_v60  ;;  %9088 = vmatprep.mubr.msk.bf16.mxu0 %vm1314_vm6, %v5226_v9 }
0x1b22   : > { %9089 = vmatmul.mubr.msk.bf16.vlgmr.msra.gmra.mxu0 %vm1314_vm6, %v5227_v53 }
0x1b23   : > { %9093 = vmatpush3.bf16.msra.mxu0 %v11223_v34 }
0x1b24   : > { %9407 = vmatprep.subr.msk.bf16.mxu0 %vm1253_vm3, %v5409_v3  ;;  %4647 = vadd.xlane.f32.xlu0 %v4646_v19 }
0x1b25   : > { %4650 = vadd.xlane.f32.xlu1 %v4649_v4 }
0x1b28   : > { %4653 = vadd.xlane.f32.xlu0 %v4652_v59 }
0x1ba5   : > { %v5216_v11 = vpop.xlane.xlu1 %5215 }
0x1ba9   : > { %v5219_v5 = vpop.xlane.xlu0 %5218 }
0x1baa   : > { %v5222_v36 = vpop.xlane.xlu1 %5221 }
0x1bad   : > { %v4648_v2 = vpop.xlane.xlu0 %4647 }
0x1bae   : > { %v4651_v41 = vpop.xlane.xlu1 %4650  ;;  %9676 = vrcp.f32 %v4648_v2 }
0x1baf   : > { %9678 = vrcp.f32 %v4651_v41  ;;  %v4808_v41 = vsel %vm1314_vm6, %v11110_v7, 0.0 }
0x1bb1   : > { %v4654_v38 = vpop.xlane.xlu0 %4653 }
0x1bb2   : > { %9680 = vrcp.f32 %v4654_v38  ;;  %v4811_v38 = vsel %vm1314_vm6, %v11114_v21, 0.0 }
0x1bb3   : > { %9682 = vrcp.f32 %v5216_v11 }
0x1bb4   : > { %9684 = vrcp.f32 %v5222_v36 }
0x1bb5   : > { %9686 = vrcp.f32 %v5219_v5 }
0x1bbb   : > { %v9677_v20 = vpop.eup %9676 }
0x1bbc   : > { %v9679_v10 = vpop.eup %9678  ;;  %v4717_v31 = vmul.f32 %v9677_v20, %v11175_v56  ;;  %v4814_v20 = vsel %vm1314_vm6, %v11112_v46, 0.0 }
0x1bbd   : > { %v4718_v29 = vmul.f32 %v9679_v10, %v11177_v55 }
0x1bbf   : > { %v9681_v18 = vpop.eup %9680  ;;  %v4720_v28 = vpack.c.bf16 %v4718_v29, %v4717_v31 }
0x1bc0   : > { %v4719_v16 = vmul.f32 %v9681_v18, %v11173_v17  ;;  %v9683_v55 = vpop.eup %9682 }
0x1bc1   : > { %9100 = vmatprep.mubr.msk.bf16.mxu1 %vm1253_vm3, %v4720_v28  ;;  %v9685_v50 = vpop.eup %9684 }
0x1bc2   : > { %v4721_v33 = vpack.c.bf16 %v4719_v16, %v4719_v16  ;;  %v9687_v22 = vpop.eup %9686 }
0x1bc4   : > { %9101 = vmatmul.mubr.msk.bf16.vlgmr.msra.gmra.mxu1 %vm1253_vm3, %v4721_v33 }
0x1bc5   : > { %9113 = vmatpush3.bf16.msra.mxu1 %v5511_v44 }
0x1bc6   : > { %9114 = vmatprep.subr.bf16.mxu1 %v11203_v42 }
0x1bc9   : > { %9115 = vmatpush3.bf16.msra.mxu1 %v11203_v42  ;;  %v5422_v42 = vsel %vm1253_vm3, %v5409_v3, 0 }
0x1bca   : > { %9410 = vmatprep.subr.msk.bf16.mxu1 %vm1353_vm4, %v8023_v15  ;;  %v5419_v15 = vsel %vm1253_vm3, %v11088_v58, 0 }
0x1be2   : > { %v9090_v56 = vpop.f32.mrf.mxu0 }
0x1be3   : > { %v5287_v13 = vmul.f32 %v9685_v50, %v9090_v56 }
0x1be4   : > { %v5271_v17 = vpop.f32.mrf.mxu0 }
0x1be5   : > { %v5285_v61 = vmul.f32 %v9683_v55, %v5271_v17  ;;  %v5289_v40 = vpack.c.bf16 %v5287_v13, %v5287_v13 }
0x1be6   : > { %v9091_v32 = vpop.f32.mrf.mxu0 }
0x1be8   : > { %v5274_v27 = vpop.f32.mrf.mxu0 }
0x1be9   : > { %v5286_v54 = vmul.f32 %v9687_v22, %v5274_v27 }
0x1beb   : > { %v5288_v49 = vpack.c.bf16 %v5286_v54, %v5285_v61 }
0x1bed   : > { %9094 = vmatprep.mubr.msk.bf16.mxu0 %vm1253_vm3, %v5288_v49 }
0x1bee   : > { %9095 = vmatmul.mubr.msk.bf16.vlgmr.msra.gmra.mxu0 %vm1253_vm3, %v5289_v40 }
0x1bef   : > { %9105 = vmatpush3.bf16.xpose.msra.mxu0 %v5422_v42  ;;  %9108 = vmatprep.mubr.msk.bf16.mxu0 %vm1253_vm3, %v5406_v52 }
0x1bf0   : > { %9408 = vmatprep.subr.msk.bf16.mxu0 %vm1253_vm3, %v11088_v58 }
0x1bf7   : > { %9107 = vmatpush3.bf16.xpose.msra.mxu0 %v5419_v15 }
0x1bf8   : > { %9411 = vmatprep.subr.msk.bf16.mxu0 %vm1353_vm4, %v11164_v26 }
0x1bfe   : > { %9109 = vmatmul.mubr.msk.bf16.vlgmr.msra.gmra.mxu0 %vm1253_vm3, %v5407_v35 }
0x1bff   : > { %9127 = vmatpush3.bf16.msra.mxu0 %v11170_v51 }
0x1c00   : > { %9148 = vmatprep.subr.bf16.mxu0 %v9810_v1 }
0x1c84   : > { %v9102_v57 = vpop.f32.mrf.mxu1 }
0x1c86   : > { %v5392_v63 = vpop.f32.mrf.mxu1 }
0x1c88   : > { %v9103_v52 = vpop.f32.mrf.mxu1 }
0x1cae   : > { %v9096_v14 = vpop.f32.mrf.mxu0 }
0x1caf   : > { %v11265_v9 = vadd.f32 %v9102_v57, %v9096_v14  ;;  %v11314_v14 = vpop.f32.mrf.mxu1 }
0x1cb0   : > { %v5335_v58 = vpop.f32.mrf.mxu0 }
0x1cb1   : > { %v11267_v53 = vadd.f32 %v5392_v63, %v5335_v58  ;;  %v9484_v63 = vld [vmem:[%s11851_s0 + $0x68] sm:$0xff]  }
0x1cb2   : > { %v9097_v60 = vpop.f32.mrf.mxu0 }
0x1cb4   : > { %v11269_v26 = vpop.f32.mrf.mxu0 }
0x1cbe   : > { %v9110_v3 = vpop.f32.mrf.mxu0 }
0x1cbf   : > { %v5467_v51 = vadd.f32 %v9110_v3, %v10202_v37 }
0x1cc0   : > { %v5458_v0 = vpop.f32.mrf.mxu0 }
0x1cc1   : > { %v5459_v19 = vadd.f32 %v5458_v0, %v10202_v37  ;;  %v5478_v2 = vsel %vm1314_vm6, %v5467_v51, -inf }
0x1cc2   : > { %v9111_v4 = vpop.f32.mrf.mxu0 }
0x1cc3   : > { %v5472_v59 = vsel %vm1314_vm6, %v5459_v19, -inf }
0x1cc4   : > { %v5461_v11 = vpop.f32.mrf.mxu0  ;;  %5473 = vmax.xlane.f32.xlu1 %v5472_v59 }
0x1cc5   : > { %v5462_v5 = vadd.f32 %v5461_v11, %v10202_v37 }
0x1cc7   : > { %v5475_v36 = vsel %vm1314_vm6, %v5462_v5, -inf }
0x1cc8   : > { %5476 = vmax.xlane.f32.xlu0 %v5475_v36  ;;  %5479 = vmax.xlane.f32.xlu1 %v5478_v2 }
0x1ccc   : > { %4809 = vadd.xlane.f32.xlu0 %v4808_v41  ;;  %4812 = vadd.xlane.f32.xlu1 %v4811_v38 }
0x1cd0   : > { %4815 = vadd.xlane.f32.xlu0 %v4814_v20  ;;  %v9486_v20 = vld [vmem:[%s11847_s1 + $0x68] sm:$0xff]  }
0x1d4d   : > { %v5474_v10 = vpop.xlane.xlu1 %5473 }
0x1d4e   : > { %v5481_v31 = vsub.f32 %v5459_v19, %v5474_v10 }
0x1d50   : > { %v5484_v29 = vmul.f32 1.442695, %v5481_v31 }
0x1d51   : > { %v5477_v18 = vpop.xlane.xlu0 %5476  ;;  %v5480_v28 = vpop.xlane.xlu1 %5479 }
0x1d52   : > { %9688 = vpow2.f32 %v5484_v29  ;;  %v5482_v16 = vsub.f32 %v5462_v5, %v5477_v18  ;;  %v5483_v33 = vsub.f32 %v5467_v51, %v5480_v28  ;;  %v9487_v18 = vld [vmem:[%s11847_s1 + $0x60] sm:$0xff]  }
0x1d54   : > { %v5486_v44 = vmul.f32 1.442695, %v5482_v16  ;;  %v5488_v56 = vmul.f32 1.442695, %v5483_v33  ;;  %v9488_v33 = vld [vmem:[%s11848_s4 + $0x68] sm:$0xff]  }
0x1d55   : > { %v4810_v7 = vpop.xlane.xlu0 %4809  ;;  %v4813_v17 = vpop.xlane.xlu1 %4812 }
0x1d56   : > { %9690 = vpow2.f32 %v5486_v44 }
0x1d57   : > { %9692 = vpow2.f32 %v5488_v56  ;;  %v8052_v56 = vld [vmem:[%s11853_s27 + $0x6] ss:$0 sm:$0xff] }
0x1d58   : > { %9694 = vrcp.f32 %v4810_v7 }
0x1d59   : > { %9696 = vrcp.f32 %v4813_v17  ;;  %v4816_v21 = vpop.xlane.xlu0 %4815  ;;  %v9489_v17 = vld [vmem:[%s11848_s4 + $0x60] sm:$0xff]  }
0x1d5a   : > { %9698 = vrcp.f32 %v4816_v21 }
0x1d5f   : > { %v9689_v46 = vpop.eup %9688 }
0x1d60   : > { %v5490_v55 = vsel %vm1314_vm6, %v9689_v46, 0.0 }
0x1d61   : > { %5491 = vadd.xlane.f32.xlu1 %v5490_v55 }
0x1d63   : > { %v9691_v32 = vpop.eup %9690 }
0x1d64   : > { %v9693_v50 = vpop.eup %9692  ;;  %v5493_v22 = vsel %vm1314_vm6, %v9691_v32, 0.0  ;;  %v5502_v13 = vpack.c.bf16 %v9691_v32, %v9689_v46 }
0x1d65   : > { %v9695_v27 = vpop.eup %9694  ;;  %v5503_v61 = vpack.c.bf16 %v9693_v50, %v9693_v50  ;;  %5494 = vadd.xlane.f32.xlu0 %v5493_v22  ;;  %v5496_v54 = vsel %vm1314_vm6, %v9693_v50, 0.0 }
0x1d66   : > { %v9697_v49 = vpop.eup %9696  ;;  %5497 = vadd.xlane.f32.xlu1 %v5496_v54  ;;  %9116 = vmatprep.mubr.msk.bf16.mxu1 %vm1314_vm6, %v5502_v13  ;;  %v4879_v40 = vmul.f32 %v9695_v27, %v11181_v30  ;;  %v9485_v30 = vld [vmem:[%s11851_s0 + $0x60] sm:$0xff]  }
0x1d67   : > { %v9699_v42 = vpop.eup %9698  ;;  %9117 = vmatmul.mubr.msk.bf16.vlgmr.msra.gmra.mxu1 %vm1314_vm6, %v5503_v61  ;;  %v4880_v15 = vmul.f32 %v9697_v49, %v11183_v45 }
0x1d68   : > { %v4881_v35 = vmul.f32 %v9699_v42, %v11179_v12  ;;  %9121 = vmatpush3.bf16.msra.mxu1 %v11223_v34 }
0x1d69   : > { %v4882_v57 = vpack.c.bf16 %v4880_v15, %v4879_v40  ;;  %9132 = vmatprep.subr.bf16.mxu1 %v9810_v1 }
0x1d6a   : > { %v4883_v52 = vpack.c.bf16 %v4881_v35, %v4881_v35 }
0x1d6b   : > { %9128 = vmatprep.mubr.msk.bf16.mxu0 %vm1253_vm3, %v4882_v57 }
0x1d6c   : > { %9129 = vmatmul.mubr.msk.bf16.vlgmr.msra.gmra.mxu0 %vm1253_vm3, %v4883_v52 }
0x1d6d   : > { %9149 = vmatpush3.bf16.msra.mxu0 %v9484_v63  ;;  %9152 = vmatprep.mubr.msk.bf16.mxu0 %vm9811_vm0, %v9810_v1 }
0x1d6e   : > { %9150 = vmatprep.subr.bf16.mxu0 %v9810_v1 }
0x1d71   : > { %9151 = vmatpush3.bf16.msra.mxu0 %v9485_v30 }
0x1d74   : > { %9153 = vmatmul.mubr.msk.bf16.vlgmr.msra.gmra.mxu0 %vm891_vm2, %v10965_v23 }
0x1d75   : > { %9156 = vmatprep.mubr.msk.bf16.mxu0 %vm9811_vm0, %v9810_v1 }
0x1d7c   : > { %9157 = vmatmul.mubr.msk.bf16.gmra.mxu0 %vm891_vm2, %v10985_v47 }
0x1d7d   : > { %9160 = vmatprep.mubr.msk.bf16.mxu0 %vm9811_vm0, %v9810_v1 }
0x1d84   : > { %9161 = vmatmul.mubr.msk.bf16.gmra.mxu0 %vm891_vm2, %v10995_v6 }
0x1dea   : > { %v5492_v12 = vpop.xlane.xlu1 %5491 }
0x1deb   : > { %9700 = vrcp.f32 %v5492_v12 }
0x1dee   : > { %v5495_v34 = vpop.xlane.xlu0 %5494 }
0x1def   : > { %v5498_v45 = vpop.xlane.xlu1 %5497 }
0x1df0   : > { %9702 = vrcp.f32 %v5498_v45 }
0x1df1   : > { %9704 = vrcp.f32 %v5495_v34 }
0x1df8   : > { %v9701_v3 = vpop.eup %9700 }
0x1dfd   : > { %v9703_v19 = vpop.eup %9702 }
0x1dfe   : > { %v9705_v51 = vpop.eup %9704 }
0x1e27   : > { %v9118_v58 = vpop.f32.mrf.mxu1 }
0x1e28   : > { %v5563_v59 = vmul.f32 %v9703_v19, %v9118_v58  ;;  %v8041_v19 = vld [vmem:[%s11852_s9 + $0x6] ss:$0 sm:$0xff] }
0x1e29   : > { %v5547_v60 = vpop.f32.mrf.mxu1 }
0x1e2a   : > { %v5561_v5 = vmul.f32 %v9701_v3, %v5547_v60  ;;  %v5565_v10 = vpack.c.bf16 %v5563_v59, %v5563_v59 }
0x1e2b   : > { %v9119_v0 = vpop.f32.mrf.mxu1 }
0x1e2c   : > { %v11316_v4 = vpop.f32.mrf.mxu0 }
0x1e2d   : > { %v5550_v11 = vpop.f32.mrf.mxu1 }
0x1e2e   : > { %v5562_v36 = vmul.f32 %v9705_v51, %v5550_v11  ;;  %v11318_v2 = vpop.f32.mrf.mxu0 }
0x1e30   : > { %v5564_v41 = vpack.c.bf16 %v5562_v36, %v5561_v5  ;;  %v9131_v38 = vpop.f32.mrf.mxu0 }
0x1e32   : > { %9122 = vmatprep.mubr.msk.bf16.mxu1 %vm1253_vm3, %v5564_v41  ;;  %v11324_v31 = vpop.f32.mrf.mxu0 }
0x1e33   : > { %9123 = vmatmul.mubr.msk.bf16.vlgmr.msra.gmra.mxu1 %vm1253_vm3, %v5565_v10 }
0x1e34   : > { %9133 = vmatpush3.bf16.msra.mxu1 %v9486_v20  ;;  %v5815_v29 = vpop.f32.mrf.mxu0  ;;  %9136 = vmatprep.mubr.msk.bf16.mxu1 %vm9811_vm0, %v9810_v1 }
0x1e35   : > { %9134 = vmatprep.subr.bf16.mxu1 %v9810_v1  ;;  %v5816_v32 = vadd.f32 %v8052_v56, %v5815_v29 }
0x1e36   : > { %v9154_v28 = vpop.f32.mrf.mxu0 }
0x1e38   : > { %9135 = vmatpush3.bf16.msra.mxu1 %v9487_v18  ;;  %v5818_v16 = vpop.f32.mrf.mxu0 }
0x1e39   : > { %9164 = vmatprep.subr.bf16.mxu1 %v9810_v1  ;;  %v5819_v21 = vadd.f32 %v8052_v56, %v5818_v16 }
0x1e3a   : > { %v9155_v44 = vpop.f32.mrf.mxu0 }
0x1e3b   : > { %9137 = vmatmul.mubr.msk.bf16.vlgmr.msra.gmra.mxu1 %vm891_vm2, %v10965_v23  ;;  %v5922_v13 = vpack.c.bf16 %v5819_v21, %v5816_v32 }
0x1e3c   : > { %v5823_v7 = vpop.f32.mrf.mxu0  ;;  %9140 = vmatprep.mubr.msk.bf16.mxu1 %vm9811_vm0, %v9810_v1  ;;  %9165 = vmatpush3.bf16.msra.mxu1 %v9488_v33 }
0x1e3d   : > { %v5824_v46 = vadd.f32 %v8052_v56, %v5823_v7  ;;  %9166 = vmatprep.subr.bf16.mxu1 %v9810_v1  ;;  %v5933_v15 = vsel %vm1253_vm3, %v5922_v13, 0 }
0x1e3e   : > { %v9158_v55 = vpop.f32.mrf.mxu0 }
0x1e3f   : > { %v5923_v50 = vpack.c.bf16 %v5824_v46, %v5824_v46 }
0x1e40   : > { %v5826_v22 = vpop.f32.mrf.mxu0  ;;  %9167 = vmatpush3.bf16.msra.mxu1 %v9489_v17 }
0x1e41   : > { %v5936_v27 = vsel %vm1253_vm3, %v5923_v50, 0  ;;  %9412 = vmatprep.subr.msk.bf16.mxu0 %vm1253_vm3, %v5923_v50  ;;  %v5827_v52 = vadd.f32 %v8052_v56, %v5826_v22 }
0x1e42   : > { %v9159_v61 = vpop.f32.mrf.mxu0  ;;  %9181 = vmatpush3.bf16.xpose.msra.mxu0 %v5936_v27  ;;  %v8063_v27 = vld [vmem:[%s11805_s10 + $0x6] ss:$0 sm:$0xff] }
0x1e43   : > { %9141 = vmatmul.mubr.msk.bf16.gmra.mxu1 %vm891_vm2, %v10985_v47  ;;  %9413 = vmatprep.subr.msk.bf16.mxu0 %vm1253_vm3, %v5922_v13 }
0x1e44   : > { %v5831_v54 = vpop.f32.mrf.mxu0  ;;  %9144 = vmatprep.mubr.msk.bf16.mxu1 %vm9811_vm0, %v9810_v1 }
0x1e45   : > { %v5832_v63 = vadd.f32 %v8052_v56, %v5831_v54 }
0x1e46   : > { %v9162_v49 = vpop.f32.mrf.mxu0 }
0x1e47   : > { %v6144_v30 = vpack.c.bf16 %v5832_v63, %v5827_v52 }
0x1e48   : > { %v5834_v40 = vpop.f32.mrf.mxu0 }
0x1e49   : > { %v5835_v42 = vadd.f32 %v8052_v56, %v5834_v40  ;;  %v6155_v45 = vsel %vm1253_vm3, %v6144_v30, 0 }
0x1e4a   : > { %v9163_v35 = vpop.f32.mrf.mxu0  ;;  %9183 = vmatpush3.bf16.xpose.msra.mxu0 %v5933_v15 }
0x1e4b   : > { %v6145_v57 = vpack.c.bf16 %v5835_v42, %v5835_v42  ;;  %9145 = vmatmul.mubr.msk.bf16.gmra.mxu1 %vm891_vm2, %v10995_v6 }
0x1e4c   : > { %9168 = vmatprep.mubr.msk.bf16.mxu1 %vm9811_vm0, %v9810_v1 }
0x1e4d   : > { %9416 = vmatprep.subr.msk.bf16.mxu1 %vm1253_vm3, %v6145_v57  ;;  %v6158_v12 = vsel %vm1253_vm3, %v6145_v57, 0 }
0x1e53   : > { %9169 = vmatmul.mubr.msk.bf16.vlgmr.msra.gmra.mxu1 %vm891_vm2, %v10965_v23 }
0x1e54   : > { %9203 = vmatpush3.bf16.xpose.msra.mxu1 %v6158_v12  ;;  %9172 = vmatprep.mubr.msk.bf16.mxu1 %vm9811_vm0, %v9810_v1 }
0x1e55   : > { %9417 = vmatprep.subr.msk.bf16.mxu1 %vm1253_vm3, %v6144_v30 }
0x1e5b   : > { %9173 = vmatmul.mubr.msk.bf16.gmra.mxu1 %vm891_vm2, %v10985_v47 }
0x1e5c   : > { %9205 = vmatpush3.bf16.xpose.msra.mxu1 %v6155_v45  ;;  %9176 = vmatprep.mubr.msk.bf16.mxu1 %vm9811_vm0, %v9810_v1 }
0x1e63   : > { %9177 = vmatmul.mubr.msk.bf16.gmra.mxu1 %vm891_vm2, %v10995_v6 }
0x1ef3   : > { %v11374_v34 = vpop.f32.mrf.mxu1 }
0x1ef5   : > { %v11376_v58 = vpop.f32.mrf.mxu1 }
0x1ef7   : > { %v9125_v60 = vpop.f32.mrf.mxu1 }
0x1ef9   : > { %v11378_v3 = vpop.f32.mrf.mxu1 }
0x1efb   : > { %v5733_v0 = vpop.f32.mrf.mxu1 }
0x1efc   : > { %v5734_v11 = vadd.f32 %v8041_v19, %v5733_v0 }
0x1efd   : > { %v9138_v51 = vpop.f32.mrf.mxu1 }
0x1eff   : > { %v5736_v59 = vpop.f32.mrf.mxu1 }
0x1f00   : > { %v5737_v5 = vadd.f32 %v8041_v19, %v5736_v59 }
0x1f01   : > { %v9139_v36 = vpop.f32.mrf.mxu1 }
0x1f02   : > { %v5920_v41 = vpack.c.bf16 %v5737_v5, %v5734_v11 }
0x1f03   : > { %v5741_v38 = vpop.f32.mrf.mxu1 }
0x1f04   : > { %v5742_v20 = vadd.f32 %v8041_v19, %v5741_v38  ;;  %9184 = vmatprep.mubr.msk.bf16.mxu0 %vm1253_vm3, %v5920_v41 }
0x1f05   : > { %v9142_v10 = vpop.f32.mrf.mxu1 }
0x1f06   : > { %v5921_v29 = vpack.c.bf16 %v5742_v20, %v5742_v20 }
0x1f07   : > { %v5744_v18 = vpop.f32.mrf.mxu1 }
0x1f08   : > { %9185 = vmatmul.mubr.msk.bf16.vlgmr.msra.gmra.mxu0 %vm1253_vm3, %v5921_v29  ;;  %v5745_v33 = vadd.f32 %v8041_v19, %v5744_v18 }
0x1f09   : > { %v9143_v28 = vpop.f32.mrf.mxu1 }
0x1f0b   : > { %v5749_v16 = vpop.f32.mrf.mxu1 }
0x1f0c   : > { %v5750_v44 = vadd.f32 %v8041_v19, %v5749_v16 }
0x1f0d   : > { %v9146_v56 = vpop.f32.mrf.mxu1 }
0x1f0e   : > { %v6142_v7 = vpack.c.bf16 %v5750_v44, %v5745_v33  ;;  %v8073_v56 = vld [vmem:[%s11806_s11 + $0x18] sm:$0xf] }
0x1f0f   : > { %v5752_v17 = vpop.f32.mrf.mxu1  ;;  %9419 = vmatprep.subr.msk.bf16.mxu1 %vm1353_vm4, %v8073_v56 }
0x1f10   : > { %v5753_v21 = vadd.f32 %v8041_v19, %v5752_v17  ;;  %9206 = vmatprep.mubr.msk.bf16.mxu1 %vm1253_vm3, %v6142_v7  ;;  %v6089_v7 = vsel %vm1353_vm4, %v8073_v56, 0 }
0x1f11   : > { %v9147_v46 = vpop.f32.mrf.mxu1 }
0x1f12   : > { %v6143_v55 = vpack.c.bf16 %v5753_v21, %v5753_v21 }
0x1f13   : > { %v5897_v32 = vpop.f32.mrf.mxu1 }
0x1f14   : > { %9207 = vmatmul.mubr.msk.bf16.vlgmr.msra.gmra.mxu1 %vm1253_vm3, %v6143_v55  ;;  %v5898_v42 = vadd.f32 %v8063_v27, %v5897_v32 }
0x1f15   : > { %v9170_v50 = vpop.f32.mrf.mxu1  ;;  %9219 = vmatpush3.bf16.msra.mxu1 %v6089_v7 }
0x1f16   : > { %9240 = vmatprep.subr.bf16.mxu1 %v9810_v1 }
0x1f17   : > { %v5900_v22 = vpop.f32.mrf.mxu1 }
0x1f18   : > { %v5901_v54 = vadd.f32 %v8063_v27, %v5900_v22 }
0x1f19   : > { %v9171_v13 = vpop.f32.mrf.mxu1 }
0x1f1a   : > { %v5924_v57 = vpack.c.bf16 %v5901_v54, %v5898_v42 }
0x1f1b   : > { %v5905_v61 = vpop.f32.mrf.mxu1 }
0x1f1c   : > { %v5906_v49 = vadd.f32 %v8063_v27, %v5905_v61 }
0x1f1d   : > { %v9174_v40 = vpop.f32.mrf.mxu1 }
0x1f1e   : > { %v5925_v15 = vpack.c.bf16 %v5906_v49, %v5906_v49 }
0x1f1f   : > { %v5908_v35 = vpop.f32.mrf.mxu1 }
0x1f20   : > { %v6025_v63 = vsel %vm1353_vm4, %v5925_v15, 0  ;;  %v5909_v52 = vadd.f32 %v8063_v27, %v5908_v35  ;;  %9414 = vmatprep.subr.msk.bf16.mxu0 %vm1353_vm4, %v5925_v15 }
0x1f21   : > { %v9175_v30 = vpop.f32.mrf.mxu1  ;;  %9189 = vmatpush3.bf16.msra.mxu0 %v6025_v63 }
0x1f22   : > { %9190 = vmatprep.subr.bf16.mxu0 %v5924_v57 }
0x1f23   : > { %v5913_v12 = vpop.f32.mrf.mxu1 }
0x1f24   : > { %v5914_v45 = vadd.f32 %v8063_v27, %v5913_v12 }
0x1f25   : > { %v9178_v60 = vpop.f32.mrf.mxu1  ;;  %9191 = vmatpush3.bf16.msra.mxu0 %v5924_v57 }
0x1f26   : > { %v11392_v0 = vpack.c.bf16 %v5914_v45, %v5909_v52  ;;  %9415 = vmatprep.subr.msk.bf16.mxu0 %vm1353_vm4, %v8073_v56 }
0x1f27   : > { %v5916_v19 = vpop.f32.mrf.mxu1 }
0x1f28   : > { %v5917_v51 = vadd.f32 %v8063_v27, %v5916_v19 }
0x1f29   : > { %v9179_v59 = vpop.f32.mrf.mxu1 }
0x1f2a   : > { %v6147_v12 = vpack.c.bf16 %v5917_v51, %v5917_v51 }
0x1fc8   : > { %v9186_v11 = vpop.f32.mrf.mxu0 }
0x1fc9   : > { %v5981_v38 = vadd.f32 %v9186_v11, %v10202_v37 }
0x1fca   : > { %v5972_v5 = vpop.f32.mrf.mxu0 }
0x1fcb   : > { %v5973_v36 = vadd.f32 %v5972_v5, %v10202_v37  ;;  %v5992_v28 = vsel %vm1314_vm6, %v5981_v38, -inf }
0x1fcc   : > { %v9187_v41 = vpop.f32.mrf.mxu0 }
0x1fcd   : > { %v5986_v20 = vsel %vm1314_vm6, %v5973_v36, -inf }
0x1fce   : > { %v5975_v10 = vpop.f32.mrf.mxu0  ;;  %5987 = vmax.xlane.f32.xlu0 %v5986_v20 }
0x1fcf   : > { %v5976_v29 = vadd.f32 %v5975_v10, %v10202_v37 }
0x1fd1   : > { %v5989_v18 = vsel %vm1314_vm6, %v5976_v29, -inf }
0x1fd2   : > { %5990 = vmax.xlane.f32.xlu1 %v5989_v18  ;;  %5993 = vmax.xlane.f32.xlu0 %v5992_v28 }
0x1fd4   : > { %v9208_v16 = vpop.f32.mrf.mxu1 }
0x1fd5   : > { %v6203_v45 = vadd.f32 %v9208_v16, %v10202_v37 }
0x1fd6   : > { %v6194_v33 = vpop.f32.mrf.mxu1 }
0x1fd7   : > { %v6195_v15 = vadd.f32 %v6194_v33, %v10202_v37  ;;  %v6214_v59 = vsel %vm1314_vm6, %v6203_v45, -inf }
0x1fd8   : > { %v9209_v44 = vpop.f32.mrf.mxu1 }
0x1fd9   : > { %v6208_v60 = vsel %vm1314_vm6, %v6195_v15, -inf }
0x1fda   : > { %v6197_v49 = vpop.f32.mrf.mxu1 }
0x1fdb   : > { %v6198_v63 = vadd.f32 %v6197_v49, %v10202_v37 }
0x1fdd   : > { %v6211_v19 = vsel %vm1314_vm6, %v6198_v63, -inf }
0x2057   : > { %v5988_v17 = vpop.xlane.xlu0 %5987 }
0x2058   : > { %v5995_v21 = vsub.f32 %v5973_v36, %v5988_v17 }
0x205a   : > { %v5998_v46 = vmul.f32 1.442695, %v5995_v21 }
0x205b   : > { %v5991_v55 = vpop.xlane.xlu1 %5990  ;;  %v5994_v32 = vpop.xlane.xlu0 %5993 }
0x205c   : > { %9706 = vpow2.f32 %v5998_v46  ;;  %v5996_v50 = vsub.f32 %v5976_v29, %v5991_v55  ;;  %v5997_v22 = vsub.f32 %v5981_v38, %v5994_v32 }
0x205e   : > { %v6000_v13 = vmul.f32 1.442695, %v5996_v50  ;;  %v6002_v27 = vmul.f32 1.442695, %v5997_v22 }
0x2060   : > { %9708 = vpow2.f32 %v6000_v13 }
0x2061   : > { %9710 = vpow2.f32 %v6002_v27 }
0x2069   : > { %v9707_v61 = vpop.eup %9706 }
0x206a   : > { %v6004_v54 = vsel %vm1314_vm6, %v9707_v61, 0.0 }
0x206b   : > { %6005 = vadd.xlane.f32.xlu1 %v6004_v54 }
0x206d   : > { %v9709_v40 = vpop.eup %9708 }
0x206e   : > { %v9711_v42 = vpop.eup %9710  ;;  %v6007_v35 = vsel %vm1314_vm6, %v9709_v40, 0.0  ;;  %v6016_v57 = vpack.c.bf16 %v9709_v40, %v9707_v61 }
0x206f   : > { %v6017_v52 = vpack.c.bf16 %v9711_v42, %v9711_v42  ;;  %6008 = vadd.xlane.f32.xlu0 %v6007_v35  ;;  %v6010_v30 = vsel %vm1314_vm6, %v9711_v42, 0.0  ;;  %v6247_v35 = vsel %vm1353_vm4, %v6147_v12, 0 }
0x2070   : > { %6011 = vadd.xlane.f32.xlu1 %v6010_v30  ;;  %9192 = vmatprep.mubr.msk.bf16.mxu0 %vm1314_vm6, %v6016_v57  ;;  %v9490_v57 = vld [vmem:[%s11847_s1 + $0x78] sm:$0xff]   ;;  %v9493_v30 = vld [vmem:[%s11848_s4 + $0x70] sm:$0xff]  }
0x2071   : > { %9193 = vmatmul.mubr.msk.bf16.vlgmr.msra.gmra.mxu0 %vm1314_vm6, %v6017_v52  ;;  %v9491_v52 = vld [vmem:[%s11847_s1 + $0x70] sm:$0xff]  }
0x2072   : > { %9197 = vmatpush3.bf16.msra.mxu0 %v6089_v7 }
0x2073   : > { %9418 = vmatprep.subr.msk.bf16.mxu0 %vm1353_vm4, %v6147_v12  ;;  %6209 = vmax.xlane.f32.xlu0 %v6208_v60 }
0x2074   : > { %6212 = vmax.xlane.f32.xlu1 %v6211_v19 }
0x2077   : > { %6215 = vmax.xlane.f32.xlu0 %v6214_v59 }
0x20f4   : > { %v6006_v11 = vpop.xlane.xlu1 %6005 }
0x20f8   : > { %v6009_v5 = vpop.xlane.xlu0 %6008 }
0x20f9   : > { %v6012_v36 = vpop.xlane.xlu1 %6011 }
0x20fc   : > { %v6210_v51 = vpop.xlane.xlu0 %6209 }
0x20fd   : > { %v6213_v41 = vpop.xlane.xlu1 %6212  ;;  %v6217_v38 = vsub.f32 %v6195_v15, %v6210_v51  ;;  %v5396_v51 = vadd.f32 %v11314_v14, %v11269_v26 }
0x20fe   : > { %v6218_v20 = vsub.f32 %v6198_v63, %v6213_v41 }
0x20ff   : > { %v6220_v10 = vmul.f32 1.442695, %v6217_v38 }
0x2100   : > { %v6222_v29 = vmul.f32 1.442695, %v6218_v20  ;;  %v6216_v18 = vpop.xlane.xlu0 %6215 }
0x2101   : > { %9712 = vpow2.f32 %v6220_v10  ;;  %v6219_v28 = vsub.f32 %v6203_v45, %v6216_v18 }
0x2102   : > { %9714 = vpow2.f32 %v6222_v29 }
0x2103   : > { %v6224_v16 = vmul.f32 1.442695, %v6219_v28 }
0x2105   : > { %9716 = vpow2.f32 %v6224_v16 }
0x2106   : > { %9718 = vrcp.f32 %v6006_v11 }
0x2107   : > { %9720 = vrcp.f32 %v6012_v36 }
0x2108   : > { %9722 = vrcp.f32 %v6009_v5 }
0x210e   : > { %v9713_v33 = vpop.eup %9712 }
0x210f   : > { %v9715_v44 = vpop.eup %9714  ;;  %v6226_v56 = vsel %vm1314_vm6, %v9713_v33, 0.0 }
0x2110   : > { %v6229_v7 = vsel %vm1314_vm6, %v9715_v44, 0.0  ;;  %6227 = vadd.xlane.f32.xlu1 %v6226_v56  ;;  %v6238_v15 = vpack.c.bf16 %v9715_v44, %v9713_v33 }
0x2111   : > { %6230 = vadd.xlane.f32.xlu0 %v6229_v7 }
0x2112   : > { %v9717_v17 = vpop.eup %9716 }
0x2113   : > { %v6232_v21 = vsel %vm1314_vm6, %v9717_v17, 0.0  ;;  %v9719_v32 = vpop.eup %9718  ;;  %v6239_v63 = vpack.c.bf16 %v9717_v17, %v9717_v17  ;;  %v9494_v17 = vld [vmem:[%s11851_s0 + $0x78] sm:$0xff]  }
0x2114   : > { %6233 = vadd.xlane.f32.xlu1 %v6232_v21  ;;  %v9721_v22 = vpop.eup %9720 }
0x2115   : > { %v9723_v13 = vpop.eup %9722 }
0x2131   : > { %v9194_v46 = vpop.f32.mrf.mxu0 }
0x2132   : > { %v6077_v27 = vmul.f32 %v9721_v22, %v9194_v46  ;;  %v9495_v46 = vld [vmem:[%s11851_s0 + $0x70] sm:$0xff]  }
0x2133   : > { %v6061_v55 = vpop.f32.mrf.mxu0 }
0x2134   : > { %v6075_v54 = vmul.f32 %v9719_v32, %v6061_v55  ;;  %v6079_v42 = vpack.c.bf16 %v6077_v27, %v6077_v27  ;;  %v8087_v32 = vld [vmem:[%s11852_s9 + $0x7] ss:$0 sm:$0xff] }
0x2135   : > { %v9195_v50 = vpop.f32.mrf.mxu0 }
0x2137   : > { %v6064_v61 = vpop.f32.mrf.mxu0 }
0x2138   : > { %v6076_v49 = vmul.f32 %v9723_v13, %v6064_v61 }
0x213a   : > { %v6078_v40 = vpack.c.bf16 %v6076_v49, %v6075_v54 }
0x213c   : > { %9198 = vmatprep.mubr.msk.bf16.mxu0 %vm1253_vm3, %v6078_v40 }
0x213d   : > { %9199 = vmatmul.mubr.msk.bf16.vlgmr.msra.gmra.mxu0 %vm1253_vm3, %v6079_v42 }
0x213e   : > { %9211 = vmatpush3.bf16.msra.mxu0 %v6247_v35  ;;  %9214 = vmatprep.mubr.msk.bf16.mxu0 %vm1314_vm6, %v6238_v15 }
0x213f   : > { %9212 = vmatprep.subr.bf16.mxu0 %v11392_v0 }
0x2142   : > { %9213 = vmatpush3.bf16.msra.mxu0 %v11392_v0  ;;  %v9492_v0 = vld [vmem:[%s11848_s4 + $0x78] sm:$0xff]  }
0x2143   : > { %9224 = vmatprep.subr.bf16.mxu0 %v9810_v1 }
0x2145   : > { %9215 = vmatmul.mubr.msk.bf16.vlgmr.msra.gmra.mxu0 %vm1314_vm6, %v6239_v63 }
0x2146   : > { %9225 = vmatpush3.bf16.msra.mxu0 %v9490_v57  ;;  %9228 = vmatprep.mubr.msk.bf16.mxu0 %vm9811_vm0, %v9810_v1 }
0x2147   : > { %9226 = vmatprep.subr.bf16.mxu0 %v9810_v1 }
0x214a   : > { %9227 = vmatpush3.bf16.msra.mxu0 %v9491_v52 }
0x214b   : > { %9256 = vmatprep.subr.bf16.mxu0 %v9810_v1 }
0x214d   : > { %9229 = vmatmul.mubr.msk.bf16.vlgmr.msra.gmra.mxu0 %vm891_vm2, %v10965_v23 }
0x214e   : > { %9232 = vmatprep.mubr.msk.bf16.mxu0 %vm9811_vm0, %v9810_v1  ;;  %9257 = vmatpush3.bf16.msra.mxu0 %v9492_v0 }
0x214f   : > { %9258 = vmatprep.subr.bf16.mxu0 %v9810_v1 }
0x2152   : > { %9259 = vmatpush3.bf16.msra.mxu0 %v9493_v30  ;;  %v8109_v30 = vld [vmem:[%s11805_s10 + $0x7] ss:$0 sm:$0xff] }
0x2155   : > { %9233 = vmatmul.mubr.msk.bf16.gmra.mxu0 %vm891_vm2, %v10985_v47 }
0x2156   : > { %9236 = vmatprep.mubr.msk.bf16.mxu0 %vm9811_vm0, %v9810_v1 }
0x215d   : > { %9237 = vmatmul.mubr.msk.bf16.gmra.mxu0 %vm891_vm2, %v10995_v6 }
0x215e   : > { %9260 = vmatprep.mubr.msk.bf16.mxu0 %vm9811_vm0, %v9810_v1 }
0x2165   : > { %9261 = vmatmul.mubr.msk.bf16.vlgmr.msra.gmra.mxu0 %vm891_vm2, %v10965_v23 }
0x2166   : > { %9264 = vmatprep.mubr.msk.bf16.mxu0 %vm9811_vm0, %v9810_v1 }
0x216d   : > { %9265 = vmatmul.mubr.msk.bf16.gmra.mxu0 %vm891_vm2, %v10985_v47 }
0x216e   : > { %9268 = vmatprep.mubr.msk.bf16.mxu0 %vm9811_vm0, %v9810_v1 }
0x2175   : > { %9269 = vmatmul.mubr.msk.bf16.gmra.mxu0 %vm891_vm2, %v10995_v6 }
0x2199   : > { %v6228_v12 = vpop.xlane.xlu1 %6227 }
0x219a   : > { %v6231_v60 = vpop.xlane.xlu0 %6230  ;;  %9724 = vrcp.f32 %v6228_v12 }
0x219d   : > { %v6234_v45 = vpop.xlane.xlu1 %6233 }
0x219e   : > { %9726 = vrcp.f32 %v6234_v45 }
0x219f   : > { %9728 = vrcp.f32 %v6231_v60 }
0x21a7   : > { %v9725_v29 = vpop.eup %9724 }
0x21ab   : > { %v9727_v28 = vpop.eup %9726 }
0x21ac   : > { %v9729_v16 = vpop.eup %9728 }
0x21fd   : > { %v9200_v19 = vpop.f32.mrf.mxu0 }
0x21fe   : > { %v11470_v59 = vadd.f32 %v9200_v19, %v11265_v9 }
0x21ff   : > { %v6125_v11 = vpop.f32.mrf.mxu0 }
0x2200   : > { %v11473_v5 = vadd.f32 %v6125_v11, %v11267_v53 }
0x2201   : > { %v9201_v36 = vpop.f32.mrf.mxu0 }
0x2203   : > { %v6128_v41 = vpop.f32.mrf.mxu0 }
0x2204   : > { %v11477_v38 = vadd.f32 %v6128_v41, %v5396_v51 }
0x2205   : > { %v9216_v20 = vpop.f32.mrf.mxu0 }
0x2206   : > { %v6299_v33 = vmul.f32 %v9727_v28, %v9216_v20 }
0x2207   : > { %v6283_v10 = vpop.f32.mrf.mxu0 }
0x2208   : > { %v6297_v44 = vmul.f32 %v9725_v29, %v6283_v10  ;;  %v6301_v26 = vpack.c.bf16 %v6299_v33, %v6299_v33 }
0x2209   : > { %v9217_v18 = vpop.f32.mrf.mxu0 }
0x220b   : > { %v6286_v9 = vpop.f32.mrf.mxu0 }
0x220c   : > { %v6298_v56 = vmul.f32 %v9729_v16, %v6286_v9 }
0x220d   : > { %v6418_v7 = vpop.f32.mrf.mxu0 }
0x220e   : > { %v6300_v53 = vpack.c.bf16 %v6298_v56, %v6297_v44  ;;  %v6419_v0 = vadd.f32 %v8087_v32, %v6418_v7  ;;  %v5669_v56 = vadd.f32 %v11316_v4, %v11374_v34 }
0x220f   : > { %v9230_v14 = vpop.f32.mrf.mxu0 }
0x2210   : > { %9220 = vmatprep.mubr.msk.bf16.mxu1 %vm1253_vm3, %v6300_v53  ;;  %v5661_v53 = vadd.f32 %v11318_v2, %v11376_v58  ;;  %v8098_v2 = vld [vmem:[%s11853_s27 + $0x7] ss:$0 sm:$0xff] }
0x2211   : > { %9221 = vmatmul.mubr.msk.bf16.vlgmr.msra.gmra.mxu1 %vm1253_vm3, %v6301_v26  ;;  %v6421_v21 = vpop.f32.mrf.mxu0 }
0x2212   : > { %9241 = vmatpush3.bf16.msra.mxu1 %v9494_v17  ;;  %9244 = vmatprep.mubr.msk.bf16.mxu1 %vm9811_vm0, %v9810_v1  ;;  %v6422_v63 = vadd.f32 %v8087_v32, %v6421_v21 }
0x2213   : > { %v9231_v55 = vpop.f32.mrf.mxu0  ;;  %9242 = vmatprep.subr.bf16.mxu1 %v9810_v1 }
0x2214   : > { %v6605_v45 = vpack.c.bf16 %v6422_v63, %v6419_v0 }
0x2215   : > { %v6426_v50 = vpop.f32.mrf.mxu0 }
0x2216   : > { %v11493_v22 = vadd.f32 %v8087_v32, %v6426_v50  ;;  %9243 = vmatpush3.bf16.msra.mxu1 %v9495_v46  ;;  %v5664_v46 = vadd.f32 %v11324_v31, %v11378_v3 }
0x2217   : > { %v9234_v13 = vpop.f32.mrf.mxu0 }
0x2219   : > { %v6429_v27 = vpop.f32.mrf.mxu0  ;;  %9245 = vmatmul.mubr.msk.bf16.vlgmr.msra.gmra.mxu1 %vm891_vm2, %v10965_v23 }
0x221a   : > { %9248 = vmatprep.mubr.msk.bf16.mxu1 %vm9811_vm0, %v9810_v1  ;;  %v6430_v49 = vadd.f32 %v8087_v32, %v6429_v27 }
0x221b   : > { %v9235_v61 = vpop.f32.mrf.mxu0 }
0x221d   : > { %v6434_v54 = vpop.f32.mrf.mxu0 }
0x221e   : > { %v6435_v40 = vadd.f32 %v8087_v32, %v6434_v54 }
0x221f   : > { %v9238_v42 = vpop.f32.mrf.mxu0 }
0x2220   : > { %v6827_v15 = vpack.c.bf16 %v6435_v40, %v6430_v49 }
0x2221   : > { %v6437_v35 = vpop.f32.mrf.mxu0  ;;  %9249 = vmatmul.mubr.msk.bf16.gmra.mxu1 %vm891_vm2, %v10985_v47 }
0x2222   : > { %v11501_v57 = vadd.f32 %v8087_v32, %v6437_v35  ;;  %9298 = vmatprep.mubr.msk.bf16.mxu0 %vm1253_vm3, %v6827_v15  ;;  %9252 = vmatprep.mubr.msk.bf16.mxu1 %vm9811_vm0, %v9810_v1 }
0x2223   : > { %v9239_v23 = vpop.f32.mrf.mxu0 }
0x2225   : > { %v6582_v52 = vpop.f32.mrf.mxu0 }
0x2226   : > { %v6583_v60 = vadd.f32 %v8109_v30, %v6582_v52 }
0x2227   : > { %v9262_v12 = vpop.f32.mrf.mxu0 }
0x2229   : > { %9253 = vmatmul.mubr.msk.bf16.gmra.mxu1 %vm891_vm2, %v10995_v6  ;;  %v6585_v47 = vpop.f32.mrf.mxu0 }
0x222a   : > { %v6586_v19 = vadd.f32 %v8109_v30, %v6585_v47  ;;  %9276 = vmatprep.mubr.msk.bf16.mxu1 %vm1253_vm3, %v6605_v45 }
0x222b   : > { %v9263_v11 = vpop.f32.mrf.mxu0 }
0x222c   : > { %v11512_v36 = vpack.c.bf16 %v6586_v19, %v6583_v60 }
0x222d   : > { %v6590_v51 = vpop.f32.mrf.mxu0 }
0x222e   : > { %v6591_v23 = vadd.f32 %v8109_v30, %v6590_v51 }
0x222f   : > { %v9266_v41 = vpop.f32.mrf.mxu0 }
0x2230   : > { %v6610_v0 = vpack.c.bf16 %v6591_v23, %v6591_v23 }
0x2231   : > { %v6593_v20 = vpop.f32.mrf.mxu0 }
0x2232   : > { %v6594_v10 = vadd.f32 %v8109_v30, %v6593_v20  ;;  %v6710_v51 = vsel %vm1353_vm4, %v6610_v0, 0 }
0x2233   : > { %v9267_v29 = vpop.f32.mrf.mxu0 }
0x2234   : > { %v6828_v29 = vpack.c.bf16 %v11501_v57, %v11501_v57 }
0x2235   : > { %v6598_v18 = vpop.f32.mrf.mxu0 }
0x2236   : > { %v6599_v28 = vadd.f32 %v8109_v30, %v6598_v18 }
0x2237   : > { %v9270_v16 = vpop.f32.mrf.mxu0 }
0x2238   : > { %v11514_v33 = vpack.c.bf16 %v6599_v28, %v6594_v10 }
0x2239   : > { %v6601_v9 = vpop.f32.mrf.mxu0 }
0x223a   : > { %v11516_v6 = vadd.f32 %v8109_v30, %v6601_v9  ;;  %v6606_v30 = vpack.c.bf16 %v11493_v22, %v11493_v22 }
0x223b   : > { %v9271_v44 = vpop.f32.mrf.mxu0 }
0x22d1   : > { %v9222_v7 = vpop.f32.mrf.mxu1 }
0x22d2   : > { %v11522_v17 = vadd.f32 %v9222_v7, %v5669_v56 }
0x22d3   : > { %v6342_v26 = vpop.f32.mrf.mxu1 }
0x22d4   : > { %v11524_v14 = vadd.f32 %v6342_v26, %v5661_v53 }
0x22d5   : > { %v9223_v21 = vpop.f32.mrf.mxu1 }
0x22d7   : > { %v6345_v55 = vpop.f32.mrf.mxu1 }
0x22d8   : > { %v11528_v32 = vadd.f32 %v6345_v55, %v5664_v46  ;;  %v8119_v46 = vld [vmem:[%s11806_s11 + $0x1c] sm:$0xf] }
0x22d9   : > { %v6500_v50 = vpop.f32.mrf.mxu1  ;;  %v6774_v55 = vsel %vm1353_vm4, %v8119_v46, 0 }
0x22da   : > { %v6501_v49 = vadd.f32 %v8098_v2, %v6500_v50 }
0x22db   : > { %v9246_v13 = vpop.f32.mrf.mxu1 }
0x22dd   : > { %v6503_v27 = vpop.f32.mrf.mxu1 }
0x22de   : > { %v6504_v58 = vadd.f32 %v8098_v2, %v6503_v27 }
0x22df   : > { %v9247_v4 = vpop.f32.mrf.mxu1 }
0x22e0   : > { %v6607_v15 = vpack.c.bf16 %v6504_v58, %v6501_v49 }
0x22e1   : > { %v6508_v34 = vpop.f32.mrf.mxu1 }
0x22e2   : > { %v6509_v61 = vadd.f32 %v8098_v2, %v6508_v34  ;;  %v6618_v47 = vsel %vm1253_vm3, %v6607_v15, 0 }
0x22e3   : > { %v9250_v54 = vpop.f32.mrf.mxu1 }
0x22e4   : > { %v6608_v40 = vpack.c.bf16 %v6509_v61, %v6509_v61 }
0x22e5   : > { %v6511_v42 = vpop.f32.mrf.mxu1 }
0x22e6   : > { %v6621_v31 = vsel %vm1253_vm3, %v6608_v40, 0  ;;  %9420 = vmatprep.subr.msk.bf16.mxu1 %vm1253_vm3, %v6608_v40  ;;  %v6512_v19 = vadd.f32 %v8098_v2, %v6511_v42 }
0x22e7   : > { %v9251_v3 = vpop.f32.mrf.mxu1  ;;  %9273 = vmatpush3.bf16.xpose.msra.mxu1 %v6621_v31 }
0x22e8   : > { %9421 = vmatprep.subr.msk.bf16.mxu1 %vm1253_vm3, %v6607_v15 }
0x22e9   : > { %v6516_v35 = vpop.f32.mrf.mxu1 }
0x22ea   : > { %v6517_v12 = vadd.f32 %v8098_v2, %v6516_v35 }
0x22eb   : > { %v9254_v63 = vpop.f32.mrf.mxu1 }
0x22ec   : > { %v6829_v41 = vpack.c.bf16 %v6517_v12, %v6512_v19  ;;  %v6832_v12 = vpack.c.bf16 %v11516_v6, %v11516_v6 }
0x22ed   : > { %v6519_v52 = vpop.f32.mrf.mxu1 }
0x22ee   : > { %v6520_v45 = vadd.f32 %v8098_v2, %v6519_v52  ;;  %v6840_v10 = vsel %vm1253_vm3, %v6829_v41, 0 }
0x22ef   : > { %v9255_v60 = vpop.f32.mrf.mxu1  ;;  %9275 = vmatpush3.bf16.xpose.msra.mxu1 %v6618_v47 }
0x22f0   : > { %v6830_v11 = vpack.c.bf16 %v6520_v45, %v6520_v45  ;;  %9422 = vmatprep.subr.msk.bf16.mxu1 %vm1353_vm4, %v6610_v0 }
0x22f2   : > { %v6843_v20 = vsel %vm1253_vm3, %v6830_v11, 0  ;;  %9424 = vmatprep.subr.msk.bf16.mxu0 %vm1253_vm3, %v6830_v11 }
0x22f3   : > { %9295 = vmatpush3.bf16.xpose.msra.mxu0 %v6843_v20 }
0x22f4   : > { %9425 = vmatprep.subr.msk.bf16.mxu0 %vm1253_vm3, %v6829_v41 }
0x22f6   : > { %9277 = vmatmul.mubr.msk.bf16.vlgmr.msra.gmra.mxu1 %vm1253_vm3, %v6606_v30 }
0x22f7   : > { %9281 = vmatpush3.bf16.msra.mxu1 %v6710_v51 }
0x22f8   : > { %9282 = vmatprep.subr.bf16.mxu1 %v11512_v36 }
0x22fb   : > { %9283 = vmatpush3.bf16.msra.mxu1 %v11512_v36  ;;  %9297 = vmatpush3.bf16.xpose.msra.mxu0 %v6840_v10 }
0x22fc   : > { %9423 = vmatprep.subr.msk.bf16.mxu1 %vm1353_vm4, %v8119_v46  ;;  %9427 = vmatprep.subr.msk.bf16.mxu0 %vm1353_vm4, %v8119_v46 }
0x2302   : > { %9299 = vmatmul.mubr.msk.bf16.vlgmr.msra.gmra.mxu0 %vm1253_vm3, %v6828_v29 }
0x2303   : > { %9311 = vmatpush3.bf16.msra.mxu0 %v6774_v55 }
0x2304   : > { %9332 = vmatprep.subr.bf16.mxu0 %v9810_v1 }
0x23b6   : > { %v9278_v22 = vpop.f32.mrf.mxu1 }
0x23b7   : > { %v6666_v9 = vadd.f32 %v9278_v22, %v10202_v37 }
0x23b8   : > { %v6657_v18 = vpop.f32.mrf.mxu1 }
0x23b9   : > { %v6658_v28 = vadd.f32 %v6657_v18, %v10202_v37  ;;  %v6677_v53 = vsel %vm1314_vm6, %v6666_v9, -inf }
0x23ba   : > { %v9279_v16 = vpop.f32.mrf.mxu1 }
0x23bb   : > { %v6671_v44 = vsel %vm1314_vm6, %v6658_v28, -inf }
0x23bc   : > { %v6660_v56 = vpop.f32.mrf.mxu1  ;;  %6672 = vmax.xlane.f32.xlu0 %v6671_v44 }
0x23bd   : > { %v6661_v7 = vadd.f32 %v6660_v56, %v10202_v37 }
0x23bf   : > { %v6674_v36 = vsel %vm1314_vm6, %v6661_v7, -inf }
0x23c0   : > { %6675 = vmax.xlane.f32.xlu1 %v6674_v36  ;;  %6678 = vmax.xlane.f32.xlu0 %v6677_v53 }
0x23c2   : > { %v9300_v57 = vpop.f32.mrf.mxu0 }
0x23c3   : > { %v6888_v45 = vadd.f32 %v9300_v57, %v10202_v37 }
0x23c4   : > { %v6879_v26 = vpop.f32.mrf.mxu0 }
0x23c5   : > { %v6880_v3 = vadd.f32 %v6879_v26, %v10202_v37  ;;  %v6899_v19 = vsel %vm1314_vm6, %v6888_v45, -inf }
0x23c6   : > { %v9301_v21 = vpop.f32.mrf.mxu0 }
0x23c7   : > { %v6893_v47 = vsel %vm1314_vm6, %v6880_v3, -inf }
0x23c8   : > { %v6882_v42 = vpop.f32.mrf.mxu0 }
0x23c9   : > { %v6883_v63 = vadd.f32 %v6882_v42, %v10202_v37 }
0x23cb   : > { %v6896_v60 = vsel %vm1314_vm6, %v6883_v63, -inf }
0x2445   : > { %v6673_v50 = vpop.xlane.xlu0 %6672 }
0x2446   : > { %v6680_v13 = vsub.f32 %v6658_v28, %v6673_v50 }
0x2448   : > { %v6683_v27 = vmul.f32 1.442695, %v6680_v13 }
0x2449   : > { %v6676_v4 = vpop.xlane.xlu1 %6675  ;;  %v6679_v2 = vpop.xlane.xlu0 %6678 }
0x244a   : > { %9730 = vpow2.f32 %v6683_v27  ;;  %v6681_v34 = vsub.f32 %v6661_v7, %v6676_v4  ;;  %v6682_v58 = vsub.f32 %v6666_v9, %v6679_v2 }
0x244c   : > { %v6685_v61 = vmul.f32 1.442695, %v6681_v34  ;;  %v6687_v54 = vmul.f32 1.442695, %v6682_v58 }
0x244e   : > { %9732 = vpow2.f32 %v6685_v61  ;;  %v6932_v61 = vsel %vm1353_vm4, %v6832_v12, 0 }
0x244f   : > { %9734 = vpow2.f32 %v6687_v54 }
0x2457   : > { %v9731_v49 = vpop.eup %9730 }
0x2458   : > { %v6689_v40 = vsel %vm1314_vm6, %v9731_v49, 0.0 }
0x2459   : > { %6690 = vadd.xlane.f32.xlu1 %v6689_v40 }
0x245b   : > { %v9733_v15 = vpop.eup %9732 }
0x245c   : > { %v9735_v31 = vpop.eup %9734  ;;  %v6692_v35 = vsel %vm1314_vm6, %v9733_v15, 0.0  ;;  %v6701_v23 = vpack.c.bf16 %v9733_v15, %v9731_v49 }
0x245d   : > { %v6702_v52 = vpack.c.bf16 %v9735_v31, %v9735_v31  ;;  %6693 = vadd.xlane.f32.xlu0 %v6692_v35  ;;  %v6695_v0 = vsel %vm1314_vm6, %v9735_v31, 0.0  ;;  %v8129_v31 = vld [vmem:[%s11807_s12 + $0x1] ss:$0 sm:$0xff] }
0x245e   : > { %6696 = vadd.xlane.f32.xlu1 %v6695_v0  ;;  %9284 = vmatprep.mubr.msk.bf16.mxu1 %vm1314_vm6, %v6701_v23 }
0x245f   : > { %9285 = vmatmul.mubr.msk.bf16.vlgmr.msra.gmra.mxu1 %vm1314_vm6, %v6702_v52 }
0x2460   : > { %9289 = vmatpush3.bf16.msra.mxu1 %v6774_v55 }
0x2461   : > { %9426 = vmatprep.subr.msk.bf16.mxu1 %vm1353_vm4, %v6832_v12  ;;  %6894 = vmax.xlane.f32.xlu0 %v6893_v47 }
0x2462   : > { %6897 = vmax.xlane.f32.xlu1 %v6896_v60 }
0x2465   : > { %6900 = vmax.xlane.f32.xlu0 %v6899_v19 }
0x24e2   : > { %v6691_v11 = vpop.xlane.xlu1 %6690 }
0x24e6   : > { %v6694_v41 = vpop.xlane.xlu0 %6693 }
0x24e7   : > { %v6697_v20 = vpop.xlane.xlu1 %6696 }
0x24ea   : > { %v6895_v6 = vpop.xlane.xlu0 %6894 }
0x24eb   : > { %v6898_v30 = vpop.xlane.xlu1 %6897  ;;  %v6902_v51 = vsub.f32 %v6880_v3, %v6895_v6 }
0x24ec   : > { %v6903_v10 = vsub.f32 %v6883_v63, %v6898_v30  ;;  %v8131_v63 = vld [vmem:[%s11808_s13 + $0x1] ss:$0 sm:$0xff] }
0x24ed   : > { %v6905_v37 = vmul.f32 1.442695, %v6902_v51 }
0x24ee   : > { %v6907_v29 = vmul.f32 1.442695, %v6903_v10  ;;  %v6901_v22 = vpop.xlane.xlu0 %6900 }
0x24ef   : > { %9736 = vpow2.f32 %v6905_v37  ;;  %v6904_v18 = vsub.f32 %v6888_v45, %v6901_v22 }
0x24f0   : > { %9738 = vpow2.f32 %v6907_v29 }
0x24f1   : > { %v6909_v28 = vmul.f32 1.442695, %v6904_v18 }
0x24f3   : > { %9740 = vpow2.f32 %v6909_v28 }
0x24f4   : > { %9742 = vrcp.f32 %v6691_v11 }
0x24f5   : > { %9744 = vrcp.f32 %v6697_v20 }
0x24f6   : > { %9746 = vrcp.f32 %v6694_v41 }
0x24fc   : > { %v9737_v16 = vpop.eup %9736 }
0x24fd   : > { %v9739_v9 = vpop.eup %9738  ;;  %v6911_v44 = vsel %vm1314_vm6, %v9737_v16, 0.0 }
0x24fe   : > { %v6914_v56 = vsel %vm1314_vm6, %v9739_v9, 0.0  ;;  %6912 = vadd.xlane.f32.xlu1 %v6911_v44  ;;  %v6923_v58 = vpack.c.bf16 %v9739_v9, %v9737_v16 }
0x24ff   : > { %6915 = vadd.xlane.f32.xlu0 %v6914_v56 }
0x2500   : > { %v9741_v7 = vpop.eup %9740 }
0x2501   : > { %v6917_v36 = vsel %vm1314_vm6, %v9741_v7, 0.0  ;;  %v9743_v26 = vpop.eup %9742  ;;  %v6924_v54 = vpack.c.bf16 %v9741_v7, %v9741_v7 }
0x2502   : > { %6918 = vadd.xlane.f32.xlu1 %v6917_v36  ;;  %v9745_v46 = vpop.eup %9744 }
0x2503   : > { %v9747_v55 = vpop.eup %9746 }
0x251f   : > { %v9286_v53 = vpop.f32.mrf.mxu1 }
0x2520   : > { %v6762_v50 = vmul.f32 %v9745_v46, %v9286_v53 }
0x2521   : > { %v6746_v57 = vpop.f32.mrf.mxu1 }
0x2522   : > { %v6760_v27 = vmul.f32 %v9743_v26, %v6746_v57  ;;  %v6764_v34 = vpack.c.bf16 %v6762_v50, %v6762_v50 }
0x2523   : > { %v9287_v21 = vpop.f32.mrf.mxu1 }
0x2525   : > { %v6749_v13 = vpop.f32.mrf.mxu1 }
0x2526   : > { %v6761_v4 = vmul.f32 %v9747_v55, %v6749_v13 }
0x2528   : > { %v6763_v2 = vpack.c.bf16 %v6761_v4, %v6760_v27 }
0x252a   : > { %9290 = vmatprep.mubr.msk.bf16.mxu1 %vm1253_vm3, %v6763_v2 }
0x252b   : > { %9291 = vmatmul.mubr.msk.bf16.vlgmr.msra.gmra.mxu1 %vm1253_vm3, %v6764_v34 }
0x252c   : > { %9303 = vmatpush3.bf16.msra.mxu1 %v6932_v61  ;;  %9306 = vmatprep.mubr.msk.bf16.mxu1 %vm1314_vm6, %v6923_v58 }
0x252d   : > { %9304 = vmatprep.subr.bf16.mxu1 %v11514_v33 }
0x2530   : > { %9305 = vmatpush3.bf16.msra.mxu1 %v11514_v33 }
0x2531   : > { %9316 = vmatprep.subr.bf16.mxu1 %v9810_v1 }
0x2533   : > { %9307 = vmatmul.mubr.msk.bf16.vlgmr.msra.gmra.mxu1 %vm1314_vm6, %v6924_v54 }
0x2534   : > { %9320 = vmatprep.mubr.msk.bf16.mxu1 %vm9811_vm0, %v9810_v1 }
0x2587   : > { %v6913_v49 = vpop.xlane.xlu1 %6912 }
0x2588   : > { %v6916_v42 = vpop.xlane.xlu0 %6915  ;;  %9748 = vrcp.f32 %v6913_v49 }
0x258b   : > { %v6919_v40 = vpop.xlane.xlu1 %6918 }
0x258c   : > { %9750 = vrcp.f32 %v6919_v40 }
0x258d   : > { %9752 = vrcp.f32 %v6916_v42 }
0x2595   : > { %v9749_v30 = vpop.eup %9748 }
0x2599   : > { %v9751_v10 = vpop.eup %9750 }
0x25eb   : > { %v9292_v15 = vpop.f32.mrf.mxu1 }
0x25ec   : > { %v6826_v33 = vadd.f32 %v9292_v15, %v11470_v59 }
0x25ed   : > { %v6810_v3 = vpop.f32.mrf.mxu1 }
0x25ee   : > { %v7054_v35 = vadd.f32 %v8129_v31, %v6826_v33  ;;  %v6824_v23 = vadd.f32 %v6810_v3, %v11473_v5 }
0x25ef   : > { %v9293_v52 = vpop.f32.mrf.mxu1 }
0x25f0   : > { %v7052_v0 = vadd.f32 %v8129_v31, %v6824_v23  ;;  %v7068_v45 = vmul.f32 %v8131_v63, %v7054_v35  ;;  %v9496_v23 = vld [vmem:[%s11811_s16 + $0x18] sm:$0xff]   ;;  %v9498_v52 = vld [vmem:[%s11811_s16 + $0x10] sm:$0xff]  }
0x25f1   : > { %v6813_v12 = vpop.f32.mrf.mxu1  ;;  %9317 = vmatpush3.bf16.msra.mxu1 %v9496_v23 }
0x25f2   : > { %v7066_v47 = vmul.f32 %v8131_v63, %v7052_v0  ;;  %v6825_v60 = vadd.f32 %v6813_v12, %v11477_v38  ;;  %v11606_v6 = vadd.f32 %v7068_v45, %v10896_v48  ;;  %v9753_v38 = vpop.eup %9752  ;;  %v9499_v0 = vld [vmem:[%s11813_s18 + $0x10] sm:$0xff]   ;;  %9318 = vmatprep.subr.bf16.mxu1 %v9810_v1 }
0x25f3   : > { %v9308_v19 = vpop.f32.mrf.mxu1 }
0x25f4   : > { %v7053_v11 = vadd.f32 %v8129_v31, %v6825_v60  ;;  %v11601_v41 = vadd.f32 %v7066_v47, %v10886_v24  ;;  %v6984_v29 = vmul.f32 %v9751_v10, %v9308_v19  ;;  %v7088_v28 = vsel %vm891_vm2, %v11606_v6, 0.0 }
0x25f5   : > { %v6968_v59 = vpop.f32.mrf.mxu1  ;;  %9319 = vmatpush3.bf16.msra.mxu1 %v9498_v52 }
0x25f6   : > { %v7067_v20 = vmul.f32 %v8131_v63, %v7053_v11  ;;  %v7082_v5 = vsel %vm891_vm2, %v11601_v41, 0.0  ;;  %v6982_v24 = vmul.f32 %v9749_v30, %v6968_v59  ;;  %v6986_v9 = vpack.c.bf16 %v6984_v29, %v6984_v29  ;;  %9348 = vmatprep.subr.bf16.mxu1 %v9810_v1 }
0x25f7   : > { %7083 = vadd.xlane.f32.xlu0 %v7082_v5  ;;  %v9309_v51 = vpop.f32.mrf.mxu1 }
0x25f8   : > { %v11609_v37 = vadd.f32 %v7067_v20, %v10891_v39 }
0x25f9   : > { %v6971_v22 = vpop.f32.mrf.mxu1 }
0x25fa   : > { %v6983_v18 = vmul.f32 %v9753_v38, %v6971_v22  ;;  %v7085_v16 = vsel %vm891_vm2, %v11609_v37, 0.0 }
0x25fb   : > { %7089 = vadd.xlane.f32.xlu0 %v7088_v28  ;;  %7086 = vadd.xlane.f32.xlu1 %v7085_v16 }
0x25fc   : > { %v6985_v48 = vpack.c.bf16 %v6983_v18, %v6982_v24 }
0x25fe   : > { %9312 = vmatprep.mubr.msk.bf16.mxu0 %vm1253_vm3, %v6985_v48 }
0x25ff   : > { %9313 = vmatmul.mubr.msk.bf16.vlgmr.msra.gmra.mxu0 %vm1253_vm3, %v6986_v9 }
0x2600   : > { %9336 = vmatprep.mubr.msk.bf16.mxu0 %vm9811_vm0, %v9810_v1 }
0x2680   : > { %v7084_v44 = vpop.xlane.xlu0 %7083 }
0x2681   : > { %v7100_v46 = vmul.f32 0.03125, %v7084_v44  ;;  %v8134_v44 = vld [vmem:[%s11809_s14 + $0x1] ss:$0 sm:$0xff] }
0x2684   : > { %v7087_v57 = vpop.xlane.xlu1 %7086  ;;  %v7090_v13 = vpop.xlane.xlu0 %7089 }
0x2685   : > { %v7101_v50 = vmul.f32 0.03125, %v7087_v57  ;;  %v7102_v61 = vmul.f32 0.03125, %v7090_v13 }
0x2687   : > { %v11640_v42 = vsub.f32 %v11606_v6, %v7102_v61 }
0x2689   : > { %v7114_v3 = vmul.f32 %v11640_v42, %v11640_v42 }
0x268b   : > { %v7124_v35 = vsel %vm891_vm2, %v7114_v3, 0.0 }
0x26bf   : > { %v9314_v39 = vpop.f32.mrf.mxu0 }
0x26c0   : > { %v7043_v56 = vadd.f32 %v9314_v39, %v11522_v17  ;;  %v11626_v17 = vsub.f32 %v11601_v41, %v7100_v46 }
0x26c1   : > { %v7027_v7 = vpop.f32.mrf.mxu0 }
0x26c2   : > { %v7057_v36 = vadd.f32 %v8129_v31, %v7043_v56  ;;  %v7041_v53 = vadd.f32 %v7027_v7, %v11524_v14  ;;  %v7107_v14 = vsub.f32 %v11609_v37, %v7101_v50 }
0x26c3   : > { %v9315_v26 = vpop.f32.mrf.mxu0 }
0x26c4   : > { %v7055_v21 = vadd.f32 %v8129_v31, %v7041_v53  ;;  %v7071_v27 = vmul.f32 %v8131_v63, %v7057_v36  ;;  %v7113_v33 = vmul.f32 %v7107_v14, %v7107_v14  ;;  %v8135_v53 = vld [vmem:[%s11810_s15 + $0x1] ss:$0 sm:$0xff] }
0x26c5   : > { %v7030_v55 = vpop.f32.mrf.mxu0 }
0x26c6   : > { %v7069_v4 = vmul.f32 %v8131_v63, %v7055_v21  ;;  %v7042_v2 = vadd.f32 %v7030_v55, %v11528_v32  ;;  %v11632_v40 = vadd.f32 %v7071_v27, %v10917_v25  ;;  %v7121_v25 = vsel %vm891_vm2, %v7113_v33, 0.0  ;;  %v9500_v27 = vld [vmem:[%s11815_s20 + $0x18] sm:$0xff]  }
0x26c8   : > { %v7056_v34 = vadd.f32 %v8129_v31, %v7042_v2  ;;  %v11623_v58 = vadd.f32 %v7069_v4, %v10901_v43  ;;  %v7112_v43 = vmul.f32 %v11626_v17, %v11626_v17  ;;  %v7097_v15 = vsel %vm891_vm2, %v11632_v40, 0.0  ;;  %v9501_v2 = vld [vmem:[%s11815_s20 + $0x10] sm:$0xff]  }
0x26ca   : > { %v7070_v54 = vmul.f32 %v8131_v63, %v7056_v34  ;;  %v7091_v49 = vsel %vm891_vm2, %v11623_v58, 0.0  ;;  %v9497_v63 = vld [vmem:[%s11813_s18 + $0x18] sm:$0xff]  }
0x26cb   : > { %7092 = vadd.xlane.f32.xlu1 %v7091_v49  ;;  %9333 = vmatpush3.bf16.msra.mxu0 %v9497_v63 }
0x26cc   : > { %v11635_v32 = vadd.f32 %v7070_v54, %v10909_v62  ;;  %v7118_v62 = vsel %vm891_vm2, %v7112_v43, 0.0  ;;  %9334 = vmatprep.subr.bf16.mxu0 %v9810_v1 }
0x26ce   : > { %v7094_v31 = vsel %vm891_vm2, %v11635_v32, 0.0 }
0x26cf   : > { %7098 = vadd.xlane.f32.xlu1 %v7097_v15  ;;  %7095 = vadd.xlane.f32.xlu0 %v7094_v31 }
0x26d0   : > { %9335 = vmatpush3.bf16.msra.mxu0 %v9499_v0 }
0x26d3   : > { %7122 = vadd.xlane.f32.xlu1 %v7121_v25  ;;  %7119 = vadd.xlane.f32.xlu0 %v7118_v62 }
0x26d7   : > { %7125 = vadd.xlane.f32.xlu0 %v7124_v35 }
0x2754   : > { %v7093_v12 = vpop.xlane.xlu1 %7092 }
0x2755   : > { %v7103_v45 = vmul.f32 0.03125, %v7093_v12 }
0x2757   : > { %v11667_v47 = vsub.f32 %v11623_v58, %v7103_v45 }
0x2758   : > { %v7099_v60 = vpop.xlane.xlu1 %7098  ;;  %v7096_v19 = vpop.xlane.xlu0 %7095 }
0x2759   : > { %v7105_v11 = vmul.f32 0.03125, %v7099_v60  ;;  %v7104_v59 = vmul.f32 0.03125, %v7096_v19  ;;  %v7115_v20 = vmul.f32 %v11667_v47, %v11667_v47 }
0x275b   : > { %v7111_v5 = vsub.f32 %v11632_v40, %v7105_v11  ;;  %v11673_v30 = vsub.f32 %v11635_v32, %v7104_v59  ;;  %v7127_v51 = vsel %vm891_vm2, %v7115_v20, 0.0 }
0x275c   : > { %7128 = vadd.xlane.f32.xlu1 %v7127_v51  ;;  %v7123_v10 = vpop.xlane.xlu1 %7122  ;;  %v7120_v38 = vpop.xlane.xlu0 %7119 }
0x275d   : > { %v7137_v29 = vmul.f32 0.03125, %v7123_v10  ;;  %v7136_v22 = vmul.f32 0.03125, %v7120_v38  ;;  %v7117_v24 = vmul.f32 %v7111_v5, %v7111_v5  ;;  %v7116_v18 = vmul.f32 %v11673_v30, %v11673_v30 }
0x275f   : > { %v7143_v28 = vadd.f32 1e-06, %v7137_v29  ;;  %v7142_v16 = vadd.f32 1e-06, %v7136_v22  ;;  %v7133_v48 = vsel %vm891_vm2, %v7117_v24, 0.0  ;;  %v7130_v9 = vsel %vm891_vm2, %v7116_v18, 0.0 }
0x2760   : > { %7134 = vadd.xlane.f32.xlu1 %v7133_v48  ;;  %7131 = vadd.xlane.f32.xlu0 %v7130_v9  ;;  %v7126_v50 = vpop.xlane.xlu0 %7125 }
0x2761   : > { %9754 = vrsqrt.f32 %v7143_v28  ;;  %v7138_v13 = vmul.f32 0.03125, %v7126_v50 }
0x2762   : > { %9756 = vrsqrt.f32 %v7142_v16 }
0x2763   : > { %v7144_v4 = vadd.f32 1e-06, %v7138_v13 }
0x2765   : > { %9758 = vrsqrt.f32 %v7144_v4 }
0x276e   : > { %v9755_v39 = vpop.eup %9754 }
0x276f   : > { %v9757_v56 = vpop.eup %9756  ;;  %v7155_v7 = vmul.f32 %v9755_v39, %v7107_v14 }
0x2770   : > { %v7154_v36 = vmul.f32 %v9757_v56, %v11626_v17 }
0x2771   : > { %v7167_v57 = vmul.f32 %v8134_v44, %v7155_v7 }
0x2772   : > { %v7166_v26 = vmul.f32 %v8134_v44, %v7154_v36  ;;  %v9759_v33 = vpop.eup %9758 }
0x2773   : > { %v7179_v21 = vadd.f32 %v8135_v53, %v7167_v57  ;;  %v7156_v25 = vmul.f32 %v9759_v33, %v11640_v42 }
0x2774   : > { %v7178_v46 = vadd.f32 %v8135_v53, %v7166_v26 }
0x2775   : > { %v7168_v35 = vmul.f32 %v8134_v44, %v7156_v25 }
0x2776   : > { %v7191_v55 = vpack.c.bf16 %v7179_v21, %v7178_v46 }
0x2777   : > { %v7180_v12 = vadd.f32 %v8135_v53, %v7168_v35 }
0x2778   : > { %9321 = vmatmul.mubr.msk.bf16.vlgmr.msra.gmra.mxu1 %vm891_vm2, %v7191_v55  ;;  %9337 = vmatmul.mubr.msk.bf16.vlgmr.msra.gmra.mxu0 %vm891_vm2, %v7191_v55 }
0x2779   : > { %9324 = vmatprep.mubr.msk.bf16.mxu1 %vm9811_vm0, %v9810_v1  ;;  %9340 = vmatprep.mubr.msk.bf16.mxu0 %vm9811_vm0, %v9810_v1 }
0x277a   : > { %9349 = vmatpush3.bf16.msra.mxu1 %v9500_v27 }
0x277b   : > { %9350 = vmatprep.subr.bf16.mxu1 %v9810_v1 }
0x277e   : > { %9351 = vmatpush3.bf16.msra.mxu1 %v9501_v2 }
0x27e5   : > { %v7129_v34 = vpop.xlane.xlu1 %7128 }
0x27e6   : > { %v7139_v17 = vmul.f32 0.03125, %v7129_v34 }
0x27e8   : > { %v7145_v61 = vadd.f32 1e-06, %v7139_v17 }
0x27e9   : > { %v7135_v14 = vpop.xlane.xlu1 %7134  ;;  %v7132_v54 = vpop.xlane.xlu0 %7131 }
0x27ea   : > { %9760 = vrsqrt.f32 %v7145_v61  ;;  %v7141_v49 = vmul.f32 0.03125, %v7135_v14  ;;  %v7140_v43 = vmul.f32 0.03125, %v7132_v54 }
0x27ec   : > { %v7147_v15 = vadd.f32 1e-06, %v7141_v49  ;;  %v7146_v31 = vadd.f32 1e-06, %v7140_v43 }
0x27ee   : > { %9762 = vrsqrt.f32 %v7147_v15 }
0x27ef   : > { %9764 = vrsqrt.f32 %v7146_v31 }
0x27f7   : > { %v9761_v62 = vpop.eup %9760 }
0x27f8   : > { %v7157_v3 = vmul.f32 %v9761_v62, %v11667_v47 }
0x27fa   : > { %v7169_v23 = vmul.f32 %v8134_v44, %v7157_v3 }
0x27fb   : > { %v9763_v63 = vpop.eup %9762 }
0x27fc   : > { %v9765_v52 = vpop.eup %9764  ;;  %v7159_v0 = vmul.f32 %v9763_v63, %v7111_v5  ;;  %v7181_v45 = vadd.f32 %v8135_v53, %v7169_v23  ;;  %v8141_v5 = vld [vmem:[%s11812_s17 + $0x1] ss:$0 sm:$0xff] }
0x27fd   : > { %v7158_v60 = vmul.f32 %v9765_v52, %v11673_v30 }
0x27fe   : > { %v7192_v19 = vpack.c.bf16 %v7181_v45, %v7180_v12  ;;  %v7171_v11 = vmul.f32 %v8134_v44, %v7159_v0 }
0x27ff   : > { %v7170_v59 = vmul.f32 %v8134_v44, %v7158_v60 }
0x2800   : > { %9325 = vmatmul.mubr.msk.bf16.gmra.mxu1 %vm891_vm2, %v7192_v19  ;;  %9341 = vmatmul.mubr.msk.bf16.gmra.mxu0 %vm891_vm2, %v7192_v19  ;;  %v7183_v47 = vadd.f32 %v8135_v53, %v7171_v11 }
0x2801   : > { %9328 = vmatprep.mubr.msk.bf16.mxu1 %vm9811_vm0, %v9810_v1  ;;  %9344 = vmatprep.mubr.msk.bf16.mxu0 %vm9811_vm0, %v9810_v1  ;;  %v7182_v42 = vadd.f32 %v8135_v53, %v7170_v59  ;;  %v11719_v53 = vld [vmem:[%s11814_s19 + $0x1] ss:$0 sm:$0xff] }
0x2803   : > { %v7193_v20 = vpack.c.bf16 %v7183_v47, %v7182_v42 }
0x2808   : > { %9329 = vmatmul.mubr.msk.bf16.gmra.mxu1 %vm891_vm2, %v7193_v20  ;;  %9345 = vmatmul.mubr.msk.bf16.gmra.mxu0 %vm891_vm2, %v7193_v20 }
0x2809   : > { %9352 = vmatprep.mubr.msk.bf16.mxu1 %vm9811_vm0, %v9810_v1 }
0x2838   : > { %v7255_v30 = vpop.f32.mrf.mxu1  ;;  %v7337_v51 = vpop.f32.mrf.mxu0 }
0x2839   : > { %v7256_v10 = vadd.f32 %v8141_v5, %v7255_v30  ;;  %v7338_v21 = vadd.f32 %v11719_v53, %v7337_v51 }
0x283a   : > { %v9322_v38 = vpop.f32.mrf.mxu1  ;;  %v9338_v29 = vpop.f32.mrf.mxu0 }
0x283b   : > { %v8158_v22 = vmul.f32 -1.442695, %v7256_v10 }
0x283c   : > { %v7258_v24 = vpop.f32.mrf.mxu1  ;;  %v7340_v18 = vpop.f32.mrf.mxu0 }
0x283d   : > { %9766 = vpow2.f32 %v8158_v22  ;;  %v7259_v28 = vadd.f32 %v8141_v5, %v7258_v24  ;;  %v7341_v55 = vadd.f32 %v11719_v53, %v7340_v18 }
0x283e   : > { %v9323_v16 = vpop.f32.mrf.mxu1  ;;  %v9339_v48 = vpop.f32.mrf.mxu0 }
0x283f   : > { %v8159_v9 = vmul.f32 -1.442695, %v7259_v28 }
0x2841   : > { %9768 = vpow2.f32 %v8159_v9 }
0x284a   : > { %v9767_v39 = vpop.eup %9766 }
0x284b   : > { %v7378_v44 = vadd.f32 1.0, %v9767_v39 }
0x284d   : > { %9770 = vrcp.f32 %v7378_v44 }
0x284e   : > { %v9769_v56 = vpop.eup %9768 }
0x284f   : > { %v7379_v7 = vadd.f32 1.0, %v9769_v56 }
0x2851   : > { %9772 = vrcp.f32 %v7379_v7 }
0x285a   : > { %v9771_v36 = vpop.eup %9770 }
0x285b   : > { %v7396_v57 = vmul.f32 %v9771_v36, %v7256_v10 }
0x285d   : > { %v7402_v50 = vmul.f32 %v7396_v57, %v7338_v21 }
0x285e   : > { %v9773_v26 = vpop.eup %9772 }
0x285f   : > { %v7397_v46 = vmul.f32 %v9773_v26, %v7259_v28 }
0x2861   : > { %v7403_v13 = vmul.f32 %v7397_v46, %v7341_v55  ;;  %v8169_v46 = vld [vmem:[%s11816_s21 + $0x1] ss:$0 sm:$0xff] }
0x2863   : > { %v7415_v27 = vpack.c.bf16 %v7403_v13, %v7402_v50  ;;  %v8176_v50 = vld [vmem:[%s11817_s22 + $0x1] ss:$0 sm:$0xff] }
0x2865   : > { %9353 = vmatmul.mubr.msk.bf16.vlgmr.msra.gmra.mxu1 %vm891_vm2, %v7415_v27 }
0x2866   : > { %9356 = vmatprep.mubr.msk.bf16.mxu1 %vm9811_vm0, %v9810_v1 }
0x28c0   : > { %v7263_v4 = vpop.f32.mrf.mxu1  ;;  %v7345_v2 = vpop.f32.mrf.mxu0 }
0x28c1   : > { %v7264_v34 = vadd.f32 %v8141_v5, %v7263_v4 }
0x28c2   : > { %v9326_v17 = vpop.f32.mrf.mxu1  ;;  %v9342_v61 = vpop.f32.mrf.mxu0 }
0x28c3   : > { %v8160_v14 = vmul.f32 -1.442695, %v7264_v34 }
0x28c4   : > { %v7266_v54 = vpop.f32.mrf.mxu1  ;;  %v7348_v49 = vpop.f32.mrf.mxu0 }
0x28c5   : > { %9774 = vpow2.f32 %v8160_v14  ;;  %v7267_v43 = vadd.f32 %v8141_v5, %v7266_v54  ;;  %v7349_v18 = vadd.f32 %v11719_v53, %v7348_v49 }
0x28c6   : > { %v9327_v15 = vpop.f32.mrf.mxu1  ;;  %v9343_v31 = vpop.f32.mrf.mxu0 }
0x28c7   : > { %v8161_v33 = vmul.f32 -1.442695, %v7267_v43 }
0x28c8   : > { %v7271_v25 = vpop.f32.mrf.mxu1  ;;  %v7353_v62 = vpop.f32.mrf.mxu0 }
0x28c9   : > { %9776 = vpow2.f32 %v8161_v33  ;;  %v7272_v3 = vadd.f32 %v8141_v5, %v7271_v25  ;;  %v7354_v56 = vadd.f32 %v11719_v53, %v7353_v62 }
0x28ca   : > { %v9330_v35 = vpop.f32.mrf.mxu1  ;;  %v9346_v23 = vpop.f32.mrf.mxu0 }
0x28cb   : > { %v8162_v63 = vmul.f32 -1.442695, %v7272_v3 }
0x28cc   : > { %v7274_v52 = vpop.f32.mrf.mxu1  ;;  %v7356_v0 = vpop.f32.mrf.mxu0 }
0x28cd   : > { %9778 = vpow2.f32 %v8162_v63  ;;  %v7275_v12 = vadd.f32 %v8141_v5, %v7274_v52  ;;  %v7346_v5 = vadd.f32 %v11719_v53, %v7345_v2  ;;  %v7357_v36 = vadd.f32 %v11719_v53, %v7356_v0 }
0x28ce   : > { %v9331_v45 = vpop.f32.mrf.mxu1  ;;  %v9347_v60 = vpop.f32.mrf.mxu0 }
0x28cf   : > { %v8163_v19 = vmul.f32 -1.442695, %v7275_v12 }
0x28d1   : > { %9780 = vpow2.f32 %v8163_v19 }
0x28d2   : > { %v9775_v11 = vpop.eup %9774 }
0x28d3   : > { %v7380_v59 = vadd.f32 1.0, %v9775_v11 }
0x28d5   : > { %9782 = vrcp.f32 %v7380_v59 }
0x28d6   : > { %v9777_v42 = vpop.eup %9776 }
0x28d7   : > { %v7381_v47 = vadd.f32 1.0, %v9777_v42 }
0x28d9   : > { %9784 = vrcp.f32 %v7381_v47 }
0x28da   : > { %v9779_v20 = vpop.eup %9778 }
0x28db   : > { %v7382_v30 = vadd.f32 1.0, %v9779_v20 }
0x28dd   : > { %9786 = vrcp.f32 %v7382_v30 }
0x28de   : > { %v9781_v51 = vpop.eup %9780 }
0x28df   : > { %v7383_v10 = vadd.f32 1.0, %v9781_v51 }
0x28e1   : > { %9788 = vrcp.f32 %v7383_v10 }
0x28e2   : > { %v9783_v38 = vpop.eup %9782 }
0x28e3   : > { %v7398_v29 = vmul.f32 %v9783_v38, %v7264_v34 }
0x28e5   : > { %v7404_v28 = vmul.f32 %v7398_v29, %v7346_v5 }
0x28e6   : > { %v9785_v22 = vpop.eup %9784 }
0x28e7   : > { %v7399_v24 = vmul.f32 %v9785_v22, %v7267_v43 }
0x28e9   : > { %v7405_v16 = vmul.f32 %v7399_v24, %v7349_v18 }
0x28ea   : > { %v9787_v48 = vpop.eup %9786 }
0x28eb   : > { %v7416_v9 = vpack.c.bf16 %v7405_v16, %v7404_v28  ;;  %v7400_v39 = vmul.f32 %v9787_v48, %v7272_v3 }
0x28ed   : > { %9357 = vmatmul.mubr.msk.bf16.gmra.mxu1 %vm891_vm2, %v7416_v9  ;;  %v7406_v57 = vmul.f32 %v7400_v39, %v7354_v56 }
0x28ee   : > { %v9789_v44 = vpop.eup %9788  ;;  %9360 = vmatprep.mubr.msk.bf16.mxu1 %vm9811_vm0, %v9810_v1 }
0x28ef   : > { %v7401_v7 = vmul.f32 %v9789_v44, %v7275_v12 }
0x28f1   : > { %v7407_v26 = vmul.f32 %v7401_v7, %v7357_v36 }
0x28f3   : > { %v7417_v21 = vpack.c.bf16 %v7407_v26, %v7406_v57 }
0x28f5   : > { %9361 = vmatmul.mubr.msk.bf16.gmra.mxu1 %vm891_vm2, %v7417_v21 }
0x2925   : > { %v7479_v55 = vpop.f32.mrf.mxu1 }
0x2926   : > { %v7480_v13 = vadd.f32 %v8169_v46, %v7479_v55 }
0x2927   : > { %v9354_v27 = vpop.f32.mrf.mxu1 }
0x2928   : > { %v7510_v4 = vmul.f32 %v8176_v50, %v7480_v13 }
0x2929   : > { %v7482_v2 = vpop.f32.mrf.mxu1 }
0x292a   : > { %v7483_v34 = vadd.f32 %v8169_v46, %v7482_v2  ;;  %v7516_v53 = vadd.f32 %v7510_v4, %v11601_v41 }
0x292b   : > { %v9355_v17 = vpop.f32.mrf.mxu1 }
0x292c   : > { %v7511_v61 = vmul.f32 %v8176_v50, %v7483_v34  ;;  %v7524_v14 = vsel %vm891_vm2, %v7516_v53, 0.0 }
0x292d   : > { %7525 = vadd.xlane.f32.xlu0 %v7524_v14 }
0x292e   : > { %v7517_v54 = vadd.f32 %v7511_v61, %v11609_v37 }
0x2930   : > { %v7527_v49 = vsel %vm891_vm2, %v7517_v54, 0.0 }
0x2931   : > { %7528 = vadd.xlane.f32.xlu1 %v7527_v49 }
0x29ad   : > { %v7487_v43 = vpop.f32.mrf.mxu1 }
0x29ae   : > { %v7488_v15 = vadd.f32 %v8169_v46, %v7487_v43 }
0x29af   : > { %v9358_v31 = vpop.f32.mrf.mxu1 }
0x29b0   : > { %v7512_v33 = vmul.f32 %v8176_v50, %v7488_v15 }
0x29b1   : > { %v7490_v25 = vpop.f32.mrf.mxu1 }
0x29b2   : > { %v7491_v62 = vadd.f32 %v8169_v46, %v7490_v25  ;;  %v7518_v3 = vadd.f32 %v7512_v33, %v11606_v6 }
0x29b3   : > { %v9359_v35 = vpop.f32.mrf.mxu1 }
0x29b4   : > { %v7513_v41 = vmul.f32 %v8176_v50, %v7491_v62  ;;  %v7530_v23 = vsel %vm891_vm2, %v7518_v3, 0.0 }
0x29b5   : > { %7531 = vadd.xlane.f32.xlu0 %v7530_v23  ;;  %v7495_v63 = vpop.f32.mrf.mxu1  ;;  %v774_v23 = vshrl.u32 %v769_v8, 7  ;;  %v8178_v8 = vld [vmem:[%s11819_s24] ss:$0 sm:$0xff] }
0x29b6   : > { %v7526_v52 = vpop.xlane.xlu0 %7525  ;;  %v7496_v0 = vadd.f32 %v8169_v46, %v7495_v63  ;;  %v7519_v37 = vadd.f32 %v7513_v41, %v11623_v58 }
0x29b7   : > { %v7542_v12 = vmul.f32 0.03125, %v7526_v52  ;;  %v9362_v45 = vpop.f32.mrf.mxu1 }
0x29b8   : > { %v7514_v60 = vmul.f32 %v8176_v50, %v7496_v0  ;;  %v7533_v19 = vsel %vm891_vm2, %v7519_v37, 0.0 }
0x29b9   : > { %v11748_v11 = vsub.f32 %v7516_v53, %v7542_v12  ;;  %7534 = vadd.xlane.f32.xlu1 %v7533_v19  ;;  %v7498_v59 = vpop.f32.mrf.mxu1  ;;  %v8177_v12 = vld [vmem:[%s11818_s23] ss:$0 sm:$0xff] }
0x29ba   : > { %v7529_v6 = vpop.xlane.xlu1 %7528  ;;  %v7499_v42 = vadd.f32 %v8169_v46, %v7498_v59  ;;  %v7520_v47 = vadd.f32 %v7514_v60, %v11635_v32  ;;  %v776_v60 = vadd.s32 16, %v774_v23 }
0x29bb   : > { %v7543_v20 = vmul.f32 0.03125, %v7529_v6  ;;  %v9363_v30 = vpop.f32.mrf.mxu1  ;;  %v7554_v58 = vmul.f32 %v11748_v11, %v11748_v11 }
0x29bc   : > { %v7515_v51 = vmul.f32 %v8176_v50, %v7499_v42  ;;  %v7536_v10 = vsel %vm891_vm2, %v7520_v47, 0.0  ;;  %vm779_vm7 = vcmp.lt.s32.totalorder %v776_v60, 17 }
0x29bd   : > { %v7549_v38 = vsub.f32 %v7517_v54, %v7543_v20  ;;  %7537 = vadd.xlane.f32.xlu0 %v7536_v10  ;;  %v7560_v22 = vsel %vm891_vm2, %v7554_v58, 0.0 }
0x29be   : > { %v7521_v29 = vadd.f32 %v7515_v51, %v11632_v40  ;;  %v782_v51 = vsel %vm779_vm7, 1.0, %v9810_v1 }
0x29bf   : > { %v7555_v24 = vmul.f32 %v7549_v38, %v7549_v38 }
0x29c0   : > { %v7539_v5 = vsel %vm891_vm2, %v7521_v29, 0.0 }
0x29c1   : > { %7561 = vadd.xlane.f32.xlu0 %v7560_v22  ;;  %7540 = vadd.xlane.f32.xlu1 %v7539_v5  ;;  %v7563_v32 = vsel %vm891_vm2, %v7555_v24, 0.0 }
0x29c5   : > { %7564 = vadd.xlane.f32.xlu1 %v7563_v32 }
0x2a3e   : > { %v7532_v18 = vpop.xlane.xlu0 %7531 }
0x2a3f   : > { %v7544_v28 = vmul.f32 0.03125, %v7532_v18 }
0x2a41   : > { %v7550_v16 = vsub.f32 %v7518_v3, %v7544_v28 }
0x2a42   : > { %v7535_v48 = vpop.xlane.xlu1 %7534 }
0x2a43   : > { %v7545_v9 = vmul.f32 0.03125, %v7535_v48  ;;  %v7556_v39 = vmul.f32 %v7550_v16, %v7550_v16 }
0x2a45   : > { %v11758_v44 = vsub.f32 %v7519_v37, %v7545_v9  ;;  %v7566_v40 = vsel %vm891_vm2, %v7556_v39, 0.0 }
0x2a46   : > { %7567 = vadd.xlane.f32.xlu0 %v7566_v40  ;;  %v7538_v56 = vpop.xlane.xlu0 %7537 }
0x2a47   : > { %v7546_v7 = vmul.f32 0.03125, %v7538_v56  ;;  %v7557_v36 = vmul.f32 %v11758_v44, %v11758_v44 }
0x2a49   : > { %v7552_v57 = vsub.f32 %v7520_v47, %v7546_v7  ;;  %v7569_v26 = vsel %vm891_vm2, %v7557_v36, 0.0 }
0x2a4a   : > { %7570 = vadd.xlane.f32.xlu1 %v7569_v26  ;;  %v7541_v21 = vpop.xlane.xlu1 %7540  ;;  %v7562_v34 = vpop.xlane.xlu0 %7561 }
0x2a4b   : > { %v7547_v46 = vmul.f32 0.03125, %v7541_v21  ;;  %v7558_v55 = vmul.f32 %v7552_v57, %v7552_v57  ;;  %v7578_v17 = vmul.f32 0.03125, %v7562_v34 }
0x2a4d   : > { %v11764_v50 = vsub.f32 %v7521_v29, %v7547_v46  ;;  %v7572_v13 = vsel %vm891_vm2, %v7558_v55, 0.0  ;;  %v7584_v14 = vadd.f32 1e-06, %v7578_v17 }
0x2a4e   : > { %7573 = vadd.xlane.f32.xlu0 %v7572_v13  ;;  %v7565_v2 = vpop.xlane.xlu1 %7564 }
0x2a4f   : > { %v7559_v27 = vmul.f32 %v11764_v50, %v11764_v50  ;;  %v7579_v53 = vmul.f32 0.03125, %v7565_v2 }
0x2a51   : > { %v7575_v4 = vsel %vm891_vm2, %v7559_v27, 0.0  ;;  %v7585_v61 = vadd.f32 1e-06, %v7579_v53 }
0x2a52   : > { %7576 = vadd.xlane.f32.xlu1 %v7575_v4 }
0x2a53   : > { %9790 = vrsqrt.f32 %v7585_v61 }
0x2a54   : > { %9792 = vrsqrt.f32 %v7584_v14 }
0x2a60   : > { %v9791_v25 = vpop.eup %9790 }
0x2a61   : > { %v9793_v35 = vpop.eup %9792  ;;  %v7597_v41 = vmul.f32 %v9791_v25, %v7549_v38 }
0x2a62   : > { %v7596_v0 = vmul.f32 %v9793_v35, %v11748_v11 }
0x2a63   : > { %v7609_v45 = vmul.f32 %v8177_v12, %v7597_v41 }
0x2a64   : > { %v7608_v59 = vmul.f32 %v8177_v12, %v7596_v0 }
0x2a65   : > { %v7621_v42 = vadd.f32 %v8178_v8, %v7609_v45 }
0x2a66   : > { %v7620_v11 = vadd.f32 %v8178_v8, %v7608_v59 }
0x2a67   : > { %v7630_v10 = vsel %vm891_vm2, %v7621_v42, 0.0 }
0x2a68   : > { %v7629_v38 = vsel %vm891_vm2, %v7620_v11, 0.0 }
0x2a69   : > { %v7631_v24 = vadd.f32 %v7630_v10, %v7629_v38 }
0x2acf   : > { %v7568_v54 = vpop.xlane.xlu0 %7567 }
0x2ad0   : > { %v7580_v49 = vmul.f32 0.03125, %v7568_v54 }
0x2ad2   : > { %v7586_v43 = vadd.f32 1e-06, %v7580_v49 }
0x2ad3   : > { %v7571_v15 = vpop.xlane.xlu1 %7570 }
0x2ad4   : > { %9794 = vrsqrt.f32 %v7586_v43  ;;  %v7581_v31 = vmul.f32 0.03125, %v7571_v15 }
0x2ad6   : > { %v7587_v33 = vadd.f32 1e-06, %v7581_v31 }
0x2ad7   : > { %v7574_v62 = vpop.xlane.xlu0 %7573 }
0x2ad8   : > { %9796 = vrsqrt.f32 %v7587_v33  ;;  %v7582_v3 = vmul.f32 0.03125, %v7574_v62 }
0x2ada   : > { %v7588_v63 = vadd.f32 1e-06, %v7582_v3 }
0x2adb   : > { %v7577_v52 = vpop.xlane.xlu1 %7576 }
0x2adc   : > { %9798 = vrsqrt.f32 %v7588_v63  ;;  %v7583_v37 = vmul.f32 0.03125, %v7577_v52 }
0x2ade   : > { %v7589_v19 = vadd.f32 1e-06, %v7583_v37 }
0x2ae0   : > { %9800 = vrsqrt.f32 %v7589_v19 }
0x2ae1   : > { %v9795_v6 = vpop.eup %9794 }
0x2ae2   : > { %v7598_v47 = vmul.f32 %v9795_v6, %v7550_v16 }
0x2ae4   : > { %v7610_v20 = vmul.f32 %v8177_v12, %v7598_v47 }
0x2ae5   : > { %v9797_v30 = vpop.eup %9796 }
0x2ae6   : > { %v7622_v58 = vadd.f32 %v8178_v8, %v7610_v20  ;;  %v7599_v22 = vmul.f32 %v9797_v30, %v11758_v44 }
0x2ae8   : > { %v7628_v29 = vmul.f32 %v7622_v58, %v782_v51  ;;  %v7611_v16 = vmul.f32 %v8177_v12, %v7599_v22 }
0x2ae9   : > { %v9799_v5 = vpop.eup %9798 }
0x2aea   : > { %v7632_v32 = vsel %vm891_vm2, %v7628_v29, 0.0  ;;  %v7600_v18 = vmul.f32 %v9799_v5, %v7552_v57  ;;  %v7623_v7 = vadd.f32 %v8178_v8, %v7611_v16 }
0x2aeb   : > { %v7633_v28 = vadd.f32 %v7632_v32, %v7631_v24 }
0x2aec   : > { %v7612_v48 = vmul.f32 %v8177_v12, %v7600_v18  ;;  %v7652_v57 = vsel %vm891_vm2, %v7623_v7, 0.0 }
0x2aed   : > { %v9801_v9 = vpop.eup %9800  ;;  %v7634_v39 = vrot.slane %v7633_v28, 4 }
0x2aee   : > { %v7624_v1 = vadd.f32 %v8178_v8, %v7612_v48  ;;  %v7601_v40 = vmul.f32 %v9801_v9, %v11764_v50 }
0x2aef   : > { %v7635_v56 = vadd.f32 %v7634_v39, %v7633_v28 }
0x2af0   : > { %v7613_v36 = vmul.f32 %v8177_v12, %v7601_v40  ;;  %v7653_v44 = vsel %vm891_vm2, %v7624_v1, 0.0 }
0x2af1   : > { %v7636_v26 = vrot.slane %v7635_v56, 2  ;;  %v7654_v27 = vadd.f32 %v7653_v44, %v7652_v57 }
0x2af2   : > { %v7625_v21 = vadd.f32 %v8178_v8, %v7613_v36 }
0x2af3   : > { %v7637_v46 = vadd.f32 %v7636_v26, %v7635_v56 }
0x2af4   : > { %v7651_v55 = vmul.f32 %v7625_v21, %v782_v51 }
0x2af5   : > { %v7638_v13 = vrot.slane %v7637_v46, 1 }
0x2af6   : > { %v7655_v4 = vsel %vm891_vm2, %v7651_v55, 0.0 }
0x2af7   : > { %v7639_v50 = vadd.f32 %v7638_v13, %v7637_v46  ;;  %v7656_v2 = vadd.f32 %v7655_v4, %v7654_v27 }
0x2af9   : > { %v7640_v34 = vsub.f32 %v7639_v50, %v7620_v11  ;;  %v7657_v53 = vrot.slane %v7656_v2, 4 }
0x2afb   : > { %v7641_v17 = vmul.f32 0.0625, %v7640_v34  ;;  %v7658_v61 = vadd.f32 %v7657_v53, %v7656_v2 }
0x2afd   : > { %v7643_v14 = vrot.slane %v7641_v17, 7  ;;  %v7659_v54 = vrot.slane %v7658_v61, 2 }
0x2aff   : > { %v7646_v49 = vsel %vm7645_vm8, %v7620_v11, %v7643_v14  ;;  %v7660_v43 = vadd.f32 %v7659_v54, %v7658_v61 }
0x2b00   : > { %7648 = vst.msk [vmem:[%s766_s30] sm:$0x3] %vm7647_vm9, %v7646_v49 }
0x2b01   : > { %v7661_v15 = vrot.slane %v7660_v43, 1 }
0x2b03   : > { %v7662_v31 = vadd.f32 %v7661_v15, %v7660_v43 }
0x2b05   : > { %v7663_v33 = vsub.f32 %v7662_v31, %v7623_v7 }
0x2b07   : > { %v7664_v25 = vmul.f32 0.0625, %v7663_v33 }
0x2b09   : > { %v7666_v62 = vrot.slane %v7664_v25, 7 }
0x2b0b   : > { %v7668_v3 = vsel %vm7645_vm8, %v7623_v7, %v7666_v62 }
0x2b0c   : > { %8179 = vst.msk [vmem:[%s766_s30 + $0x2] sm:$0x3] %vm7647_vm9, %v7668_v3 }
0x2b0d PF: > { %s35_s29 = sadd.s32 1, %s9808_s29  }
0x2b0e   : > { %p32_p5 = scmp.ge.s32.totalorder %s35_s29, 4  }
0x2b10   :  { %34 = sbr.rel (!%p32_p5) target bundleno = 12 (0xc), region = 213 }

</bundles_post_ra>
